<compile_context>
chip_gen: v7x
topology: tpu7x:2x2x1
jax: 0.10.0
libtpu: 0.0.40
codegen_flags: <defaults>
</compile_context>

<pallas_src>
import math
from functools import partial

import jax
import jax.numpy as jnp
from jax.experimental import pallas as pl
from jax.experimental.pallas import tpu as pltpu

_BN_EPS = 1e-5


def _round_up(v, m):
    return ((v + m - 1) // m) * m


# ------------------------------ fused kernel --------------------------------

def _basic_block_kernel(x_ref, w1_ref, shift1_ref, w2_ref, shift2_ref, o_ref,
                        pad1_ref, pad2_ref, lhs_ref, h2_ref, *, H, W, Wp, C):
    """Fused BasicBlock on one NHWC image.

    x_ref      : (1, H, W, C)   f32   input image (also the identity residual)
    w1_ref     : (3, 3*C, C)    bf16  conv1 weights, BN1 scale folded in
    shift1_ref : (1, C)         f32   BN1 shift
    w2_ref     : (3, 3*C, C)    bf16  conv2 weights, BN2 scale folded in
    shift2_ref : (1, C)         f32   BN2 shift
    o_ref      : (1, H, W, C)   f32   block output
    pad1_ref   : (Hp*Wp, C)     bf16  zero-padded conv1 input      (scratch)
    pad2_ref   : (Hp*Wp, C)     bf16  zero-padded conv2 input      (scratch)
    lhs_ref    : (H*Wp, 3*C)    bf16  K=3*C LHS assembly buffer    (scratch)
    h2_ref     : (H*Wp, C)      f32   conv2 + BN2 result           (scratch)
    """
    rows = H * Wp

    # -- stage 0: zero-padded bf16 copy of the input (cast exactly once) -----
    pad1_ref[...] = jnp.zeros_like(pad1_ref)
    for y in range(H):
        pad1_ref[pl.ds((y + 1) * Wp + 1, W), :] = (
            x_ref[0, y, :, :].astype(pad1_ref.dtype))

    # -- 3x3 conv (pad=1, stride 1) as 3 MXU dots with K = 3*C ----------------
    # Output flat index j = y*Wp + x; tap (ky, kx) lives at src[j + ky*Wp + kx].
    def conv3x3(src_ref, w_ref):
        acc = None
        for ky in range(3):
            base = ky * Wp                       # multiple of 8 -> aligned
            for kx in range(3):
                lhs_ref[:, kx * C:(kx + 1) * C] = (
                    src_ref[pl.ds(base + kx, rows), :])
            d = jnp.dot(lhs_ref[...], w_ref[ky],
                        preferred_element_type=jnp.float32)
            acc = d if acc is None else acc + d
        return acc                               # (rows, C) f32

    # -- conv1 + BN1 shift + ReLU -> padded bf16 intermediate (stays in VMEM) -
    h1 = jnp.maximum(conv3x3(pad1_ref, w1_ref) + shift1_ref[...], 0.0)
    pad2_ref[...] = jnp.zeros_like(pad2_ref)
    pad2_ref[pl.ds(Wp + 1, rows), :] = h1.astype(pad2_ref.dtype)
    # Re-zero the (Wp - W) garbage columns of every written row: they are
    # exactly the left/right zero padding conv2's taps will read.
    zrow = jnp.zeros((Wp - W, C), pad2_ref.dtype)
    for y in range(H):
        pad2_ref[pl.ds((y + 1) * Wp + W + 1, Wp - W), :] = zrow

    # -- conv2 + BN2 shift -----------------------------------------------------
    h2_ref[...] = conv3x3(pad2_ref, w2_ref) + shift2_ref[...]

    # -- + residual (f32, from the resident input block) + ReLU; store only
    #    the W valid columns of each row (no wrapper-side slice pass). --------
    for y in range(H):
        row = h2_ref[pl.ds(y * Wp, W), :] + x_ref[0, y, :, :]
        o_ref[0, y, :, :] = jnp.maximum(row, 0.0).astype(o_ref.dtype)


# ------------------------------ module glue ----------------------------------

def _fold_bn(bn):
    # TODO(synk): eval-mode BatchNorm only (running stats folded to
    # scale/shift); training-mode batch statistics are not computed.
    scale = bn["gamma"] / jnp.sqrt(bn["var"] + _BN_EPS)
    shift = bn["beta"] - bn["mean"] * scale
    return scale, shift


def basic_block_forward(params, x_nchw):
    """BasicBlock forward (NCHW in/out, stride=1, downsample=None)."""
    # TODO(synk): stride>1 and a downsample branch are not implemented; the
    # identity-residual default config (stride=1, inplanes==planes) only.
    # TODO(synk): drop these two transposes (full HBM passes each) if the
    # surrounding model can stay NHWC end-to-end.
    x = jnp.transpose(x_nchw, (0, 2, 3, 1))          # NCHW -> NHWC
    N, H, W, C = x.shape
    assert params["conv1_w"].shape == (3, 3, C, C), (
        "identity residual (downsample=None) needs inplanes == planes")

    Wp = _round_up(W + 2, 8)      # padded/output row pitch, sublane aligned
    Hp = H + 3                    # 1 top pad row + tap-offset slack at bottom
    rows = H * Wp

    s1, b1 = _fold_bn(params["bn1"])
    s2, b2 = _fold_bn(params["bn2"])
    # Fold BN scale into the f32 weights, then cast once to bf16; reshape
    # HWIO (3,3,C,C) -> (3, 3*C, C) so each ky row is one K=3*C MXU operand.
    w1 = (params["conv1_w"] * s1).reshape(3, 3 * C, C).astype(jnp.bfloat16)
    w2 = (params["conv2_w"] * s2).reshape(3, 3 * C, C).astype(jnp.bfloat16)
    shift1 = b1.reshape(1, C).astype(jnp.float32)
    shift2 = b2.reshape(1, C).astype(jnp.float32)

    out = pl.pallas_call(
        partial(_basic_block_kernel, H=H, W=W, Wp=Wp, C=C),
        out_shape=jax.ShapeDtypeStruct((N, H, W, C), jnp.float32),
        grid_spec=pltpu.PrefetchScalarGridSpec(
            num_scalar_prefetch=0,
            # TODO(synk): add a row-tile grid axis (halo of 2 intermediate
            # rows) for large H*W to restore deep pipelining / VMEM headroom.
            grid=(N,),
            in_specs=[
                pl.BlockSpec((1, H, W, C), lambda n: (n, 0, 0, 0)),
                pl.BlockSpec((3, 3 * C, C), lambda n: (0, 0, 0)),
                pl.BlockSpec((1, C), lambda n: (0, 0)),
                pl.BlockSpec((3, 3 * C, C), lambda n: (0, 0, 0)),
                pl.BlockSpec((1, C), lambda n: (0, 0)),
            ],
            out_specs=pl.BlockSpec((1, H, W, C), lambda n: (n, 0, 0, 0)),
            scratch_shapes=[
                pltpu.VMEM((Hp * Wp, C), jnp.bfloat16),   # padded conv1 input
                pltpu.VMEM((Hp * Wp, C), jnp.bfloat16),   # padded conv2 input
                pltpu.VMEM((rows, 3 * C), jnp.bfloat16),  # K=3*C LHS assembly
                pltpu.VMEM((rows, C), jnp.float32),       # conv2+BN2 result
            ],
        ),
        # TODO(synk): on v7x switch to pltpu.CORE_PARALLEL once a row-tile
        # axis guarantees both TensorCores have work even at batch 1.
        compiler_params=pltpu.CompilerParams(
            dimension_semantics=("parallel",)),
    )(x, w1, shift1, w2, shift2)

    return jnp.transpose(out, (0, 3, 1, 2))           # NHWC -> NCHW


def init_basic_block_params(key, inplanes, planes):
    ks = jax.random.split(key, 4)

    def conv_w(k, cin, cout):
        bound = math.sqrt(6.0 / (9 * cin))
        return jax.random.uniform(k, (3, 3, cin, cout), jnp.float32,
                                  -bound, bound)

    def bn(k, c):
        k1, k2, k3, k4 = jax.random.split(k, 4)
        return {"gamma": 1.0 + 0.1 * jax.random.normal(k1, (c,), jnp.float32),
                "beta": 0.1 * jax.random.normal(k2, (c,), jnp.float32),
                "mean": 0.1 * jax.random.normal(k3, (c,), jnp.float32),
                "var": jax.random.uniform(k4, (c,), jnp.float32, 0.5, 1.5)}

    return {"conv1_w": conv_w(ks[0], inplanes, planes),
            "bn1": bn(ks[1], planes),
            "conv2_w": conv_w(ks[2], planes, planes),
            "bn2": bn(ks[3], planes)}


def reference_basic_block(params, x_nchw):
    """Pure-XLA f32 reference for a numerical sanity check."""
    x = jnp.transpose(x_nchw, (0, 2, 3, 1))
    dn = ("NHWC", "HWIO", "NHWC")
    s1, b1 = _fold_bn(params["bn1"])
    s2, b2 = _fold_bn(params["bn2"])
    h = jax.lax.conv_general_dilated(
        x, params["conv1_w"], (1, 1), ((1, 1), (1, 1)),
        dimension_numbers=dn, precision=jax.lax.Precision.HIGHEST)
    h = jnp.maximum(h * s1 + b1, 0.0)
    h = jax.lax.conv_general_dilated(
        h, params["conv2_w"], (1, 1), ((1, 1), (1, 1)),
        dimension_numbers=dn, precision=jax.lax.Precision.HIGHEST)
    h = jnp.maximum(h * s2 + b2 + x, 0.0)
    return jnp.transpose(h, (0, 3, 1, 2))


if __name__ == "__main__":
    key = jax.random.PRNGKey(0)
    pkey, xkey = jax.random.split(key)
    N, C, H, W = 2, 64, 16, 16            # inplanes == planes == 64, stride=1
    params = init_basic_block_params(pkey, C, C)
    x = jax.random.normal(xkey, (N, C, H, W), jnp.float32)

    fwd = jax.jit(basic_block_forward)
    y = jax.block_until_ready(fwd(params, x))

    assert y.shape == (N, C, H, W) and y.dtype == jnp.float32
    assert bool(jnp.all(jnp.isfinite(y))) and bool(jnp.all(y >= 0.0))

    # Loose check vs f32 XLA reference (kernel uses bf16 MXU operands).
    y_ref = reference_basic_block(params, x)
    err = float(jnp.max(jnp.abs(y - y_ref)))
    tol = 5e-2 * (float(jnp.max(jnp.abs(y_ref))) + 1e-6)
    assert err <= tol, f"max abs err {err} exceeds tol {tol}"

    print("KERNEL_OK")
</pallas_src>

<mosaic_0001>
module attributes {stable_mosaic.version = 11 : i64} {
  func.func @_basic_block_kernel(%arg0: i32, %arg1: memref<1x16x16x64xf32, #tpu.memory_space<vmem>>, %arg2: memref<3x192x64xbf16, #tpu.memory_space<vmem>>, %arg3: memref<1x64xf32, #tpu.memory_space<vmem>>, %arg4: memref<3x192x64xbf16, #tpu.memory_space<vmem>>, %arg5: memref<1x64xf32, #tpu.memory_space<vmem>>, %arg6: memref<1x16x16x64xf32, #tpu.memory_space<vmem>>, %arg7: memref<456x64xbf16, #tpu.memory_space<vmem>>, %arg8: memref<456x64xbf16, #tpu.memory_space<vmem>>, %arg9: memref<384x192xbf16, #tpu.memory_space<vmem>>, %arg10: memref<384x64xf32, #tpu.memory_space<vmem>>) attributes {dimension_semantics = [#tpu.dimension_semantics<parallel>], iteration_bounds = array<i64: 2>, scalar_prefetch = 0 : i64, scratch_operands = 4 : i64, tpu.core_type = #tpu.core_type<tc>, window_params = [{transform_indices = @transform_0, window_bounds = array<i64: 1, 16, 16, 64>}, {pipeline_mode = #tpu.pipeline_mode<synchronous>, transform_indices = @transform_1, window_bounds = array<i64: 3, 192, 64>}, {pipeline_mode = #tpu.pipeline_mode<synchronous>, transform_indices = @transform_2, window_bounds = array<i64: 1, 64>}, {pipeline_mode = #tpu.pipeline_mode<synchronous>, transform_indices = @transform_3, window_bounds = array<i64: 3, 192, 64>}, {pipeline_mode = #tpu.pipeline_mode<synchronous>, transform_indices = @transform_4, window_bounds = array<i64: 1, 64>}, {transform_indices = @transform_5, window_bounds = array<i64: 1, 16, 16, 64>}]} {
    %cst = arith.constant 0.000000e+00 : bf16
    %0 = vector.broadcast %cst : bf16 to vector<456x64xbf16>
    %c0 = arith.constant 0 : index
    %c0_0 = arith.constant 0 : index
    %1 = vector.load %arg7[%c0, %c0_0] : memref<456x64xbf16, #tpu.memory_space<vmem>>, vector<456x64xbf16>
    tpu.vector_store %arg7[%c0, %c0_0], %0 {strides = array<i32>} : memref<456x64xbf16, #tpu.memory_space<vmem>>, vector<456x64xbf16>,
    %c0_1 = arith.constant 0 : index
    %c0_2 = arith.constant 0 : index
    %c0_3 = arith.constant 0 : index
    %c0_4 = arith.constant 0 : index
    %2 = vector.load %arg1[%c0_1, %c0_2, %c0_3, %c0_4] : memref<1x16x16x64xf32, #tpu.memory_space<vmem>>, vector<1x1x16x64xf32>
    %3 = vector.shape_cast %2 : vector<1x1x16x64xf32> to vector<16x64xf32>
    %4 = arith.truncf %3 : vector<16x64xf32> to vector<16x64xbf16>
    %c25 = arith.constant 25 : index
    %c0_5 = arith.constant 0 : index
    %5 = vector.load %arg7[%c25, %c0_5] : memref<456x64xbf16, #tpu.memory_space<vmem>>, vector<16x64xbf16>
    tpu.vector_store %arg7[%c25, %c0_5], %4 {strides = array<i32>} : memref<456x64xbf16, #tpu.memory_space<vmem>>, vector<16x64xbf16>,
    %c0_6 = arith.constant 0 : index
    %c1 = arith.constant 1 : index
    %c0_7 = arith.constant 0 : index
    %c0_8 = arith.constant 0 : index
    %6 = vector.load %arg1[%c0_6, %c1, %c0_7, %c0_8] : memref<1x16x16x64xf32, #tpu.memory_space<vmem>>, vector<1x1x16x64xf32>
    %7 = vector.shape_cast %6 : vector<1x1x16x64xf32> to vector<16x64xf32>
    %8 = arith.truncf %7 : vector<16x64xf32> to vector<16x64xbf16>
    %c49 = arith.constant 49 : index
    %c0_9 = arith.constant 0 : index
    %9 = vector.load %arg7[%c49, %c0_9] : memref<456x64xbf16, #tpu.memory_space<vmem>>, vector<16x64xbf16>
    tpu.vector_store %arg7[%c49, %c0_9], %8 {strides = array<i32>} : memref<456x64xbf16, #tpu.memory_space<vmem>>, vector<16x64xbf16>,
    %c0_10 = arith.constant 0 : index
    %c2 = arith.constant 2 : index
    %c0_11 = arith.constant 0 : index
    %c0_12 = arith.constant 0 : index
    %10 = vector.load %arg1[%c0_10, %c2, %c0_11, %c0_12] : memref<1x16x16x64xf32, #tpu.memory_space<vmem>>, vector<1x1x16x64xf32>
    %11 = vector.shape_cast %10 : vector<1x1x16x64xf32> to vector<16x64xf32>
    %12 = arith.truncf %11 : vector<16x64xf32> to vector<16x64xbf16>
    %c73 = arith.constant 73 : index
    %c0_13 = arith.constant 0 : index
    %13 = vector.load %arg7[%c73, %c0_13] : memref<456x64xbf16, #tpu.memory_space<vmem>>, vector<16x64xbf16>
    tpu.vector_store %arg7[%c73, %c0_13], %12 {strides = array<i32>} : memref<456x64xbf16, #tpu.memory_space<vmem>>, vector<16x64xbf16>,
    %c0_14 = arith.constant 0 : index
    %c3 = arith.constant 3 : index
    %c0_15 = arith.constant 0 : index
    %c0_16 = arith.constant 0 : index
    %14 = vector.load %arg1[%c0_14, %c3, %c0_15, %c0_16] : memref<1x16x16x64xf32, #tpu.memory_space<vmem>>, vector<1x1x16x64xf32>
    %15 = vector.shape_cast %14 : vector<1x1x16x64xf32> to vector<16x64xf32>
    %16 = arith.truncf %15 : vector<16x64xf32> to vector<16x64xbf16>
    %c97 = arith.constant 97 : index
    %c0_17 = arith.constant 0 : index
    %17 = vector.load %arg7[%c97, %c0_17] : memref<456x64xbf16, #tpu.memory_space<vmem>>, vector<16x64xbf16>
    tpu.vector_store %arg7[%c97, %c0_17], %16 {strides = array<i32>} : memref<456x64xbf16, #tpu.memory_space<vmem>>, vector<16x64xbf16>,
    %c0_18 = arith.constant 0 : index
    %c4 = arith.constant 4 : index
    %c0_19 = arith.constant 0 : index
    %c0_20 = arith.constant 0 : index
    %18 = vector.load %arg1[%c0_18, %c4, %c0_19, %c0_20] : memref<1x16x16x64xf32, #tpu.memory_space<vmem>>, vector<1x1x16x64xf32>
    %19 = vector.shape_cast %18 : vector<1x1x16x64xf32> to vector<16x64xf32>
    %20 = arith.truncf %19 : vector<16x64xf32> to vector<16x64xbf16>
    %c121 = arith.constant 121 : index
    %c0_21 = arith.constant 0 : index
    %21 = vector.load %arg7[%c121, %c0_21] : memref<456x64xbf16, #tpu.memory_space<vmem>>, vector<16x64xbf16>
    tpu.vector_store %arg7[%c121, %c0_21], %20 {strides = array<i32>} : memref<456x64xbf16, #tpu.memory_space<vmem>>, vector<16x64xbf16>,
    %c0_22 = arith.constant 0 : index
    %c5 = arith.constant 5 : index
    %c0_23 = arith.constant 0 : index
    %c0_24 = arith.constant 0 : index
    %22 = vector.load %arg1[%c0_22, %c5, %c0_23, %c0_24] : memref<1x16x16x64xf32, #tpu.memory_space<vmem>>, vector<1x1x16x64xf32>
    %23 = vector.shape_cast %22 : vector<1x1x16x64xf32> to vector<16x64xf32>
    %24 = arith.truncf %23 : vector<16x64xf32> to vector<16x64xbf16>
    %c145 = arith.constant 145 : index
    %c0_25 = arith.constant 0 : index
    %25 = vector.load %arg7[%c145, %c0_25] : memref<456x64xbf16, #tpu.memory_space<vmem>>, vector<16x64xbf16>
    tpu.vector_store %arg7[%c145, %c0_25], %24 {strides = array<i32>} : memref<456x64xbf16, #tpu.memory_space<vmem>>, vector<16x64xbf16>,
    %c0_26 = arith.constant 0 : index
    %c6 = arith.constant 6 : index
    %c0_27 = arith.constant 0 : index
    %c0_28 = arith.constant 0 : index
    %26 = vector.load %arg1[%c0_26, %c6, %c0_27, %c0_28] : memref<1x16x16x64xf32, #tpu.memory_space<vmem>>, vector<1x1x16x64xf32>
    %27 = vector.shape_cast %26 : vector<1x1x16x64xf32> to vector<16x64xf32>
    %28 = arith.truncf %27 : vector<16x64xf32> to vector<16x64xbf16>
    %c169 = arith.constant 169 : index
    %c0_29 = arith.constant 0 : index
    %29 = vector.load %arg7[%c169, %c0_29] : memref<456x64xbf16, #tpu.memory_space<vmem>>, vector<16x64xbf16>
    tpu.vector_store %arg7[%c169, %c0_29], %28 {strides = array<i32>} : memref<456x64xbf16, #tpu.memory_space<vmem>>, vector<16x64xbf16>,
    %c0_30 = arith.constant 0 : index
    %c7 = arith.constant 7 : index
    %c0_31 = arith.constant 0 : index
    %c0_32 = arith.constant 0 : index
    %30 = vector.load %arg1[%c0_30, %c7, %c0_31, %c0_32] : memref<1x16x16x64xf32, #tpu.memory_space<vmem>>, vector<1x1x16x64xf32>
    %31 = vector.shape_cast %30 : vector<1x1x16x64xf32> to vector<16x64xf32>
    %32 = arith.truncf %31 : vector<16x64xf32> to vector<16x64xbf16>
    %c193 = arith.constant 193 : index
    %c0_33 = arith.constant 0 : index
    %33 = vector.load %arg7[%c193, %c0_33] : memref<456x64xbf16, #tpu.memory_space<vmem>>, vector<16x64xbf16>
    tpu.vector_store %arg7[%c193, %c0_33], %32 {strides = array<i32>} : memref<456x64xbf16, #tpu.memory_space<vmem>>, vector<16x64xbf16>,
    %c0_34 = arith.constant 0 : index
    %c8 = arith.constant 8 : index
    %c0_35 = arith.constant 0 : index
    %c0_36 = arith.constant 0 : index
    %34 = vector.load %arg1[%c0_34, %c8, %c0_35, %c0_36] : memref<1x16x16x64xf32, #tpu.memory_space<vmem>>, vector<1x1x16x64xf32>
    %35 = vector.shape_cast %34 : vector<1x1x16x64xf32> to vector<16x64xf32>
    %36 = arith.truncf %35 : vector<16x64xf32> to vector<16x64xbf16>
    %c217 = arith.constant 217 : index
    %c0_37 = arith.constant 0 : index
    %37 = vector.load %arg7[%c217, %c0_37] : memref<456x64xbf16, #tpu.memory_space<vmem>>, vector<16x64xbf16>
    tpu.vector_store %arg7[%c217, %c0_37], %36 {strides = array<i32>} : memref<456x64xbf16, #tpu.memory_space<vmem>>, vector<16x64xbf16>,
    %c0_38 = arith.constant 0 : index
    %c9 = arith.constant 9 : index
    %c0_39 = arith.constant 0 : index
    %c0_40 = arith.constant 0 : index
    %38 = vector.load %arg1[%c0_38, %c9, %c0_39, %c0_40] : memref<1x16x16x64xf32, #tpu.memory_space<vmem>>, vector<1x1x16x64xf32>
    %39 = vector.shape_cast %38 : vector<1x1x16x64xf32> to vector<16x64xf32>
    %40 = arith.truncf %39 : vector<16x64xf32> to vector<16x64xbf16>
    %c241 = arith.constant 241 : index
    %c0_41 = arith.constant 0 : index
    %41 = vector.load %arg7[%c241, %c0_41] : memref<456x64xbf16, #tpu.memory_space<vmem>>, vector<16x64xbf16>
    tpu.vector_store %arg7[%c241, %c0_41], %40 {strides = array<i32>} : memref<456x64xbf16, #tpu.memory_space<vmem>>, vector<16x64xbf16>,
    %c0_42 = arith.constant 0 : index
    %c10 = arith.constant 10 : index
    %c0_43 = arith.constant 0 : index
    %c0_44 = arith.constant 0 : index
    %42 = vector.load %arg1[%c0_42, %c10, %c0_43, %c0_44] : memref<1x16x16x64xf32, #tpu.memory_space<vmem>>, vector<1x1x16x64xf32>
    %43 = vector.shape_cast %42 : vector<1x1x16x64xf32> to vector<16x64xf32>
    %44 = arith.truncf %43 : vector<16x64xf32> to vector<16x64xbf16>
    %c265 = arith.constant 265 : index
    %c0_45 = arith.constant 0 : index
    %45 = vector.load %arg7[%c265, %c0_45] : memref<456x64xbf16, #tpu.memory_space<vmem>>, vector<16x64xbf16>
    tpu.vector_store %arg7[%c265, %c0_45], %44 {strides = array<i32>} : memref<456x64xbf16, #tpu.memory_space<vmem>>, vector<16x64xbf16>,
    %c0_46 = arith.constant 0 : index
    %c11 = arith.constant 11 : index
    %c0_47 = arith.constant 0 : index
    %c0_48 = arith.constant 0 : index
    %46 = vector.load %arg1[%c0_46, %c11, %c0_47, %c0_48] : memref<1x16x16x64xf32, #tpu.memory_space<vmem>>, vector<1x1x16x64xf32>
    %47 = vector.shape_cast %46 : vector<1x1x16x64xf32> to vector<16x64xf32>
    %48 = arith.truncf %47 : vector<16x64xf32> to vector<16x64xbf16>
    %c289 = arith.constant 289 : index
    %c0_49 = arith.constant 0 : index
    %49 = vector.load %arg7[%c289, %c0_49] : memref<456x64xbf16, #tpu.memory_space<vmem>>, vector<16x64xbf16>
    tpu.vector_store %arg7[%c289, %c0_49], %48 {strides = array<i32>} : memref<456x64xbf16, #tpu.memory_space<vmem>>, vector<16x64xbf16>,
    %c0_50 = arith.constant 0 : index
    %c12 = arith.constant 12 : index
    %c0_51 = arith.constant 0 : index
    %c0_52 = arith.constant 0 : index
    %50 = vector.load %arg1[%c0_50, %c12, %c0_51, %c0_52] : memref<1x16x16x64xf32, #tpu.memory_space<vmem>>, vector<1x1x16x64xf32>
    %51 = vector.shape_cast %50 : vector<1x1x16x64xf32> to vector<16x64xf32>
    %52 = arith.truncf %51 : vector<16x64xf32> to vector<16x64xbf16>
    %c313 = arith.constant 313 : index
    %c0_53 = arith.constant 0 : index
    %53 = vector.load %arg7[%c313, %c0_53] : memref<456x64xbf16, #tpu.memory_space<vmem>>, vector<16x64xbf16>
    tpu.vector_store %arg7[%c313, %c0_53], %52 {strides = array<i32>} : memref<456x64xbf16, #tpu.memory_space<vmem>>, vector<16x64xbf16>,
    %c0_54 = arith.constant 0 : index
    %c13 = arith.constant 13 : index
    %c0_55 = arith.constant 0 : index
    %c0_56 = arith.constant 0 : index
    %54 = vector.load %arg1[%c0_54, %c13, %c0_55, %c0_56] : memref<1x16x16x64xf32, #tpu.memory_space<vmem>>, vector<1x1x16x64xf32>
    %55 = vector.shape_cast %54 : vector<1x1x16x64xf32> to vector<16x64xf32>
    %56 = arith.truncf %55 : vector<16x64xf32> to vector<16x64xbf16>
    %c337 = arith.constant 337 : index
    %c0_57 = arith.constant 0 : index
    %57 = vector.load %arg7[%c337, %c0_57] : memref<456x64xbf16, #tpu.memory_space<vmem>>, vector<16x64xbf16>
    tpu.vector_store %arg7[%c337, %c0_57], %56 {strides = array<i32>} : memref<456x64xbf16, #tpu.memory_space<vmem>>, vector<16x64xbf16>,
    %c0_58 = arith.constant 0 : index
    %c14 = arith.constant 14 : index
    %c0_59 = arith.constant 0 : index
    %c0_60 = arith.constant 0 : index
    %58 = vector.load %arg1[%c0_58, %c14, %c0_59, %c0_60] : memref<1x16x16x64xf32, #tpu.memory_space<vmem>>, vector<1x1x16x64xf32>
    %59 = vector.shape_cast %58 : vector<1x1x16x64xf32> to vector<16x64xf32>
    %60 = arith.truncf %59 : vector<16x64xf32> to vector<16x64xbf16>
    %c361 = arith.constant 361 : index
    %c0_61 = arith.constant 0 : index
    %61 = vector.load %arg7[%c361, %c0_61] : memref<456x64xbf16, #tpu.memory_space<vmem>>, vector<16x64xbf16>
    tpu.vector_store %arg7[%c361, %c0_61], %60 {strides = array<i32>} : memref<456x64xbf16, #tpu.memory_space<vmem>>, vector<16x64xbf16>,
    %c0_62 = arith.constant 0 : index
    %c15 = arith.constant 15 : index
    %c0_63 = arith.constant 0 : index
    %c0_64 = arith.constant 0 : index
    %62 = vector.load %arg1[%c0_62, %c15, %c0_63, %c0_64] : memref<1x16x16x64xf32, #tpu.memory_space<vmem>>, vector<1x1x16x64xf32>
    %63 = vector.shape_cast %62 : vector<1x1x16x64xf32> to vector<16x64xf32>
    %64 = arith.truncf %63 : vector<16x64xf32> to vector<16x64xbf16>
    %c385 = arith.constant 385 : index
    %c0_65 = arith.constant 0 : index
    %65 = vector.load %arg7[%c385, %c0_65] : memref<456x64xbf16, #tpu.memory_space<vmem>>, vector<16x64xbf16>
    tpu.vector_store %arg7[%c385, %c0_65], %64 {strides = array<i32>} : memref<456x64xbf16, #tpu.memory_space<vmem>>, vector<16x64xbf16>,
    %c0_66 = arith.constant 0 : index
    %c0_67 = arith.constant 0 : index
    %66 = vector.load %arg7[%c0_66, %c0_67] : memref<456x64xbf16, #tpu.memory_space<vmem>>, vector<384x64xbf16>
    %c0_68 = arith.constant 0 : index
    %c0_69 = arith.constant 0 : index
    %67 = vector.load %arg9[%c0_68, %c0_69] : memref<384x192xbf16, #tpu.memory_space<vmem>>, vector<384x64xbf16>
    tpu.vector_store %arg9[%c0_68, %c0_69], %66 {strides = array<i32>} : memref<384x192xbf16, #tpu.memory_space<vmem>>, vector<384x64xbf16>,
    %c1_70 = arith.constant 1 : index
    %c0_71 = arith.constant 0 : index
    %68 = vector.load %arg7[%c1_70, %c0_71] : memref<456x64xbf16, #tpu.memory_space<vmem>>, vector<384x64xbf16>
    %c0_72 = arith.constant 0 : index
    %c64 = arith.constant 64 : index
    %69 = vector.load %arg9[%c0_72, %c64] : memref<384x192xbf16, #tpu.memory_space<vmem>>, vector<384x64xbf16>
    tpu.vector_store %arg9[%c0_72, %c64], %68 {strides = array<i32>} : memref<384x192xbf16, #tpu.memory_space<vmem>>, vector<384x64xbf16>,
    %c2_73 = arith.constant 2 : index
    %c0_74 = arith.constant 0 : index
    %70 = vector.load %arg7[%c2_73, %c0_74] : memref<456x64xbf16, #tpu.memory_space<vmem>>, vector<384x64xbf16>
    %c0_75 = arith.constant 0 : index
    %c128 = arith.constant 128 : index
    %71 = vector.load %arg9[%c0_75, %c128] : memref<384x192xbf16, #tpu.memory_space<vmem>>, vector<384x64xbf16>
    tpu.vector_store %arg9[%c0_75, %c128], %70 {strides = array<i32>} : memref<384x192xbf16, #tpu.memory_space<vmem>>, vector<384x64xbf16>,
    %c0_76 = arith.constant 0 : index
    %c0_77 = arith.constant 0 : index
    %72 = vector.load %arg9[%c0_76, %c0_77] : memref<384x192xbf16, #tpu.memory_space<vmem>>, vector<384x192xbf16>
    %c0_78 = arith.constant 0 : index
    %c0_79 = arith.constant 0 : index
    %c0_80 = arith.constant 0 : index
    %73 = vector.load %arg2[%c0_78, %c0_79, %c0_80] : memref<3x192x64xbf16, #tpu.memory_space<vmem>>, vector<1x192x64xbf16>
    %74 = vector.shape_cast %73 : vector<1x192x64xbf16> to vector<192x64xbf16>
    %cst_81 = arith.constant dense<0.000000e+00> : vector<384x64xf32>
    %75 = tpu.matmul %72, %74, %cst_81 {dimension_numbers = #tpu.dot_dimension_numbers<[1], [0], [0], [1], [0, 0, 1, 1], [], []>} : vector<384x192xbf16>, vector<192x64xbf16>, vector<384x64xf32> -> vector<384x64xf32>
    %c24 = arith.constant 24 : index
    %c0_82 = arith.constant 0 : index
    %76 = vector.load %arg7[%c24, %c0_82] : memref<456x64xbf16, #tpu.memory_space<vmem>>, vector<384x64xbf16>
    %c0_83 = arith.constant 0 : index
    %c0_84 = arith.constant 0 : index
    %77 = vector.load %arg9[%c0_83, %c0_84] : memref<384x192xbf16, #tpu.memory_space<vmem>>, vector<384x64xbf16>
    tpu.vector_store %arg9[%c0_83, %c0_84], %76 {strides = array<i32>} : memref<384x192xbf16, #tpu.memory_space<vmem>>, vector<384x64xbf16>,
    %c25_85 = arith.constant 25 : index
    %c0_86 = arith.constant 0 : index
    %78 = vector.load %arg7[%c25_85, %c0_86] : memref<456x64xbf16, #tpu.memory_space<vmem>>, vector<384x64xbf16>
    %c0_87 = arith.constant 0 : index
    %c64_88 = arith.constant 64 : index
    %79 = vector.load %arg9[%c0_87, %c64_88] : memref<384x192xbf16, #tpu.memory_space<vmem>>, vector<384x64xbf16>
    tpu.vector_store %arg9[%c0_87, %c64_88], %78 {strides = array<i32>} : memref<384x192xbf16, #tpu.memory_space<vmem>>, vector<384x64xbf16>,
    %c26 = arith.constant 26 : index
    %c0_89 = arith.constant 0 : index
    %80 = vector.load %arg7[%c26, %c0_89] : memref<456x64xbf16, #tpu.memory_space<vmem>>, vector<384x64xbf16>
    %c0_90 = arith.constant 0 : index
    %c128_91 = arith.constant 128 : index
    %81 = vector.load %arg9[%c0_90, %c128_91] : memref<384x192xbf16, #tpu.memory_space<vmem>>, vector<384x64xbf16>
    tpu.vector_store %arg9[%c0_90, %c128_91], %80 {strides = array<i32>} : memref<384x192xbf16, #tpu.memory_space<vmem>>, vector<384x64xbf16>,
    %c0_92 = arith.constant 0 : index
    %c0_93 = arith.constant 0 : index
    %82 = vector.load %arg9[%c0_92, %c0_93] : memref<384x192xbf16, #tpu.memory_space<vmem>>, vector<384x192xbf16>
    %c1_94 = arith.constant 1 : index
    %c0_95 = arith.constant 0 : index
    %c0_96 = arith.constant 0 : index
    %83 = vector.load %arg2[%c1_94, %c0_95, %c0_96] : memref<3x192x64xbf16, #tpu.memory_space<vmem>>, vector<1x192x64xbf16>
    %84 = vector.shape_cast %83 : vector<1x192x64xbf16> to vector<192x64xbf16>
    %cst_97 = arith.constant dense<0.000000e+00> : vector<384x64xf32>
    %85 = tpu.matmul %82, %84, %cst_97 {dimension_numbers = #tpu.dot_dimension_numbers<[1], [0], [0], [1], [0, 0, 1, 1], [], []>} : vector<384x192xbf16>, vector<192x64xbf16>, vector<384x64xf32> -> vector<384x64xf32>
    %86 = arith.addf %75, %85 : vector<384x64xf32>
    %c48 = arith.constant 48 : index
    %c0_98 = arith.constant 0 : index
    %87 = vector.load %arg7[%c48, %c0_98] : memref<456x64xbf16, #tpu.memory_space<vmem>>, vector<384x64xbf16>
    %c0_99 = arith.constant 0 : index
    %c0_100 = arith.constant 0 : index
    %88 = vector.load %arg9[%c0_99, %c0_100] : memref<384x192xbf16, #tpu.memory_space<vmem>>, vector<384x64xbf16>
    tpu.vector_store %arg9[%c0_99, %c0_100], %87 {strides = array<i32>} : memref<384x192xbf16, #tpu.memory_space<vmem>>, vector<384x64xbf16>,
    %c49_101 = arith.constant 49 : index
    %c0_102 = arith.constant 0 : index
    %89 = vector.load %arg7[%c49_101, %c0_102] : memref<456x64xbf16, #tpu.memory_space<vmem>>, vector<384x64xbf16>
    %c0_103 = arith.constant 0 : index
    %c64_104 = arith.constant 64 : index
    %90 = vector.load %arg9[%c0_103, %c64_104] : memref<384x192xbf16, #tpu.memory_space<vmem>>, vector<384x64xbf16>
    tpu.vector_store %arg9[%c0_103, %c64_104], %89 {strides = array<i32>} : memref<384x192xbf16, #tpu.memory_space<vmem>>, vector<384x64xbf16>,
    %c50 = arith.constant 50 : index
    %c0_105 = arith.constant 0 : index
    %91 = vector.load %arg7[%c50, %c0_105] : memref<456x64xbf16, #tpu.memory_space<vmem>>, vector<384x64xbf16>
    %c0_106 = arith.constant 0 : index
    %c128_107 = arith.constant 128 : index
    %92 = vector.load %arg9[%c0_106, %c128_107] : memref<384x192xbf16, #tpu.memory_space<vmem>>, vector<384x64xbf16>
    tpu.vector_store %arg9[%c0_106, %c128_107], %91 {strides = array<i32>} : memref<384x192xbf16, #tpu.memory_space<vmem>>, vector<384x64xbf16>,
    %c0_108 = arith.constant 0 : index
    %c0_109 = arith.constant 0 : index
    %93 = vector.load %arg9[%c0_108, %c0_109] : memref<384x192xbf16, #tpu.memory_space<vmem>>, vector<384x192xbf16>
    %c2_110 = arith.constant 2 : index
    %c0_111 = arith.constant 0 : index
    %c0_112 = arith.constant 0 : index
    %94 = vector.load %arg2[%c2_110, %c0_111, %c0_112] : memref<3x192x64xbf16, #tpu.memory_space<vmem>>, vector<1x192x64xbf16>
    %95 = vector.shape_cast %94 : vector<1x192x64xbf16> to vector<192x64xbf16>
    %cst_113 = arith.constant dense<0.000000e+00> : vector<384x64xf32>
    %96 = tpu.matmul %93, %95, %cst_113 {dimension_numbers = #tpu.dot_dimension_numbers<[1], [0], [0], [1], [0, 0, 1, 1], [], []>} : vector<384x192xbf16>, vector<192x64xbf16>, vector<384x64xf32> -> vector<384x64xf32>
    %97 = arith.addf %86, %96 : vector<384x64xf32>
    %c0_114 = arith.constant 0 : index
    %c0_115 = arith.constant 0 : index
    %98 = vector.load %arg3[%c0_114, %c0_115] : memref<1x64xf32, #tpu.memory_space<vmem>>, vector<1x64xf32>
    %99 = vector.broadcast %98 : vector<1x64xf32> to vector<384x64xf32>
    %100 = arith.addf %97, %99 : vector<384x64xf32>
    %cst_116 = arith.constant 0.000000e+00 : f32
    %101 = vector.broadcast %cst_116 : f32 to vector<384x64xf32>
    %102 = arith.maximumf %100, %101 : vector<384x64xf32>
    %cst_117 = arith.constant 0.000000e+00 : bf16
    %103 = vector.broadcast %cst_117 : bf16 to vector<456x64xbf16>
    %c0_118 = arith.constant 0 : index
    %c0_119 = arith.constant 0 : index
    %104 = vector.load %arg8[%c0_118, %c0_119] : memref<456x64xbf16, #tpu.memory_space<vmem>>, vector<456x64xbf16>
    tpu.vector_store %arg8[%c0_118, %c0_119], %103 {strides = array<i32>} : memref<456x64xbf16, #tpu.memory_space<vmem>>, vector<456x64xbf16>,
    %105 = arith.truncf %102 : vector<384x64xf32> to vector<384x64xbf16>
    %c25_120 = arith.constant 25 : index
    %c0_121 = arith.constant 0 : index
    %106 = vector.load %arg8[%c25_120, %c0_121] : memref<456x64xbf16, #tpu.memory_space<vmem>>, vector<384x64xbf16>
    tpu.vector_store %arg8[%c25_120, %c0_121], %105 {strides = array<i32>} : memref<456x64xbf16, #tpu.memory_space<vmem>>, vector<384x64xbf16>,
    %cst_122 = arith.constant 0.000000e+00 : bf16
    %107 = vector.broadcast %cst_122 : bf16 to vector<8x64xbf16>
    %c41 = arith.constant 41 : index
    %c0_123 = arith.constant 0 : index
    %108 = vector.load %arg8[%c41, %c0_123] : memref<456x64xbf16, #tpu.memory_space<vmem>>, vector<8x64xbf16>
    tpu.vector_store %arg8[%c41, %c0_123], %107 {strides = array<i32>} : memref<456x64xbf16, #tpu.memory_space<vmem>>, vector<8x64xbf16>,
    %c65 = arith.constant 65 : index
    %c0_124 = arith.constant 0 : index
    %109 = vector.load %arg8[%c65, %c0_124] : memref<456x64xbf16, #tpu.memory_space<vmem>>, vector<8x64xbf16>
    tpu.vector_store %arg8[%c65, %c0_124], %107 {strides = array<i32>} : memref<456x64xbf16, #tpu.memory_space<vmem>>, vector<8x64xbf16>,
    %c89 = arith.constant 89 : index
    %c0_125 = arith.constant 0 : index
    %110 = vector.load %arg8[%c89, %c0_125] : memref<456x64xbf16, #tpu.memory_space<vmem>>, vector<8x64xbf16>
    tpu.vector_store %arg8[%c89, %c0_125], %107 {strides = array<i32>} : memref<456x64xbf16, #tpu.memory_space<vmem>>, vector<8x64xbf16>,
    %c113 = arith.constant 113 : index
    %c0_126 = arith.constant 0 : index
    %111 = vector.load %arg8[%c113, %c0_126] : memref<456x64xbf16, #tpu.memory_space<vmem>>, vector<8x64xbf16>
    tpu.vector_store %arg8[%c113, %c0_126], %107 {strides = array<i32>} : memref<456x64xbf16, #tpu.memory_space<vmem>>, vector<8x64xbf16>,
    %c137 = arith.constant 137 : index
    %c0_127 = arith.constant 0 : index
    %112 = vector.load %arg8[%c137, %c0_127] : memref<456x64xbf16, #tpu.memory_space<vmem>>, vector<8x64xbf16>
    tpu.vector_store %arg8[%c137, %c0_127], %107 {strides = array<i32>} : memref<456x64xbf16, #tpu.memory_space<vmem>>, vector<8x64xbf16>,
    %c161 = arith.constant 161 : index
    %c0_128 = arith.constant 0 : index
    %113 = vector.load %arg8[%c161, %c0_128] : memref<456x64xbf16, #tpu.memory_space<vmem>>, vector<8x64xbf16>
    tpu.vector_store %arg8[%c161, %c0_128], %107 {strides = array<i32>} : memref<456x64xbf16, #tpu.memory_space<vmem>>, vector<8x64xbf16>,
    %c185 = arith.constant 185 : index
    %c0_129 = arith.constant 0 : index
    %114 = vector.load %arg8[%c185, %c0_129] : memref<456x64xbf16, #tpu.memory_space<vmem>>, vector<8x64xbf16>
    tpu.vector_store %arg8[%c185, %c0_129], %107 {strides = array<i32>} : memref<456x64xbf16, #tpu.memory_space<vmem>>, vector<8x64xbf16>,
    %c209 = arith.constant 209 : index
    %c0_130 = arith.constant 0 : index
    %115 = vector.load %arg8[%c209, %c0_130] : memref<456x64xbf16, #tpu.memory_space<vmem>>, vector<8x64xbf16>
    tpu.vector_store %arg8[%c209, %c0_130], %107 {strides = array<i32>} : memref<456x64xbf16, #tpu.memory_space<vmem>>, vector<8x64xbf16>,
    %c233 = arith.constant 233 : index
    %c0_131 = arith.constant 0 : index
    %116 = vector.load %arg8[%c233, %c0_131] : memref<456x64xbf16, #tpu.memory_space<vmem>>, vector<8x64xbf16>
    tpu.vector_store %arg8[%c233, %c0_131], %107 {strides = array<i32>} : memref<456x64xbf16, #tpu.memory_space<vmem>>, vector<8x64xbf16>,
    %c257 = arith.constant 257 : index
    %c0_132 = arith.constant 0 : index
    %117 = vector.load %arg8[%c257, %c0_132] : memref<456x64xbf16, #tpu.memory_space<vmem>>, vector<8x64xbf16>
    tpu.vector_store %arg8[%c257, %c0_132], %107 {strides = array<i32>} : memref<456x64xbf16, #tpu.memory_space<vmem>>, vector<8x64xbf16>,
    %c281 = arith.constant 281 : index
    %c0_133 = arith.constant 0 : index
    %118 = vector.load %arg8[%c281, %c0_133] : memref<456x64xbf16, #tpu.memory_space<vmem>>, vector<8x64xbf16>
    tpu.vector_store %arg8[%c281, %c0_133], %107 {strides = array<i32>} : memref<456x64xbf16, #tpu.memory_space<vmem>>, vector<8x64xbf16>,
    %c305 = arith.constant 305 : index
    %c0_134 = arith.constant 0 : index
    %119 = vector.load %arg8[%c305, %c0_134] : memref<456x64xbf16, #tpu.memory_space<vmem>>, vector<8x64xbf16>
    tpu.vector_store %arg8[%c305, %c0_134], %107 {strides = array<i32>} : memref<456x64xbf16, #tpu.memory_space<vmem>>, vector<8x64xbf16>,
    %c329 = arith.constant 329 : index
    %c0_135 = arith.constant 0 : index
    %120 = vector.load %arg8[%c329, %c0_135] : memref<456x64xbf16, #tpu.memory_space<vmem>>, vector<8x64xbf16>
    tpu.vector_store %arg8[%c329, %c0_135], %107 {strides = array<i32>} : memref<456x64xbf16, #tpu.memory_space<vmem>>, vector<8x64xbf16>,
    %c353 = arith.constant 353 : index
    %c0_136 = arith.constant 0 : index
    %121 = vector.load %arg8[%c353, %c0_136] : memref<456x64xbf16, #tpu.memory_space<vmem>>, vector<8x64xbf16>
    tpu.vector_store %arg8[%c353, %c0_136], %107 {strides = array<i32>} : memref<456x64xbf16, #tpu.memory_space<vmem>>, vector<8x64xbf16>,
    %c377 = arith.constant 377 : index
    %c0_137 = arith.constant 0 : index
    %122 = vector.load %arg8[%c377, %c0_137] : memref<456x64xbf16, #tpu.memory_space<vmem>>, vector<8x64xbf16>
    tpu.vector_store %arg8[%c377, %c0_137], %107 {strides = array<i32>} : memref<456x64xbf16, #tpu.memory_space<vmem>>, vector<8x64xbf16>,
    %c401 = arith.constant 401 : index
    %c0_138 = arith.constant 0 : index
    %123 = vector.load %arg8[%c401, %c0_138] : memref<456x64xbf16, #tpu.memory_space<vmem>>, vector<8x64xbf16>
    tpu.vector_store %arg8[%c401, %c0_138], %107 {strides = array<i32>} : memref<456x64xbf16, #tpu.memory_space<vmem>>, vector<8x64xbf16>,
    %c0_139 = arith.constant 0 : index
    %c0_140 = arith.constant 0 : index
    %124 = vector.load %arg8[%c0_139, %c0_140] : memref<456x64xbf16, #tpu.memory_space<vmem>>, vector<384x64xbf16>
    %c0_141 = arith.constant 0 : index
    %c0_142 = arith.constant 0 : index
    %125 = vector.load %arg9[%c0_141, %c0_142] : memref<384x192xbf16, #tpu.memory_space<vmem>>, vector<384x64xbf16>
    tpu.vector_store %arg9[%c0_141, %c0_142], %124 {strides = array<i32>} : memref<384x192xbf16, #tpu.memory_space<vmem>>, vector<384x64xbf16>,
    %c1_143 = arith.constant 1 : index
    %c0_144 = arith.constant 0 : index
    %126 = vector.load %arg8[%c1_143, %c0_144] : memref<456x64xbf16, #tpu.memory_space<vmem>>, vector<384x64xbf16>
    %c0_145 = arith.constant 0 : index
    %c64_146 = arith.constant 64 : index
    %127 = vector.load %arg9[%c0_145, %c64_146] : memref<384x192xbf16, #tpu.memory_space<vmem>>, vector<384x64xbf16>
    tpu.vector_store %arg9[%c0_145, %c64_146], %126 {strides = array<i32>} : memref<384x192xbf16, #tpu.memory_space<vmem>>, vector<384x64xbf16>,
    %c2_147 = arith.constant 2 : index
    %c0_148 = arith.constant 0 : index
    %128 = vector.load %arg8[%c2_147, %c0_148] : memref<456x64xbf16, #tpu.memory_space<vmem>>, vector<384x64xbf16>
    %c0_149 = arith.constant 0 : index
    %c128_150 = arith.constant 128 : index
    %129 = vector.load %arg9[%c0_149, %c128_150] : memref<384x192xbf16, #tpu.memory_space<vmem>>, vector<384x64xbf16>
    tpu.vector_store %arg9[%c0_149, %c128_150], %128 {strides = array<i32>} : memref<384x192xbf16, #tpu.memory_space<vmem>>, vector<384x64xbf16>,
    %c0_151 = arith.constant 0 : index
    %c0_152 = arith.constant 0 : index
    %130 = vector.load %arg9[%c0_151, %c0_152] : memref<384x192xbf16, #tpu.memory_space<vmem>>, vector<384x192xbf16>
    %c0_153 = arith.constant 0 : index
    %c0_154 = arith.constant 0 : index
    %c0_155 = arith.constant 0 : index
    %131 = vector.load %arg4[%c0_153, %c0_154, %c0_155] : memref<3x192x64xbf16, #tpu.memory_space<vmem>>, vector<1x192x64xbf16>
    %132 = vector.shape_cast %131 : vector<1x192x64xbf16> to vector<192x64xbf16>
    %cst_156 = arith.constant dense<0.000000e+00> : vector<384x64xf32>
    %133 = tpu.matmul %130, %132, %cst_156 {dimension_numbers = #tpu.dot_dimension_numbers<[1], [0], [0], [1], [0, 0, 1, 1], [], []>} : vector<384x192xbf16>, vector<192x64xbf16>, vector<384x64xf32> -> vector<384x64xf32>
    %c24_157 = arith.constant 24 : index
    %c0_158 = arith.constant 0 : index
    %134 = vector.load %arg8[%c24_157, %c0_158] : memref<456x64xbf16, #tpu.memory_space<vmem>>, vector<384x64xbf16>
    %c0_159 = arith.constant 0 : index
    %c0_160 = arith.constant 0 : index
    %135 = vector.load %arg9[%c0_159, %c0_160] : memref<384x192xbf16, #tpu.memory_space<vmem>>, vector<384x64xbf16>
    tpu.vector_store %arg9[%c0_159, %c0_160], %134 {strides = array<i32>} : memref<384x192xbf16, #tpu.memory_space<vmem>>, vector<384x64xbf16>,
    %c25_161 = arith.constant 25 : index
    %c0_162 = arith.constant 0 : index
    %136 = vector.load %arg8[%c25_161, %c0_162] : memref<456x64xbf16, #tpu.memory_space<vmem>>, vector<384x64xbf16>
    %c0_163 = arith.constant 0 : index
    %c64_164 = arith.constant 64 : index
    %137 = vector.load %arg9[%c0_163, %c64_164] : memref<384x192xbf16, #tpu.memory_space<vmem>>, vector<384x64xbf16>
    tpu.vector_store %arg9[%c0_163, %c64_164], %136 {strides = array<i32>} : memref<384x192xbf16, #tpu.memory_space<vmem>>, vector<384x64xbf16>,
    %c26_165 = arith.constant 26 : index
    %c0_166 = arith.constant 0 : index
    %138 = vector.load %arg8[%c26_165, %c0_166] : memref<456x64xbf16, #tpu.memory_space<vmem>>, vector<384x64xbf16>
    %c0_167 = arith.constant 0 : index
    %c128_168 = arith.constant 128 : index
    %139 = vector.load %arg9[%c0_167, %c128_168] : memref<384x192xbf16, #tpu.memory_space<vmem>>, vector<384x64xbf16>
    tpu.vector_store %arg9[%c0_167, %c128_168], %138 {strides = array<i32>} : memref<384x192xbf16, #tpu.memory_space<vmem>>, vector<384x64xbf16>,
    %c0_169 = arith.constant 0 : index
    %c0_170 = arith.constant 0 : index
    %140 = vector.load %arg9[%c0_169, %c0_170] : memref<384x192xbf16, #tpu.memory_space<vmem>>, vector<384x192xbf16>
    %c1_171 = arith.constant 1 : index
    %c0_172 = arith.constant 0 : index
    %c0_173 = arith.constant 0 : index
    %141 = vector.load %arg4[%c1_171, %c0_172, %c0_173] : memref<3x192x64xbf16, #tpu.memory_space<vmem>>, vector<1x192x64xbf16>
    %142 = vector.shape_cast %141 : vector<1x192x64xbf16> to vector<192x64xbf16>
    %cst_174 = arith.constant dense<0.000000e+00> : vector<384x64xf32>
    %143 = tpu.matmul %140, %142, %cst_174 {dimension_numbers = #tpu.dot_dimension_numbers<[1], [0], [0], [1], [0, 0, 1, 1], [], []>} : vector<384x192xbf16>, vector<192x64xbf16>, vector<384x64xf32> -> vector<384x64xf32>
    %144 = arith.addf %133, %143 : vector<384x64xf32>
    %c48_175 = arith.constant 48 : index
    %c0_176 = arith.constant 0 : index
    %145 = vector.load %arg8[%c48_175, %c0_176] : memref<456x64xbf16, #tpu.memory_space<vmem>>, vector<384x64xbf16>
    %c0_177 = arith.constant 0 : index
    %c0_178 = arith.constant 0 : index
    %146 = vector.load %arg9[%c0_177, %c0_178] : memref<384x192xbf16, #tpu.memory_space<vmem>>, vector<384x64xbf16>
    tpu.vector_store %arg9[%c0_177, %c0_178], %145 {strides = array<i32>} : memref<384x192xbf16, #tpu.memory_space<vmem>>, vector<384x64xbf16>,
    %c49_179 = arith.constant 49 : index
    %c0_180 = arith.constant 0 : index
    %147 = vector.load %arg8[%c49_179, %c0_180] : memref<456x64xbf16, #tpu.memory_space<vmem>>, vector<384x64xbf16>
    %c0_181 = arith.constant 0 : index
    %c64_182 = arith.constant 64 : index
    %148 = vector.load %arg9[%c0_181, %c64_182] : memref<384x192xbf16, #tpu.memory_space<vmem>>, vector<384x64xbf16>
    tpu.vector_store %arg9[%c0_181, %c64_182], %147 {strides = array<i32>} : memref<384x192xbf16, #tpu.memory_space<vmem>>, vector<384x64xbf16>,
    %c50_183 = arith.constant 50 : index
    %c0_184 = arith.constant 0 : index
    %149 = vector.load %arg8[%c50_183, %c0_184] : memref<456x64xbf16, #tpu.memory_space<vmem>>, vector<384x64xbf16>
    %c0_185 = arith.constant 0 : index
    %c128_186 = arith.constant 128 : index
    %150 = vector.load %arg9[%c0_185, %c128_186] : memref<384x192xbf16, #tpu.memory_space<vmem>>, vector<384x64xbf16>
    tpu.vector_store %arg9[%c0_185, %c128_186], %149 {strides = array<i32>} : memref<384x192xbf16, #tpu.memory_space<vmem>>, vector<384x64xbf16>,
    %c0_187 = arith.constant 0 : index
    %c0_188 = arith.constant 0 : index
    %151 = vector.load %arg9[%c0_187, %c0_188] : memref<384x192xbf16, #tpu.memory_space<vmem>>, vector<384x192xbf16>
    %c2_189 = arith.constant 2 : index
    %c0_190 = arith.constant 0 : index
    %c0_191 = arith.constant 0 : index
    %152 = vector.load %arg4[%c2_189, %c0_190, %c0_191] : memref<3x192x64xbf16, #tpu.memory_space<vmem>>, vector<1x192x64xbf16>
    %153 = vector.shape_cast %152 : vector<1x192x64xbf16> to vector<192x64xbf16>
    %cst_192 = arith.constant dense<0.000000e+00> : vector<384x64xf32>
    %154 = tpu.matmul %151, %153, %cst_192 {dimension_numbers = #tpu.dot_dimension_numbers<[1], [0], [0], [1], [0, 0, 1, 1], [], []>} : vector<384x192xbf16>, vector<192x64xbf16>, vector<384x64xf32> -> vector<384x64xf32>
    %155 = arith.addf %144, %154 : vector<384x64xf32>
    %c0_193 = arith.constant 0 : index
    %c0_194 = arith.constant 0 : index
    %156 = vector.load %arg5[%c0_193, %c0_194] : memref<1x64xf32, #tpu.memory_space<vmem>>, vector<1x64xf32>
    %157 = vector.broadcast %156 : vector<1x64xf32> to vector<384x64xf32>
    %158 = arith.addf %155, %157 : vector<384x64xf32>
    %c0_195 = arith.constant 0 : index
    %c0_196 = arith.constant 0 : index
    %159 = vector.load %arg10[%c0_195, %c0_196] : memref<384x64xf32, #tpu.memory_space<vmem>>, vector<384x64xf32>
    tpu.vector_store %arg10[%c0_195, %c0_196], %158 {strides = array<i32>} : memref<384x64xf32, #tpu.memory_space<vmem>>, vector<384x64xf32>,
    %c0_197 = arith.constant 0 : index
    %c0_198 = arith.constant 0 : index
    %160 = vector.load %arg10[%c0_197, %c0_198] : memref<384x64xf32, #tpu.memory_space<vmem>>, vector<16x64xf32>
    %c0_199 = arith.constant 0 : index
    %c0_200 = arith.constant 0 : index
    %c0_201 = arith.constant 0 : index
    %c0_202 = arith.constant 0 : index
    %161 = vector.load %arg1[%c0_199, %c0_200, %c0_201, %c0_202] : memref<1x16x16x64xf32, #tpu.memory_space<vmem>>, vector<1x1x16x64xf32>
    %162 = vector.shape_cast %161 : vector<1x1x16x64xf32> to vector<16x64xf32>
    %163 = arith.addf %160, %162 : vector<16x64xf32>
    %cst_203 = arith.constant 0.000000e+00 : f32
    %164 = vector.broadcast %cst_203 : f32 to vector<16x64xf32>
    %165 = arith.maximumf %163, %164 : vector<16x64xf32>
    %c0_204 = arith.constant 0 : index
    %c0_205 = arith.constant 0 : index
    %c0_206 = arith.constant 0 : index
    %c0_207 = arith.constant 0 : index
    %166 = vector.load %arg6[%c0_204, %c0_205, %c0_206, %c0_207] : memref<1x16x16x64xf32, #tpu.memory_space<vmem>>, vector<1x1x16x64xf32>
    %167 = vector.shape_cast %166 : vector<1x1x16x64xf32> to vector<16x64xf32>
    %168 = vector.shape_cast %165 : vector<16x64xf32> to vector<1x1x16x64xf32>
    tpu.vector_store %arg6[%c0_204, %c0_205, %c0_206, %c0_207], %168 {strides = array<i32>} : memref<1x16x16x64xf32, #tpu.memory_space<vmem>>, vector<1x1x16x64xf32>,
    %c24_208 = arith.constant 24 : index
    %c0_209 = arith.constant 0 : index
    %169 = vector.load %arg10[%c24_208, %c0_209] : memref<384x64xf32, #tpu.memory_space<vmem>>, vector<16x64xf32>
    %c0_210 = arith.constant 0 : index
    %c1_211 = arith.constant 1 : index
    %c0_212 = arith.constant 0 : index
    %c0_213 = arith.constant 0 : index
    %170 = vector.load %arg1[%c0_210, %c1_211, %c0_212, %c0_213] : memref<1x16x16x64xf32, #tpu.memory_space<vmem>>, vector<1x1x16x64xf32>
    %171 = vector.shape_cast %170 : vector<1x1x16x64xf32> to vector<16x64xf32>
    %172 = arith.addf %169, %171 : vector<16x64xf32>
    %cst_214 = arith.constant 0.000000e+00 : f32
    %173 = vector.broadcast %cst_214 : f32 to vector<16x64xf32>
    %174 = arith.maximumf %172, %173 : vector<16x64xf32>
    %c0_215 = arith.constant 0 : index
    %c1_216 = arith.constant 1 : index
    %c0_217 = arith.constant 0 : index
    %c0_218 = arith.constant 0 : index
    %175 = vector.load %arg6[%c0_215, %c1_216, %c0_217, %c0_218] : memref<1x16x16x64xf32, #tpu.memory_space<vmem>>, vector<1x1x16x64xf32>
    %176 = vector.shape_cast %175 : vector<1x1x16x64xf32> to vector<16x64xf32>
    %177 = vector.shape_cast %174 : vector<16x64xf32> to vector<1x1x16x64xf32>
    tpu.vector_store %arg6[%c0_215, %c1_216, %c0_217, %c0_218], %177 {strides = array<i32>} : memref<1x16x16x64xf32, #tpu.memory_space<vmem>>, vector<1x1x16x64xf32>,
    %c48_219 = arith.constant 48 : index
    %c0_220 = arith.constant 0 : index
    %178 = vector.load %arg10[%c48_219, %c0_220] : memref<384x64xf32, #tpu.memory_space<vmem>>, vector<16x64xf32>
    %c0_221 = arith.constant 0 : index
    %c2_222 = arith.constant 2 : index
    %c0_223 = arith.constant 0 : index
    %c0_224 = arith.constant 0 : index
    %179 = vector.load %arg1[%c0_221, %c2_222, %c0_223, %c0_224] : memref<1x16x16x64xf32, #tpu.memory_space<vmem>>, vector<1x1x16x64xf32>
    %180 = vector.shape_cast %179 : vector<1x1x16x64xf32> to vector<16x64xf32>
    %181 = arith.addf %178, %180 : vector<16x64xf32>
    %cst_225 = arith.constant 0.000000e+00 : f32
    %182 = vector.broadcast %cst_225 : f32 to vector<16x64xf32>
    %183 = arith.maximumf %181, %182 : vector<16x64xf32>
    %c0_226 = arith.constant 0 : index
    %c2_227 = arith.constant 2 : index
    %c0_228 = arith.constant 0 : index
    %c0_229 = arith.constant 0 : index
    %184 = vector.load %arg6[%c0_226, %c2_227, %c0_228, %c0_229] : memref<1x16x16x64xf32, #tpu.memory_space<vmem>>, vector<1x1x16x64xf32>
    %185 = vector.shape_cast %184 : vector<1x1x16x64xf32> to vector<16x64xf32>
    %186 = vector.shape_cast %183 : vector<16x64xf32> to vector<1x1x16x64xf32>
    tpu.vector_store %arg6[%c0_226, %c2_227, %c0_228, %c0_229], %186 {strides = array<i32>} : memref<1x16x16x64xf32, #tpu.memory_space<vmem>>, vector<1x1x16x64xf32>,
    %c72 = arith.constant 72 : index
    %c0_230 = arith.constant 0 : index
    %187 = vector.load %arg10[%c72, %c0_230] : memref<384x64xf32, #tpu.memory_space<vmem>>, vector<16x64xf32>
    %c0_231 = arith.constant 0 : index
    %c3_232 = arith.constant 3 : index
    %c0_233 = arith.constant 0 : index
    %c0_234 = arith.constant 0 : index
    %188 = vector.load %arg1[%c0_231, %c3_232, %c0_233, %c0_234] : memref<1x16x16x64xf32, #tpu.memory_space<vmem>>, vector<1x1x16x64xf32>
    %189 = vector.shape_cast %188 : vector<1x1x16x64xf32> to vector<16x64xf32>
    %190 = arith.addf %187, %189 : vector<16x64xf32>
    %cst_235 = arith.constant 0.000000e+00 : f32
    %191 = vector.broadcast %cst_235 : f32 to vector<16x64xf32>
    %192 = arith.maximumf %190, %191 : vector<16x64xf32>
    %c0_236 = arith.constant 0 : index
    %c3_237 = arith.constant 3 : index
    %c0_238 = arith.constant 0 : index
    %c0_239 = arith.constant 0 : index
    %193 = vector.load %arg6[%c0_236, %c3_237, %c0_238, %c0_239] : memref<1x16x16x64xf32, #tpu.memory_space<vmem>>, vector<1x1x16x64xf32>
    %194 = vector.shape_cast %193 : vector<1x1x16x64xf32> to vector<16x64xf32>
    %195 = vector.shape_cast %192 : vector<16x64xf32> to vector<1x1x16x64xf32>
    tpu.vector_store %arg6[%c0_236, %c3_237, %c0_238, %c0_239], %195 {strides = array<i32>} : memref<1x16x16x64xf32, #tpu.memory_space<vmem>>, vector<1x1x16x64xf32>,
    %c96 = arith.constant 96 : index
    %c0_240 = arith.constant 0 : index
    %196 = vector.load %arg10[%c96, %c0_240] : memref<384x64xf32, #tpu.memory_space<vmem>>, vector<16x64xf32>
    %c0_241 = arith.constant 0 : index
    %c4_242 = arith.constant 4 : index
    %c0_243 = arith.constant 0 : index
    %c0_244 = arith.constant 0 : index
    %197 = vector.load %arg1[%c0_241, %c4_242, %c0_243, %c0_244] : memref<1x16x16x64xf32, #tpu.memory_space<vmem>>, vector<1x1x16x64xf32>
    %198 = vector.shape_cast %197 : vector<1x1x16x64xf32> to vector<16x64xf32>
    %199 = arith.addf %196, %198 : vector<16x64xf32>
    %cst_245 = arith.constant 0.000000e+00 : f32
    %200 = vector.broadcast %cst_245 : f32 to vector<16x64xf32>
    %201 = arith.maximumf %199, %200 : vector<16x64xf32>
    %c0_246 = arith.constant 0 : index
    %c4_247 = arith.constant 4 : index
    %c0_248 = arith.constant 0 : index
    %c0_249 = arith.constant 0 : index
    %202 = vector.load %arg6[%c0_246, %c4_247, %c0_248, %c0_249] : memref<1x16x16x64xf32, #tpu.memory_space<vmem>>, vector<1x1x16x64xf32>
    %203 = vector.shape_cast %202 : vector<1x1x16x64xf32> to vector<16x64xf32>
    %204 = vector.shape_cast %201 : vector<16x64xf32> to vector<1x1x16x64xf32>
    tpu.vector_store %arg6[%c0_246, %c4_247, %c0_248, %c0_249], %204 {strides = array<i32>} : memref<1x16x16x64xf32, #tpu.memory_space<vmem>>, vector<1x1x16x64xf32>,
    %c120 = arith.constant 120 : index
    %c0_250 = arith.constant 0 : index
    %205 = vector.load %arg10[%c120, %c0_250] : memref<384x64xf32, #tpu.memory_space<vmem>>, vector<16x64xf32>
    %c0_251 = arith.constant 0 : index
    %c5_252 = arith.constant 5 : index
    %c0_253 = arith.constant 0 : index
    %c0_254 = arith.constant 0 : index
    %206 = vector.load %arg1[%c0_251, %c5_252, %c0_253, %c0_254] : memref<1x16x16x64xf32, #tpu.memory_space<vmem>>, vector<1x1x16x64xf32>
    %207 = vector.shape_cast %206 : vector<1x1x16x64xf32> to vector<16x64xf32>
    %208 = arith.addf %205, %207 : vector<16x64xf32>
    %cst_255 = arith.constant 0.000000e+00 : f32
    %209 = vector.broadcast %cst_255 : f32 to vector<16x64xf32>
    %210 = arith.maximumf %208, %209 : vector<16x64xf32>
    %c0_256 = arith.constant 0 : index
    %c5_257 = arith.constant 5 : index
    %c0_258 = arith.constant 0 : index
    %c0_259 = arith.constant 0 : index
    %211 = vector.load %arg6[%c0_256, %c5_257, %c0_258, %c0_259] : memref<1x16x16x64xf32, #tpu.memory_space<vmem>>, vector<1x1x16x64xf32>
    %212 = vector.shape_cast %211 : vector<1x1x16x64xf32> to vector<16x64xf32>
    %213 = vector.shape_cast %210 : vector<16x64xf32> to vector<1x1x16x64xf32>
    tpu.vector_store %arg6[%c0_256, %c5_257, %c0_258, %c0_259], %213 {strides = array<i32>} : memref<1x16x16x64xf32, #tpu.memory_space<vmem>>, vector<1x1x16x64xf32>,
    %c144 = arith.constant 144 : index
    %c0_260 = arith.constant 0 : index
    %214 = vector.load %arg10[%c144, %c0_260] : memref<384x64xf32, #tpu.memory_space<vmem>>, vector<16x64xf32>
    %c0_261 = arith.constant 0 : index
    %c6_262 = arith.constant 6 : index
    %c0_263 = arith.constant 0 : index
    %c0_264 = arith.constant 0 : index
    %215 = vector.load %arg1[%c0_261, %c6_262, %c0_263, %c0_264] : memref<1x16x16x64xf32, #tpu.memory_space<vmem>>, vector<1x1x16x64xf32>
    %216 = vector.shape_cast %215 : vector<1x1x16x64xf32> to vector<16x64xf32>
    %217 = arith.addf %214, %216 : vector<16x64xf32>
    %cst_265 = arith.constant 0.000000e+00 : f32
    %218 = vector.broadcast %cst_265 : f32 to vector<16x64xf32>
    %219 = arith.maximumf %217, %218 : vector<16x64xf32>
    %c0_266 = arith.constant 0 : index
    %c6_267 = arith.constant 6 : index
    %c0_268 = arith.constant 0 : index
    %c0_269 = arith.constant 0 : index
    %220 = vector.load %arg6[%c0_266, %c6_267, %c0_268, %c0_269] : memref<1x16x16x64xf32, #tpu.memory_space<vmem>>, vector<1x1x16x64xf32>
    %221 = vector.shape_cast %220 : vector<1x1x16x64xf32> to vector<16x64xf32>
    %222 = vector.shape_cast %219 : vector<16x64xf32> to vector<1x1x16x64xf32>
    tpu.vector_store %arg6[%c0_266, %c6_267, %c0_268, %c0_269], %222 {strides = array<i32>} : memref<1x16x16x64xf32, #tpu.memory_space<vmem>>, vector<1x1x16x64xf32>,
    %c168 = arith.constant 168 : index
    %c0_270 = arith.constant 0 : index
    %223 = vector.load %arg10[%c168, %c0_270] : memref<384x64xf32, #tpu.memory_space<vmem>>, vector<16x64xf32>
    %c0_271 = arith.constant 0 : index
    %c7_272 = arith.constant 7 : index
    %c0_273 = arith.constant 0 : index
    %c0_274 = arith.constant 0 : index
    %224 = vector.load %arg1[%c0_271, %c7_272, %c0_273, %c0_274] : memref<1x16x16x64xf32, #tpu.memory_space<vmem>>, vector<1x1x16x64xf32>
    %225 = vector.shape_cast %224 : vector<1x1x16x64xf32> to vector<16x64xf32>
    %226 = arith.addf %223, %225 : vector<16x64xf32>
    %cst_275 = arith.constant 0.000000e+00 : f32
    %227 = vector.broadcast %cst_275 : f32 to vector<16x64xf32>
    %228 = arith.maximumf %226, %227 : vector<16x64xf32>
    %c0_276 = arith.constant 0 : index
    %c7_277 = arith.constant 7 : index
    %c0_278 = arith.constant 0 : index
    %c0_279 = arith.constant 0 : index
    %229 = vector.load %arg6[%c0_276, %c7_277, %c0_278, %c0_279] : memref<1x16x16x64xf32, #tpu.memory_space<vmem>>, vector<1x1x16x64xf32>
    %230 = vector.shape_cast %229 : vector<1x1x16x64xf32> to vector<16x64xf32>
    %231 = vector.shape_cast %228 : vector<16x64xf32> to vector<1x1x16x64xf32>
    tpu.vector_store %arg6[%c0_276, %c7_277, %c0_278, %c0_279], %231 {strides = array<i32>} : memref<1x16x16x64xf32, #tpu.memory_space<vmem>>, vector<1x1x16x64xf32>,
    %c192 = arith.constant 192 : index
    %c0_280 = arith.constant 0 : index
    %232 = vector.load %arg10[%c192, %c0_280] : memref<384x64xf32, #tpu.memory_space<vmem>>, vector<16x64xf32>
    %c0_281 = arith.constant 0 : index
    %c8_282 = arith.constant 8 : index
    %c0_283 = arith.constant 0 : index
    %c0_284 = arith.constant 0 : index
    %233 = vector.load %arg1[%c0_281, %c8_282, %c0_283, %c0_284] : memref<1x16x16x64xf32, #tpu.memory_space<vmem>>, vector<1x1x16x64xf32>
    %234 = vector.shape_cast %233 : vector<1x1x16x64xf32> to vector<16x64xf32>
    %235 = arith.addf %232, %234 : vector<16x64xf32>
    %cst_285 = arith.constant 0.000000e+00 : f32
    %236 = vector.broadcast %cst_285 : f32 to vector<16x64xf32>
    %237 = arith.maximumf %235, %236 : vector<16x64xf32>
    %c0_286 = arith.constant 0 : index
    %c8_287 = arith.constant 8 : index
    %c0_288 = arith.constant 0 : index
    %c0_289 = arith.constant 0 : index
    %238 = vector.load %arg6[%c0_286, %c8_287, %c0_288, %c0_289] : memref<1x16x16x64xf32, #tpu.memory_space<vmem>>, vector<1x1x16x64xf32>
    %239 = vector.shape_cast %238 : vector<1x1x16x64xf32> to vector<16x64xf32>
    %240 = vector.shape_cast %237 : vector<16x64xf32> to vector<1x1x16x64xf32>
    tpu.vector_store %arg6[%c0_286, %c8_287, %c0_288, %c0_289], %240 {strides = array<i32>} : memref<1x16x16x64xf32, #tpu.memory_space<vmem>>, vector<1x1x16x64xf32>,
    %c216 = arith.constant 216 : index
    %c0_290 = arith.constant 0 : index
    %241 = vector.load %arg10[%c216, %c0_290] : memref<384x64xf32, #tpu.memory_space<vmem>>, vector<16x64xf32>
    %c0_291 = arith.constant 0 : index
    %c9_292 = arith.constant 9 : index
    %c0_293 = arith.constant 0 : index
    %c0_294 = arith.constant 0 : index
    %242 = vector.load %arg1[%c0_291, %c9_292, %c0_293, %c0_294] : memref<1x16x16x64xf32, #tpu.memory_space<vmem>>, vector<1x1x16x64xf32>
    %243 = vector.shape_cast %242 : vector<1x1x16x64xf32> to vector<16x64xf32>
    %244 = arith.addf %241, %243 : vector<16x64xf32>
    %cst_295 = arith.constant 0.000000e+00 : f32
    %245 = vector.broadcast %cst_295 : f32 to vector<16x64xf32>
    %246 = arith.maximumf %244, %245 : vector<16x64xf32>
    %c0_296 = arith.constant 0 : index
    %c9_297 = arith.constant 9 : index
    %c0_298 = arith.constant 0 : index
    %c0_299 = arith.constant 0 : index
    %247 = vector.load %arg6[%c0_296, %c9_297, %c0_298, %c0_299] : memref<1x16x16x64xf32, #tpu.memory_space<vmem>>, vector<1x1x16x64xf32>
    %248 = vector.shape_cast %247 : vector<1x1x16x64xf32> to vector<16x64xf32>
    %249 = vector.shape_cast %246 : vector<16x64xf32> to vector<1x1x16x64xf32>
    tpu.vector_store %arg6[%c0_296, %c9_297, %c0_298, %c0_299], %249 {strides = array<i32>} : memref<1x16x16x64xf32, #tpu.memory_space<vmem>>, vector<1x1x16x64xf32>,
    %c240 = arith.constant 240 : index
    %c0_300 = arith.constant 0 : index
    %250 = vector.load %arg10[%c240, %c0_300] : memref<384x64xf32, #tpu.memory_space<vmem>>, vector<16x64xf32>
    %c0_301 = arith.constant 0 : index
    %c10_302 = arith.constant 10 : index
    %c0_303 = arith.constant 0 : index
    %c0_304 = arith.constant 0 : index
    %251 = vector.load %arg1[%c0_301, %c10_302, %c0_303, %c0_304] : memref<1x16x16x64xf32, #tpu.memory_space<vmem>>, vector<1x1x16x64xf32>
    %252 = vector.shape_cast %251 : vector<1x1x16x64xf32> to vector<16x64xf32>
    %253 = arith.addf %250, %252 : vector<16x64xf32>
    %cst_305 = arith.constant 0.000000e+00 : f32
    %254 = vector.broadcast %cst_305 : f32 to vector<16x64xf32>
    %255 = arith.maximumf %253, %254 : vector<16x64xf32>
    %c0_306 = arith.constant 0 : index
    %c10_307 = arith.constant 10 : index
    %c0_308 = arith.constant 0 : index
    %c0_309 = arith.constant 0 : index
    %256 = vector.load %arg6[%c0_306, %c10_307, %c0_308, %c0_309] : memref<1x16x16x64xf32, #tpu.memory_space<vmem>>, vector<1x1x16x64xf32>
    %257 = vector.shape_cast %256 : vector<1x1x16x64xf32> to vector<16x64xf32>
    %258 = vector.shape_cast %255 : vector<16x64xf32> to vector<1x1x16x64xf32>
    tpu.vector_store %arg6[%c0_306, %c10_307, %c0_308, %c0_309], %258 {strides = array<i32>} : memref<1x16x16x64xf32, #tpu.memory_space<vmem>>, vector<1x1x16x64xf32>,
    %c264 = arith.constant 264 : index
    %c0_310 = arith.constant 0 : index
    %259 = vector.load %arg10[%c264, %c0_310] : memref<384x64xf32, #tpu.memory_space<vmem>>, vector<16x64xf32>
    %c0_311 = arith.constant 0 : index
    %c11_312 = arith.constant 11 : index
    %c0_313 = arith.constant 0 : index
    %c0_314 = arith.constant 0 : index
    %260 = vector.load %arg1[%c0_311, %c11_312, %c0_313, %c0_314] : memref<1x16x16x64xf32, #tpu.memory_space<vmem>>, vector<1x1x16x64xf32>
    %261 = vector.shape_cast %260 : vector<1x1x16x64xf32> to vector<16x64xf32>
    %262 = arith.addf %259, %261 : vector<16x64xf32>
    %cst_315 = arith.constant 0.000000e+00 : f32
    %263 = vector.broadcast %cst_315 : f32 to vector<16x64xf32>
    %264 = arith.maximumf %262, %263 : vector<16x64xf32>
    %c0_316 = arith.constant 0 : index
    %c11_317 = arith.constant 11 : index
    %c0_318 = arith.constant 0 : index
    %c0_319 = arith.constant 0 : index
    %265 = vector.load %arg6[%c0_316, %c11_317, %c0_318, %c0_319] : memref<1x16x16x64xf32, #tpu.memory_space<vmem>>, vector<1x1x16x64xf32>
    %266 = vector.shape_cast %265 : vector<1x1x16x64xf32> to vector<16x64xf32>
    %267 = vector.shape_cast %264 : vector<16x64xf32> to vector<1x1x16x64xf32>
    tpu.vector_store %arg6[%c0_316, %c11_317, %c0_318, %c0_319], %267 {strides = array<i32>} : memref<1x16x16x64xf32, #tpu.memory_space<vmem>>, vector<1x1x16x64xf32>,
    %c288 = arith.constant 288 : index
    %c0_320 = arith.constant 0 : index
    %268 = vector.load %arg10[%c288, %c0_320] : memref<384x64xf32, #tpu.memory_space<vmem>>, vector<16x64xf32>
    %c0_321 = arith.constant 0 : index
    %c12_322 = arith.constant 12 : index
    %c0_323 = arith.constant 0 : index
    %c0_324 = arith.constant 0 : index
    %269 = vector.load %arg1[%c0_321, %c12_322, %c0_323, %c0_324] : memref<1x16x16x64xf32, #tpu.memory_space<vmem>>, vector<1x1x16x64xf32>
    %270 = vector.shape_cast %269 : vector<1x1x16x64xf32> to vector<16x64xf32>
    %271 = arith.addf %268, %270 : vector<16x64xf32>
    %cst_325 = arith.constant 0.000000e+00 : f32
    %272 = vector.broadcast %cst_325 : f32 to vector<16x64xf32>
    %273 = arith.maximumf %271, %272 : vector<16x64xf32>
    %c0_326 = arith.constant 0 : index
    %c12_327 = arith.constant 12 : index
    %c0_328 = arith.constant 0 : index
    %c0_329 = arith.constant 0 : index
    %274 = vector.load %arg6[%c0_326, %c12_327, %c0_328, %c0_329] : memref<1x16x16x64xf32, #tpu.memory_space<vmem>>, vector<1x1x16x64xf32>
    %275 = vector.shape_cast %274 : vector<1x1x16x64xf32> to vector<16x64xf32>
    %276 = vector.shape_cast %273 : vector<16x64xf32> to vector<1x1x16x64xf32>
    tpu.vector_store %arg6[%c0_326, %c12_327, %c0_328, %c0_329], %276 {strides = array<i32>} : memref<1x16x16x64xf32, #tpu.memory_space<vmem>>, vector<1x1x16x64xf32>,
    %c312 = arith.constant 312 : index
    %c0_330 = arith.constant 0 : index
    %277 = vector.load %arg10[%c312, %c0_330] : memref<384x64xf32, #tpu.memory_space<vmem>>, vector<16x64xf32>
    %c0_331 = arith.constant 0 : index
    %c13_332 = arith.constant 13 : index
    %c0_333 = arith.constant 0 : index
    %c0_334 = arith.constant 0 : index
    %278 = vector.load %arg1[%c0_331, %c13_332, %c0_333, %c0_334] : memref<1x16x16x64xf32, #tpu.memory_space<vmem>>, vector<1x1x16x64xf32>
    %279 = vector.shape_cast %278 : vector<1x1x16x64xf32> to vector<16x64xf32>
    %280 = arith.addf %277, %279 : vector<16x64xf32>
    %cst_335 = arith.constant 0.000000e+00 : f32
    %281 = vector.broadcast %cst_335 : f32 to vector<16x64xf32>
    %282 = arith.maximumf %280, %281 : vector<16x64xf32>
    %c0_336 = arith.constant 0 : index
    %c13_337 = arith.constant 13 : index
    %c0_338 = arith.constant 0 : index
    %c0_339 = arith.constant 0 : index
    %283 = vector.load %arg6[%c0_336, %c13_337, %c0_338, %c0_339] : memref<1x16x16x64xf32, #tpu.memory_space<vmem>>, vector<1x1x16x64xf32>
    %284 = vector.shape_cast %283 : vector<1x1x16x64xf32> to vector<16x64xf32>
    %285 = vector.shape_cast %282 : vector<16x64xf32> to vector<1x1x16x64xf32>
    tpu.vector_store %arg6[%c0_336, %c13_337, %c0_338, %c0_339], %285 {strides = array<i32>} : memref<1x16x16x64xf32, #tpu.memory_space<vmem>>, vector<1x1x16x64xf32>,
    %c336 = arith.constant 336 : index
    %c0_340 = arith.constant 0 : index
    %286 = vector.load %arg10[%c336, %c0_340] : memref<384x64xf32, #tpu.memory_space<vmem>>, vector<16x64xf32>
    %c0_341 = arith.constant 0 : index
    %c14_342 = arith.constant 14 : index
    %c0_343 = arith.constant 0 : index
    %c0_344 = arith.constant 0 : index
    %287 = vector.load %arg1[%c0_341, %c14_342, %c0_343, %c0_344] : memref<1x16x16x64xf32, #tpu.memory_space<vmem>>, vector<1x1x16x64xf32>
    %288 = vector.shape_cast %287 : vector<1x1x16x64xf32> to vector<16x64xf32>
    %289 = arith.addf %286, %288 : vector<16x64xf32>
    %cst_345 = arith.constant 0.000000e+00 : f32
    %290 = vector.broadcast %cst_345 : f32 to vector<16x64xf32>
    %291 = arith.maximumf %289, %290 : vector<16x64xf32>
    %c0_346 = arith.constant 0 : index
    %c14_347 = arith.constant 14 : index
    %c0_348 = arith.constant 0 : index
    %c0_349 = arith.constant 0 : index
    %292 = vector.load %arg6[%c0_346, %c14_347, %c0_348, %c0_349] : memref<1x16x16x64xf32, #tpu.memory_space<vmem>>, vector<1x1x16x64xf32>
    %293 = vector.shape_cast %292 : vector<1x1x16x64xf32> to vector<16x64xf32>
    %294 = vector.shape_cast %291 : vector<16x64xf32> to vector<1x1x16x64xf32>
    tpu.vector_store %arg6[%c0_346, %c14_347, %c0_348, %c0_349], %294 {strides = array<i32>} : memref<1x16x16x64xf32, #tpu.memory_space<vmem>>, vector<1x1x16x64xf32>,
    %c360 = arith.constant 360 : index
    %c0_350 = arith.constant 0 : index
    %295 = vector.load %arg10[%c360, %c0_350] : memref<384x64xf32, #tpu.memory_space<vmem>>, vector<16x64xf32>
    %c0_351 = arith.constant 0 : index
    %c15_352 = arith.constant 15 : index
    %c0_353 = arith.constant 0 : index
    %c0_354 = arith.constant 0 : index
    %296 = vector.load %arg1[%c0_351, %c15_352, %c0_353, %c0_354] : memref<1x16x16x64xf32, #tpu.memory_space<vmem>>, vector<1x1x16x64xf32>
    %297 = vector.shape_cast %296 : vector<1x1x16x64xf32> to vector<16x64xf32>
    %298 = arith.addf %295, %297 : vector<16x64xf32>
    %cst_355 = arith.constant 0.000000e+00 : f32
    %299 = vector.broadcast %cst_355 : f32 to vector<16x64xf32>
    %300 = arith.maximumf %298, %299 : vector<16x64xf32>
    %c0_356 = arith.constant 0 : index
    %c15_357 = arith.constant 15 : index
    %c0_358 = arith.constant 0 : index
    %c0_359 = arith.constant 0 : index
    %301 = vector.load %arg6[%c0_356, %c15_357, %c0_358, %c0_359] : memref<1x16x16x64xf32, #tpu.memory_space<vmem>>, vector<1x1x16x64xf32>
    %302 = vector.shape_cast %301 : vector<1x1x16x64xf32> to vector<16x64xf32>
    %303 = vector.shape_cast %300 : vector<16x64xf32> to vector<1x1x16x64xf32>
    tpu.vector_store %arg6[%c0_356, %c15_357, %c0_358, %c0_359], %303 {strides = array<i32>} : memref<1x16x16x64xf32, #tpu.memory_space<vmem>>, vector<1x1x16x64xf32>,
    return
  }
  func.func @transform_0(%arg0: i32) -> (i32, i32, i32, i32) {
    %c0_i32 = arith.constant 0 : i32
    %c0_i32_0 = arith.constant 0 : i32
    %c0_i32_1 = arith.constant 0 : i32
    %c0_i32_2 = arith.constant 0 : i32
    return %arg0, %c0_i32, %c0_i32_0, %c0_i32_1 : i32, i32, i32, i32
  }
  func.func @transform_1(%arg0: i32) -> (i32, i32, i32) {
    %c0_i32 = arith.constant 0 : i32
    %c0_i32_0 = arith.constant 0 : i32
    %c0_i32_1 = arith.constant 0 : i32
    %c0_i32_2 = arith.constant 0 : i32
    return %c0_i32, %c0_i32_0, %c0_i32_1 : i32, i32, i32
  }
  func.func @transform_2(%arg0: i32) -> (i32, i32) {
    %c0_i32 = arith.constant 0 : i32
    %c0_i32_0 = arith.constant 0 : i32
    %c0_i32_1 = arith.constant 0 : i32
    return %c0_i32, %c0_i32_0 : i32, i32
  }
  func.func @transform_3(%arg0: i32) -> (i32, i32, i32) {
    %c0_i32 = arith.constant 0 : i32
    %c0_i32_0 = arith.constant 0 : i32
    %c0_i32_1 = arith.constant 0 : i32
    %c0_i32_2 = arith.constant 0 : i32
    return %c0_i32, %c0_i32_0, %c0_i32_1 : i32, i32, i32
  }
  func.func @transform_4(%arg0: i32) -> (i32, i32) {
    %c0_i32 = arith.constant 0 : i32
    %c0_i32_0 = arith.constant 0 : i32
    %c0_i32_1 = arith.constant 0 : i32
    return %c0_i32, %c0_i32_0 : i32, i32
  }
  func.func @transform_5(%arg0: i32) -> (i32, i32, i32, i32) {
    %c0_i32 = arith.constant 0 : i32
    %c0_i32_0 = arith.constant 0 : i32
    %c0_i32_1 = arith.constant 0 : i32
    %c0_i32_2 = arith.constant 0 : i32
    return %arg0, %c0_i32, %c0_i32_0, %c0_i32_1 : i32, i32, i32, i32
  }
}

</mosaic_0001>

<bundles_post_ra>
// kernel: basic_block_forward.1
= control target key start
LH: loop header
LB: loop body
LE: loop exit
PB: predicated region body
PF: predicated region fallthrough
CT: control target
= control target key end

     0   :  { %10 = vsyncpa [#allocation7], 0  ;;  %s15977_s0 = inlined_call_operand.vmem [shape: f32[2,16,16,64], index: 0, kind: input, shape index: {}]   ;;  %s15978_s1 = inlined_call_operand.vmem [shape: bf16[3,192,64], index: 1, kind: input, shape index: {}]   ;;  %s15979_s2 = inlined_call_operand.vmem [shape: f32[1,64], index: 2, kind: input, shape index: {}]   ;;  %s15980_s3 = inlined_call_operand.vmem [shape: bf16[3,192,64], index: 3, kind: input, shape index: {}]   ;;  %s15981_s4 = inlined_call_operand.vmem [shape: f32[1,64], index: 4, kind: input, shape index: {}]   ;;  %s15982_s5 = inlined_call_operand.hbm [shape: f32[2,16,16,64], index: 5, kind: output, shape index: {}]  }
   0x1   :  { %12 = vsyncpa [#allocation7 + $0x1], 0  ;;  %s12278_s18 = smov 0   ;;  %s12280_s19 = smov 0  }
   0x2   :  { %s12282_s20 = smov 0   ;;  %s12284_s21 = smov 0  }
   0x3 LB: > { %s12299_s22 = sadd.s32 4294967295, %s12241_s21   ;;  %s10596_s23 = sadd.s32 4294967294, %s12241_s21   ;;  %s12241_s21 = sphi %s12284_s21, %s16013_s21   ;;  %s12237_s20 = sphi %s12282_s20, %s16012_s20   ;;  %s12233_s19 = sphi %s12280_s19, %s16011_s19   ;;  %s12229_s18 = sphi %s12278_s18, %s16010_s18  }
   0x4   : > { %s12303_s24 = sadd.s32 1, %s12241_s21   ;;  %s135_s25 = sadd.s32 1, %s12237_s20 }
   0x5   : > { %s132_s26 = ssub.s32 %s12241_s21, %s12303_s24  ;;  %p145_p0 = scmp.ne.s32.totalorder %s12237_s20, %s12233_s19 }
   0x6   : > { %p133_p1 = scmp.eq.s32.totalorder %s132_s26, 0  ;;  %p146_p2 = scmp.eq.s32.totalorder %s12299_s22, 1 }
   0x7   : > { %p151_p3 = scmp.ne.s32.totalorder %s12233_s19, %s12229_s18  ;;  %p152_p4 = scmp.eq.s32.totalorder %s10596_s23, 1 }
   0x8   : > { %s12314_s27 = scalar_select %p133_p1, %s12237_s20, %s135_s25  }
   0x9   : > { %p12316_p5 = por %p146_p2, %p145_p0  ;;  %p12320_p6 = por %p152_p4, %p151_p3 }
   0xa   : > { %p10599_p7 = scmp.ge.s32.totalorder %s12241_s21, 1  ;;  %p190_p8 = scmp.lt.s32.totalorder %s12241_s21, 3 }
   0xc   : > { %p191_p9 = pnand %p10599_p7, %p190_p8 }
   0xe   : > { %194 = sbr.rel (%p191_p9) target bundleno = 1436 (0x59c), region = 40 }
  0x15   : > { %p218_p10 = scmp.lt.s32.totalorder %s12299_s22, 1  ;;  %vm224_vm0 = vcmask 519168   ;;  %v15983_v0 = vmov 0   ;;  %vm314_vm1 = vsmask.f32 7938  ;;  %v11682_v1 = vld [vmem:[%s15978_s1] sm:$0xff]  }
  0x16   : > { %225 = vst.msk [vmem:[#allocation2] sm:$0xf] %vm224_vm0, %v15983_v0  ;;  %226 = vst.msk [vmem:[#allocation2 + $0x4] sm:$0xf] %vm224_vm0, %v15983_v0  ;;  %3425 = vmatprep.subr.bf16.mxu1 %v15983_v0  ;;  %3056 = vmatprep.subr.bf16.mxu0 %v15983_v0  ;;  %v11683_v2 = vld [vmem:[%s15978_s1 + $0x8] sm:$0xff]   ;;  %v11686_v3 = vld [vmem:[%s15978_s1 + $0x60] sm:$0xff]  }
  0x17   : > { %227 = vst.msk [vmem:[#allocation2 + $0x8] sm:$0xf] %vm224_vm0, %v15983_v0  ;;  %228 = vst.msk [vmem:[#allocation2 + $0xc] sm:$0xf] %vm224_vm0, %v15983_v0  ;;  %s219_s30 = scalar_select %p218_p10, %s12299_s22, 1  ;;  %3426 = vmatpush1.bf16.msra.mxu1 %v11682_v1  ;;  %3057 = vmatpush1.bf16.msra.mxu0 %v11686_v3  ;;  %vm320_vm4 = vcmask 516096  }
  0x18   : > { %229 = vst.msk [vmem:[#allocation2 + $0x10] sm:$0xf] %vm224_vm0, %v15983_v0  ;;  %230 = vst.msk [vmem:[#allocation2 + $0x14] sm:$0xf] %vm224_vm0, %v15983_v0  ;;  %vm290_vm2 = vsmask.f32 256  ;;  %3427 = vmatprep.subr.bf16.mxu1 %v15983_v0  ;;  %3058 = vmatprep.subr.bf16.mxu0 %v15983_v0 }
  0x19   : > { %231 = vst.msk [vmem:[#allocation2 + $0x18] sm:$0xf] %vm224_vm0, %v15983_v0  ;;  %232 = vst.msk [vmem:[#allocation2 + $0x1c] sm:$0xf] %vm224_vm0, %v15983_v0  ;;  %s11536_s8 = sshll.u32 %s219_s30, 8  ;;  %s12244_s26 = smov 64  }
  0x1a   : > { %233 = vst.msk [vmem:[#allocation2 + $0x20] sm:$0xf] %vm224_vm0, %v15983_v0  ;;  %234 = vst.msk [vmem:[#allocation2 + $0x24] sm:$0xf] %vm224_vm0, %v15983_v0  ;;  %s12561_s13 = scalar_lea.vmem %s15977_s0, %s11536_s8  ;;  %vm291_vm3 = vsmask.f32 4368 }
  0x1b   : > { %235 = vst.msk [vmem:[#allocation2 + $0x28] sm:$0xf] %vm224_vm0, %v15983_v0  ;;  %236 = vst.msk [vmem:[#allocation2 + $0x2c] sm:$0xf] %vm224_vm0, %v15983_v0  ;;  %v282_v4 = vld [vmem:[%s12561_s13] sm:$0xff]  ;;  %v283_v5 = vld [vmem:[%s12561_s13 + $0x8] sm:$0xff]  ;;  %3428 = vmatpush1.bf16.msra.mxu1 %v11683_v2 }
  0x1c   : > { %237 = vst.msk [vmem:[#allocation2 + $0x30] sm:$0xf] %vm224_vm0, %v15983_v0  ;;  %238 = vst.msk [vmem:[#allocation2 + $0x34] sm:$0xf] %vm224_vm0, %v15983_v0  ;;  %v10605_v6 = vld [vmem:[%s12561_s13 + $0x10] sm:$0xff]  ;;  %v11537_v7 = vpack.c.bf16 %v282_v4, %v282_v4  ;;  %v11538_v8 = vpack.c.bf16 %v283_v5, %v283_v5  ;;  %v10606_v10 = vld [vmem:[%s12561_s13 + $0x18] sm:$0xff]  ;;  %3429 = vmatprep.subr.bf16.mxu1 %v15983_v0 }
  0x1d   : > { %239 = vst.msk [vmem:[#allocation2 + $0x38] sm:$0xf] %vm224_vm0, %v15983_v0  ;;  %240 = vst.msk [vmem:[#allocation2 + $0x3c] sm:$0xf] %vm224_vm0, %v15983_v0  ;;  %v11539_v9 = vpack.c.bf16 %v10605_v6, %v10605_v6  ;;  %v10609_v11 = vld [vmem:[%s12561_s13 + $0x20] sm:$0xff]  ;;  %v11540_v12 = vpack.c.bf16 %v10606_v10, %v10606_v10  ;;  %v10610_v14 = vld [vmem:[%s12561_s13 + $0x28] sm:$0xff] }
  0x1e   : > { %241 = vst.msk [vmem:[#allocation2 + $0x40] sm:$0xf] %vm224_vm0, %v15983_v0  ;;  %242 = vst.msk [vmem:[#allocation2 + $0x44] sm:$0xf] %vm224_vm0, %v15983_v0  ;;  %v12572_v13 = vpack.c.bf16 %v10609_v11, %v10609_v11  ;;  %v294_v15 = vshrl.u32 %v11537_v7, 16  ;;  %v297_v16 = vshll.u32 %v11537_v7, 16  ;;  %v11542_v26 = vpack.c.bf16 %v10610_v14, %v10610_v14 }
  0x1f   : > { %243 = vst.msk [vmem:[#allocation2 + $0x48] sm:$0xf] %vm224_vm0, %v15983_v0  ;;  %244 = vst.msk [vmem:[#allocation2 + $0x4c] sm:$0xf] %vm224_vm0, %v15983_v0  ;;  %v12576_v17 = vld [vmem:[#allocation2] sm:$0xff]   ;;  %v302_v18 = vshrl.u32 %v11538_v8, 16 }
  0x20   : > { %245 = vst.msk [vmem:[#allocation2 + $0x50] sm:$0xf] %vm224_vm0, %v15983_v0  ;;  %246 = vst.msk [vmem:[#allocation2 + $0x54] sm:$0xf] %vm224_vm0, %v15983_v0  ;;  %v305_v19 = vshll.u32 %v11538_v8, 16  ;;  %v335_v20 = vshrl.u32 %v11539_v9, 16 }
  0x21   : > { %247 = vst.msk [vmem:[#allocation2 + $0x58] sm:$0xf] %vm224_vm0, %v15983_v0  ;;  %248 = vst.msk [vmem:[#allocation2 + $0x5c] sm:$0xf] %vm224_vm0, %v15983_v0  ;;  %v338_v21 = vshll.u32 %v11539_v9, 16  ;;  %v343_v22 = vshrl.u32 %v11540_v12, 16 }
  0x22   : > { %249 = vst.msk [vmem:[#allocation2 + $0x60] sm:$0xf] %vm224_vm0, %v15983_v0  ;;  %250 = vst.msk [vmem:[#allocation2 + $0x64] sm:$0xf] %vm224_vm0, %v15983_v0  ;;  %v296_v23 = vrot.slane %v294_v15, 7  ;;  %v304_v25 = vrot.slane %v302_v18, 7 }
  0x23   : > { %251 = vst.msk [vmem:[#allocation2 + $0x68] sm:$0xf] %vm224_vm0, %v15983_v0  ;;  %252 = vst.msk [vmem:[#allocation2 + $0x6c] sm:$0xf] %vm224_vm0, %v15983_v0  ;;  %v316_v27 = vld [vmem:[#allocation2 + $0xc] sm:$0xf] }
  0x24   : > { %253 = vst.msk [vmem:[#allocation2 + $0x70] sm:$0xf] %vm224_vm0, %v15983_v0  ;;  %254 = vst.msk [vmem:[#allocation2 + $0x74] sm:$0xf] %vm224_vm0, %v15983_v0  ;;  %v337_v29 = vrot.slane %v335_v20, 7  ;;  %v345_v30 = vrot.slane %v343_v22, 7  ;;  %v299_v33 = vor.u32 %v297_v16, %v296_v23  ;;  %v307_v36 = vor.u32 %v305_v19, %v304_v25 }
  0x25   : > { %255 = vst.msk [vmem:[#allocation2 + $0x78] sm:$0xf] %vm224_vm0, %v15983_v0  ;;  %256 = vst.msk [vmem:[#allocation2 + $0x7c] sm:$0xf] %vm224_vm0, %v15983_v0  ;;  %v346_v31 = vshll.u32 %v11540_v12, 16  ;;  %v371_v32 = vshrl.u32 %v12572_v13, 16 }
  0x26   : > { %257 = vst.msk [vmem:[#allocation2 + $0x80] sm:$0xf] %vm224_vm0, %v15983_v0  ;;  %258 = vst.msk [vmem:[#allocation2 + $0x84] sm:$0xf] %vm224_vm0, %v15983_v0  ;;  %v1258_v34 = vshll.u32 %v12576_v17, 16  ;;  %v300_v35 = vrot.slane %v296_v23, 4  ;;  %v340_v41 = vor.u32 %v338_v21, %v337_v29 }
  0x27   : > { %259 = vst.msk [vmem:[#allocation2 + $0x88] sm:$0xf] %vm224_vm0, %v15983_v0  ;;  %260 = vst.msk [vmem:[#allocation2 + $0x8c] sm:$0xf] %vm224_vm0, %v15983_v0  ;;  %v322_v38 = vld [vmem:[#allocation2 + $0x14] sm:$0x1]  ;;  %v348_v43 = vor.u32 %v346_v31, %v345_v30 }
  0x28   : > { %261 = vst.msk [vmem:[#allocation2 + $0x90] sm:$0xf] %vm224_vm0, %v15983_v0  ;;  %262 = vst.msk [vmem:[#allocation2 + $0x94] sm:$0xf] %vm224_vm0, %v15983_v0  ;;  %v354_v39 = vld [vmem:[#allocation2 + $0x18] sm:$0xf] }
  0x29   : > { %263 = vst.msk [vmem:[#allocation2 + $0x98] sm:$0xf] %vm224_vm0, %v15983_v0  ;;  %264 = vst.msk [vmem:[#allocation2 + $0x9c] sm:$0xf] %vm224_vm0, %v15983_v0  ;;  %v309_v40 = vrot.slane %v304_v25, 4  ;;  %v341_v42 = vrot.slane %v337_v29, 4 }
  0x2a   : > { %265 = vst.msk [vmem:[#allocation2 + $0xa0] sm:$0xf] %vm224_vm0, %v15983_v0  ;;  %266 = vst.msk [vmem:[#allocation2 + $0xa4] sm:$0xf] %vm224_vm0, %v15983_v0  ;;  %v358_v44 = vld [vmem:[#allocation2 + $0x20] sm:$0x1] }
  0x2b   : > { %267 = vst.msk [vmem:[#allocation2 + $0xa8] sm:$0xf] %vm224_vm0, %v15983_v0  ;;  %268 = vst.msk [vmem:[#allocation2 + $0xac] sm:$0xf] %vm224_vm0, %v15983_v0  ;;  %v1256_v46 = vshrl.u32 %v12576_v17, 16  ;;  %v350_v48 = vrot.slane %v345_v30, 4 }
  0x2c   : > { %269 = vst.msk [vmem:[#allocation2 + $0xb0] sm:$0xf] %vm224_vm0, %v15983_v0  ;;  %270 = vst.msk [vmem:[#allocation2 + $0xb4] sm:$0xf] %vm224_vm0, %v15983_v0  ;;  %v10613_v49 = vld [vmem:[%s12561_s13 + $0x30] sm:$0xff]  ;;  %v10614_v50 = vld [vmem:[%s12561_s13 + $0x38] sm:$0xff] }
  0x2d   : > { %271 = vst.msk [vmem:[#allocation2 + $0xb8] sm:$0xf] %vm224_vm0, %v15983_v0  ;;  %272 = vst.msk [vmem:[#allocation2 + $0xbc] sm:$0xf] %vm224_vm0, %v15983_v0  ;;  %v10617_v51 = vld [vmem:[%s12561_s13 + $0x40] sm:$0xff]  ;;  %v373_v55 = vrot.slane %v371_v32, 7  ;;  %v11543_v63 = vpack.c.bf16 %v10613_v49, %v10613_v49  ;;  %v11544_v1 = vpack.c.bf16 %v10614_v50, %v10614_v50 }
  0x2e   : > { %273 = vst.msk [vmem:[#allocation2 + $0xc0] sm:$0xf] %vm224_vm0, %v15983_v0  ;;  %274 = vst.msk [vmem:[#allocation2 + $0xc4] sm:$0xf] %vm224_vm0, %v15983_v0  ;;  %v10618_v56 = vld [vmem:[%s12561_s13 + $0x48] sm:$0xff]  ;;  %v374_v58 = vshll.u32 %v12572_v13, 16  ;;  %v11545_v2 = vpack.c.bf16 %v10617_v51, %v10617_v51 }
  0x2f   : > { %275 = vst.msk [vmem:[#allocation2 + $0xc8] sm:$0xf] %vm224_vm0, %v15983_v0  ;;  %276 = vst.msk [vmem:[#allocation2 + $0xcc] sm:$0xf] %vm224_vm0, %v15983_v0  ;;  %v379_v59 = vshrl.u32 %v11542_v26, 16  ;;  %v382_v60 = vshll.u32 %v11542_v26, 16  ;;  %v12619_v6 = vpack.c.bf16 %v10618_v56, %v10618_v56 }
  0x30   : > { %277 = vst.msk [vmem:[#allocation2 + $0xd0] sm:$0xf] %vm224_vm0, %v15983_v0  ;;  %278 = vst.msk [vmem:[#allocation2 + $0xd4] sm:$0xf] %vm224_vm0, %v15983_v0  ;;  %vm1254_vm8 = vsmask.f32 7424  ;;  %v376_v3 = vor.u32 %v374_v58, %v373_v55 }
  0x31   : > { %279 = vst.msk [vmem:[#allocation2 + $0xd8] sm:$0xf] %vm224_vm0, %v15983_v0  ;;  %5192 = vst.msk [vmem:[#allocation3] sm:$0xf] %vm224_vm0, %v15983_v0  ;;  %v1260_v61 = vrot.slane %v1258_v34, 1  ;;  %v377_v4 = vrot.slane %v373_v55, 4 }
  0x32   : > { %5193 = vst.msk [vmem:[#allocation3 + $0x4] sm:$0xf] %vm224_vm0, %v15983_v0  ;;  %5194 = vst.msk [vmem:[#allocation3 + $0x8] sm:$0xf] %vm224_vm0, %v15983_v0  ;;  %v390_v62 = vld [vmem:[#allocation2 + $0x24] sm:$0xf] }
  0x33   : > { %5195 = vst.msk [vmem:[#allocation3 + $0xc] sm:$0xf] %vm224_vm0, %v15983_v0  ;;  %5196 = vst.msk [vmem:[#allocation3 + $0x10] sm:$0xf] %vm224_vm0, %v15983_v0  ;;  %v381_v5 = vrot.slane %v379_v59, 7  ;;  %v407_v8 = vshrl.u32 %v11543_v63, 16 }
  0x34   : > { %5197 = vst.msk [vmem:[#allocation3 + $0x14] sm:$0xf] %vm224_vm0, %v15983_v0  ;;  %5198 = vst.msk [vmem:[#allocation3 + $0x18] sm:$0xf] %vm224_vm0, %v15983_v0  ;;  %v394_v7 = vld [vmem:[#allocation2 + $0x2c] sm:$0x1] }
  0x35   : > { %5199 = vst.msk [vmem:[#allocation3 + $0x1c] sm:$0xf] %vm224_vm0, %v15983_v0  ;;  %5200 = vst.msk [vmem:[#allocation3 + $0x20] sm:$0xf] %vm224_vm0, %v15983_v0  ;;  %v410_v9 = vshll.u32 %v11543_v63, 16  ;;  %v415_v10 = vshrl.u32 %v11544_v1, 16  ;;  %v384_v13 = vor.u32 %v382_v60, %v381_v5 }
  0x36   : > { %5201 = vst.msk [vmem:[#allocation3 + $0x24] sm:$0xf] %vm224_vm0, %v15983_v0  ;;  %5202 = vst.msk [vmem:[#allocation3 + $0x28] sm:$0xf] %vm224_vm0, %v15983_v0  ;;  %v418_v11 = vshll.u32 %v11544_v1, 16  ;;  %v386_v14 = vrot.slane %v381_v5, 4 }
  0x37   : > { %5203 = vst.msk [vmem:[#allocation3 + $0x2c] sm:$0xf] %vm224_vm0, %v15983_v0  ;;  %5204 = vst.msk [vmem:[#allocation3 + $0x30] sm:$0xf] %vm224_vm0, %v15983_v0  ;;  %v426_v15 = vld [vmem:[#allocation2 + $0x30] sm:$0xf] }
  0x38   : > { %5205 = vst.msk [vmem:[#allocation3 + $0x34] sm:$0xf] %vm224_vm0, %v15983_v0  ;;  %5206 = vst.msk [vmem:[#allocation3 + $0x38] sm:$0xf] %vm224_vm0, %v15983_v0  ;;  %v443_v16 = vshrl.u32 %v11545_v2, 16  ;;  %v11687_v18 = vld [vmem:[%s15978_s1 + $0x10] sm:$0xff]  }
  0x39   : > { %5207 = vst.msk [vmem:[#allocation3 + $0x3c] sm:$0xf] %vm224_vm0, %v15983_v0  ;;  %5208 = vst.msk [vmem:[#allocation3 + $0x40] sm:$0xf] %vm224_vm0, %v15983_v0  ;;  %v11688_v19 = vld [vmem:[%s15978_s1 + $0x68] sm:$0xff]   ;;  %v409_v20 = vrot.slane %v407_v8, 7  ;;  %3430 = vmatpush1.bf16.msra.mxu1 %v11687_v18 }
  0x3a   : > { %5209 = vst.msk [vmem:[#allocation3 + $0x44] sm:$0xf] %vm224_vm0, %v15983_v0  ;;  %5210 = vst.msk [vmem:[#allocation3 + $0x48] sm:$0xf] %vm224_vm0, %v15983_v0  ;;  %v12629_v21 = vrot.slane %v415_v10, 7  ;;  %v446_v22 = vshll.u32 %v11545_v2, 16  ;;  %3059 = vmatpush1.bf16.msra.mxu0 %v11688_v19  ;;  %3431 = vmatprep.subr.bf16.mxu1 %v15983_v0 }
  0x3b   : > { %5211 = vst.msk [vmem:[#allocation3 + $0x4c] sm:$0xf] %vm224_vm0, %v15983_v0  ;;  %5212 = vst.msk [vmem:[#allocation3 + $0x50] sm:$0xf] %vm224_vm0, %v15983_v0  ;;  %v462_v23 = vld [vmem:[#allocation2 + $0x3c] sm:$0xf]  ;;  %3060 = vmatprep.subr.bf16.mxu0 %v15983_v0 }
  0x3c   : > { %5213 = vst.msk [vmem:[#allocation3 + $0x54] sm:$0xf] %vm224_vm0, %v15983_v0  ;;  %5214 = vst.msk [vmem:[#allocation3 + $0x58] sm:$0xf] %vm224_vm0, %v15983_v0  ;;  %v451_v25 = vshrl.u32 %v12619_v6, 16  ;;  %v10621_v26 = vld [vmem:[%s12561_s13 + $0x50] sm:$0xff] }
  0x3d   : > { %5215 = vst.msk [vmem:[#allocation3 + $0x5c] sm:$0xf] %vm224_vm0, %v15983_v0  ;;  %5216 = vst.msk [vmem:[#allocation3 + $0x60] sm:$0xf] %vm224_vm0, %v15983_v0  ;;  %v12637_v31 = vrot.slane %v443_v16, 7  ;;  %v413_v34 = vrot.slane %v409_v20, 4  ;;  %v12654_v50 = vpack.c.bf16 %v10621_v26, %v10621_v26 }
  0x3e   : > { %5217 = vst.msk [vmem:[#allocation3 + $0x64] sm:$0xf] %vm224_vm0, %v15983_v0  ;;  %5218 = vst.msk [vmem:[#allocation3 + $0x68] sm:$0xf] %vm224_vm0, %v15983_v0  ;;  %v10625_v55 = vld [vmem:[%s12561_s13 + $0x60] sm:$0xff]  ;;  %v10626_v56 = vld [vmem:[%s12561_s13 + $0x68] sm:$0xff] }
  0x3f   : > { %5219 = vst.msk [vmem:[#allocation3 + $0x6c] sm:$0xf] %vm224_vm0, %v15983_v0  ;;  %5220 = vst.msk [vmem:[#allocation3 + $0x70] sm:$0xf] %vm224_vm0, %v15983_v0  ;;  %v10629_v10 = vld [vmem:[%s12561_s13 + $0x70] sm:$0xff]  ;;  %v12664_v19 = vpack.c.bf16 %v10625_v55, %v10625_v55  ;;  %vm1057_vm9 = vcmask 523264  }
  0x40   : > { %5221 = vst.msk [vmem:[#allocation3 + $0x74] sm:$0xf] %vm224_vm0, %v15983_v0  ;;  %5222 = vst.msk [vmem:[#allocation3 + $0x78] sm:$0xf] %vm224_vm0, %v15983_v0  ;;  %vm1720_vm10 = vcmask 1046528   ;;  %vm1523_vm11 = vcmask 1048064  }
  0x41   : > { %5223 = vst.msk [vmem:[#allocation3 + $0x7c] sm:$0xf] %vm224_vm0, %v15983_v0  ;;  %5224 = vst.msk [vmem:[#allocation3 + $0x80] sm:$0xf] %vm224_vm0, %v15983_v0  ;;  %s215_s6 = sand.u32 1, %s12233_s19   ;;  %s11617_s9 = sshll.u32 %s12299_s22, 12 }
  0x42   : > { %5225 = vst.msk [vmem:[#allocation3 + $0x84] sm:$0xf] %vm224_vm0, %v15983_v0  ;;  %5226 = vst.msk [vmem:[#allocation3 + $0x88] sm:$0xf] %vm224_vm0, %v15983_v0  ;;  %s10600_s7 = sshll.u32 %s215_s6, 8  ;;  %s15928_s14 = scalar_lea.hbm %s15982_s5, %s11617_s9 }
  0x43   : > { %5227 = vst.msk [vmem:[#allocation3 + $0x8c] sm:$0xf] %vm224_vm0, %v15983_v0  ;;  %5228 = vst.msk [vmem:[#allocation3 + $0x90] sm:$0xf] %vm224_vm0, %v15983_v0  ;;  %s15742_s8 = scalar_lea.vmem [#allocation6], %s10600_s7  ;;  %s12245_s15 = smov [#allocation6]  }
  0x44   : > { %5229 = vst.msk [vmem:[#allocation3 + $0x94] sm:$0xf] %vm224_vm0, %v15983_v0  ;;  %5230 = vst.msk [vmem:[#allocation3 + $0x98] sm:$0xf] %vm224_vm0, %v15983_v0  ;;  %s10534_s10 = sshll.u32 %s15742_s8, 4  ;;  %s12183_s16 = sshll.u32 %s12245_s15, 4  ;;  %s15930_s10 = int_to_ptr.vmem [resolvable:$true] %s10534_s10  ;;  %s12184_s16 = int_to_ptr.vmem [resolvable:$false] %s12183_s16 }
  0x45   : > { %5231 = vst.msk [vmem:[#allocation3 + $0x9c] sm:$0xf] %vm224_vm0, %v15983_v0  ;;  %5232 = vst.msk [vmem:[#allocation3 + $0xa0] sm:$0xf] %vm224_vm0, %v15983_v0  ;;  %s12179_s22 = scalar_lea.vmem %s15930_s10, 4096  ;;  %s12185_s17 = scalar_lea.vmem %s12184_s16, 8192 }
  0x46   : > { %5233 = vst.msk [vmem:[#allocation3 + $0xa4] sm:$0xf] %vm224_vm0, %v15983_v0  ;;  %5234 = vst.msk [vmem:[#allocation3 + $0xa8] sm:$0xf] %vm224_vm0, %v15983_v0  ;;  %p12180_p11 = scmp.ne.s32.totalorder %s15930_s10, %s12179_s22  ;;  %p12186_p0 = scmp.lt.s32.totalorder %s15930_s10, %s12184_s16 }
  0x47   : > { %5235 = vst.msk [vmem:[#allocation3 + $0xac] sm:$0xf] %vm224_vm0, %v15983_v0  ;;  %5236 = vst.msk [vmem:[#allocation3 + $0xb0] sm:$0xf] %vm224_vm0, %v15983_v0  ;;  %p12187_p1 = scmp.lt.s32.totalorder %s12185_s17, %s12179_s22 }
  0x48   : > { %5237 = vst.msk [vmem:[#allocation3 + $0xb4] sm:$0xf] %vm224_vm0, %v15983_v0  ;;  %5238 = vst.msk [vmem:[#allocation3 + $0xb8] sm:$0xf] %vm224_vm0, %v15983_v0  ;;  %p12181_p12 = pnand %p12180_p11, %p12316_p5 }
  0x49   : > { %5239 = vst.msk [vmem:[#allocation3 + $0xbc] sm:$0xf] %vm224_vm0, %v15983_v0  ;;  %5240 = vst.msk [vmem:[#allocation3 + $0xc0] sm:$0xf] %vm224_vm0, %v15983_v0  ;;  %p12188_p2 = por %p12187_p1, %p12186_p0 }
  0x4a   : > { %5241 = vst.msk [vmem:[#allocation3 + $0xc4] sm:$0xf] %vm224_vm0, %v15983_v0  ;;  %5242 = vst.msk [vmem:[#allocation3 + $0xc8] sm:$0xf] %vm224_vm0, %v15983_v0  ;;  %p12182_p13 = pneg %p12181_p12 }
  0x4b   : > { %5243 = vst.msk [vmem:[#allocation3 + $0xcc] sm:$0xf] %vm224_vm0, %v15983_v0  ;;  %5244 = vst.msk [vmem:[#allocation3 + $0xd0] sm:$0xf] %vm224_vm0, %v15983_v0 }
  0x4c   : > { %5245 = vst.msk [vmem:[#allocation3 + $0xd4] sm:$0xf] %vm224_vm0, %v15983_v0  ;;  %5246 = vst.msk [vmem:[#allocation3 + $0xd8] sm:$0xf] %vm224_vm0, %v15983_v0  ;;  %p12189_p3 = pnand %p12188_p2, %p12182_p13 }
  0x4d   : > { %vm12581_vm5 = vmand %vm224_vm0, %vm314_vm1 }
  0x4e   : > { %vm12587_vm6 = vmor %vm290_vm2, %vm291_vm3  ;;  %v317_v45 = vsel %vm12581_vm5, %v299_v33, %v316_v27  ;;  %v355_v53 = vsel %vm12581_vm5, %v340_v41, %v354_v39  ;;  %v391_v12 = vsel %vm12581_vm5, %v376_v3, %v390_v62  ;;  %v412_v33 = vor.u32 %v410_v9, %v409_v20  ;;  %v10622_v41 = vld [vmem:[%s12561_s13 + $0x58] sm:$0xff] }
  0x4f   : > { %vm12595_vm7 = vmand %vm320_vm4, %vm290_vm2  ;;  %v308_v47 = vsel %vm12587_vm6, %v300_v35, %v307_v36  ;;  %318 = vst [vmem:[#allocation2 + $0xc] sm:$0xf] %v317_v45  ;;  %v349_v54 = vsel %vm12587_vm6, %v341_v42, %v348_v43  ;;  %v385_v29 = vsel %vm12587_vm6, %v377_v4, %v384_v13  ;;  %v420_v35 = vor.u32 %v418_v11, %v12629_v21 }
  0x50   : > { %319 = vst.msk [vmem:[#allocation2 + $0x10] sm:$0xf] %vm224_vm0, %v308_v47  ;;  %v323_v52 = vsel %vm12595_vm7, %v309_v40, %v322_v38  ;;  %356 = vst [vmem:[#allocation2 + $0x18] sm:$0xf] %v355_v53  ;;  %v359_v57 = vsel %vm12595_vm7, %v350_v48, %v358_v44  ;;  %v395_v30 = vsel %vm12595_vm7, %v386_v14, %v394_v7 }
  0x51   : > { %324 = vst [vmem:[#allocation2 + $0x14] sm:$0x1] %v323_v52  ;;  %357 = vst.msk [vmem:[#allocation2 + $0x1c] sm:$0xf] %vm224_vm0, %v349_v54  ;;  %v1261_v36 = vor.u32 %v1260_v61, %v1256_v46  ;;  %v448_v40 = vor.u32 %v446_v22, %v12637_v31  ;;  %v427_v47 = vsel %vm12581_vm5, %v412_v33, %v426_v15  ;;  %v11689_v22 = vld [vmem:[%s15978_s1 + $0x18] sm:$0xff]  }
  0x52   : > { %360 = vst [vmem:[#allocation2 + $0x20] sm:$0x1] %v359_v57  ;;  %392 = vst [vmem:[#allocation2 + $0x24] sm:$0xf] %v391_v12  ;;  %v421_v48 = vsel %vm12587_vm6, %v413_v34, %v420_v35  ;;  %v12660_v3 = vpack.c.bf16 %v10622_v41, %v10622_v41  ;;  %v12666_v20 = vpack.c.bf16 %v10626_v56, %v10626_v56  ;;  %3432 = vmatpush1.bf16.msra.mxu1 %v11689_v22  ;;  %v466_v56 = vld [vmem:[#allocation2 + $0x44] sm:$0x1] }
  0x53   : > { %393 = vst.msk [vmem:[#allocation2 + $0x28] sm:$0xf] %vm224_vm0, %v385_v29  ;;  %396 = vst [vmem:[#allocation2 + $0x2c] sm:$0x1] %v395_v30  ;;  %v463_v46 = vsel %vm12581_vm5, %v448_v40, %v462_v23  ;;  %3433 = vmatprep.subr.bf16.mxu1 %v15983_v0 }
  0x54   : > { %428 = vst [vmem:[#allocation2 + $0x30] sm:$0xf] %v427_v47  ;;  %429 = vst.msk [vmem:[#allocation2 + $0x34] sm:$0xf] %vm224_vm0, %v421_v48 }
  0x55   : > { %464 = vst [vmem:[#allocation2 + $0x3c] sm:$0xf] %v463_v46 }
  0x56   : > { %v11662_v27 = vld [vmem:[#allocation2 + $0x8] sm:$0xff]  }
  0x57   : > { %v1263_v38 = vshll.u32 %v11662_v27, 16  ;;  %v1267_v39 = vshrl.u32 %v11662_v27, 16  ;;  %v11664_v43 = vld [vmem:[#allocation2 + $0xc] sm:$0xff]  }
  0x58   : > { %v11663_v32 = vld [vmem:[#allocation2 + $0x10] sm:$0xff]   ;;  %v11666_v17 = vld [vmem:[#allocation2 + $0x18] sm:$0xff]   ;;  %v2279_v52 = vshrl.u32 %v11664_v43, 16  ;;  %v2281_v53 = vshll.u32 %v11664_v43, 16 }
  0x59   : > { %v1271_v42 = vshll.u32 %v11663_v32, 16  ;;  %v11665_v44 = vld [vmem:[#allocation2 + $0x14] sm:$0xff]   ;;  %v1275_v45 = vshrl.u32 %v11663_v32, 16  ;;  %v1265_v49 = vrot.slane %v1263_v38, 1  ;;  %v1279_v59 = vshll.u32 %v11666_v17, 16  ;;  %v11667_v60 = vld [vmem:[#allocation2 + $0x1c] sm:$0xff]  }
  0x5a   : > { %v2286_v54 = vshll.u32 %v11665_v44, 16  ;;  %v2290_v61 = vshrl.u32 %v11665_v44, 16  ;;  %v11668_v62 = vld [vmem:[#allocation2 + $0x20] sm:$0xff]   ;;  %v2283_v63 = vrot.slane %v2281_v53, 1  ;;  %v2294_v7 = vshll.u32 %v11667_v60, 16  ;;  %v11670_v18 = vld [vmem:[#allocation2 + $0x28] sm:$0xff]  }
  0x5b   : > { %v1273_v51 = vrot.slane %v1271_v42, 1  ;;  %v1266_v57 = vsel %vm1254_vm8, %v1261_v36, %v1265_v49  ;;  %v1269_v58 = vor.u32 %v1267_v39, %v1265_v49  ;;  %v1281_v5 = vrot.slane %v1279_v59, 1  ;;  %v11669_v9 = vld [vmem:[#allocation2 + $0x24] sm:$0xff]   ;;  %v12675_v35 = vld [vmem:[#allocation2 + $0x2c] sm:$0xff]   ;;  %v430_v38 = vld [vmem:[#allocation2 + $0x38] sm:$0x1] }
  0x5c   : > { %1451 = vrot.lane.b32.xlu0 %v1266_v57, %s12244_s26  ;;  %v2288_v1 = vrot.slane %v2286_v54, 1  ;;  %v1283_v8 = vshrl.u32 %v11666_v17, 16  ;;  %v2284_v11 = vor.u32 %v2283_v63, %v2279_v52  ;;  %v1287_v13 = vshll.u32 %v11668_v62, 16  ;;  %v12677_v36 = vld [vmem:[#allocation2 + $0x30] sm:$0xff]  }
  0x5d   : > { %v1277_v2 = vor.u32 %v1275_v45, %v1273_v51  ;;  %v1274_v4 = vsel %vm1254_vm8, %v1269_v58, %v1273_v51  ;;  %v2298_v14 = vshrl.u32 %v11667_v60, 16  ;;  %v2296_v15 = vrot.slane %v2294_v7, 1  ;;  %v11692_v51 = vld [vmem:[%s15978_s1 + $0x70] sm:$0xff]   ;;  %v11693_v60 = vld [vmem:[%s15978_s1 + $0x20] sm:$0xff]  }
  0x5e   : > { %v2292_v12 = vor.u32 %v2290_v61, %v2288_v1  ;;  %v2302_v16 = vshll.u32 %v11669_v9, 16  ;;  %v2289_v23 = vsel %vm1254_vm8, %v2284_v11, %v2288_v1  ;;  %v1285_v26 = vor.u32 %v1283_v8, %v1281_v5  ;;  %3061 = vmatpush1.bf16.msra.mxu0 %v11692_v51  ;;  %3434 = vmatpush1.bf16.msra.mxu1 %v11693_v60 }
  0x5f   : > { %v1289_v27 = vrot.slane %v1287_v13, 1  ;;  %v1291_v29 = vshrl.u32 %v11668_v62, 16  ;;  %2474 = vrot.lane.b32.xlu1 %v2289_v23, %s12244_s26  ;;  %v2300_v32 = vor.u32 %v2298_v14, %v2296_v15  ;;  %v1295_v34 = vshll.u32 %v11670_v18, 16  ;;  %3062 = vmatprep.subr.bf16.mxu0 %v15983_v0  ;;  %v502_v13 = vld [vmem:[#allocation2 + $0x50] sm:$0x1] }
  0x60   : > { %1453 = vrot.lane.b32.xlu0 %v1274_v4, %s12244_s26  ;;  %v2297_v30 = vsel %vm1254_vm8, %v2292_v12, %v2296_v15  ;;  %v2304_v33 = vrot.slane %v2302_v16, 1  ;;  %v1282_v39 = vsel %vm1254_vm8, %v1277_v2, %v1281_v5  ;;  %v2306_v40 = vshrl.u32 %v11669_v9, 16  ;;  %v11694_v4 = vld [vmem:[%s15978_s1 + $0x78] sm:$0xff]   ;;  %v498_v5 = vld [vmem:[#allocation2 + $0x48] sm:$0xf]  ;;  %3435 = vmatprep.subr.bf16.mxu1 %v15983_v0 }
  0x61   : > { %v1299_v41 = vshrl.u32 %v11670_v18, 16  ;;  %v12680_v42 = vpack.c.bf16 %v10629_v10, %v10629_v10  ;;  %v1293_v43 = vor.u32 %v1291_v29, %v1289_v27  ;;  %v1297_v44 = vrot.slane %v1295_v34, 1  ;;  %v534_v14 = vld [vmem:[#allocation2 + $0x54] sm:$0xf]  ;;  %v11695_v29 = vld [vmem:[%s15978_s1 + $0x28] sm:$0xff]  }
  0x62   : > { %v2310_v45 = vshll.u32 %v12675_v35, 16  ;;  %v1303_v47 = vshll.u32 %v12677_v36, 16  ;;  %v1290_v48 = vsel %vm1254_vm8, %v1285_v26, %v1289_v27  ;;  %v2308_v49 = vor.u32 %v2306_v40, %v2304_v33  ;;  %3063 = vmatpush1.bf16.msra.mxu0 %v11694_v4  ;;  %v538_v34 = vld [vmem:[#allocation2 + $0x5c] sm:$0x1]  ;;  %3436 = vmatpush1.bf16.msra.mxu1 %v11695_v29 }
  0x63   : > { %v422_v17 = vrot.slane %v12629_v21, 4  ;;  %v2314_v46 = vshrl.u32 %v12675_v35, 16  ;;  %1455 = vrot.lane.b32.xlu1 %v1282_v39, %s12244_s26  ;;  %v2305_v52 = vsel %vm1254_vm8, %v2300_v32, %v2304_v33  ;;  %v1301_v54 = vor.u32 %v1299_v41, %v1297_v44  ;;  %3064 = vmatprep.subr.bf16.mxu0 %v15983_v0 }
  0x64   : > { %2476 = vrot.lane.b32.xlu0 %v2297_v30, %s12244_s26  ;;  %v2312_v53 = vrot.slane %v2310_v45, 1  ;;  %v12694_v55 = vrot.slane %v1303_v47, 1  ;;  %v449_v21 = vrot.slane %v12637_v31, 4  ;;  %v453_v58 = vrot.slane %v451_v25, 7  ;;  %3437 = vmatprep.subr.bf16.mxu1 %v15983_v0 }
  0x65   : > { %v431_v57 = vsel %vm12595_vm7, %v422_v17, %v430_v38  ;;  %v454_v59 = vshll.u32 %v12619_v6, 16  ;;  %v1298_v61 = vsel %vm1254_vm8, %v1293_v43, %v1297_v44  ;;  %v1307_v31 = vshrl.u32 %v12677_v36, 16  ;;  %v570_v43 = vld [vmem:[#allocation2 + $0x60] sm:$0xf] }
  0x66   : > { %v2313_v62 = vsel %vm1254_vm8, %v2308_v49, %v2312_v53  ;;  %v12709_v63 = vsel %vm1254_vm8, %v1301_v54, %v12694_v55  ;;  %432 = vst [vmem:[#allocation2 + $0x38] sm:$0x1] %v431_v57  ;;  %v458_v25 = vrot.slane %v453_v58, 4  ;;  %v479_v1 = vshrl.u32 %v12654_v50, 16 }
  0x67   : > { %v456_v6 = vor.u32 %v454_v59, %v453_v58  ;;  %v482_v2 = vshll.u32 %v12654_v50, 16  ;;  %1457 = vrot.lane.b32.xlu1 %v1290_v48, %s12244_s26  ;;  %v487_v7 = vshrl.u32 %v12660_v3, 16  ;;  %v490_v8 = vshll.u32 %v12660_v3, 16  ;;  %v11700_v58 = vld [vmem:[%s15978_s1 + $0x88] sm:$0xff]  }
  0x68   : > { %2478 = vrot.lane.b32.xlu0 %v2305_v52, %s12244_s26  ;;  %v515_v9 = vshrl.u32 %v12664_v19, 16  ;;  %v518_v10 = vshll.u32 %v12664_v19, 16  ;;  %v467_v11 = vsel %vm12595_vm7, %v458_v25, %v466_v56  ;;  %v481_v12 = vrot.slane %v479_v1, 7  ;;  %v11698_v52 = vld [vmem:[%s15978_s1 + $0x80] sm:$0xff]  }
  0x69   : > { %v457_v50 = vsel %vm12587_vm6, %v449_v21, %v456_v6  ;;  %v523_v15 = vshrl.u32 %v12666_v20, 16  ;;  %468 = vst [vmem:[#allocation2 + $0x44] sm:$0x1] %v467_v11  ;;  %v489_v3 = vrot.slane %v487_v7, 7  ;;  %v526_v18 = vshll.u32 %v12666_v20, 16  ;;  %3065 = vmatpush1.bf16.msra.mxu0 %v11698_v52 }
  0x6a   : > { %465 = vst.msk [vmem:[#allocation2 + $0x40] sm:$0xf] %vm224_vm0, %v457_v50  ;;  %v517_v16 = vrot.slane %v515_v9, 7  ;;  %v551_v19 = vshrl.u32 %v12680_v42, 16  ;;  %v484_v22 = vor.u32 %v482_v2, %v481_v12  ;;  %v485_v23 = vrot.slane %v481_v12, 4  ;;  %3066 = vmatprep.subr.bf16.mxu0 %v15983_v0  ;;  %v10633_v9 = vld [vmem:[%s12561_s13 + $0x80] sm:$0xff] }
  0x6b   : > { %v525_v26 = vrot.slane %v523_v15, 7  ;;  %v554_v27 = vshll.u32 %v12680_v42, 16  ;;  %1459 = vrot.lane.b32.xlu1 %v1298_v61, %s12244_s26  ;;  %v492_v30 = vor.u32 %v490_v8, %v489_v3  ;;  %v494_v32 = vrot.slane %v489_v3, 4 }
  0x6c   : > { %2480 = vrot.lane.b32.xlu0 %v2313_v62, %s12244_s26  ;;  %v520_v20 = vor.u32 %v518_v10, %v517_v16  ;;  %v521_v33 = vrot.slane %v517_v16, 4  ;;  %v2316_v38 = vor.u32 %v2314_v46, %v2312_v53  ;;  %v499_v39 = vsel %vm12581_vm5, %v484_v22, %v498_v5  ;;  %v11699_v53 = vld [vmem:[%s15978_s1 + $0x30] sm:$0xff]   ;;  %v10630_v5 = vld [vmem:[%s12561_s13 + $0x78] sm:$0xff]  ;;  %v10634_v10 = vld [vmem:[%s12561_s13 + $0x88] sm:$0xff] }
  0x6d   : > { %v11673_v35 = vld [vmem:[#allocation2 + $0x34] sm:$0xff]   ;;  %v528_v40 = vor.u32 %v526_v18, %v525_v26  ;;  %v530_v41 = vrot.slane %v525_v26, 4  ;;  %500 = vst [vmem:[#allocation2 + $0x48] sm:$0xf] %v499_v39  ;;  %v493_v44 = vsel %vm12587_vm6, %v485_v23, %v492_v30  ;;  %v503_v45 = vsel %vm12595_vm7, %v494_v32, %v502_v13  ;;  %3438 = vmatpush1.bf16.msra.mxu1 %v11699_v53 }
  0x6e   : > { %v11674_v42 = vld [vmem:[#allocation2 + $0x38] sm:$0xff]   ;;  %v535_v47 = vsel %vm12581_vm5, %v520_v20, %v534_v14  ;;  %v12748_v48 = vrot.slane %v551_v19, 7  ;;  %v2318_v49 = vshll.u32 %v11673_v35, 16  ;;  %v2322_v17 = vshrl.u32 %v11673_v35, 16  ;;  %501 = vst.msk [vmem:[#allocation2 + $0x4c] sm:$0xf] %vm224_vm0, %v493_v44  ;;  %3439 = vmatprep.subr.bf16.mxu1 %v15983_v0  ;;  %3067 = vmatpush1.bf16.msra.mxu0 %v11700_v58 }
  0x6f   : > { %504 = vst [vmem:[#allocation2 + $0x50] sm:$0x1] %v503_v45  ;;  %536 = vst [vmem:[#allocation2 + $0x54] sm:$0xf] %v535_v47  ;;  %v529_v46 = vsel %vm12587_vm6, %v521_v33, %v528_v40  ;;  %v539_v51 = vsel %vm12595_vm7, %v530_v41, %v538_v34  ;;  %1461 = vrot.lane.b32.xlu1 %v12709_v63, %s12244_s26  ;;  %v1309_v54 = vor.u32 %v1307_v31, %v12694_v55  ;;  %v11701_v53 = vld [vmem:[%s15978_s1 + $0x38] sm:$0xff]  }
  0x70   : > { %v1311_v56 = vshll.u32 %v11674_v42, 16  ;;  %v1315_v57 = vshrl.u32 %v11674_v42, 16  ;;  %537 = vst.msk [vmem:[#allocation2 + $0x58] sm:$0xf] %vm224_vm0, %v529_v46  ;;  %540 = vst [vmem:[#allocation2 + $0x5c] sm:$0x1] %v539_v51  ;;  %v556_v21 = vor.u32 %v554_v27, %v12748_v48  ;;  %3068 = vmatprep.subr.bf16.mxu0 %v15983_v0  ;;  %v11552_v32 = vpack.c.bf16 %v10630_v5, %v10630_v5 }
  0x71   : > { %v2320_v59 = vrot.slane %v2318_v49, 1  ;;  %v11675_v60 = vld [vmem:[#allocation2 + $0x3c] sm:$0xff]   ;;  %v12788_v34 = vpack.c.bf16 %v10633_v9, %v10633_v9  ;;  %v12790_v35 = vpack.c.bf16 %v10634_v10, %v10634_v10  ;;  %3440 = vmatpush1.bf16.msra.mxu1 %v11701_v53  ;;  %v606_v5 = vld [vmem:[#allocation2 + $0x6c] sm:$0xf] }
  0x72   : > { %v1313_v61 = vrot.slane %v1311_v56, 1  ;;  %v11676_v62 = vld [vmem:[#allocation2 + $0x40] sm:$0xff]   ;;  %v571_v36 = vsel %vm12581_vm5, %v556_v21, %v570_v43  ;;  %v2326_v31 = vshll.u32 %v11675_v60, 16  ;;  %v2330_v6 = vshrl.u32 %v11675_v60, 16  ;;  %3441 = vmatprep.subr.bf16.mxu1 %v15983_v0 }
  0x73   : > { %v2321_v55 = vsel %vm1254_vm8, %v2316_v38, %v2320_v59  ;;  %v2324_v63 = vor.u32 %v2322_v17, %v2320_v59  ;;  %572 = vst [vmem:[#allocation2 + $0x60] sm:$0xf] %v571_v36  ;;  %v1319_v2 = vshll.u32 %v11676_v62, 16  ;;  %v1323_v4 = vshrl.u32 %v11676_v62, 16 }
  0x74   : > { %2482 = vrot.lane.b32.xlu0 %v2321_v55, %s12244_s26  ;;  %v1314_v25 = vsel %vm1254_vm8, %v1309_v54, %v1313_v61  ;;  %v1317_v1 = vor.u32 %v1315_v57, %v1313_v61  ;;  %v2328_v7 = vrot.slane %v2326_v31, 1  ;;  %v11677_v8 = vld [vmem:[#allocation2 + $0x44] sm:$0xff]   ;;  %v559_v59 = vshrl.u32 %v11552_v32, 16  ;;  %v10637_v61 = vld [vmem:[%s12561_s13 + $0x90] sm:$0xff] }
  0x75   : > { %1463 = vrot.lane.b32.xlu1 %v1314_v25, %s12244_s26  ;;  %v1321_v50 = vrot.slane %v1319_v2, 1  ;;  %v11678_v11 = vld [vmem:[#allocation2 + $0x48] sm:$0xff]   ;;  %v2334_v14 = vshll.u32 %v11677_v8, 16  ;;  %v2338_v3 = vshrl.u32 %v11677_v8, 16  ;;  %v562_v60 = vshll.u32 %v11552_v32, 16  ;;  %v11704_v31 = vld [vmem:[%s15978_s1 + $0x90] sm:$0xff]  }
  0x76   : > { %v2329_v12 = vsel %vm1254_vm8, %v2324_v63, %v2328_v7  ;;  %v2332_v13 = vor.u32 %v2330_v6, %v2328_v7  ;;  %v11679_v15 = vld [vmem:[#allocation2 + $0x4c] sm:$0xff]   ;;  %v1327_v22 = vshll.u32 %v11678_v11, 16  ;;  %v1331_v23 = vshrl.u32 %v11678_v11, 16  ;;  %v574_v63 = vld [vmem:[#allocation2 + $0x68] sm:$0x1]  ;;  %v11705_v6 = vld [vmem:[%s15978_s1 + $0x40] sm:$0xff]   ;;  %3069 = vmatpush1.bf16.msra.mxu0 %v11704_v31 }
  0x77   : > { %v11680_v16 = vld [vmem:[#allocation2 + $0x50] sm:$0xff]   ;;  %v1322_v18 = vsel %vm1254_vm8, %v1317_v1, %v1321_v50  ;;  %v1325_v19 = vor.u32 %v1323_v4, %v1321_v50  ;;  %v2336_v26 = vrot.slane %v2334_v14, 1  ;;  %v2342_v27 = vshll.u32 %v11679_v15, 16  ;;  %v12793_v43 = vld [vmem:[#allocation2 + $0x58] sm:$0xff]   ;;  %3442 = vmatpush1.bf16.msra.mxu1 %v11705_v6  ;;  %3070 = vmatprep.subr.bf16.mxu0 %v15983_v0 }
  0x78   : > { %2484 = vrot.lane.b32.xlu0 %v2329_v12, %s12244_s26  ;;  %v1335_v29 = vshll.u32 %v11680_v16, 16  ;;  %v11681_v30 = vld [vmem:[#allocation2 + $0x54] sm:$0xff]   ;;  %v1329_v20 = vrot.slane %v1327_v22, 1  ;;  %v2346_v33 = vshrl.u32 %v11679_v15, 16  ;;  %v1339_v49 = vshrl.u32 %v11680_v16, 16  ;;  %3443 = vmatprep.subr.bf16.mxu1 %v15983_v0  ;;  %v11707_v15 = vld [vmem:[%s15978_s1 + $0x48] sm:$0xff]  }
  0x79   : > { %1465 = vrot.lane.b32.xlu1 %v1322_v18, %s12244_s26  ;;  %v2337_v38 = vsel %vm1254_vm8, %v2332_v13, %v2336_v26  ;;  %v2340_v39 = vor.u32 %v2338_v3, %v2336_v26  ;;  %v2344_v40 = vrot.slane %v2342_v27, 1  ;;  %v2350_v47 = vshll.u32 %v11681_v30, 16  ;;  %v11706_v11 = vld [vmem:[%s15978_s1 + $0x98] sm:$0xff]   ;;  %v11710_v26 = vld [vmem:[#allocation2] sm:$0xff]  }
  0x7a   : > { %v1337_v41 = vrot.slane %v1335_v29, 1  ;;  %v12795_v42 = vld [vmem:[#allocation2 + $0x5c] sm:$0xff]   ;;  %v1330_v44 = vsel %vm1254_vm8, %v1325_v19, %v1329_v20  ;;  %v1333_v45 = vor.u32 %v1331_v23, %v1329_v20  ;;  %v1343_v51 = vshll.u32 %v12793_v43, 16  ;;  %v610_v23 = vld [vmem:[#allocation2 + $0x74] sm:$0x1]  ;;  %3071 = vmatpush1.bf16.msra.mxu0 %v11706_v11  ;;  %1058 = vst.msk [vmem:[#allocation4] sm:$0xff] %vm1057_vm9, %v11710_v26 }
  0x7b   : > { %v2345_v17 = vsel %vm1254_vm8, %v2340_v39, %v2344_v40  ;;  %v2348_v46 = vor.u32 %v2346_v33, %v2344_v40  ;;  %v2354_v52 = vshrl.u32 %v11681_v30, 16  ;;  %v2352_v56 = vrot.slane %v2350_v47, 1  ;;  %v10638_v3 = vld [vmem:[%s12561_s13 + $0x98] sm:$0xff]  ;;  %v11711_v20 = vld [vmem:[%s15978_s1 + $0xa0] sm:$0xff]   ;;  %3444 = vmatpush1.bf16.msra.mxu1 %v11707_v15  ;;  %3072 = vmatprep.subr.bf16.mxu0 %v15983_v0  ;;  %v11713_v47 = vld [vmem:[%s15978_s1 + $0xa8] sm:$0xff]  }
  0x7c   : > { %2486 = vrot.lane.b32.xlu0 %v2337_v38, %s12244_s26  ;;  %v1338_v54 = vsel %vm1254_vm8, %v1333_v45, %v1337_v41  ;;  %v1341_v57 = vor.u32 %v1339_v49, %v1337_v41  ;;  %v2358_v21 = vshll.u32 %v12795_v42, 16  ;;  %v12807_v58 = vrot.slane %v1343_v51, 1  ;;  %3445 = vmatprep.subr.bf16.mxu1 %v15983_v0  ;;  %v11712_v41 = vld [vmem:[%s15978_s1 + $0x50] sm:$0xff]   ;;  %v10641_v51 = vld [vmem:[%s12561_s13 + $0xa0] sm:$0xff] }
  0x7d   : > { %1467 = vrot.lane.b32.xlu1 %v1330_v44, %s12244_s26  ;;  %v2356_v62 = vor.u32 %v2354_v52, %v2352_v56  ;;  %v557_v55 = vrot.slane %v12748_v48, 4  ;;  %v2353_v25 = vsel %vm1254_vm8, %v2348_v46, %v2352_v56  ;;  %v561_v1 = vrot.slane %v559_v59, 7  ;;  %v646_v46 = vld [vmem:[#allocation2 + $0x80] sm:$0x1]  ;;  %v11714_v56 = vld [vmem:[%s15978_s1 + $0x58] sm:$0xff]  }
  0x7e   : > { %v12811_v36 = vrot.slane %v2358_v21, 1  ;;  %v587_v2 = vshrl.u32 %v12788_v34, 16  ;;  %v1346_v48 = vsel %vm1254_vm8, %v1341_v57, %v12807_v58  ;;  %v590_v4 = vshll.u32 %v12788_v34, 16  ;;  %v642_v34 = vld [vmem:[#allocation2 + $0x78] sm:$0xf]  ;;  %3073 = vmatpush1.bf16.msra.mxu0 %v11711_v20 }
  0x7f   : > { %v595_v7 = vshrl.u32 %v12790_v35, 16  ;;  %v564_v8 = vor.u32 %v562_v60, %v561_v1  ;;  %v566_v9 = vrot.slane %v561_v1, 4  ;;  %v598_v50 = vshll.u32 %v12790_v35, 16  ;;  %3446 = vmatpush1.bf16.msra.mxu1 %v11712_v41  ;;  %3074 = vmatprep.subr.bf16.mxu0 %v15983_v0  ;;  %v10642_v1 = vld [vmem:[%s12561_s13 + $0xa8] sm:$0xff] }
  0x80   : > { %2488 = vrot.lane.b32.xlu0 %v2345_v17, %s12244_s26  ;;  %v589_v10 = vrot.slane %v587_v2, 7  ;;  %v2361_v12 = vsel %vm1254_vm8, %v2356_v62, %v12811_v36  ;;  %v11555_v14 = vpack.c.bf16 %v10637_v61, %v10637_v61  ;;  %v11556_v35 = vpack.c.bf16 %v10638_v3, %v10638_v3  ;;  %3447 = vmatprep.subr.bf16.mxu1 %v15983_v0 }
  0x81   : > { %1469 = vrot.lane.b32.xlu1 %v1338_v54, %s12244_s26  ;;  %v597_v13 = vrot.slane %v595_v7, 7  ;;  %v565_v16 = vsel %vm12587_vm6, %v557_v55, %v564_v8  ;;  %v575_v18 = vsel %vm12595_vm7, %v566_v9, %v574_v63  ;;  %v1347_v49 = vshrl.u32 %v12793_v43, 16 }
  0x82   : > { %v592_v19 = vor.u32 %v590_v4, %v589_v10  ;;  %v593_v22 = vrot.slane %v589_v10, 4  ;;  %573 = vst.msk [vmem:[#allocation2 + $0x64] sm:$0xf] %vm224_vm0, %v565_v16  ;;  %576 = vst [vmem:[#allocation2 + $0x68] sm:$0x1] %v575_v18  ;;  %v623_v30 = vshrl.u32 %v11555_v14, 16  ;;  %v12874_v57 = vpack.c.bf16 %v10641_v51, %v10641_v51  ;;  %3075 = vmatpush1.bf16.msra.mxu0 %v11713_v47 }
  0x83   : > { %v600_v27 = vor.u32 %v598_v50, %v597_v13  ;;  %v602_v29 = vrot.slane %v597_v13, 4  ;;  %v626_v32 = vshll.u32 %v11555_v14, 16  ;;  %v631_v44 = vshrl.u32 %v11556_v35, 16  ;;  %3448 = vmatpush1.bf16.msra.mxu1 %v11714_v56  ;;  %3076 = vmatprep.subr.bf16.mxu0 %v15983_v0  ;;  %v11719_v56 = vld [vmem:[#allocation2 + $0xc] sm:$0xfe]  }
  0x84   : > { %2490 = vrot.lane.b32.xlu0 %v2353_v25, %s12244_s26  ;;  %v607_v33 = vsel %vm12581_vm5, %v592_v19, %v606_v5  ;;  %v625_v40 = vrot.slane %v623_v30, 7  ;;  %v634_v45 = vshll.u32 %v11556_v35, 16  ;;  %v2362_v52 = vshrl.u32 %v12795_v42, 16  ;;  %8209 = vmatprep.subr.bf16.mxu1 %v15983_v0 }
  0x85   : > { %1471 = vrot.lane.b32.xlu1 %v1346_v48, %s12244_s26  ;;  %608 = vst [vmem:[#allocation2 + $0x6c] sm:$0xf] %v607_v33  ;;  %v601_v38 = vsel %vm12587_vm6, %v593_v22, %v600_v27  ;;  %v611_v39 = vsel %vm12595_vm7, %v602_v29, %v610_v23  ;;  %v633_v54 = vrot.slane %v631_v44, 7  ;;  %v1349_v60 = vor.u32 %v1347_v49, %v12807_v58  ;;  %v11717_v29 = vld [vmem:[#allocation2] sm:$0xfe]  }
  0x86   : > { %609 = vst.msk [vmem:[#allocation2 + $0x70] sm:$0xf] %vm224_vm0, %v601_v38  ;;  %612 = vst [vmem:[#allocation2 + $0x74] sm:$0x1] %v611_v39  ;;  %v628_v17 = vor.u32 %v626_v32, %v625_v40  ;;  %v629_v53 = vrot.slane %v625_v40, 4  ;;  %v659_v62 = vshrl.u32 %v12874_v57, 16  ;;  %v2364_v2 = vor.u32 %v2362_v52, %v12811_v36 }
  0x87   : > { %v636_v42 = vor.u32 %v634_v45, %v633_v54  ;;  %v638_v59 = vrot.slane %v633_v54, 4  ;;  %v11558_v19 = vpack.c.bf16 %v10642_v1, %v10642_v1  ;;  %v662_v41 = vshll.u32 %v12874_v57, 16  ;;  %v11723_v1 = vld [vmem:[%s15978_s1 + $0xb0] sm:$0xff]  }
  0x88   : > { %2492 = vrot.lane.b32.xlu0 %v2361_v12, %s12244_s26  ;;  %v643_v43 = vsel %vm12581_vm5, %v628_v17, %v642_v34  ;;  %v12896_v34 = vld [vmem:[#allocation2 + $0x8] sm:$0xff]   ;;  %v661_v38 = vrot.slane %v659_v62, 7  ;;  %v678_v17 = vld [vmem:[#allocation2 + $0x84] sm:$0xf]  ;;  %v12913_v62 = vld [vmem:[#allocation2 + $0x14] sm:$0xff]   ;;  %3077 = vmatpush1.bf16.msra.mxu0 %v11723_v1 }
  0x89   : > { %v11690_v21 = vld [vmem:[#allocation2 + $0x60] sm:$0xff]   ;;  %644 = vst [vmem:[#allocation2 + $0x78] sm:$0xf] %v643_v43  ;;  %v637_v6 = vsel %vm12587_vm6, %v629_v53, %v636_v42  ;;  %v647_v25 = vsel %vm12595_vm7, %v638_v59, %v646_v46  ;;  %v667_v44 = vshrl.u32 %v11558_v19, 16  ;;  %v670_v46 = vshll.u32 %v11558_v19, 16  ;;  %3078 = vmatprep.subr.bf16.mxu0 %v15983_v0 }
  0x8a   : > { %v11691_v61 = vld [vmem:[#allocation2 + $0x64] sm:$0xff]   ;;  %v1351_v55 = vshll.u32 %v11690_v21, 16  ;;  %v1355_v31 = vshrl.u32 %v11690_v21, 16  ;;  %645 = vst.msk [vmem:[#allocation2 + $0x7c] sm:$0xf] %vm224_vm0, %v637_v6  ;;  %v664_v54 = vor.u32 %v662_v41, %v661_v38  ;;  %v665_v21 = vrot.slane %v661_v38, 4 }
  0x8b   : > { %v2366_v58 = vshll.u32 %v11691_v61, 16  ;;  %648 = vst [vmem:[#allocation2 + $0x80] sm:$0x1] %v647_v25  ;;  %v2370_v7 = vshrl.u32 %v11691_v61, 16  ;;  %v669_v57 = vrot.slane %v667_v44, 7  ;;  %v1721_v42 = vrot.slane %v11717_v29, 1 }
  0x8c   : > { %v11696_v63 = vld [vmem:[#allocation2 + $0x68] sm:$0xff]   ;;  %v1353_v4 = vrot.slane %v1351_v55, 1  ;;  %v1722_v61 = vrot.slane %v12896_v34, 1  ;;  %v11730_v44 = vld [vmem:[#allocation2 + $0x18] sm:$0xfe]  }
  0x8d   : > { %v11697_v48 = vld [vmem:[#allocation2 + $0x6c] sm:$0xff]   ;;  %v1359_v5 = vshll.u32 %v11696_v63, 16  ;;  %v2368_v9 = vrot.slane %v2366_v58, 1  ;;  %v1363_v50 = vshrl.u32 %v11696_v63, 16 }
  0x8e   : > { %v11702_v8 = vld [vmem:[#allocation2 + $0x70] sm:$0xff]   ;;  %v2374_v10 = vshll.u32 %v11697_v48, 16  ;;  %v2378_v11 = vshrl.u32 %v11697_v48, 16  ;;  %v1354_v12 = vsel %vm1254_vm8, %v1349_v60, %v1353_v4  ;;  %v1357_v13 = vor.u32 %v1355_v31, %v1353_v4  ;;  %v11721_v55 = vld [vmem:[#allocation2 + $0x8] sm:$0xff]  }
  0x8f   : > { %v1361_v14 = vrot.slane %v1359_v5, 1  ;;  %v1367_v36 = vshll.u32 %v11702_v8, 16  ;;  %1473 = vrot.lane.b32.xlu1 %v1354_v12, %s12244_s26  ;;  %v2369_v15 = vsel %vm1254_vm8, %v2364_v2, %v2368_v9  ;;  %v2372_v3 = vor.u32 %v2370_v7, %v2368_v9  ;;  %1059 = vst.msk [vmem:[#allocation4 + $0x10] sm:$0xff] %vm1057_vm9, %v11721_v55  ;;  %v682_v48 = vld [vmem:[#allocation2 + $0x8c] sm:$0x1]  ;;  %v11724_v7 = vld [vmem:[%s15978_s1 + $0xb8] sm:$0xff]  }
  0x90   : > { %v2376_v16 = vrot.slane %v2374_v10, 1  ;;  %v11703_v18 = vld [vmem:[#allocation2 + $0x74] sm:$0xff]   ;;  %2494 = vrot.lane.b32.xlu0 %v2369_v15, %s12244_s26  ;;  %v1371_v27 = vshrl.u32 %v11702_v8, 16  ;;  %v679_v60 = vsel %vm12581_vm5, %v664_v54, %v678_v17  ;;  %v672_v31 = vor.u32 %v670_v46, %v669_v57  ;;  %v12942_v15 = vld [vmem:[#allocation2 + $0x1c] sm:$0xff]   ;;  %3079 = vmatpush1.bf16.msra.mxu0 %v11724_v7 }
  0x91   : > { %v1362_v22 = vsel %vm1254_vm8, %v1357_v13, %v1361_v14  ;;  %v1365_v23 = vor.u32 %v1363_v50, %v1361_v14  ;;  %v1369_v26 = vrot.slane %v1367_v36, 1  ;;  %v2382_v20 = vshll.u32 %v11703_v18, 16  ;;  %v12898_v35 = vld [vmem:[#allocation2 + $0x78] sm:$0xff]   ;;  %680 = vst [vmem:[#allocation2 + $0x84] sm:$0xf] %v679_v60  ;;  %v10645_v9 = vld [vmem:[%s12561_s13 + $0xb0] sm:$0xff]  ;;  %4816 = vmatprep.subr.bf16.mxu0 %v15983_v0 }
  0x92   : > { %v2377_v30 = vsel %vm1254_vm8, %v2372_v3, %v2376_v16  ;;  %v2380_v32 = vor.u32 %v2378_v11, %v2376_v16  ;;  %v2386_v33 = vshrl.u32 %v11703_v18, 16  ;;  %v12901_v40 = vld [vmem:[#allocation2 + $0x7c] sm:$0xff]   ;;  %v1375_v49 = vshll.u32 %v12898_v35, 16  ;;  %v11727_v50 = vld [vmem:[#allocation2 + $0x10] sm:$0xff]  }
  0x93   : > { %1475 = vrot.lane.b32.xlu1 %v1362_v22, %s12244_s26  ;;  %v2384_v39 = vrot.slane %v2382_v20, 1  ;;  %v1370_v45 = vsel %vm1254_vm8, %v1365_v23, %v1369_v26  ;;  %v1373_v47 = vor.u32 %v1371_v27, %v1369_v26  ;;  %v2390_v53 = vshll.u32 %v12901_v40, 16  ;;  %v12938_v12 = vld [vmem:[#allocation2 + $0x10] sm:$0xff]   ;;  %1060 = vst.msk [vmem:[#allocation4 + $0x20] sm:$0xff] %vm1057_vm9, %v11727_v50  ;;  %v12948_v23 = vld [vmem:[#allocation2 + $0x20] sm:$0xff]   ;;  %v10646_v54 = vld [vmem:[%s12561_s13 + $0xb8] sm:$0xff] }
  0x94   : > { %2496 = vrot.lane.b32.xlu0 %v2377_v30, %s12244_s26  ;;  %v1377_v43 = vrot.slane %v1375_v49, 1  ;;  %v1723_v25 = vsel %vm1720_vm10, %v1721_v42, %v1722_v61  ;;  %v674_v2 = vrot.slane %v669_v57, 4  ;;  %v673_v58 = vsel %vm12587_vm6, %v665_v21, %v672_v31  ;;  %v714_v18 = vld [vmem:[#allocation2 + $0x90] sm:$0xf]  ;;  %v11736_v57 = vld [vmem:[#allocation2 + $0x18] sm:$0xff]  }
  0x95   : > { %v2385_v51 = vsel %vm1254_vm8, %v2380_v32, %v2384_v39  ;;  %v2388_v52 = vor.u32 %v2386_v33, %v2384_v39  ;;  %v2392_v59 = vrot.slane %v2390_v53, 1  ;;  %1794 = vst.msk [vmem:[#allocation4 + $0x8] sm:$0xff] %vm1057_vm9, %v1723_v25  ;;  %v2742_v4 = vrot.slane %v11719_v56, 1  ;;  %1061 = vst.msk [vmem:[#allocation4 + $0x30] sm:$0xff] %vm1057_vm9, %v11736_v57  ;;  %v11737_v31 = vld [vmem:[#allocation2 + $0x18] sm:$0xff]  }
  0x96   : > { %v1378_v63 = vsel %vm1254_vm8, %v1373_v47, %v1377_v43  ;;  %681 = vst.msk [vmem:[#allocation2 + $0x88] sm:$0xf] %vm224_vm0, %v673_v58  ;;  %v2743_v5 = vrot.slane %v12913_v62, 1  ;;  %v683_v8 = vsel %vm12595_vm7, %v674_v2, %v682_v48  ;;  %v11559_v10 = vpack.c.bf16 %v10645_v9, %v10645_v9  ;;  %v718_v2 = vld [vmem:[#allocation2 + $0x98] sm:$0x1]  ;;  %v12988_v48 = vld [vmem:[#allocation2 + $0x28] sm:$0xff]  }
  0x97   : > { %1477 = vrot.lane.b32.xlu1 %v1370_v45, %s12244_s26  ;;  %v2393_v6 = vsel %vm1254_vm8, %v2388_v52, %v2392_v59  ;;  %684 = vst [vmem:[#allocation2 + $0x8c] sm:$0x1] %v683_v8  ;;  %v1379_v11 = vshrl.u32 %v12898_v35, 16  ;;  %v2394_v13 = vshrl.u32 %v12901_v40, 16  ;;  %v1724_v19 = vrot.slane %v12938_v12, 1  ;;  %v10649_v9 = vld [vmem:[%s12561_s13 + $0xc0] sm:$0xff] }
  0x98   : > { %2498 = vrot.lane.b32.xlu0 %v2385_v51, %s12244_s26  ;;  %v695_v14 = vshrl.u32 %v11559_v10, 16  ;;  %v698_v36 = vshll.u32 %v11559_v10, 16  ;;  %v11715_v3 = vld [vmem:[#allocation2 + $0x80] sm:$0xff]   ;;  %v2744_v16 = vsel %vm1720_vm10, %v2742_v4, %v2743_v5  ;;  %v2745_v34 = vrot.slane %v12942_v15, 1 }
  0x99   : > { %v1381_v26 = vor.u32 %v1379_v11, %v1377_v43  ;;  %v1383_v27 = vshll.u32 %v11715_v3, 16  ;;  %v1387_v30 = vshrl.u32 %v11715_v3, 16  ;;  %v1725_v32 = vsel %vm1720_vm10, %v1722_v61, %v1724_v19 }
  0x9a   : > { %v12946_v22 = vrot.slane %v695_v14, 7  ;;  %1795 = vst.msk [vmem:[#allocation4 + $0x18] sm:$0xff] %vm1057_vm9, %v1725_v32  ;;  %v2396_v39 = vor.u32 %v2394_v13, %v2392_v59  ;;  %v4503_v45 = vrot.slane %v12948_v23, 1  ;;  %v4502_v51 = vrot.slane %v11730_v44, 1  ;;  %v10650_v13 = vld [vmem:[%s12561_s13 + $0xc8] sm:$0xff] }
  0x9b   : > { %1479 = vrot.lane.b32.xlu1 %v1378_v63, %s12244_s26  ;;  %v1385_v35 = vrot.slane %v1383_v27, 1  ;;  %v2746_v53 = vsel %vm1720_vm10, %v2743_v5, %v2745_v34  ;;  %v11560_v21 = vpack.c.bf16 %v10646_v54, %v10646_v54  ;;  %v1726_v58 = vrot.slane %v11737_v31, 1  ;;  %v13007_v27 = vld [vmem:[#allocation2 + $0x20] sm:$0xff]  }
  0x9c   : > { %2500 = vrot.lane.b32.xlu0 %v2393_v6, %s12244_s26  ;;  %v1819_v29 = vld [vmem:[#allocation4 + $0x8] sm:$0xff]  ;;  %v700_v33 = vor.u32 %v698_v36, %v12946_v22  ;;  %v4504_v43 = vsel %vm1720_vm10, %v4502_v51, %v4503_v45  ;;  %v701_v62 = vrot.slane %v12946_v22, 4  ;;  %v12984_v6 = vld [vmem:[#allocation2 + $0x24] sm:$0xff]   ;;  %v4505_v11 = vrot.slane %v12988_v48, 1 }
  0x9d   : > { %v11716_v20 = vld [vmem:[#allocation2 + $0x84] sm:$0xff]   ;;  %2815 = vst.msk [vmem:[#allocation4 + $0x8] sm:$0xff] %vm1057_vm9, %v2744_v16  ;;  %10885 = vmatprep.mubr.msk.bf16.mxu1 %vm1057_vm9, %v1819_v29  ;;  %v1386_v47 = vsel %vm1254_vm8, %v1381_v26, %v1385_v35  ;;  %v1389_v49 = vor.u32 %v1387_v30, %v1385_v35  ;;  %v703_v55 = vshrl.u32 %v11560_v21, 16  ;;  %v706_v63 = vshll.u32 %v11560_v21, 16  ;;  %v750_v30 = vld [vmem:[#allocation2 + $0x9c] sm:$0xf] }
  0x9e   : > { %v12957_v38 = vld [vmem:[#allocation2 + $0x88] sm:$0xff]   ;;  %v2398_v40 = vshll.u32 %v11716_v20, 16  ;;  %v715_v41 = vsel %vm12581_vm5, %v700_v33, %v714_v18  ;;  %v2402_v59 = vshrl.u32 %v11716_v20, 16  ;;  %v1727_v10 = vsel %vm1720_vm10, %v1724_v19, %v1726_v58  ;;  %v11743_v18 = vld [vmem:[#allocation2 + $0x20] sm:$0xff]  }
  0x9f   : > { %v1391_v17 = vshll.u32 %v12957_v38, 16  ;;  %716 = vst [vmem:[#allocation2 + $0x90] sm:$0xf] %v715_v41  ;;  %1481 = vrot.lane.b32.xlu1 %v1386_v47, %s12244_s26  ;;  %v705_v1 = vrot.slane %v703_v55, 7  ;;  %v2747_v50 = vrot.slane %v12984_v6, 1  ;;  %v11561_v12 = vpack.c.bf16 %v10649_v9, %v10649_v9  ;;  %1796 = vst.msk [vmem:[#allocation4 + $0x28] sm:$0xff] %vm1057_vm9, %v1727_v10 }
  0xa0   : > { %v2400_v46 = vrot.slane %v2398_v40, 1  ;;  %v11562_v16 = vpack.c.bf16 %v10650_v13, %v10650_v13  ;;  %v4506_v22 = vsel %vm1720_vm10, %v4503_v45, %v4505_v11  ;;  %1062 = vst.msk [vmem:[#allocation4 + $0x40] sm:$0xff] %vm1057_vm9, %v11743_v18  ;;  %v1728_v35 = vrot.slane %v13007_v27, 1 }
  0xa1   : > { %v12965_v52 = vrot.slane %v1391_v17, 1  ;;  %v12976_v60 = vld [vmem:[#allocation4 + $0x18] sm:$0xff]  ;;  %v708_v7 = vor.u32 %v706_v63, %v705_v1  ;;  %v710_v8 = vrot.slane %v705_v1, 4  ;;  %v731_v23 = vshrl.u32 %v11561_v12, 16  ;;  %v13021_v17 = vld [vmem:[#allocation2 + $0x30] sm:$0xff]  }
  0xa2   : > { %v2401_v56 = vsel %vm1254_vm8, %v2396_v39, %v2400_v46  ;;  %2816 = vst.msk [vmem:[#allocation4 + $0x18] sm:$0xff] %vm1057_vm9, %v2746_v53  ;;  %v2404_v4 = vor.u32 %v2402_v59, %v2400_v46  ;;  %v734_v26 = vshll.u32 %v11561_v12, 16  ;;  %v739_v32 = vshrl.u32 %v11562_v16, 16  ;;  %v13014_v39 = vld [vmem:[#allocation2 + $0x2c] sm:$0xff]  }
  0xa3   : > { %2502 = vrot.lane.b32.xlu0 %v2401_v56, %s12244_s26  ;;  %v1394_v42 = vsel %vm1254_vm8, %v1389_v49, %v12965_v52  ;;  %v709_v36 = vsel %vm12587_vm6, %v701_v62, %v708_v7  ;;  %v719_v3 = vsel %vm12595_vm7, %v710_v8, %v718_v2  ;;  %v742_v20 = vshll.u32 %v11562_v16, 16  ;;  %v10653_v56 = vld [vmem:[%s12561_s13 + $0xd0] sm:$0xff]  ;;  %v11751_v7 = vld [vmem:[#allocation2 + $0x28] sm:$0xff]  }
  0xa4   : > { %v2840_v61 = vld [vmem:[#allocation4 + $0x8] sm:$0xff]  ;;  %1483 = vrot.lane.b32.xlu1 %v1394_v42, %s12244_s26  ;;  %717 = vst.msk [vmem:[#allocation2 + $0x94] sm:$0xf] %vm224_vm0, %v709_v36  ;;  %720 = vst [vmem:[#allocation2 + $0x98] sm:$0x1] %v719_v3  ;;  %v733_v33 = vrot.slane %v731_v23, 7  ;;  %v2748_v44 = vsel %vm1720_vm10, %v2745_v34, %v2747_v50  ;;  %v1729_v49 = vsel %vm1720_vm10, %v1726_v58, %v1728_v35 }
  0xa5   : > { %10849 = vmatprep.mubr.msk.bf16.mxu0 %vm1057_vm9, %v2840_v61  ;;  %4575 = vst.msk [vmem:[#allocation4 + $0x8] sm:$0xff] %vm1057_vm9, %v4504_v43  ;;  %v1395_v40 = vshrl.u32 %v12957_v38, 16  ;;  %v741_v41 = vrot.slane %v739_v32, 7  ;;  %1797 = vst.msk [vmem:[#allocation4 + $0x38] sm:$0xff] %vm1057_vm9, %v1729_v49  ;;  %v2749_v15 = vrot.slane %v13014_v39, 1  ;;  %v11563_v57 = vpack.c.bf16 %v10653_v56, %v10653_v56  ;;  %v13044_v8 = vld [vmem:[#allocation2 + $0x28] sm:$0xff]  }
  0xa6   : > { %v12986_v25 = vld [vmem:[#allocation2 + $0x8c] sm:$0xff]   ;;  %v736_v45 = vor.u32 %v734_v26, %v733_v33  ;;  %v737_v47 = vrot.slane %v733_v33, 4  ;;  %v754_v34 = vld [vmem:[#allocation2 + $0xa4] sm:$0x1]  ;;  %v4507_v61 = vrot.slane %v13021_v17, 1  ;;  %1063 = vst.msk [vmem:[#allocation4 + $0x50] sm:$0xff] %vm1057_vm9, %v11751_v7 }
  0xa7   : > { %v2406_v5 = vshll.u32 %v12986_v25, 16  ;;  %v2410_v46 = vshrl.u32 %v12986_v25, 16  ;;  %v744_v51 = vor.u32 %v742_v20, %v741_v41  ;;  %v13025_v53 = vld [vmem:[#allocation4 + $0x28] sm:$0xff]  ;;  %v746_v54 = vrot.slane %v741_v41, 4  ;;  %v786_v58 = vld [vmem:[#allocation2 + $0xa8] sm:$0xf] }
  0xa8   : > { %v751_v38 = vsel %vm12581_vm5, %v736_v45, %v750_v30  ;;  %2817 = vst.msk [vmem:[#allocation4 + $0x28] sm:$0xff] %vm1057_vm9, %v2748_v44  ;;  %v1397_v42 = vor.u32 %v1395_v40, %v12965_v52  ;;  %v767_v31 = vshrl.u32 %v11563_v57, 16  ;;  %v770_v6 = vshll.u32 %v11563_v57, 16  ;;  %v13058_v36 = vld [vmem:[#allocation2 + $0x34] sm:$0xff]  }
  0xa9   : > { %v2408_v14 = vrot.slane %v2406_v5, 1  ;;  %v13002_v19 = vld [vmem:[#allocation4 + $0x18] sm:$0xff]  ;;  %752 = vst [vmem:[#allocation2 + $0x9c] sm:$0xf] %v751_v38  ;;  %v745_v21 = vsel %vm12587_vm6, %v737_v47, %v744_v51  ;;  %v755_v62 = vsel %vm12595_vm7, %v746_v54, %v754_v34  ;;  %v2750_v52 = vsel %vm1720_vm10, %v2747_v50, %v2749_v15  ;;  %v11755_v44 = vld [vmem:[#allocation2 + $0x38] sm:$0xff]  }
  0xaa   : > { %4576 = vst.msk [vmem:[#allocation4 + $0x18] sm:$0xff] %vm1057_vm9, %v4506_v22  ;;  %756 = vst [vmem:[#allocation2 + $0xa4] sm:$0x1] %v755_v62  ;;  %v13042_v5 = vrot.slane %v767_v31, 7  ;;  %v4508_v50 = vsel %vm1720_vm10, %v4505_v11, %v4507_v61  ;;  %v2751_v20 = vrot.slane %v13058_v36, 1  ;;  %v10654_v45 = vld [vmem:[%s12561_s13 + $0xd8] sm:$0xff] }
  0xab   : > { %v2409_v29 = vsel %vm1254_vm8, %v2404_v4, %v2408_v14  ;;  %v11734_v43 = vld [vmem:[#allocation2 + $0x90] sm:$0xff]   ;;  %753 = vst.msk [vmem:[#allocation2 + $0xa0] sm:$0xf] %vm224_vm0, %v745_v21  ;;  %v2412_v25 = vor.u32 %v2410_v46, %v2408_v14  ;;  %v1730_v14 = vrot.slane %v13044_v8, 1  ;;  %v11564_v51 = vpack.c.bf16 %v10654_v45, %v10654_v45  ;;  %v13092_v62 = vld [vmem:[#allocation2 + $0x3c] sm:$0xff]  }
  0xac   : > { %2504 = vrot.lane.b32.xlu0 %v2409_v29, %s12244_s26  ;;  %v11735_v59 = vld [vmem:[#allocation2 + $0x94] sm:$0xff]   ;;  %v1399_v55 = vshll.u32 %v11734_v43, 16  ;;  %v1403_v63 = vshrl.u32 %v11734_v43, 16  ;;  %v13046_v10 = vld [vmem:[#allocation4 + $0x38] sm:$0xff]  ;;  %v772_v13 = vor.u32 %v770_v6, %v13042_v5  ;;  %v2752_v54 = vsel %vm1720_vm10, %v2749_v15, %v2751_v20 }
  0xad   : > { %v2414_v1 = vshll.u32 %v11735_v59, 16  ;;  %v2418_v2 = vshrl.u32 %v11735_v59, 16  ;;  %2818 = vst.msk [vmem:[#allocation4 + $0x38] sm:$0xff] %vm1057_vm9, %v2750_v52  ;;  %v1731_v22 = vsel %vm1720_vm10, %v1728_v35, %v1730_v14  ;;  %v4509_v56 = vrot.slane %v11755_v44, 1  ;;  %v11758_v43 = vld [vmem:[#allocation2 + $0x30] sm:$0xff]  }
  0xae   : > { %v1401_v4 = vrot.slane %v1399_v55, 1  ;;  %v787_v11 = vsel %vm12581_vm5, %v772_v13, %v786_v58  ;;  %1798 = vst.msk [vmem:[#allocation4 + $0x48] sm:$0xff] %vm1057_vm9, %v1731_v22  ;;  %v775_v57 = vshrl.u32 %v11564_v51, 16  ;;  %v13090_v59 = vld [vmem:[#allocation2 + $0x30] sm:$0xff]   ;;  %v773_v31 = vrot.slane %v13042_v5, 4  ;;  %1064 = vst.msk [vmem:[#allocation4 + $0x60] sm:$0xff] %vm1057_vm9, %v11758_v43 }
  0xaf   : > { %v2416_v9 = vrot.slane %v2414_v1, 1  ;;  %v13063_v48 = vld [vmem:[#allocation4 + $0x28] sm:$0xff]  ;;  %788 = vst [vmem:[#allocation2 + $0xa8] sm:$0xf] %v787_v11  ;;  %v4510_v15 = vsel %vm1720_vm10, %v4507_v61, %v4509_v56  ;;  %v13112_v5 = vld [vmem:[#allocation2 + $0x40] sm:$0xff]   ;;  %v10658_v11 = vld [vmem:[%s12561_s13 + $0xe8] sm:$0xff] }
  0xb0   : > { %v1402_v12 = vsel %vm1254_vm8, %v1397_v42, %v1401_v4  ;;  %v11741_v16 = vld [vmem:[#allocation2 + $0x98] sm:$0xff]   ;;  %v1405_v23 = vor.u32 %v1403_v63, %v1401_v4  ;;  %4577 = vst.msk [vmem:[#allocation4 + $0x28] sm:$0xff] %vm1057_vm9, %v4508_v50  ;;  %v778_v42 = vshll.u32 %v11564_v51, 16  ;;  %v777_v6 = vrot.slane %v775_v57, 7  ;;  %v790_v61 = vld [vmem:[#allocation2 + $0xb0] sm:$0x1] }
  0xb1   : > { %1485 = vrot.lane.b32.xlu1 %v1402_v12, %s12244_s26  ;;  %v2417_v3 = vsel %vm1254_vm8, %v2412_v25, %v2416_v9  ;;  %v1407_v26 = vshll.u32 %v11741_v16, 16  ;;  %v2420_v29 = vor.u32 %v2418_v2, %v2416_v9  ;;  %v1411_v32 = vshrl.u32 %v11741_v16, 16  ;;  %v11722_v2 = vld [vmem:[#allocation2 + $0xc] sm:$0xff]   ;;  %v11732_v22 = vld [vmem:[#allocation2 + $0x14] sm:$0xff]   ;;  %v13154_v43 = vld [vmem:[#allocation2 + $0x44] sm:$0xff]  }
  0xb2   : > { %2506 = vrot.lane.b32.xlu0 %v2417_v3, %s12244_s26  ;;  %v11742_v18 = vld [vmem:[#allocation2 + $0x9c] sm:$0xff]   ;;  %v1732_v25 = vrot.slane %v13090_v59, 1  ;;  %v780_v52 = vor.u32 %v778_v42, %v777_v6  ;;  %v782_v58 = vrot.slane %v777_v6, 4  ;;  %v2753_v9 = vrot.slane %v13092_v62, 1  ;;  %v822_v45 = vld [vmem:[#allocation2 + $0xb4] sm:$0xf] }
  0xb3   : > { %v13069_v27 = vld [vmem:[#allocation2 + $0xa0] sm:$0xff]   ;;  %v2422_v30 = vshll.u32 %v11742_v18, 16  ;;  %v1409_v33 = vrot.slane %v1407_v26, 1  ;;  %v2426_v35 = vshrl.u32 %v11742_v18, 16  ;;  %v11566_v26 = vpack.c.bf16 %v10658_v11, %v10658_v11  ;;  %v13144_v51 = vld [vmem:[#allocation2 + $0x38] sm:$0xff]  }
  0xb4   : > { %v1415_v40 = vshll.u32 %v13069_v27, 16  ;;  %v13085_v34 = vld [vmem:[#allocation4 + $0x38] sm:$0xff]  ;;  %v1733_v4 = vsel %vm1720_vm10, %v1730_v14, %v1732_v25  ;;  %v781_v50 = vsel %vm12587_vm6, %v773_v31, %v780_v52  ;;  %v791_v13 = vsel %vm12595_vm7, %v782_v58, %v790_v61  ;;  %v13180_v58 = vld [vmem:[#allocation2 + $0x48] sm:$0xff]  }
  0xb5   : > { %v2424_v41 = vrot.slane %v2422_v30, 1  ;;  %v1410_v47 = vsel %vm1254_vm8, %v1405_v23, %v1409_v33  ;;  %v1413_v49 = vor.u32 %v1411_v32, %v1409_v33  ;;  %v13096_v39 = vld [vmem:[#allocation4 + $0x48] sm:$0xff]  ;;  %4578 = vst.msk [vmem:[#allocation4 + $0x38] sm:$0xff] %vm1057_vm9, %v4510_v15  ;;  %1799 = vst.msk [vmem:[#allocation4 + $0x58] sm:$0xff] %vm1057_vm9, %v1733_v4  ;;  %v4511_v14 = vrot.slane %v13112_v5, 1  ;;  %v10657_v3 = vld [vmem:[%s12561_s13 + $0xe0] sm:$0xff] }
  0xb6   : > { %v13076_v46 = vrot.slane %v1415_v40, 1  ;;  %1487 = vrot.lane.b32.xlu1 %v1410_v47, %s12244_s26  ;;  %v13094_v63 = vld [vmem:[#allocation2 + $0xa4] sm:$0xff]   ;;  %2819 = vst.msk [vmem:[#allocation4 + $0x48] sm:$0xff] %vm1057_vm9, %v2752_v54  ;;  %792 = vst [vmem:[#allocation2 + $0xb0] sm:$0x1] %v791_v13  ;;  %v11565_v18 = vpack.c.bf16 %v10657_v3, %v10657_v3  ;;  %v2754_v44 = vsel %vm1720_vm10, %v2751_v20, %v2753_v9  ;;  %v811_v47 = vshrl.u32 %v11566_v26, 16 }
  0xb7   : > { %v2425_v38 = vsel %vm1254_vm8, %v2420_v29, %v2424_v41  ;;  %v2428_v1 = vor.u32 %v2426_v35, %v2424_v41  ;;  %v2430_v17 = vshll.u32 %v13094_v63, 16  ;;  %789 = vst.msk [vmem:[#allocation2 + $0xac] sm:$0xf] %vm224_vm0, %v781_v50  ;;  %v4512_v23 = vsel %vm1720_vm10, %v4509_v56, %v4511_v14  ;;  %v11766_v29 = vld [vmem:[#allocation2 + $0x38] sm:$0xff]   ;;  %v11746_v50 = vld [vmem:[#allocation2 + $0x24] sm:$0xff]   ;;  %v13222_v5 = vld [vmem:[#allocation2 + $0x4c] sm:$0xff]  }
  0xb8   : > { %2508 = vrot.lane.b32.xlu0 %v2425_v38, %s12244_s26  ;;  %v1418_v21 = vsel %vm1254_vm8, %v1413_v49, %v13076_v46  ;;  %v803_v33 = vshrl.u32 %v11565_v18, 16  ;;  %v806_v40 = vshll.u32 %v11565_v18, 16  ;;  %v1419_v35 = vshrl.u32 %v13069_v27, 16  ;;  %1065 = vst.msk [vmem:[#allocation4 + $0x70] sm:$0xff] %vm1057_vm9, %v11766_v29  ;;  %v11740_v57 = vld [vmem:[#allocation2 + $0x1c] sm:$0xff]  }
  0xb9   : > { %v13114_v8 = vrot.slane %v2430_v17, 1  ;;  %v814_v49 = vshll.u32 %v11566_v26, 16  ;;  %v2434_v36 = vshrl.u32 %v13094_v63, 16  ;;  %v813_v54 = vrot.slane %v811_v47, 7  ;;  %v826_v4 = vld [vmem:[#allocation2 + $0xbc] sm:$0x1] }
  0xba   : > { %1489 = vrot.lane.b32.xlu1 %v1418_v21, %s12244_s26  ;;  %v805_v27 = vrot.slane %v803_v33, 7  ;;  %v1734_v56 = vrot.slane %v13144_v51, 1  ;;  %v4513_v29 = vrot.slane %v13180_v58, 1  ;;  %v13213_v47 = vld [vmem:[#allocation2 + $0x40] sm:$0xff]  }
  0xbb   : > { %v2433_v16 = vsel %vm1254_vm8, %v2428_v1, %v13114_v8  ;;  %v816_v31 = vor.u32 %v814_v49, %v813_v54  ;;  %v818_v1 = vrot.slane %v813_v54, 4  ;;  %v2436_v13 = vor.u32 %v2434_v36, %v13114_v8  ;;  %v11754_v36 = vld [vmem:[#allocation2 + $0x2c] sm:$0xff]  }
  0xbc   : > { %2510 = vrot.lane.b32.xlu0 %v2433_v16, %s12244_s26  ;;  %v13151_v38 = vld [vmem:[#allocation4 + $0x58] sm:$0xff]  ;;  %v808_v42 = vor.u32 %v806_v40, %v805_v27  ;;  %v1735_v6 = vsel %vm1720_vm10, %v1732_v25, %v1734_v56  ;;  %v2755_v25 = vrot.slane %v13154_v43, 1  ;;  %v11763_v54 = vld [vmem:[%s15978_s1 + $0xd0] sm:$0xff]  }
  0xbd   : > { %v13133_v32 = vld [vmem:[#allocation4 + $0x48] sm:$0xff]  ;;  %2820 = vst.msk [vmem:[#allocation4 + $0x58] sm:$0xff] %vm1057_vm9, %v2754_v44  ;;  %1800 = vst.msk [vmem:[#allocation4 + $0x68] sm:$0xff] %vm1057_vm9, %v1735_v6  ;;  %v11773_v40 = vld [vmem:[#allocation2 + $0x40] sm:$0xff]  }
  0xbe   : > { %4579 = vst.msk [vmem:[#allocation4 + $0x48] sm:$0xff] %vm1057_vm9, %v4512_v23  ;;  %v13161_v15 = vld [vmem:[#allocation2 + $0xa8] sm:$0xff]   ;;  %v823_v61 = vsel %vm12581_vm5, %v808_v42, %v822_v45  ;;  %v858_v45 = vld [vmem:[#allocation2 + $0xc0] sm:$0xf]  ;;  %1066 = vst.msk [vmem:[#allocation4 + $0x80] sm:$0xff] %vm1057_vm9, %v11773_v40  ;;  %v1736_v42 = vrot.slane %v13213_v47, 1 }
  0xbf   : > { %v13170_v17 = vld [vmem:[#allocation2 + $0xac] sm:$0xff]   ;;  %v1423_v52 = vshll.u32 %v13161_v15, 16  ;;  %824 = vst [vmem:[#allocation2 + $0xb4] sm:$0xf] %v823_v61 }
  0xc0   : > { %v2438_v3 = vshll.u32 %v13170_v17, 16  ;;  %v11748_v23 = vld [vmem:[%s15978_s1 + $0xc8] sm:$0xff]   ;;  %v11787_v47 = vld [vmem:[#allocation2 + $0x50] sm:$0xff]  }
  0xc1   : > { %v1425_v26 = vrot.slane %v1423_v52, 1  ;;  %1068 = vst.msk [vmem:[#allocation4 + $0xa0] sm:$0xff] %vm1057_vm9, %v11787_v47 }
  0xc2   : > { %v2440_v8 = vrot.slane %v2438_v3, 1  ;;  %v11778_v3 = vld [vmem:[%s15978_s1 + $0xd8] sm:$0xff]  }
  0xc4   : > { %v13206_v44 = vld [vmem:[#allocation4 + $0x58] sm:$0xff]  ;;  %v2441_v62 = vsel %vm1254_vm8, %v2436_v13, %v2440_v8 }
  0xc5   : > { %2512 = vrot.lane.b32.xlu0 %v2441_v62, %s12244_s26 }
  0xce   : > { %v1452_v55 = vpop.permute.xlu0 %1451 }
  0xcf   : > { %1524 = vst.msk [vmem:[#allocation4] sm:$0xff] %vm1523_vm11, %v1452_v55  ;;  %v809_v55 = vrot.slane %v805_v27, 4 }
  0xd1   : > { %v2475_v12 = vpop.permute.xlu1 %2474  ;;  %v817_v59 = vsel %vm12587_vm6, %v809_v55, %v816_v31  ;;  %v11764_v55 = vld [vmem:[#allocation2 + $0xb0] sm:$0xff]  }
  0xd2   : > { %v1454_v7 = vpop.permute.xlu0 %1453  ;;  %825 = vst.msk [vmem:[#allocation2 + $0xb8] sm:$0xf] %vm224_vm0, %v817_v59  ;;  %v1431_v6 = vshll.u32 %v11764_v55, 16 }
  0xd3   : > { %1525 = vst.msk [vmem:[#allocation4 + $0x10] sm:$0xff] %vm1523_vm11, %v1454_v7  ;;  %v10661_v7 = vld [vmem:[%s12561_s13 + $0xf0] sm:$0xff] }
  0xd4   : > { %v11567_v16 = vpack.c.bf16 %v10661_v7, %v10661_v7 }
  0xd5   : > { %v1456_v41 = vpop.permute.xlu1 %1455 }
  0xd6   : > { %v1818_v30 = vld [vmem:[#allocation4] sm:$0xff]  ;;  %1526 = vst.msk [vmem:[#allocation4 + $0x20] sm:$0xff] %vm1523_vm11, %v1456_v41  ;;  %v2477_v20 = vpop.permute.xlu0 %2476  ;;  %v842_v33 = vshll.u32 %v11567_v16, 16 }
  0xd7   : > { %2082 = vst.msk [vmem:[#allocation4] sm:$0xff] %vm1057_vm9, %v11722_v2  ;;  %3458 = vmatmul.mubr.bf16.vlgmr.msra.gmra.mrb[0].mxu1 %v1818_v30  ;;  %v1421_v2 = vor.u32 %v1419_v35, %v13076_v46  ;;  %v827_v46 = vsel %vm12595_vm7, %v818_v1, %v826_v4  ;;  %v839_v30 = vshrl.u32 %v11567_v16, 16  ;;  %v1427_v35 = vshrl.u32 %v13161_v15, 16  ;;  %v13256_v4 = vld [vmem:[#allocation2 + $0x50] sm:$0xff]  }
  0xd8   : > { %2546 = vst.msk [vmem:[#allocation4] sm:$0xff] %vm1523_vm11, %v2475_v12  ;;  %10886 = vmatprep.mubr.msk.bf16.mxu1 %vm1057_vm9, %v12976_v60  ;;  %v11733_v60 = vld [vmem:[%s15978_s1 + $0xc0] sm:$0xff]   ;;  %828 = vst [vmem:[#allocation2 + $0xbc] sm:$0x1] %v827_v46  ;;  %v1737_v15 = vsel %vm1720_vm10, %v1734_v56, %v1736_v42  ;;  %v2757_v56 = vrot.slane %v13222_v5, 1  ;;  %v4515_v46 = vrot.slane %v13256_v4, 1 }
  0xd9   : > { %v1458_v63 = vpop.permute.xlu1 %1457  ;;  %v1426_v41 = vsel %vm1254_vm8, %v1421_v2, %v1425_v26  ;;  %v1429_v31 = vor.u32 %v1427_v35, %v1425_v26  ;;  %1801 = vst.msk [vmem:[#allocation4 + $0x78] sm:$0xff] %vm1057_vm9, %v1737_v15  ;;  %v13364_v4 = vld [vmem:[#allocation2 + $0x5c] sm:$0xff]  }
  0xda   : > { %v1820_v21 = vld [vmem:[#allocation4 + $0x10] sm:$0xff]  ;;  %1527 = vst.msk [vmem:[#allocation4 + $0x30] sm:$0xff] %vm1523_vm11, %v1458_v63  ;;  %v2479_v12 = vpop.permute.xlu0 %2478  ;;  %1491 = vrot.lane.b32.xlu1 %v1426_v41, %s12244_s26  ;;  %v2758_v26 = vsel %vm1720_vm10, %v2755_v25, %v2757_v56 }
  0xdb   : > { %2083 = vst.msk [vmem:[#allocation4 + $0x10] sm:$0xff] %vm1057_vm9, %v11732_v22  ;;  %v13239_v63 = vld [vmem:[#allocation2 + $0xb4] sm:$0xff]   ;;  %v11769_v41 = vld [vmem:[#allocation2 + $0x3c] sm:$0xff]  }
  0xdc   : > { %2547 = vst.msk [vmem:[#allocation4 + $0x10] sm:$0xff] %vm1523_vm11, %v2477_v20  ;;  %v2446_v51 = vshll.u32 %v13239_v63, 16  ;;  %v2450_v43 = vshrl.u32 %v13239_v63, 16 }
  0xdd   : > { %v1822_v11 = vld [vmem:[#allocation4 + $0x20] sm:$0xff]  ;;  %v1460_v22 = vpop.permute.xlu1 %1459 }
  0xde   : > { %2084 = vst.msk [vmem:[#allocation4 + $0x20] sm:$0xff] %vm1057_vm9, %v11740_v57  ;;  %v2481_v49 = vpop.permute.xlu0 %2480  ;;  %v13231_v57 = vld [vmem:[#allocation4 + $0x68] sm:$0xff] }
  0xdf   : > { %3466 = vmatmul.mubr.bf16.gmra.mrb[4].mxu1 %v1820_v21  ;;  %v2839_v18 = vld [vmem:[#allocation4] sm:$0xff]  ;;  %1528 = vst.msk [vmem:[#allocation4 + $0x40] sm:$0xff] %vm1523_vm11, %v1460_v22  ;;  %2548 = vst.msk [vmem:[#allocation4 + $0x20] sm:$0xff] %vm1523_vm11, %v2479_v12  ;;  %v2442_v21 = vshrl.u32 %v13170_v17, 16  ;;  %v13247_v1 = vld [vmem:[#allocation2 + $0xb8] sm:$0xff]   ;;  %v1435_v17 = vshrl.u32 %v11764_v55, 16 }
  0xe0   : > { %3089 = vmatmul.mubr.bf16.vlgmr.msra.gmra.mrb[0].mxu0 %v2839_v18  ;;  %10887 = vmatprep.mubr.msk.bf16.mxu1 %vm1057_vm9, %v13025_v53  ;;  %v2756_v53 = vsel %vm1720_vm10, %v2753_v9, %v2755_v25  ;;  %v13219_v9 = vrot.slane %v839_v30, 7  ;;  %v11761_v12 = vld [vmem:[#allocation2 + $0x34] sm:$0xff]   ;;  %v1439_v13 = vshll.u32 %v13247_v1, 16  ;;  %v4516_v30 = vsel %vm1720_vm10, %v4513_v29, %v4515_v46  ;;  %v13296_v58 = vld [vmem:[#allocation4 + $0x78] sm:$0xff] }
  0xe1   : > { %4817 = vmatpush1.bf16.msra.mxu0 %v11733_v60  ;;  %10850 = vmatprep.mubr.msk.bf16.mxu0 %vm1057_vm9, %v13002_v19  ;;  %v4514_v19 = vsel %vm1720_vm10, %v4511_v14, %v4513_v29  ;;  %v13224_v27 = vld [vmem:[#allocation4 + $0x30] sm:$0xff]  ;;  %v1462_v20 = vpop.permute.xlu1 %1461  ;;  %2821 = vst.msk [vmem:[#allocation4 + $0x68] sm:$0xff] %vm1057_vm9, %v2756_v53  ;;  %v2444_v59 = vor.u32 %v2442_v21, %v2440_v8  ;;  %v1443_v29 = vshrl.u32 %v13247_v1, 16  ;;  %2822 = vst.msk [vmem:[#allocation4 + $0x78] sm:$0xff] %vm1057_vm9, %v2758_v26 }
  0xe2   : > { %4818 = vmatprep.subr.bf16.mxu0 %v15983_v0  ;;  %4580 = vst.msk [vmem:[#allocation4 + $0x58] sm:$0xff] %vm1057_vm9, %v4514_v19  ;;  %2085 = vst.msk [vmem:[#allocation4 + $0x30] sm:$0xff] %vm1057_vm9, %v11746_v50  ;;  %v844_v60 = vor.u32 %v842_v33, %v13219_v9  ;;  %v1433_v50 = vrot.slane %v1431_v6, 1  ;;  %v10662_v25 = vld [vmem:[%s12561_s13 + $0xf8] sm:$0xff] }
  0xe3   : > { %v2841_v14 = vld [vmem:[#allocation4 + $0x10] sm:$0xff]  ;;  %1529 = vst.msk [vmem:[#allocation4 + $0x50] sm:$0xff] %vm1523_vm11, %v1462_v20  ;;  %2549 = vst.msk [vmem:[#allocation4 + $0x30] sm:$0xff] %vm1523_vm11, %v2481_v49  ;;  %v11568_v53 = vpack.c.bf16 %v10662_v25, %v10662_v25  ;;  %v11781_v20 = vld [vmem:[#allocation2 + $0x48] sm:$0xff]  }
  0xe4   : > { %v859_v61 = vsel %vm12581_vm5, %v844_v60, %v858_v45  ;;  %v1434_v16 = vsel %vm1254_vm8, %v1429_v31, %v1433_v50  ;;  %v1437_v18 = vor.u32 %v1435_v17, %v1433_v50  ;;  %v845_v45 = vrot.slane %v13219_v9, 4  ;;  %v862_v60 = vld [vmem:[#allocation2 + $0xc8] sm:$0x1]  ;;  %1067 = vst.msk [vmem:[#allocation4 + $0x90] sm:$0xff] %vm1057_vm9, %v11781_v20 }
  0xe5   : > { %4819 = vmatpush1.bf16.msra.mxu0 %v11748_v23  ;;  %860 = vst [vmem:[#allocation2 + $0xc0] sm:$0xf] %v859_v61  ;;  %1493 = vrot.lane.b32.xlu1 %v1434_v16, %s12244_s26  ;;  %v847_v62 = vshrl.u32 %v11568_v53, 16 }
  0xe6   : > { %4820 = vmatprep.subr.bf16.mxu0 %v15983_v0  ;;  %v13252_v2 = vld [vmem:[#allocation4 + $0x40] sm:$0xff]  ;;  %v2483_v52 = vpop.permute.xlu0 %2482 }
  0xe7   : > { %3474 = vmatmul.mubr.bf16.gmra.mrb[8].mxu1 %v1822_v11  ;;  %2086 = vst.msk [vmem:[#allocation4 + $0x40] sm:$0xff] %vm1057_vm9, %v11754_v36  ;;  %v1464_v7 = vpop.permute.xlu1 %1463  ;;  %v1441_v11 = vrot.slane %v1439_v13, 1  ;;  %v2843_v33 = vld [vmem:[#allocation4 + $0x20] sm:$0xff]  ;;  %v849_v31 = vrot.slane %v847_v62, 7  ;;  %v13325_v13 = vld [vmem:[#allocation2 + $0x54] sm:$0xff]   ;;  %v2761_v62 = vrot.slane %v13364_v4, 1 }
  0xe8   : > { %3097 = vmatmul.mubr.bf16.gmra.mrb[4].mxu0 %v2841_v14  ;;  %10888 = vmatprep.mubr.msk.bf16.mxu1 %vm1057_vm9, %v13046_v10  ;;  %2550 = vst.msk [vmem:[#allocation4 + $0x40] sm:$0xff] %vm1523_vm11, %v2483_v52  ;;  %1530 = vst.msk [vmem:[#allocation4 + $0x60] sm:$0xff] %vm1523_vm11, %v1464_v7  ;;  %v2448_v10 = vrot.slane %v2446_v51, 1  ;;  %v13281_v8 = vld [vmem:[#allocation4 + $0x68] sm:$0xff]  ;;  %v850_v14 = vshll.u32 %v11568_v53, 16  ;;  %v13319_v51 = vld [vmem:[#allocation2 + $0x58] sm:$0xff]  }
  0xe9   : > { %10851 = vmatprep.mubr.msk.bf16.mxu0 %vm1057_vm9, %v13063_v48  ;;  %4821 = vmatpush1.bf16.msra.mxu0 %v11763_v54  ;;  %v1442_v35 = vsel %vm1254_vm8, %v1437_v18, %v1441_v11  ;;  %4581 = vst.msk [vmem:[#allocation4 + $0x68] sm:$0xff] %vm1057_vm9, %v4516_v30  ;;  %v1445_v63 = vor.u32 %v1443_v29, %v1441_v11  ;;  %v11784_v11 = vld [vmem:[#allocation2 + $0x4c] sm:$0xff]   ;;  %v13372_v53 = vld [vmem:[#allocation2 + $0x60] sm:$0xff]  }
  0xea   : > { %4822 = vmatprep.subr.bf16.mxu0 %v15983_v0  ;;  %v13272_v22 = vld [vmem:[#allocation4 + $0x50] sm:$0xff]  ;;  %v2485_v23 = vpop.permute.xlu0 %2484  ;;  %v2449_v48 = vsel %vm1254_vm8, %v2444_v59, %v2448_v10  ;;  %1495 = vrot.lane.b32.xlu1 %v1442_v35, %s12244_s26  ;;  %v2452_v21 = vor.u32 %v2450_v43, %v2448_v10  ;;  %v852_v52 = vor.u32 %v850_v14, %v849_v31  ;;  %v4519_v5 = vrot.slane %v13372_v53, 1 }
  0xeb   : > { %2087 = vst.msk [vmem:[#allocation4 + $0x50] sm:$0xff] %vm1057_vm9, %v11761_v12  ;;  %2514 = vrot.lane.b32.xlu0 %v2449_v48, %s12244_s26  ;;  %v1466_v40 = vpop.permute.xlu1 %1465  ;;  %v2845_v1 = vld [vmem:[#allocation4 + $0x30] sm:$0xff]  ;;  %v4517_v48 = vrot.slane %v13319_v51, 1 }
  0xec   : > { %2551 = vst.msk [vmem:[#allocation4 + $0x50] sm:$0xff] %vm1523_vm11, %v2485_v23  ;;  %1531 = vst.msk [vmem:[#allocation4 + $0x70] sm:$0xff] %vm1523_vm11, %v1466_v40  ;;  %v13299_v19 = vld [vmem:[#allocation2 + $0xbc] sm:$0xff]   ;;  %v853_v10 = vsel %vm12587_vm6, %v845_v45, %v852_v52  ;;  %v11790_v35 = vld [vmem:[#allocation2 + $0x54] sm:$0xff]  }
  0xed   : > { %4823 = vmatpush1.bf16.msra.mxu0 %v11778_v3  ;;  %v11779_v36 = vld [vmem:[#allocation2 + $0xc0] ss:$0 sps:$4 sm:$0x11]   ;;  %v2454_v9 = vshll.u32 %v13299_v19, 16  ;;  %861 = vst.msk [vmem:[#allocation2 + $0xc4] sm:$0xf] %vm224_vm0, %v853_v10 }
  0xee   : > { %4824 = vmatprep.subr.bf16.mxu0 %v15983_v0  ;;  %v2487_v49 = vpop.permute.xlu0 %2486  ;;  %v1447_v15 = vshll.u32 %v11779_v36, 16  ;;  %v13342_v23 = vld [vmem:[#allocation4 + $0x78] sm:$0xff] }
  0xef   : > { %3482 = vmatmul.mubr.bf16.gmra.mrb[12].mxu1 %v13224_v27  ;;  %v13308_v54 = vld [vmem:[#allocation4 + $0x60] sm:$0xff]  ;;  %v1468_v55 = vpop.permute.xlu1 %1467  ;;  %v13317_v6 = vrot.slane %v2454_v9, 1  ;;  %v11793_v9 = vld [vmem:[#allocation2 + $0x18] sm:$0xff]  }
  0xf0   : > { %3105 = vmatmul.mubr.bf16.gmra.mrb[8].mxu0 %v2843_v33  ;;  %10889 = vmatprep.mubr.msk.bf16.mxu1 %vm1057_vm9, %v13096_v39  ;;  %2088 = vst.msk [vmem:[#allocation4 + $0x60] sm:$0xff] %vm1057_vm9, %v11769_v41  ;;  %v11776_v27 = vld [vmem:[#allocation2 + $0x44] sm:$0xff]   ;;  %v1449_v61 = vrot.slane %v1447_v15, 1  ;;  %v4518_v33 = vsel %vm1720_vm10, %v4515_v46, %v4517_v48  ;;  %v2458_v41 = vshrl.u32 %v13299_v19, 16  ;;  %v11795_v15 = vld [vmem:[#allocation2 + $0x58] sm:$0xff]  }
  0xf1   : > { %10852 = vmatprep.mubr.msk.bf16.mxu0 %vm1057_vm9, %v13085_v34  ;;  %1532 = vst.msk [vmem:[#allocation4 + $0x80] sm:$0xff] %vm1523_vm11, %v1468_v55  ;;  %v11782_v39 = vld [vmem:[#allocation2 + $0x48] sm:$0xff]   ;;  %2552 = vst.msk [vmem:[#allocation4 + $0x60] sm:$0xff] %vm1523_vm11, %v2487_v49  ;;  %v854_v34 = vrot.slane %v849_v31, 4  ;;  %v2457_v7 = vsel %vm1254_vm8, %v2452_v21, %v13317_v6  ;;  %v11792_v21 = vld [vmem:[%s15978_s1 + $0xe0] sm:$0xff]  }
  0xf2   : > { %v2489_v17 = vpop.permute.xlu0 %2488  ;;  %v1738_v59 = vrot.slane %v11782_v39, 1  ;;  %2516 = vrot.lane.b32.xlu0 %v2457_v7, %s12244_s26  ;;  %v1450_v3 = vsel %vm1254_vm8, %v1445_v63, %v1449_v61  ;;  %4582 = vst.msk [vmem:[#allocation4 + $0x78] sm:$0xff] %vm1057_vm9, %v4518_v33  ;;  %v2847_v46 = vld [vmem:[#allocation4 + $0x40] sm:$0xff]  ;;  %4825 = vmatpush1.bf16.msra.mxu0 %v11792_v21  ;;  %v4041_v63 = vshll.u32 %v11793_v9, 16  ;;  %1069 = vst.msk [vmem:[#allocation4 + $0xb0] sm:$0xff] %vm1057_vm9, %v11795_v15  ;;  %v11798_v10 = vld [vmem:[#allocation2 + $0x5c] sm:$0xff]  }
  0xf3   : > { %v13323_v12 = vld [vmem:[#allocation4 + $0x70] sm:$0xff]  ;;  %v1470_v50 = vpop.permute.xlu1 %1469  ;;  %v863_v16 = vsel %vm12595_vm7, %v854_v34, %v862_v60  ;;  %1497 = vrot.lane.b32.xlu1 %v1450_v3, %s12244_s26  ;;  %v11794_v60 = vld [vmem:[#allocation2 + $0x20] sm:$0xff]   ;;  %4826 = vmatprep.subr.bf16.mxu0 %v15983_v0  ;;  %v11807_v21 = vld [vmem:[#allocation2 + $0x30] sm:$0xff]  }
  0xf4   : > { %2089 = vst.msk [vmem:[#allocation4 + $0x70] sm:$0xff] %vm1057_vm9, %v11776_v27  ;;  %v1739_v18 = vsel %vm1720_vm10, %v1736_v42, %v1738_v59  ;;  %864 = vst [vmem:[#allocation2 + $0xc8] sm:$0x1] %v863_v16  ;;  %v2759_v42 = vrot.slane %v13325_v13, 1  ;;  %v4039_v27 = vshrl.u32 %v11793_v9, 16  ;;  %v2849_v31 = vld [vmem:[#allocation4 + $0x50] sm:$0xff] }
  0xf5   : > { %1533 = vst.msk [vmem:[#allocation4 + $0x90] sm:$0xff] %vm1523_vm11, %v1470_v50  ;;  %2553 = vst.msk [vmem:[#allocation4 + $0x70] sm:$0xff] %vm1523_vm11, %v2489_v17  ;;  %v11796_v17 = vld [vmem:[#allocation2 + $0x58] sm:$0xff]   ;;  %v4043_v61 = vrot.slane %v4041_v63, 1  ;;  %v13400_v52 = vld [vmem:[#allocation2 + $0x64] sm:$0xff]  }
  0xf6   : > { %1802 = vst.msk [vmem:[#allocation4 + $0x88] sm:$0xff] %vm1057_vm9, %v1739_v18  ;;  %v2491_v26 = vpop.permute.xlu0 %2490  ;;  %v2760_v25 = vsel %vm1720_vm10, %v2757_v56, %v2759_v42  ;;  %v2460_v56 = vor.u32 %v2458_v41, %v13317_v6  ;;  %v1742_v7 = vrot.slane %v11796_v17, 1  ;;  %v11801_v33 = vld [vmem:[#allocation2 + $0x60] sm:$0xff]   ;;  %v11808_v9 = vld [vmem:[#allocation2 + $0x68] sm:$0xff]   ;;  %v13464_v15 = vld [vmem:[#allocation2 + $0x74] sm:$0xff]  }
  0xf7   : > { %3490 = vmatmul.mubr.bf16.gmra.mrb[16].mxu1 %v13252_v2  ;;  %v1472_v40 = vpop.permute.xlu1 %1471  ;;  %v11786_v2 = vld [vmem:[#allocation2 + $0xcc] ss:$0 sps:$4 sm:$0x11]   ;;  %v4044_v3 = vor.u32 %v4043_v61, %v4039_v27  ;;  %1070 = vst.msk [vmem:[#allocation4 + $0xc0] sm:$0xff] %vm1057_vm9, %v11801_v33  ;;  %v4062_v27 = vshll.u32 %v11807_v21, 16  ;;  %1071 = vst.msk [vmem:[#allocation4 + $0xd0] sm:$0xff] %vm1057_vm9, %v11808_v9 }
  0xf8   : > { %3113 = vmatmul.mubr.bf16.gmra.mrb[12].mxu0 %v2845_v1  ;;  %10890 = vmatprep.mubr.msk.bf16.mxu1 %vm1057_vm9, %v13151_v38  ;;  %v13349_v30 = vld [vmem:[#allocation4 + $0x80] sm:$0xff]  ;;  %v13359_v38 = vld [vmem:[#allocation2 + $0x50] sm:$0xff]   ;;  %1534 = vst.msk [vmem:[#allocation4 + $0xa0] sm:$0xff] %vm1523_vm11, %v1472_v40  ;;  %v2470_v45 = vshll.u32 %v11786_v2, 16  ;;  %v4046_v1 = vshll.u32 %v11794_v60, 16 }
  0xf9   : > { %10853 = vmatprep.mubr.msk.bf16.mxu0 %vm1057_vm9, %v13133_v32  ;;  %2090 = vst.msk [vmem:[#allocation4 + $0x80] sm:$0xff] %vm1057_vm9, %v11784_v11  ;;  %v1740_v32 = vrot.slane %v13359_v38, 1  ;;  %v13414_v11 = vld [vmem:[#allocation2 + $0x68] sm:$0xff]  }
  0xfa   : > { %2554 = vst.msk [vmem:[#allocation4 + $0x80] sm:$0xff] %vm1523_vm11, %v2491_v26  ;;  %v2493_v43 = vpop.permute.xlu0 %2492  ;;  %v4048_v51 = vrot.slane %v4046_v1, 1  ;;  %v2851_v40 = vld [vmem:[#allocation4 + $0x60] sm:$0xff] }
  0xfb   : > { %v11780_v19 = vld [vmem:[#allocation2 + $0xc4] sm:$0xff]   ;;  %v1741_v49 = vsel %vm1720_vm10, %v1738_v59, %v1740_v32  ;;  %v1743_v18 = vsel %vm1720_vm10, %v1740_v32, %v1742_v7  ;;  %v11811_v1 = vld [vmem:[#allocation2 + $0x6c] sm:$0xff]  }
  0xfc   : > { %v13370_v29 = vld [vmem:[#allocation4 + $0x90] sm:$0xff]  ;;  %1803 = vst.msk [vmem:[#allocation4 + $0x98] sm:$0xff] %vm1057_vm9, %v1741_v49  ;;  %v2462_v14 = vshll.u32 %v11780_v19, 16  ;;  %v2466_v20 = vshrl.u32 %v11780_v19, 16  ;;  %v4049_v26 = vsel %vm1254_vm8, %v4044_v3, %v4048_v51  ;;  %1804 = vst.msk [vmem:[#allocation4 + $0xa8] sm:$0xff] %vm1057_vm9, %v1743_v18  ;;  %v11802_v32 = vld [vmem:[#allocation2 + $0x60] sm:$0xff]  }
  0xfd   : > { %2091 = vst.msk [vmem:[#allocation4 + $0x90] sm:$0xff] %vm1057_vm9, %v11790_v35  ;;  %v13376_v36 = vld [vmem:[#allocation4 + $0x88] sm:$0xff]  ;;  %v1744_v53 = vrot.slane %v11802_v32, 1  ;;  %v11804_v19 = vld [vmem:[#allocation2 + $0x64] sm:$0xff]  }
  0xfe   : > { %2555 = vst.msk [vmem:[#allocation4 + $0x90] sm:$0xff] %vm1523_vm11, %v2493_v43  ;;  %v2464_v55 = vrot.slane %v2462_v14, 1  ;;  %v13430_v35 = vld [vmem:[#allocation2 + $0x6c] sm:$0xff]  }
  0xff   : > { %3498 = vmatmul.mubr.bf16.gmra.mrb[20].mxu1 %v13272_v22  ;;  %2823 = vst.msk [vmem:[#allocation4 + $0x88] sm:$0xff] %vm1057_vm9, %v2760_v25  ;;  %v2472_v22 = vrot.slane %v2470_v45, 1  ;;  %v13405_v50 = vld [vmem:[#allocation4 + $0xa0] sm:$0xff]  ;;  %v13439_v49 = vld [vmem:[#allocation2 + $0x70] sm:$0xff]  }
 0x100   : > { %3121 = vmatmul.mubr.bf16.gmra.mrb[16].mxu0 %v2847_v46  ;;  %10891 = vmatprep.mubr.msk.bf16.mxu1 %vm1057_vm9, %v13231_v57  ;;  %v2465_v39 = vsel %vm1254_vm8, %v2460_v56, %v2464_v55  ;;  %v2468_v6 = vor.u32 %v2466_v20, %v2464_v55  ;;  %v2762_v57 = vsel %vm1720_vm10, %v2759_v42, %v2761_v62  ;;  %v11800_v42 = vld [vmem:[#allocation2 + $0x28] sm:$0xff]   ;;  %v2765_v20 = vrot.slane %v13430_v35, 1 }
 0x101   : > { %10854 = vmatprep.mubr.msk.bf16.mxu0 %vm1057_vm9, %v13206_v44  ;;  %2518 = vrot.lane.b32.xlu0 %v2465_v39, %s12244_s26  ;;  %v4520_v44 = vsel %vm1720_vm10, %v4517_v48, %v4519_v5  ;;  %v1474_v16 = vpop.permute.xlu1 %1473  ;;  %v4050_v48 = vshrl.u32 %v11794_v60, 16  ;;  %2092 = vst.msk [vmem:[#allocation4 + $0xa0] sm:$0xff] %vm1057_vm9, %v11798_v10  ;;  %v4054_v41 = vshll.u32 %v11800_v42, 16  ;;  %v4058_v14 = vshrl.u32 %v11800_v42, 16  ;;  %v11809_v63 = vld [vmem:[#allocation2 + $0x68] sm:$0xff]   ;;  %v11814_v10 = vld [vmem:[#allocation2 + $0x70] sm:$0xff]  }
 0x102   : > { %v2473_v34 = vsel %vm1254_vm8, %v2468_v6, %v2472_v22  ;;  %1535 = vst.msk [vmem:[#allocation4 + $0xb0] sm:$0xff] %vm1523_vm11, %v1474_v16  ;;  %v2495_v47 = vpop.permute.xlu0 %2494  ;;  %v2853_v22 = vld [vmem:[#allocation4 + $0x70] sm:$0xff]  ;;  %v4064_v6 = vrot.slane %v4062_v27, 1  ;;  %v2855_v18 = vld [vmem:[#allocation4 + $0x80] sm:$0xff] }
 0x103   : > { %v13403_v59 = vld [vmem:[#allocation4 + $0x98] sm:$0xff]  ;;  %2520 = vrot.lane.b32.xlu1 %v2473_v34, %s12244_s26  ;;  %2556 = vst.msk [vmem:[#allocation4 + $0xa0] sm:$0xff] %vm1523_vm11, %v2495_v47  ;;  %v4052_v38 = vor.u32 %v4050_v48, %v4048_v51  ;;  %v4056_v25 = vrot.slane %v4054_v41, 1  ;;  %v13478_v51 = vld [vmem:[#allocation2 + $0x78] sm:$0xff]   ;;  %v11819_v41 = vld [vmem:[%s15978_s1 + $0xf0] sm:$0xff]  }
 0x104   : > { %2824 = vst.msk [vmem:[#allocation4 + $0x98] sm:$0xff] %vm1057_vm9, %v2762_v57  ;;  %v1746_v57 = vrot.slane %v11809_v63, 1  ;;  %v4525_v3 = vrot.slane %v13478_v51, 1  ;;  %1072 = vst.msk [vmem:[#allocation4 + $0xe0] sm:$0xff] %vm1057_vm9, %v11814_v10  ;;  %v11828_v51 = vld [vmem:[#allocation2 + $0x80] sm:$0xff]  }
 0x105   : > { %4234 = vrot.lane.b32.xlu0 %v4049_v26, %s12244_s26  ;;  %v1476_v46 = vpop.permute.xlu1 %1475  ;;  %v4057_v4 = vsel %vm1254_vm8, %v4052_v38, %v4056_v25  ;;  %v4060_v60 = vor.u32 %v4058_v14, %v4056_v25  ;;  %v11815_v26 = vld [vmem:[#allocation2 + $0x70] sm:$0xff]   ;;  %v13500_v38 = vld [vmem:[#allocation2 + $0x80] sm:$0xff]   ;;  %v11822_v14 = vld [vmem:[#allocation2 + $0x78] sm:$0xff]   ;;  %v1752_v10 = vrot.slane %v11828_v51, 1 }
 0x106   : > { %v13409_v13 = vld [vmem:[#allocation4 + $0x88] sm:$0xff]  ;;  %1536 = vst.msk [vmem:[#allocation4 + $0xc0] sm:$0xff] %vm1523_vm11, %v1476_v46  ;;  %v2497_v45 = vpop.permute.xlu0 %2496  ;;  %v1747_v34 = vsel %vm1720_vm10, %v1744_v53, %v1746_v57  ;;  %v1748_v33 = vrot.slane %v11815_v26, 1  ;;  %v1750_v9 = vrot.slane %v11822_v14, 1 }
 0x107   : > { %3506 = vmatmul.mubr.bf16.gmra.mrb[24].mxu1 %v13308_v54  ;;  %4583 = vst.msk [vmem:[#allocation4 + $0x88] sm:$0xff] %vm1057_vm9, %v4520_v44  ;;  %v2763_v54 = vrot.slane %v13400_v52, 1  ;;  %4236 = vrot.lane.b32.xlu1 %v4057_v4, %s12244_s26  ;;  %v4065_v52 = vsel %vm1254_vm8, %v4060_v60, %v4064_v6  ;;  %1806 = vst.msk [vmem:[#allocation4 + $0xc8] sm:$0xff] %vm1057_vm9, %v1747_v34 }
 0x108   : > { %3129 = vmatmul.mubr.bf16.gmra.mrb[20].mxu0 %v2849_v31  ;;  %10892 = vmatprep.mubr.msk.bf16.mxu1 %vm1057_vm9, %v13296_v58  ;;  %v4521_v58 = vrot.slane %v13414_v11, 1 }
 0x109   : > { %10855 = vmatprep.mubr.msk.bf16.mxu0 %vm1057_vm9, %v13281_v8  ;;  %v2764_v8 = vsel %vm1720_vm10, %v2761_v62, %v2763_v54  ;;  %v1745_v62 = vsel %vm1720_vm10, %v1742_v7, %v1744_v53  ;;  %v13446_v56 = vld [vmem:[#allocation4 + $0xb0] sm:$0xff]  ;;  %v1478_v55 = vpop.permute.xlu1 %1477  ;;  %v2766_v31 = vsel %vm1720_vm10, %v2763_v54, %v2765_v20  ;;  %v4066_v7 = vshrl.u32 %v11807_v21, 16  ;;  %4238 = vrot.lane.b32.xlu0 %v4065_v52, %s12244_s26 }
 0x10a   : > { %v4522_v2 = vsel %vm1720_vm10, %v4519_v5, %v4521_v58  ;;  %v13442_v5 = vld [vmem:[#allocation4 + $0xa8] sm:$0xff]  ;;  %1805 = vst.msk [vmem:[#allocation4 + $0xb8] sm:$0xff] %vm1057_vm9, %v1745_v62  ;;  %2093 = vst.msk [vmem:[#allocation4 + $0xb0] sm:$0xff] %vm1057_vm9, %v11804_v19  ;;  %v2499_v17 = vpop.permute.xlu0 %2498  ;;  %v13493_v54 = vld [vmem:[#allocation2 + $0x7c] sm:$0xff]   ;;  %v4527_v53 = vrot.slane %v13500_v38, 1 }
 0x10b   : > { %v13435_v43 = vld [vmem:[#allocation4 + $0x98] sm:$0xff]  ;;  %2825 = vst.msk [vmem:[#allocation4 + $0xa8] sm:$0xff] %vm1057_vm9, %v2764_v8  ;;  %v4068_v11 = vor.u32 %v4066_v7, %v4064_v6  ;;  %v1749_v8 = vsel %vm1720_vm10, %v1746_v57, %v1748_v33  ;;  %v11826_v57 = vld [vmem:[#allocation2 + $0x48] sm:$0xff]  }
 0x10c   : > { %4584 = vst.msk [vmem:[#allocation4 + $0x98] sm:$0xff] %vm1057_vm9, %v4522_v2  ;;  %1807 = vst.msk [vmem:[#allocation4 + $0xd8] sm:$0xff] %vm1057_vm9, %v1749_v8  ;;  %v11820_v19 = vld [vmem:[#allocation2 + $0x40] sm:$0xff]   ;;  %v4086_v34 = vshll.u32 %v11826_v57, 16  ;;  %v13555_v7 = vld [vmem:[#allocation2 + $0x8c] sm:$0xff]  }
 0x10d   : > { %2557 = vst.msk [vmem:[#allocation4 + $0xb0] sm:$0xff] %vm1523_vm11, %v2497_v45  ;;  %1537 = vst.msk [vmem:[#allocation4 + $0xd0] sm:$0xff] %vm1523_vm11, %v1478_v55  ;;  %v1480_v16 = vpop.permute.xlu1 %1479  ;;  %v11821_v45 = vld [vmem:[#allocation2 + $0x78] sm:$0xff]   ;;  %v4078_v62 = vshll.u32 %v11820_v19, 16 }
 0x10e   : > { %1538 = vst.msk [vmem:[#allocation4 + $0xe0] sm:$0xff] %vm1523_vm11, %v1480_v16  ;;  %v2501_v2 = vpop.permute.xlu0 %2500  ;;  %v13506_v46 = vld [vmem:[#allocation4 + $0xc8] sm:$0xff]  ;;  %v11824_v55 = vld [vmem:[#allocation2 + $0x7c] sm:$0xff]   ;;  %v11830_v16 = vld [vmem:[#allocation2 + $0x84] sm:$0xff]  }
 0x10f   : > { %3514 = vmatmul.mubr.bf16.gmra.mrb[28].mxu1 %v13323_v12  ;;  %v11806_v12 = vld [vmem:[%s15978_s1 + $0xe8] sm:$0xff]   ;;  %1073 = vst.msk [vmem:[#allocation4 + $0xf0] sm:$0xff] %vm1057_vm9, %v11821_v45  ;;  %v4080_v21 = vrot.slane %v4078_v62, 1  ;;  %v13588_v8 = vld [vmem:[#allocation2 + $0x94] sm:$0xff]  }
 0x110   : > { %3137 = vmatmul.mubr.bf16.gmra.mrb[24].mxu0 %v2851_v40  ;;  %10893 = vmatprep.mubr.msk.bf16.mxu1 %vm1057_vm9, %v13376_v36  ;;  %v4523_v36 = vrot.slane %v13439_v49, 1  ;;  %v11817_v40 = vld [vmem:[#allocation2 + $0x74] sm:$0xff]   ;;  %v11837_v45 = vld [vmem:[#allocation2 + $0x8c] sm:$0xff]  }
 0x111   : > { %10856 = vmatprep.mubr.msk.bf16.mxu0 %vm1057_vm9, %v13342_v23  ;;  %4827 = vmatpush1.bf16.msra.mxu0 %v11806_v12  ;;  %v13466_v23 = vld [vmem:[#allocation4 + $0xc0] sm:$0xff]  ;;  %v13472_v44 = vld [vmem:[#allocation4 + $0xb8] sm:$0xff]  ;;  %v1482_v49 = vpop.permute.xlu1 %1481 }
 0x112   : > { %4828 = vmatprep.subr.bf16.mxu0 %v15983_v0  ;;  %v4524_v39 = vsel %vm1720_vm10, %v4521_v58, %v4523_v36  ;;  %v13474_v61 = vld [vmem:[#allocation4 + $0xa8] sm:$0xff]  ;;  %2826 = vst.msk [vmem:[#allocation4 + $0xb8] sm:$0xff] %vm1057_vm9, %v2766_v31  ;;  %2094 = vst.msk [vmem:[#allocation4 + $0xc0] sm:$0xff] %vm1057_vm9, %v11811_v1  ;;  %v4526_v58 = vsel %vm1720_vm10, %v4523_v36, %v4525_v3  ;;  %v4528_v36 = vsel %vm1720_vm10, %v4525_v3, %v4527_v53  ;;  %v13540_v31 = vld [vmem:[#allocation2 + $0x88] sm:$0xff]  }
 0x113   : > { %4585 = vst.msk [vmem:[#allocation4 + $0xa8] sm:$0xff] %vm1057_vm9, %v4524_v39  ;;  %v13534_v60 = vld [vmem:[#allocation4 + $0xd8] sm:$0xff]  ;;  %v4082_v39 = vshrl.u32 %v11820_v19, 16  ;;  %v4529_v6 = vrot.slane %v13540_v31, 1 }
 0x114   : > { %2558 = vst.msk [vmem:[#allocation4 + $0xc0] sm:$0xff] %vm1523_vm11, %v2499_v17  ;;  %v13495_v47 = vld [vmem:[#allocation4 + $0xd0] sm:$0xff]  ;;  %1539 = vst.msk [vmem:[#allocation4 + $0xf0] sm:$0xff] %vm1523_vm11, %v1482_v49  ;;  %v11827_v1 = vld [vmem:[#allocation2 + $0x80] sm:$0xff]  }
 0x115   : > { %2095 = vst.msk [vmem:[#allocation4 + $0xd0] sm:$0xff] %vm1057_vm9, %v11817_v40  ;;  %4829 = vmatpush1.bf16.msra.mxu0 %v11819_v41  ;;  %v13528_v12 = vld [vmem:[#allocation4 + $0xe0] sm:$0xff]  ;;  %v4084_v52 = vor.u32 %v4082_v39, %v4080_v21  ;;  %1074 = vst.msk [vmem:[#allocation4 + $0x100] sm:$0xff] %vm1057_vm9, %v11827_v1  ;;  %v4530_v3 = vsel %vm1720_vm10, %v4527_v53, %v4529_v6  ;;  %v11833_v40 = vld [vmem:[#allocation2 + $0x50] sm:$0xff]  }
 0x116   : > { %2559 = vst.msk [vmem:[#allocation4 + $0xd0] sm:$0xff] %vm1523_vm11, %v2501_v2  ;;  %4830 = vmatprep.subr.bf16.mxu0 %v15983_v0  ;;  %v1484_v17 = vpop.permute.xlu1 %1483  ;;  %v11834_v2 = vld [vmem:[#allocation2 + $0x88] sm:$0xff]   ;;  %v2861_v38 = vld [vmem:[#allocation4 + $0xb0] sm:$0xff]  ;;  %v13621_v1 = vld [vmem:[#allocation2 + $0xa0] sm:$0xff]  }
 0x117   : > { %3522 = vmatmul.mubr.bf16.gmra.mrb[32].mxu1 %v13349_v30  ;;  %v2767_v30 = vrot.slane %v13464_v15, 1  ;;  %v1751_v15 = vsel %vm1720_vm10, %v1748_v33, %v1750_v9  ;;  %2096 = vst.msk [vmem:[#allocation4 + $0xe0] sm:$0xff] %vm1057_vm9, %v11824_v55  ;;  %1075 = vst.msk [vmem:[#allocation4 + $0x110] sm:$0xff] %vm1057_vm9, %v11834_v2  ;;  %v11840_v55 = vld [vmem:[#allocation2 + $0x90] sm:$0xff]   ;;  %v13617_v31 = vld [vmem:[#allocation2 + $0x9c] sm:$0xff]  }
 0x118   : > { %3145 = vmatmul.mubr.bf16.gmra.mrb[28].mxu0 %v2853_v22  ;;  %10894 = vmatprep.mubr.msk.bf16.mxu1 %vm1057_vm9, %v13403_v59  ;;  %v11813_v59 = vld [vmem:[#allocation2 + $0x38] sm:$0xff]   ;;  %v2503_v22 = vpop.permute.xlu0 %2502  ;;  %1808 = vst.msk [vmem:[#allocation4 + $0xe8] sm:$0xff] %vm1057_vm9, %v1751_v15  ;;  %v11841_v15 = vld [vmem:[#allocation2 + $0x90] sm:$0xff]   ;;  %1076 = vst.msk [vmem:[#allocation4 + $0x120] sm:$0xff] %vm1057_vm9, %v11840_v55 }
 0x119   : > { %10857 = vmatprep.mubr.msk.bf16.mxu0 %vm1057_vm9, %v13409_v13  ;;  %v4070_v48 = vshll.u32 %v11813_v59, 16  ;;  %v2768_v13 = vsel %vm1720_vm10, %v2765_v20, %v2767_v30  ;;  %v13508_v32 = vld [vmem:[#allocation4 + $0xb8] sm:$0xff]  ;;  %v4074_v25 = vshrl.u32 %v11813_v59, 16  ;;  %2560 = vst.msk [vmem:[#allocation4 + $0xe0] sm:$0xff] %vm1523_vm11, %v2503_v22  ;;  %v4088_v59 = vrot.slane %v4086_v34, 1  ;;  %1540 = vst.msk [vmem:[#allocation4 + $0x100] sm:$0xff] %vm1523_vm11, %v1484_v17 }
 0x11a   : > { %2827 = vst.msk [vmem:[#allocation4 + $0xc8] sm:$0xff] %vm1057_vm9, %v2768_v13  ;;  %4586 = vst.msk [vmem:[#allocation4 + $0xb8] sm:$0xff] %vm1057_vm9, %v4526_v58  ;;  %v13526_v20 = vld [vmem:[#allocation2 + $0x84] sm:$0xff]   ;;  %v1753_v58 = vsel %vm1720_vm10, %v1750_v9, %v1752_v10  ;;  %v11839_v9 = vld [vmem:[#allocation2 + $0x58] sm:$0xff]  }
 0x11b   : > { %v4072_v42 = vrot.slane %v4070_v48, 1  ;;  %v11832_v48 = vld [vmem:[%s15978_s1 + $0xf8] sm:$0xff]   ;;  %v4089_v13 = vsel %vm1254_vm8, %v4084_v52, %v4088_v59  ;;  %1809 = vst.msk [vmem:[#allocation4 + $0xf8] sm:$0xff] %vm1057_vm9, %v1753_v58  ;;  %v2863_v22 = vld [vmem:[#allocation4 + $0xc0] sm:$0xff] }
 0x11c   : > { %4831 = vmatpush1.bf16.msra.mxu0 %v11832_v48  ;;  %v11848_v58 = vld [vmem:[#allocation2 + $0x98] sm:$0xff]  }
 0x11d   : > { %v4073_v35 = vsel %vm1254_vm8, %v4068_v11, %v4072_v42  ;;  %v4076_v4 = vor.u32 %v4074_v25, %v4072_v42  ;;  %v13562_v11 = vld [vmem:[#allocation2 + $0x90] sm:$0xff]   ;;  %v4090_v42 = vshrl.u32 %v11826_v57, 16  ;;  %4832 = vmatprep.subr.bf16.mxu0 %v15983_v0  ;;  %v2865_v48 = vld [vmem:[#allocation4 + $0xd0] sm:$0xff] }
 0x11e   : > { %4240 = vrot.lane.b32.xlu1 %v4073_v35, %s12244_s26  ;;  %v4531_v33 = vrot.slane %v13562_v11, 1  ;;  %v11835_v35 = vld [vmem:[#allocation2 + $0x88] sm:$0xff]   ;;  %v11843_v57 = vld [vmem:[#allocation2 + $0x94] sm:$0xff]   ;;  %v11850_v2 = vld [vmem:[#allocation2 + $0x9c] sm:$0xff]  }
 0x11f   : > { %3530 = vmatmul.mubr.bf16.gmra.mrb[36].mxu1 %v13370_v29  ;;  %v2769_v29 = vrot.slane %v13493_v54, 1  ;;  %v4081_v63 = vsel %vm1254_vm8, %v4076_v4, %v4080_v21  ;;  %v13568_v26 = vld [vmem:[#allocation4 + $0xe8] sm:$0xff]  ;;  %v4092_v41 = vor.u32 %v4090_v42, %v4088_v59  ;;  %v1754_v19 = vrot.slane %v11835_v35, 1  ;;  %v13650_v42 = vld [vmem:[#allocation2 + $0xa4] sm:$0xff]  }
 0x120   : > { %3153 = vmatmul.mubr.bf16.gmra.mrb[32].mxu0 %v2855_v18  ;;  %10895 = vmatprep.mubr.msk.bf16.mxu1 %vm1057_vm9, %v13442_v5  ;;  %v2857_v5 = vld [vmem:[#allocation4 + $0x90] sm:$0xff]  ;;  %v2505_v18 = vpop.permute.xlu0 %2504  ;;  %v13590_v25 = vld [vmem:[#allocation4 + $0x100] sm:$0xff]  ;;  %v4106_v59 = vshrl.u32 %v11839_v9, 16 }
 0x121   : > { %10858 = vmatprep.mubr.msk.bf16.mxu0 %vm1057_vm9, %v13435_v43  ;;  %v2770_v43 = vsel %vm1720_vm10, %v2767_v30, %v2769_v29  ;;  %v13536_v27 = vld [vmem:[#allocation4 + $0xc8] sm:$0xff]  ;;  %4242 = vrot.lane.b32.xlu0 %v4081_v63, %s12244_s26  ;;  %v13557_v30 = vld [vmem:[#allocation4 + $0xf0] sm:$0xff]  ;;  %v1755_v14 = vsel %vm1720_vm10, %v1752_v10, %v1754_v19  ;;  %2098 = vst.msk [vmem:[#allocation4 + $0x100] sm:$0xff] %vm1057_vm9, %v11837_v45  ;;  %v4102_v63 = vshll.u32 %v11839_v9, 16  ;;  %v4535_v10 = vrot.slane %v13621_v1, 1  ;;  %v11856_v9 = vld [vmem:[#allocation2 + $0xa4] sm:$0xff]  }
 0x122   : > { %2828 = vst.msk [vmem:[#allocation4 + $0xd8] sm:$0xff] %vm1057_vm9, %v2770_v43  ;;  %4587 = vst.msk [vmem:[#allocation4 + $0xc8] sm:$0xff] %vm1057_vm9, %v4528_v36  ;;  %4244 = vrot.lane.b32.xlu1 %v4089_v13, %s12244_s26  ;;  %v13595_v49 = vld [vmem:[#allocation4 + $0xf8] sm:$0xff]  ;;  %v4098_v43 = vshrl.u32 %v11833_v40, 16 }
 0x123   : > { %2097 = vst.msk [vmem:[#allocation4 + $0xf0] sm:$0xff] %vm1057_vm9, %v11830_v16  ;;  %v1486_v62 = vpop.permute.xlu1 %1485  ;;  %1810 = vst.msk [vmem:[#allocation4 + $0x108] sm:$0xff] %vm1057_vm9, %v1755_v14  ;;  %v11846_v16 = vld [vmem:[#allocation2 + $0x60] sm:$0xff]  }
 0x124   : > { %2561 = vst.msk [vmem:[#allocation4 + $0xf0] sm:$0xff] %vm1523_vm11, %v2505_v18  ;;  %1541 = vst.msk [vmem:[#allocation4 + $0x110] sm:$0xff] %vm1523_vm11, %v1486_v62  ;;  %v2507_v36 = vpop.permute.xlu0 %2506  ;;  %v11847_v18 = vld [vmem:[#allocation2 + $0x98] sm:$0xff]   ;;  %v4110_v13 = vshll.u32 %v11846_v16, 16  ;;  %v11854_v14 = vld [vmem:[#allocation2 + $0xa0] sm:$0xff]  }
 0x125   : > { %2562 = vst.msk [vmem:[#allocation4 + $0x100] sm:$0xff] %vm1523_vm11, %v2507_v36  ;;  %v1760_v36 = vrot.slane %v11854_v14, 1 }
 0x126   : > { %1077 = vst.msk [vmem:[#allocation4 + $0x130] sm:$0xff] %vm1057_vm9, %v11847_v18 }
 0x127   : > { %3538 = vmatmul.mubr.bf16.gmra.mrb[40].mxu1 %v13405_v50  ;;  %v2771_v50 = vrot.slane %v13526_v20, 1  ;;  %v13601_v20 = vld [vmem:[#allocation2 + $0x98] sm:$0xff]  }
 0x128   : > { %3161 = vmatmul.mubr.bf16.gmra.mrb[36].mxu0 %v2857_v5  ;;  %10896 = vmatprep.mubr.msk.bf16.mxu1 %vm1057_vm9, %v13472_v44  ;;  %v2859_v44 = vld [vmem:[#allocation4 + $0xa0] sm:$0xff]  ;;  %v4533_v21 = vrot.slane %v13601_v20, 1  ;;  %v1488_v17 = vpop.permute.xlu1 %1487 }
 0x129   : > { %10859 = vmatprep.mubr.msk.bf16.mxu0 %vm1057_vm9, %v13474_v61  ;;  %v2772_v61 = vsel %vm1720_vm10, %v2769_v29, %v2771_v50  ;;  %v13570_v54 = vld [vmem:[#allocation4 + $0xd8] sm:$0xff]  ;;  %v4532_v29 = vsel %vm1720_vm10, %v4529_v6, %v4531_v33  ;;  %v1756_v6 = vrot.slane %v11841_v15, 1  ;;  %1542 = vst.msk [vmem:[#allocation4 + $0x120] sm:$0xff] %vm1523_vm11, %v1488_v17  ;;  %v2867_v20 = vld [vmem:[#allocation4 + $0xe0] sm:$0xff] }
 0x12a   : > { %2829 = vst.msk [vmem:[#allocation4 + $0xe8] sm:$0xff] %vm1057_vm9, %v2772_v61  ;;  %4588 = vst.msk [vmem:[#allocation4 + $0xd8] sm:$0xff] %vm1057_vm9, %v4530_v3  ;;  %v13627_v52 = vld [vmem:[#allocation4 + $0x108] sm:$0xff]  ;;  %v2509_v3 = vpop.permute.xlu0 %2508 }
 0x12b   : > { %v13634_v61 = vld [vmem:[#allocation4 + $0x110] sm:$0xff] }
 0x12c   : > { %2099 = vst.msk [vmem:[#allocation4 + $0x110] sm:$0xff] %vm1057_vm9, %v11843_v57  ;;  %v1490_v11 = vpop.permute.xlu1 %1489  ;;  %v11860_v57 = vld [vmem:[#allocation2 + $0xa8] sm:$0xff]   ;;  %v2869_v1 = vld [vmem:[#allocation4 + $0xf0] sm:$0xff] }
 0x12d   : > { %2563 = vst.msk [vmem:[#allocation4 + $0x110] sm:$0xff] %vm1523_vm11, %v2509_v3  ;;  %1543 = vst.msk [vmem:[#allocation4 + $0x130] sm:$0xff] %vm1523_vm11, %v1490_v11  ;;  %v13711_v3 = vld [vmem:[#allocation2 + $0xb4] sm:$0xff]  }
 0x12e   : > { %1079 = vst.msk [vmem:[#allocation4 + $0x150] sm:$0xff] %vm1057_vm9, %v11860_v57 }
 0x12f   : > { %3546 = vmatmul.mubr.bf16.gmra.mrb[44].mxu1 %v13446_v56  ;;  %v2773_v56 = vrot.slane %v13555_v7, 1  ;;  %v1757_v7 = vsel %vm1720_vm10, %v1754_v19, %v1756_v6  ;;  %v11852_v19 = vld [vmem:[#allocation2 + $0x68] sm:$0xff]  }
 0x130   : > { %3169 = vmatmul.mubr.bf16.gmra.mrb[40].mxu0 %v2859_v44  ;;  %10897 = vmatprep.mubr.msk.bf16.mxu1 %vm1057_vm9, %v13506_v46  ;;  %v4094_v46 = vshll.u32 %v11833_v40, 16  ;;  %v11845_v44 = vld [vmem:[%s15978_s1 + $0x100] sm:$0xff]   ;;  %1811 = vst.msk [vmem:[#allocation4 + $0x118] sm:$0xff] %vm1057_vm9, %v1757_v7  ;;  %v1758_v40 = vrot.slane %v11848_v58, 1  ;;  %v4118_v62 = vshll.u32 %v11852_v19, 16  ;;  %v2783_v58 = vrot.slane %v13711_v3, 1 }
 0x131   : > { %10860 = vmatprep.mubr.msk.bf16.mxu0 %vm1057_vm9, %v13508_v32  ;;  %v2774_v32 = vsel %vm1720_vm10, %v2771_v50, %v2773_v56  ;;  %v13597_v5 = vld [vmem:[#allocation4 + $0xe8] sm:$0xff]  ;;  %v4104_v50 = vrot.slane %v4102_v63, 1  ;;  %4833 = vmatpush1.bf16.msra.mxu0 %v11845_v44 }
 0x132   : > { %v4096_v53 = vrot.slane %v4094_v46, 1  ;;  %2830 = vst.msk [vmem:[#allocation4 + $0xf8] sm:$0xff] %vm1057_vm9, %v2774_v32  ;;  %4589 = vst.msk [vmem:[#allocation4 + $0xe8] sm:$0xff] %vm1057_vm9, %v4532_v29  ;;  %4834 = vmatprep.subr.bf16.mxu0 %v15983_v0  ;;  %v4114_v46 = vshrl.u32 %v11846_v16, 16  ;;  %v1759_v29 = vsel %vm1720_vm10, %v1756_v6, %v1758_v40  ;;  %v1761_v63 = vsel %vm1720_vm10, %v1758_v40, %v1760_v36  ;;  %v11859_v6 = vld [vmem:[#allocation2 + $0x70] sm:$0xff]   ;;  %v13715_v16 = vld [vmem:[#allocation2 + $0xb8] sm:$0xff]  }
 0x133   : > { %1812 = vst.msk [vmem:[#allocation4 + $0x128] sm:$0xff] %vm1057_vm9, %v1759_v29  ;;  %1813 = vst.msk [vmem:[#allocation4 + $0x138] sm:$0xff] %vm1057_vm9, %v1761_v63  ;;  %v4126_v44 = vshll.u32 %v11859_v6, 16  ;;  %v4130_v18 = vshrl.u32 %v11859_v6, 16  ;;  %v11874_v63 = vld [vmem:[#allocation2 + $0xb8] sm:$0xff]  }
 0x134   : > { %v4097_v4 = vsel %vm1254_vm8, %v4092_v41, %v4096_v53  ;;  %v13657_v41 = vld [vmem:[#allocation4 + $0x120] sm:$0xff] }
 0x135   : > { %4246 = vrot.lane.b32.xlu0 %v4097_v4, %s12244_s26  ;;  %2100 = vst.msk [vmem:[#allocation4 + $0x120] sm:$0xff] %vm1057_vm9, %v11850_v2  ;;  %v11853_v4 = vld [vmem:[#allocation2 + $0xa0] sm:$0xff]   ;;  %v11867_v2 = vld [vmem:[#allocation2 + $0xb0] sm:$0xff]  }
 0x136   : > { %1078 = vst.msk [vmem:[#allocation4 + $0x140] sm:$0xff] %vm1057_vm9, %v11853_v4  ;;  %v13745_v4 = vld [vmem:[#allocation2 + $0xc0] sm:$0xff]  }
 0x137   : > { %3554 = vmatmul.mubr.bf16.gmra.mrb[48].mxu1 %v13466_v23  ;;  %v2775_v23 = vrot.slane %v13588_v8, 1  ;;  %v13660_v35 = vld [vmem:[#allocation4 + $0x118] sm:$0xff] }
 0x138   : > { %3177 = vmatmul.mubr.bf16.gmra.mrb[44].mxu0 %v2861_v38  ;;  %10898 = vmatprep.mubr.msk.bf16.mxu1 %vm1057_vm9, %v13534_v60  ;;  %v4100_v60 = vor.u32 %v4098_v43, %v4096_v53  ;;  %v13655_v38 = vld [vmem:[#allocation2 + $0xa8] sm:$0xff]   ;;  %v2511_v53 = vpop.permute.xlu0 %2510 }
 0x139   : > { %10861 = vmatprep.mubr.msk.bf16.mxu0 %vm1057_vm9, %v13536_v27  ;;  %v2776_v39 = vsel %vm1720_vm10, %v2773_v56, %v2775_v23  ;;  %v4534_v27 = vsel %vm1720_vm10, %v4531_v33, %v4533_v21  ;;  %v13629_v34 = vld [vmem:[#allocation4 + $0xf8] sm:$0xff]  ;;  %v4536_v56 = vsel %vm1720_vm10, %v4533_v21, %v4535_v10  ;;  %v4112_v33 = vrot.slane %v4110_v13, 1  ;;  %2564 = vst.msk [vmem:[#allocation4 + $0x120] sm:$0xff] %vm1523_vm11, %v2511_v53  ;;  %v13679_v43 = vld [vmem:[#allocation2 + $0xac] sm:$0xff]   ;;  %v13681_v21 = vld [vmem:[#allocation4 + $0x130] sm:$0xff] }
 0x13a   : > { %v4105_v51 = vsel %vm1254_vm8, %v4100_v60, %v4104_v50  ;;  %2831 = vst.msk [vmem:[#allocation4 + $0x108] sm:$0xff] %vm1057_vm9, %v2776_v39  ;;  %4590 = vst.msk [vmem:[#allocation4 + $0xf8] sm:$0xff] %vm1057_vm9, %v4534_v27  ;;  %v4537_v45 = vrot.slane %v13655_v38, 1  ;;  %v13691_v15 = vld [vmem:[#allocation4 + $0x128] sm:$0xff]  ;;  %v4122_v39 = vshrl.u32 %v11852_v19, 16  ;;  %v2781_v27 = vrot.slane %v13679_v43, 1 }
 0x13b   : > { %4248 = vrot.lane.b32.xlu1 %v4105_v51, %s12244_s26  ;;  %2101 = vst.msk [vmem:[#allocation4 + $0x130] sm:$0xff] %vm1057_vm9, %v11856_v9  ;;  %v13717_v11 = vld [vmem:[#allocation4 + $0x138] sm:$0xff]  ;;  %v2871_v53 = vld [vmem:[#allocation4 + $0x100] sm:$0xff] }
 0x13c   : > { %v4538_v55 = vsel %vm1720_vm10, %v4535_v10, %v4537_v45  ;;  %v13736_v38 = vld [vmem:[#allocation2 + $0xbc] sm:$0xff]   ;;  %v2784_v19 = vsel %vm1720_vm10, %v2781_v27, %v2783_v58 }
 0x13d   : > { %v2785_v43 = vrot.slane %v13736_v38, 1 }
 0x13f   : > { %3562 = vmatmul.mubr.bf16.gmra.mrb[52].mxu1 %v13495_v47  ;;  %v2777_v47 = vrot.slane %v13617_v31, 1 }
 0x140   : > { %3185 = vmatmul.mubr.bf16.gmra.mrb[48].mxu0 %v2863_v22  ;;  %10899 = vmatprep.mubr.msk.bf16.mxu1 %vm1057_vm9, %v13568_v26  ;;  %v4108_v26 = vor.u32 %v4106_v59, %v4104_v50  ;;  %v13685_v22 = vld [vmem:[#allocation2 + $0xb0] sm:$0xff]  }
 0x141   : > { %10862 = vmatprep.mubr.msk.bf16.mxu0 %vm1057_vm9, %v13570_v54  ;;  %v2778_v54 = vsel %vm1720_vm10, %v2775_v23, %v2777_v47  ;;  %v13662_v8 = vld [vmem:[#allocation4 + $0x108] sm:$0xff]  ;;  %v4120_v23 = vrot.slane %v4118_v62, 1  ;;  %v4539_v50 = vrot.slane %v13685_v22, 1 }
 0x142   : > { %v4113_v32 = vsel %vm1254_vm8, %v4108_v26, %v4112_v33  ;;  %2832 = vst.msk [vmem:[#allocation4 + $0x118] sm:$0xff] %vm1057_vm9, %v2778_v54  ;;  %4591 = vst.msk [vmem:[#allocation4 + $0x108] sm:$0xff] %vm1057_vm9, %v4536_v56  ;;  %v11865_v54 = vld [vmem:[#allocation2 + $0x78] sm:$0xff]   ;;  %v11866_v56 = vld [vmem:[#allocation2 + $0xb0] sm:$0xff]  }
 0x143   : > { %4250 = vrot.lane.b32.xlu0 %v4113_v32, %s12244_s26  ;;  %v4124_v17 = vor.u32 %v4122_v39, %v4120_v23  ;;  %v4540_v59 = vsel %vm1720_vm10, %v4537_v45, %v4539_v50  ;;  %v4134_v40 = vshll.u32 %v11865_v54, 16  ;;  %1080 = vst.msk [vmem:[#allocation4 + $0x160] sm:$0xff] %vm1057_vm9, %v11866_v56  ;;  %v4138_v14 = vshrl.u32 %v11865_v54, 16  ;;  %v13802_v56 = vld [vmem:[#allocation2 + $0xd0] sm:$0xff]  }
 0x144   : > { %v2786_v39 = vsel %vm1720_vm10, %v2783_v58, %v2785_v43  ;;  %v2875_v58 = vld [vmem:[#allocation4 + $0x120] sm:$0xff] }
 0x147   : > { %3570 = vmatmul.mubr.bf16.gmra.mrb[56].mxu1 %v13528_v12  ;;  %v2779_v12 = vrot.slane %v13650_v42, 1  ;;  %v11863_v42 = vld [vmem:[#allocation2 + $0xac] sm:$0xff]  }
 0x148   : > { %3193 = vmatmul.mubr.bf16.gmra.mrb[52].mxu0 %v2865_v48  ;;  %10900 = vmatprep.mubr.msk.bf16.mxu1 %vm1057_vm9, %v13595_v49  ;;  %v4116_v49 = vor.u32 %v4114_v46, %v4112_v33  ;;  %v4136_v46 = vrot.slane %v4134_v40, 1  ;;  %v11883_v40 = vld [vmem:[%s15978_s1 + $0x118] sm:$0xff]  }
 0x149   : > { %10863 = vmatprep.mubr.msk.bf16.mxu0 %vm1057_vm9, %v13597_v5  ;;  %v2780_v5 = vsel %vm1720_vm10, %v2777_v47, %v2779_v12  ;;  %v13693_v31 = vld [vmem:[#allocation4 + $0x118] sm:$0xff]  ;;  %v2782_v7 = vsel %vm1720_vm10, %v2779_v12, %v2781_v27  ;;  %v4128_v47 = vrot.slane %v4126_v44, 1 }
 0x14a   : > { %v4121_v60 = vsel %vm1254_vm8, %v4116_v49, %v4120_v23  ;;  %2833 = vst.msk [vmem:[#allocation4 + $0x128] sm:$0xff] %vm1057_vm9, %v2780_v5  ;;  %4592 = vst.msk [vmem:[#allocation4 + $0x118] sm:$0xff] %vm1057_vm9, %v4538_v55  ;;  %v11871_v23 = vld [vmem:[%s15978_s1 + $0x110] sm:$0xff]   ;;  %v4543_v5 = vrot.slane %v13745_v4, 1  ;;  %v11873_v55 = vld [vmem:[#allocation2 + $0xb8] sm:$0xff]   ;;  %v4140_v22 = vor.u32 %v4138_v14, %v4136_v46 }
 0x14b   : > { %4252 = vrot.lane.b32.xlu1 %v4121_v60, %s12244_s26  ;;  %2834 = vst.msk [vmem:[#allocation4 + $0x138] sm:$0xff] %vm1057_vm9, %v2782_v7  ;;  %v4129_v26 = vsel %vm1254_vm8, %v4124_v17, %v4128_v47  ;;  %v4132_v33 = vor.u32 %v4130_v18, %v4128_v47  ;;  %1081 = vst.msk [vmem:[#allocation4 + $0x170] sm:$0xff] %vm1057_vm9, %v11873_v55 }
 0x14c   : > { %v1492_v51 = vpop.permute.xlu1 %1491  ;;  %4254 = vrot.lane.b32.xlu0 %v4129_v26, %s12244_s26 }
 0x14d   : > { %1544 = vst.msk [vmem:[#allocation4 + $0x140] sm:$0xff] %vm1523_vm11, %v1492_v51  ;;  %v11876_v51 = vld [vmem:[#allocation2 + $0xbc] sm:$0xff]  }
 0x14f   : > { %3578 = vmatmul.mubr.bf16.gmra.mrb[60].mxu1 %v13557_v30  ;;  %v11858_v30 = vld [vmem:[%s15978_s1 + $0x108] sm:$0xff]  }
 0x150   : > { %3201 = vmatmul.mubr.bf16.gmra.mrb[56].mxu0 %v2867_v20  ;;  %10901 = vmatprep.mubr.msk.bf16.mxu1 %vm1057_vm9, %v13627_v52  ;;  %v11861_v52 = vld [vmem:[#allocation2 + $0xa8] sm:$0xff]  }
 0x151   : > { %10864 = vmatprep.mubr.msk.bf16.mxu0 %vm1057_vm9, %v13629_v34  ;;  %4835 = vmatpush1.bf16.msra.mxu0 %v11858_v30  ;;  %v2513_v34 = vpop.permute.xlu0 %2512  ;;  %v1762_v10 = vrot.slane %v11861_v52, 1  ;;  %v13722_v48 = vld [vmem:[#allocation4 + $0x128] sm:$0xff]  ;;  %v1766_v30 = vrot.slane %v11874_v63, 1 }
 0x152   : > { %4836 = vmatprep.subr.bf16.mxu0 %v15983_v0  ;;  %2565 = vst.msk [vmem:[#allocation4 + $0x130] sm:$0xff] %vm1523_vm11, %v2513_v34  ;;  %v13748_v62 = vld [vmem:[#allocation4 + $0x138] sm:$0xff] }
 0x153   : > { %v1763_v13 = vsel %vm1720_vm10, %v1760_v36, %v1762_v10  ;;  %4593 = vst.msk [vmem:[#allocation4 + $0x128] sm:$0xff] %vm1057_vm9, %v4540_v59  ;;  %v11869_v36 = vld [vmem:[#allocation2 + $0xb4] sm:$0xff]   ;;  %v11878_v59 = vld [vmem:[#allocation2 + $0x88] sm:$0xff]  }
 0x154   : > { %1814 = vst.msk [vmem:[#allocation4 + $0x148] sm:$0xff] %vm1057_vm9, %v1763_v13  ;;  %v13738_v32 = vld [vmem:[#allocation4 + $0x140] sm:$0xff]  ;;  %v4150_v26 = vshll.u32 %v11878_v59, 16 }
 0x155   : > { %2102 = vst.msk [vmem:[#allocation4 + $0x140] sm:$0xff] %vm1057_vm9, %v11863_v42  ;;  %4837 = vmatpush1.bf16.msra.mxu0 %v11871_v23  ;;  %v11880_v13 = vld [vmem:[#allocation2 + $0xcc] ss:$0 sps:$4 sm:$0x11]  }
 0x156   : > { %4838 = vmatprep.subr.bf16.mxu0 %v15983_v0  ;;  %v4152_v54 = vrot.slane %v4150_v26, 1 }
 0x157   : > { %3586 = vmatmul.mubr.bf16.gmra.mrb[64].mxu1 %v13590_v25  ;;  %v4541_v25 = vrot.slane %v13715_v16, 1  ;;  %v1494_v12 = vpop.permute.xlu1 %1493 }
 0x158   : > { %3209 = vmatmul.mubr.bf16.gmra.mrb[60].mxu0 %v2869_v1  ;;  %10902 = vmatprep.mubr.msk.bf16.mxu1 %vm1057_vm9, %v13660_v35  ;;  %v1764_v35 = vrot.slane %v11867_v2, 1  ;;  %1545 = vst.msk [vmem:[#allocation4 + $0x150] sm:$0xff] %vm1523_vm11, %v1494_v12  ;;  %v4547_v12 = vrot.slane %v13802_v56, 1 }
 0x159   : > { %10865 = vmatprep.mubr.msk.bf16.mxu0 %vm1057_vm9, %v13662_v8  ;;  %v4542_v29 = vsel %vm1720_vm10, %v4539_v50, %v4541_v25  ;;  %v4137_v8 = vsel %vm1254_vm8, %v4132_v33, %v4136_v46  ;;  %v13773_v50 = vld [vmem:[#allocation2 + $0xc8] sm:$0xff]   ;;  %v4544_v1 = vsel %vm1720_vm10, %v4541_v25, %v4543_v5  ;;  %4839 = vmatpush1.bf16.msra.mxu0 %v11883_v40 }
 0x15a   : > { %v1765_v45 = vsel %vm1720_vm10, %v1762_v10, %v1764_v35  ;;  %4256 = vrot.lane.b32.xlu1 %v4137_v8, %s12244_s26  ;;  %4594 = vst.msk [vmem:[#allocation4 + $0x138] sm:$0xff] %vm1057_vm9, %v4542_v29  ;;  %v1767_v52 = vsel %vm1720_vm10, %v1764_v35, %v1766_v30  ;;  %v4545_v34 = vrot.slane %v13773_v50, 1  ;;  %v11879_v10 = vld [vmem:[#allocation2 + $0xc0] ss:$0 sps:$4 sm:$0x11]   ;;  %v11881_v25 = vld [vmem:[#allocation2 + $0xc4] sm:$0xff]   ;;  %8578 = vmatprep.subr.bf16.mxu0 %v15983_v0 }
 0x15b   : > { %1815 = vst.msk [vmem:[#allocation4 + $0x158] sm:$0xff] %vm1057_vm9, %v1765_v45  ;;  %v13753_v20 = vld [vmem:[#allocation4 + $0x148] sm:$0xff]  ;;  %1816 = vst.msk [vmem:[#allocation4 + $0x168] sm:$0xff] %vm1057_vm9, %v1767_v52  ;;  %v2789_v35 = vrot.slane %v11880_v13, 1 }
 0x15c   : > { %2835 = vst.msk [vmem:[#allocation4 + $0x148] sm:$0xff] %vm1057_vm9, %v2784_v19  ;;  %v1496_v9 = vpop.permute.xlu1 %1495  ;;  %v4546_v42 = vsel %vm1720_vm10, %v4543_v5, %v4545_v34  ;;  %v11884_v29 = vld [vmem:[#allocation2 + $0x90] sm:$0xff]   ;;  %v11885_v19 = vld [vmem:[#allocation2 + $0x18] sm:$0xff]   ;;  %v4548_v5 = vsel %vm1720_vm10, %v4545_v34, %v4547_v12 }
 0x15d   : > { %v2515_v49 = vpop.permute.xlu0 %2514  ;;  %1546 = vst.msk [vmem:[#allocation4 + $0x160] sm:$0xff] %vm1523_vm11, %v1496_v9  ;;  %v4158_v4 = vshll.u32 %v11884_v29, 16  ;;  %v4162_v23 = vshrl.u32 %v11884_v29, 16  ;;  %v11893_v34 = vld [vmem:[#allocation2 + $0xb0] sm:$0xff]  }
 0x15e   : > { %2566 = vst.msk [vmem:[#allocation4 + $0x140] sm:$0xff] %vm1523_vm11, %v2515_v49  ;;  %v11887_v49 = vld [vmem:[#allocation2 + $0x98] sm:$0xff]  }
 0x15f   : > { %3594 = vmatmul.mubr.bf16.gmra.mrb[68].mxu1 %v13634_v61  ;;  %v11872_v61 = vld [vmem:[#allocation2 + $0x80] sm:$0xff]   ;;  %v13777_v57 = vld [vmem:[#allocation4 + $0x150] sm:$0xff]  ;;  %3842 = vst.msk [vmem:[#allocation4] sm:$0xff] %vm1057_vm9, %v11885_v19 }
 0x160   : > { %3217 = vmatmul.mubr.bf16.gmra.mrb[64].mxu0 %v2871_v53  ;;  %10903 = vmatprep.mubr.msk.bf16.mxu1 %vm1057_vm9, %v13691_v15  ;;  %v4142_v60 = vshll.u32 %v11872_v61, 16  ;;  %v2873_v15 = vld [vmem:[#allocation4 + $0x110] sm:$0xff]  ;;  %v4146_v17 = vshrl.u32 %v11872_v61, 16  ;;  %2103 = vst.msk [vmem:[#allocation4 + $0x150] sm:$0xff] %vm1057_vm9, %v11869_v36  ;;  %v4154_v53 = vshrl.u32 %v11878_v59, 16  ;;  %v4166_v61 = vshll.u32 %v11887_v49, 16 }
 0x161   : > { %10866 = vmatprep.mubr.msk.bf16.mxu0 %vm1057_vm9, %v13693_v31  ;;  %v13771_v31 = vld [vmem:[#allocation2 + $0xc4] sm:$0xff]   ;;  %v2877_v36 = vld [vmem:[#allocation4 + $0x130] sm:$0xff] }
 0x162   : > { %v4144_v27 = vrot.slane %v4142_v60, 1  ;;  %v13775_v6 = vld [vmem:[#allocation4 + $0x158] sm:$0xff]  ;;  %v13813_v46 = vld [vmem:[#allocation4 + $0x168] sm:$0xff]  ;;  %v4156_v45 = vor.u32 %v4154_v53, %v4152_v54  ;;  %v4170_v60 = vshrl.u32 %v11887_v49, 16  ;;  %v4168_v63 = vrot.slane %v4166_v61, 1 }
 0x163   : > { %2836 = vst.msk [vmem:[#allocation4 + $0x158] sm:$0xff] %vm1057_vm9, %v2786_v39  ;;  %v13785_v3 = vld [vmem:[#allocation4 + $0x148] sm:$0xff]  ;;  %v11897_v53 = vld [vmem:[#allocation2 + $0xc0] sm:$0xff]  }
 0x164   : > { %v4145_v44 = vsel %vm1254_vm8, %v4140_v22, %v4144_v27  ;;  %v2517_v7 = vpop.permute.xlu0 %2516  ;;  %4595 = vst.msk [vmem:[#allocation4 + $0x148] sm:$0xff] %vm1057_vm9, %v4544_v1  ;;  %v13798_v16 = vld [vmem:[#allocation4 + $0x160] sm:$0xff]  ;;  %v4148_v18 = vor.u32 %v4146_v17, %v4144_v27  ;;  %v11889_v22 = vld [vmem:[#allocation2 + $0xa0] sm:$0xff]   ;;  %v4172_v17 = vor.u32 %v4170_v60, %v4168_v63  ;;  %v11900_v49 = vld [vmem:[#allocation2 + $0x50] sm:$0xff]  }
 0x165   : > { %4258 = vrot.lane.b32.xlu0 %v4145_v44, %s12244_s26  ;;  %2567 = vst.msk [vmem:[#allocation4 + $0x150] sm:$0xff] %vm1523_vm11, %v2517_v7  ;;  %v1498_v47 = vpop.permute.xlu1 %1497  ;;  %v4178_v50 = vshrl.u32 %v11889_v22, 16  ;;  %v11891_v44 = vld [vmem:[#allocation2 + $0xa8] sm:$0xff]   ;;  %v11892_v7 = vld [vmem:[#allocation2 + $0x30] sm:$0xff]  }
 0x166   : > { %1547 = vst.msk [vmem:[#allocation4 + $0x170] sm:$0xff] %vm1523_vm11, %v1498_v47  ;;  %v4153_v38 = vsel %vm1254_vm8, %v4148_v18, %v4152_v54 }
 0x167   : > { %3602 = vmatmul.mubr.bf16.gmra.mrb[72].mxu1 %v13657_v41  ;;  %v2787_v41 = vrot.slane %v13771_v31, 1  ;;  %2104 = vst.msk [vmem:[#allocation4 + $0x160] sm:$0xff] %vm1057_vm9, %v11876_v51  ;;  %4260 = vrot.lane.b32.xlu1 %v4153_v38, %s12244_s26  ;;  %v4174_v31 = vshll.u32 %v11889_v22, 16  ;;  %3845 = vst.msk [vmem:[#allocation4 + $0x30] sm:$0xff] %vm1057_vm9, %v11892_v7  ;;  %v11908_v7 = vld [vmem:[#allocation2 + $0x80] sm:$0xff]  }
 0x168   : > { %3225 = vmatmul.mubr.bf16.gmra.mrb[68].mxu0 %v2873_v15  ;;  %10904 = vmatprep.mubr.msk.bf16.mxu1 %vm1057_vm9, %v13717_v11  ;;  %v1768_v11 = vrot.slane %v11879_v10, 1  ;;  %v11890_v15 = vld [vmem:[#allocation2 + $0x28] sm:$0xff]   ;;  %v11894_v10 = vld [vmem:[#allocation2 + $0x38] sm:$0xff]   ;;  %3849 = vst.msk [vmem:[#allocation4 + $0x70] sm:$0xff] %vm1057_vm9, %v11900_v49  ;;  %3855 = vst.msk [vmem:[#allocation4 + $0xd0] sm:$0xff] %vm1057_vm9, %v11908_v7 }
 0x169   : > { %10867 = vmatprep.mubr.msk.bf16.mxu0 %vm1057_vm9, %v13722_v48  ;;  %v2788_v33 = vsel %vm1720_vm10, %v2785_v43, %v2787_v41  ;;  %v2790_v14 = vsel %vm1720_vm10, %v2787_v41, %v2789_v35  ;;  %v4160_v43 = vrot.slane %v4158_v4, 1  ;;  %3844 = vst.msk [vmem:[#allocation4 + $0x20] sm:$0xff] %vm1057_vm9, %v11890_v15  ;;  %v4176_v51 = vrot.slane %v4174_v31, 1  ;;  %3846 = vst.msk [vmem:[#allocation4 + $0x40] sm:$0xff] %vm1057_vm9, %v11894_v10  ;;  %v11899_v4 = vld [vmem:[#allocation2 + $0xc8] sm:$0xff]   ;;  %v11915_v49 = vld [vmem:[#allocation2 + $0xb8] sm:$0xff]  }
 0x16a   : > { %v1769_v48 = vsel %vm1720_vm10, %v1766_v30, %v1768_v11  ;;  %v13809_v2 = vld [vmem:[#allocation4 + $0x158] sm:$0xff]  ;;  %2837 = vst.msk [vmem:[#allocation4 + $0x168] sm:$0xff] %vm1057_vm9, %v2788_v33  ;;  %v11895_v11 = vld [vmem:[#allocation2 + $0xb8] sm:$0xff]  }
 0x16b   : > { %1817 = vst.msk [vmem:[#allocation4 + $0x178] sm:$0xff] %vm1057_vm9, %v1769_v48  ;;  %4596 = vst.msk [vmem:[#allocation4 + $0x158] sm:$0xff] %vm1057_vm9, %v4546_v42  ;;  %v4161_v55 = vsel %vm1254_vm8, %v4156_v45, %v4160_v43  ;;  %v4177_v47 = vsel %vm1254_vm8, %v4172_v17, %v4176_v51  ;;  %v4180_v41 = vor.u32 %v4178_v50, %v4176_v51  ;;  %v2879_v42 = vld [vmem:[#allocation4 + $0x140] sm:$0xff]  ;;  %v4198_v33 = vshll.u32 %v11895_v11, 16  ;;  %v11896_v48 = vld [vmem:[#allocation2 + $0x40] sm:$0xff]  }
 0x16c   : > { %4262 = vrot.lane.b32.xlu0 %v4161_v55, %s12244_s26  ;;  %v4202_v40 = vshrl.u32 %v11895_v11, 16  ;;  %3847 = vst.msk [vmem:[#allocation4 + $0x50] sm:$0xff] %vm1057_vm9, %v11896_v48  ;;  %v4206_v45 = vshll.u32 %v11897_v53, 16  ;;  %v11902_v55 = vld [vmem:[#allocation2 + $0x58] sm:$0xff]   ;;  %v11905_v50 = vld [vmem:[#allocation2 + $0x68] sm:$0xff]   ;;  %3862 = vst.msk [vmem:[#allocation4 + $0x140] sm:$0xff] %vm1057_vm9, %v11915_v49 }
 0x16d   : > { %v13823_v8 = vld [vmem:[#allocation4 + $0x170] sm:$0xff]  ;;  %v4200_v29 = vrot.slane %v4198_v33, 1  ;;  %3850 = vst.msk [vmem:[#allocation4 + $0x80] sm:$0xff] %vm1057_vm9, %v11902_v55  ;;  %3852 = vst.msk [vmem:[#allocation4 + $0xa0] sm:$0xff] %vm1057_vm9, %v11905_v50 }
 0x16e   : > { %2105 = vst.msk [vmem:[#allocation4 + $0x170] sm:$0xff] %vm1057_vm9, %v11881_v25  ;;  %v11903_v22 = vld [vmem:[#allocation2 + $0xd8] ss:$0 sps:$4 sm:$0x11]  }
 0x16f   : > { %3610 = vmatmul.mubr.bf16.gmra.mrb[76].mxu1 %v13681_v21  ;;  %v11886_v21 = vld [vmem:[#allocation2 + $0xd8] ss:$0 sps:$4 sm:$0x11]   ;;  %v4230_v31 = vshll.u32 %v11903_v22, 16 }
 0x170   : > { %3233 = vmatmul.mubr.bf16.gmra.mrb[72].mxu0 %v2875_v58  ;;  %10905 = vmatprep.mubr.msk.bf16.mxu1 %vm1057_vm9, %v13753_v20  ;;  %v11888_v20 = vld [vmem:[#allocation2 + $0x20] sm:$0xff]   ;;  %v4549_v30 = vrot.slane %v11886_v21, 1  ;;  %v4194_v58 = vshrl.u32 %v11893_v34, 16  ;;  %v4210_v21 = vshrl.u32 %v11897_v53, 16 }
 0x171   : > { %10868 = vmatprep.mubr.msk.bf16.mxu0 %vm1057_vm9, %v13748_v62  ;;  %v4164_v62 = vor.u32 %v4162_v23, %v4160_v43  ;;  %3843 = vst.msk [vmem:[#allocation4 + $0x10] sm:$0xff] %vm1057_vm9, %v11888_v20  ;;  %v13837_v27 = vld [vmem:[#allocation4 + $0x168] sm:$0xff]  ;;  %4266 = vrot.lane.b32.xlu0 %v4177_v47, %s12244_s26  ;;  %v4208_v43 = vrot.slane %v4206_v45, 1  ;;  %v4218_v23 = vshrl.u32 %v11899_v4, 16  ;;  %v4232_v17 = vrot.slane %v4230_v31, 1 }
 0x172   : > { %v13830_v9 = vld [vmem:[#allocation4 + $0x178] sm:$0xff]  ;;  %4597 = vst.msk [vmem:[#allocation4 + $0x168] sm:$0xff] %vm1057_vm9, %v4548_v5  ;;  %v4550_v59 = vsel %vm1720_vm10, %v4547_v12, %v4549_v30  ;;  %v11898_v12 = vld [vmem:[#allocation2 + $0x48] sm:$0xff]  }
 0x173   : > { %2838 = vst.msk [vmem:[#allocation4 + $0x178] sm:$0xff] %vm1057_vm9, %v2790_v14  ;;  %v2519_v39 = vpop.permute.xlu0 %2518  ;;  %v4169_v1 = vsel %vm1254_vm8, %v4164_v62, %v4168_v63  ;;  %3848 = vst.msk [vmem:[#allocation4 + $0x60] sm:$0xff] %vm1057_vm9, %v11898_v12  ;;  %v4212_v20 = vor.u32 %v4210_v21, %v4208_v43 }
 0x174   : > { %2568 = vst.msk [vmem:[#allocation4 + $0x160] sm:$0xff] %vm1523_vm11, %v2519_v39  ;;  %4264 = vrot.lane.b32.xlu1 %v4169_v1, %s12244_s26  ;;  %v11904_v39 = vld [vmem:[#allocation2 + $0x60] sm:$0xff]  }
 0x175   : > { %v2521_v52 = vpop.permute.xlu1 %2520  ;;  %3851 = vst.msk [vmem:[#allocation4 + $0x90] sm:$0xff] %vm1057_vm9, %v11904_v39  ;;  %v4610_v39 = vld [vmem:[#allocation4 + $0x58] sm:$0xff] }
 0x176   : > { %2569 = vst.msk [vmem:[#allocation4 + $0x170] sm:$0xff] %vm1523_vm11, %v2521_v52 }
 0x177   : > { %3618 = vmatmul.mubr.bf16.gmra.mrb[80].mxu1 %v13738_v32  ;;  %v4182_v32 = vshll.u32 %v11891_v44, 16  ;;  %v4235_v18 = vpop.permute.xlu0 %4234 }
 0x178   : > { %3241 = vmatmul.mubr.bf16.gmra.mrb[76].mxu0 %v2877_v36  ;;  %10906 = vmatprep.mubr.msk.bf16.mxu1 %vm1057_vm9, %v13775_v6  ;;  %v4186_v6 = vshrl.u32 %v11891_v44, 16  ;;  %4306 = vst.msk [vmem:[#allocation4] sm:$0xff] %vm1523_vm11, %v4235_v18  ;;  %v2881_v36 = vld [vmem:[#allocation4 + $0x150] sm:$0xff]  ;;  %v11906_v44 = vld [vmem:[#allocation2 + $0x70] sm:$0xff]   ;;  %v11912_v18 = vld [vmem:[#allocation2 + $0xa0] sm:$0xff]  }
 0x179   : > { %10869 = vmatprep.mubr.msk.bf16.mxu0 %vm1057_vm9, %v13785_v3  ;;  %v4184_v26 = vrot.slane %v4182_v32, 1  ;;  %v4190_v3 = vshll.u32 %v11893_v34, 16  ;;  %v4237_v14 = vpop.permute.xlu1 %4236  ;;  %3853 = vst.msk [vmem:[#allocation4 + $0xb0] sm:$0xff] %vm1057_vm9, %v11906_v44  ;;  %v11909_v32 = vld [vmem:[#allocation2 + $0x88] sm:$0xff]   ;;  %v11910_v34 = vld [vmem:[#allocation2 + $0x90] sm:$0xff]   ;;  %3859 = vst.msk [vmem:[#allocation4 + $0x110] sm:$0xff] %vm1057_vm9, %v11912_v18 }
 0x17a   : > { %v13855_v13 = vld [vmem:[#allocation4 + $0x178] sm:$0xff]  ;;  %4307 = vst.msk [vmem:[#allocation4 + $0x10] sm:$0xff] %vm1523_vm11, %v4237_v14 }
 0x17b   : > { %4598 = vst.msk [vmem:[#allocation4 + $0x178] sm:$0xff] %vm1057_vm9, %v4550_v59  ;;  %v4185_v54 = vsel %vm1254_vm8, %v4180_v41, %v4184_v26  ;;  %v4188_v25 = vor.u32 %v4186_v6, %v4184_v26  ;;  %v4192_v56 = vrot.slane %v4190_v3, 1  ;;  %v4239_v52 = vpop.permute.xlu0 %4238  ;;  %v2883_v51 = vld [vmem:[#allocation4 + $0x160] sm:$0xff]  ;;  %3856 = vst.msk [vmem:[#allocation4 + $0xe0] sm:$0xff] %vm1057_vm9, %v11909_v32  ;;  %v11911_v41 = vld [vmem:[#allocation2 + $0x98] sm:$0xff]  }
 0x17c   : > { %4268 = vrot.lane.b32.xlu1 %v4185_v54, %s12244_s26  ;;  %4308 = vst.msk [vmem:[#allocation4 + $0x20] sm:$0xff] %vm1523_vm11, %v4239_v52  ;;  %v4600_v6 = vld [vmem:[#allocation4 + $0x8] sm:$0xff]  ;;  %v4602_v26 = vld [vmem:[#allocation4 + $0x18] sm:$0xff]  ;;  %v11917_v32 = vld [vmem:[#allocation2 + $0xc8] sm:$0xff]  }
 0x17d   : > { %v4193_v38 = vsel %vm1254_vm8, %v4188_v25, %v4192_v56  ;;  %v4196_v35 = vor.u32 %v4194_v58, %v4192_v56  ;;  %3857 = vst.msk [vmem:[#allocation4 + $0xf0] sm:$0xff] %vm1057_vm9, %v11910_v34  ;;  %v2885_v59 = vld [vmem:[#allocation4 + $0x170] sm:$0xff]  ;;  %3858 = vst.msk [vmem:[#allocation4 + $0x100] sm:$0xff] %vm1057_vm9, %v11911_v41  ;;  %v4604_v58 = vld [vmem:[#allocation4 + $0x28] sm:$0xff] }
 0x17e   : > { %4270 = vrot.lane.b32.xlu0 %v4193_v38, %s12244_s26  ;;  %v4606_v38 = vld [vmem:[#allocation4 + $0x38] sm:$0xff]  ;;  %3864 = vst.msk [vmem:[#allocation4 + $0x160] sm:$0xff] %vm1057_vm9, %v11917_v32 }
 0x17f   : > { %3626 = vmatmul.mubr.bf16.gmra.mrb[84].mxu1 %v13777_v57  ;;  %v4201_v19 = vsel %vm1254_vm8, %v4196_v35, %v4200_v29  ;;  %v4204_v57 = vor.u32 %v4202_v40, %v4200_v29  ;;  %v11914_v40 = vld [vmem:[#allocation2 + $0xb0] sm:$0xff]  }
 0x180   : > { %3249 = vmatmul.mubr.bf16.gmra.mrb[80].mxu0 %v2879_v42  ;;  %10907 = vmatprep.mubr.msk.bf16.mxu1 %vm1057_vm9, %v13813_v46  ;;  %v4214_v46 = vshll.u32 %v11899_v4, 16  ;;  %3861 = vst.msk [vmem:[#allocation4 + $0x130] sm:$0xff] %vm1057_vm9, %v11914_v40 }
 0x181   : > { %10870 = vmatprep.mubr.msk.bf16.mxu0 %vm1057_vm9, %v13809_v2  ;;  %4272 = vrot.lane.b32.xlu1 %v4201_v19, %s12244_s26  ;;  %v11901_v2 = vld [vmem:[#allocation2 + $0xd0] sm:$0xff]   ;;  %v4209_v61 = vsel %vm1254_vm8, %v4204_v57, %v4208_v43  ;;  %v4601_v3 = vld [vmem:[#allocation4 + $0x10] sm:$0xff] }
 0x182   : > { %v4216_v5 = vrot.slane %v4214_v46, 1  ;;  %4274 = vrot.lane.b32.xlu0 %v4209_v61, %s12244_s26  ;;  %v4222_v62 = vshll.u32 %v11901_v2, 16  ;;  %v4226_v15 = vshrl.u32 %v11901_v2, 16  ;;  %v4608_v43 = vld [vmem:[#allocation4 + $0x48] sm:$0xff] }
 0x183   : > { %v4603_v33 = vld [vmem:[#allocation4 + $0x20] sm:$0xff] }
 0x184   : > { %v4217_v60 = vsel %vm1254_vm8, %v4212_v20, %v4216_v5  ;;  %v4220_v63 = vor.u32 %v4218_v23, %v4216_v5  ;;  %v4224_v30 = vrot.slane %v4222_v62, 1 }
 0x185   : > { %4276 = vrot.lane.b32.xlu1 %v4217_v60, %s12244_s26 }
 0x186   : > { %v4228_v1 = vor.u32 %v4226_v15, %v4224_v30 }
 0x187   : > { %3634 = vmatmul.mubr.bf16.gmra.mrb[88].mxu1 %v13798_v16  ;;  %v4225_v16 = vsel %vm1254_vm8, %v4220_v63, %v4224_v30  ;;  %v11916_v63 = vld [vmem:[#allocation2 + $0xc0] sm:$0xff]  }
 0x188   : > { %3257 = vmatmul.mubr.bf16.gmra.mrb[84].mxu0 %v2881_v36  ;;  %10908 = vmatprep.mubr.msk.bf16.mxu1 %vm1057_vm9, %v13830_v9  ;;  %v4233_v9 = vsel %vm1254_vm8, %v4228_v1, %v4232_v17  ;;  %3863 = vst.msk [vmem:[#allocation4 + $0x150] sm:$0xff] %vm1057_vm9, %v11916_v63  ;;  %v4618_v63 = vld [vmem:[#allocation4 + $0x98] sm:$0xff] }
 0x189   : > { %10871 = vmatprep.mubr.msk.bf16.mxu0 %vm1057_vm9, %v13837_v27  ;;  %4278 = vrot.lane.b32.xlu0 %v4225_v16, %s12244_s26  ;;  %v11907_v27 = vld [vmem:[#allocation2 + $0x78] sm:$0xff]  }
 0x18a   : > { %4280 = vrot.lane.b32.xlu1 %v4233_v9, %s12244_s26  ;;  %3854 = vst.msk [vmem:[#allocation4 + $0xc0] sm:$0xff] %vm1057_vm9, %v11907_v27 }
 0x18f   : > { %3642 = vmatmul.mubr.bf16.gmra.mrb[92].mxu1 %v13823_v8  ;;  %v4599_v8 = vld [vmem:[#allocation4] sm:$0xff] }
 0x190   : > { %3265 = vmatmul.mubr.bf16.gmra.mrb[88].mxu0 %v2883_v51  ;;  %v4241_v47 = vpop.permute.xlu1 %4240 }
 0x191   : > { %10872 = vmatprep.mubr.msk.bf16.mxu0 %vm1057_vm9, %v13855_v13  ;;  %4309 = vst.msk [vmem:[#allocation4 + $0x30] sm:$0xff] %vm1523_vm11, %v4241_v47  ;;  %v11913_v13 = vld [vmem:[#allocation2 + $0xa8] sm:$0xff]  }
 0x192   : > { %3860 = vst.msk [vmem:[#allocation4 + $0x120] sm:$0xff] %vm1057_vm9, %v11913_v13 }
 0x193   : > { %v4243_v10 = vpop.permute.xlu0 %4242 }
 0x194   : > { %4310 = vst.msk [vmem:[#allocation4 + $0x40] sm:$0xff] %vm1523_vm11, %v4243_v10  ;;  %v4245_v11 = vpop.permute.xlu1 %4244 }
 0x195   : > { %4311 = vst.msk [vmem:[#allocation4 + $0x50] sm:$0xff] %vm1523_vm11, %v4245_v11 }
 0x198   : > { %3273 = vmatmul.mubr.bf16.gmra.mrb[92].mxu0 %v2885_v59  ;;  %v4605_v21 = vld [vmem:[#allocation4 + $0x30] sm:$0xff]  ;;  %v4612_v59 = vld [vmem:[#allocation4 + $0x68] sm:$0xff] }
 0x199   : > { %11019 = vmatprep.mubr.msk.bf16.mxu0 %vm1057_vm9, %v4600_v6 }
 0x19b   : > { %v4607_v60 = vld [vmem:[#allocation4 + $0x40] sm:$0xff] }
 0x19c   : > { %v4609_v7 = vld [vmem:[#allocation4 + $0x50] sm:$0xff] }
 0x1a0   : > { %4849 = vmatmul.mubr.bf16.vlgmr.msra.gmra.mrb[96].mxu0 %v4599_v8 }
 0x1a1   : > { %11020 = vmatprep.mubr.msk.bf16.mxu0 %vm1057_vm9, %v4602_v26 }
 0x1a7   : > { %v4247_v25 = vpop.permute.xlu0 %4246 }
 0x1a8   : > { %4857 = vmatmul.mubr.bf16.gmra.mrb[100].mxu0 %v4601_v3  ;;  %4312 = vst.msk [vmem:[#allocation4 + $0x60] sm:$0xff] %vm1523_vm11, %v4247_v25 }
 0x1a9   : > { %11021 = vmatprep.mubr.msk.bf16.mxu0 %vm1057_vm9, %v4604_v58  ;;  %v11918_v58 = vld [vmem:[#allocation2 + $0xd0] sm:$0xff]  }
 0x1aa   : > { %v3459_v42 = vpop.f32.mrb[0].mxu1  ;;  %3865 = vst.msk [vmem:[#allocation4 + $0x170] sm:$0xff] %vm1057_vm9, %v11918_v58 }
 0x1ab   : > { %v3461_v54 = vpop.f32.mrb[1].mxu1 }
 0x1ac   : > { %v3462_v56 = vpop.f32.mrb[2].mxu1  ;;  %v4614_v54 = vld [vmem:[#allocation4 + $0x78] sm:$0xff] }
 0x1ad   : > { %v3464_v48 = vpop.f32.mrb[3].mxu1  ;;  %v4249_v46 = vpop.permute.xlu1 %4248 }
 0x1ae   : > { %4313 = vst.msk [vmem:[#allocation4 + $0x70] sm:$0xff] %vm1523_vm11, %v4249_v46 }
 0x1af   : > { %v4611_v13 = vld [vmem:[#allocation4 + $0x60] sm:$0xff] }
 0x1b0   : > { %4865 = vmatmul.mubr.bf16.gmra.mrb[104].mxu0 %v4603_v33 }
 0x1b1   : > { %11022 = vmatprep.mubr.msk.bf16.mxu0 %vm1057_vm9, %v4606_v38 }
 0x1b2   : > { %v3467_v35 = vpop.f32.mrb[4].mxu1 }
 0x1b3   : > { %v3090_v29 = vpop.f32.mrb[0].mxu0  ;;  %v3469_v53 = vpop.f32.mrb[5].mxu1 }
 0x1b4   : > { %v3092_v12 = vpop.f32.mrb[1].mxu0  ;;  %v3470_v19 = vpop.f32.mrb[6].mxu1  ;;  %v13911_v57 = vadd.f32 %v3459_v42, %v3090_v29 }
 0x1b5   : > { %v3093_v45 = vpop.f32.mrb[2].mxu0  ;;  %v3472_v4 = vpop.f32.mrb[7].mxu1 }
 0x1b6   : > { %v3095_v14 = vpop.f32.mrb[3].mxu0  ;;  %v13913_v2 = vadd.f32 %v3462_v56, %v3093_v45  ;;  %v4251_v30 = vpop.permute.xlu0 %4250  ;;  %v4613_v45 = vld [vmem:[#allocation4 + $0x70] sm:$0xff] }
 0x1b7   : > { %4314 = vst.msk [vmem:[#allocation4 + $0x80] sm:$0xff] %vm1523_vm11, %v4251_v30 }
 0x1b8   : > { %4873 = vmatmul.mubr.bf16.gmra.mrb[108].mxu0 %v4605_v21  ;;  %v4616_v21 = vld [vmem:[#allocation4 + $0x88] sm:$0xff] }
 0x1b9   : > { %11023 = vmatprep.mubr.msk.bf16.mxu0 %vm1057_vm9, %v4608_v43 }
 0x1ba   : > { %v3475_v23 = vpop.f32.mrb[8].mxu1 }
 0x1bb   : > { %v3098_v36 = vpop.f32.mrb[4].mxu0  ;;  %v3477_v61 = vpop.f32.mrb[9].mxu1 }
 0x1bc   : > { %v3100_v20 = vpop.f32.mrb[5].mxu0  ;;  %v3478_v5 = vpop.f32.mrb[10].mxu1  ;;  %v13918_v55 = vadd.f32 %v3467_v35, %v3098_v36 }
 0x1bd   : > { %v3101_v62 = vpop.f32.mrb[6].mxu0  ;;  %v3480_v22 = vpop.f32.mrb[11].mxu1 }
 0x1be   : > { %v3103_v15 = vpop.f32.mrb[7].mxu0  ;;  %v13920_v31 = vadd.f32 %v3470_v19, %v3101_v62  ;;  %v4253_v50 = vpop.permute.xlu1 %4252  ;;  %v4615_v22 = vld [vmem:[#allocation4 + $0x80] sm:$0xff] }
 0x1bf   : > { %4315 = vst.msk [vmem:[#allocation4 + $0x90] sm:$0xff] %vm1523_vm11, %v4253_v50  ;;  %v4255_v25 = vpop.permute.xlu0 %4254  ;;  %v11919_v15 = vld [vmem:[%s15980_s3 + $0x60] sm:$0xff]  }
 0x1c0   : > { %4881 = vmatmul.mubr.bf16.gmra.mrb[112].mxu0 %v4607_v60  ;;  %4316 = vst.msk [vmem:[#allocation4 + $0xa0] sm:$0xff] %vm1523_vm11, %v4255_v25  ;;  %8210 = vmatpush1.bf16.msra.mxu1 %v11919_v15  ;;  %v4622_v25 = vld [vmem:[#allocation4 + $0xb8] sm:$0xff] }
 0x1c1   : > { %11024 = vmatprep.mubr.msk.bf16.mxu0 %vm1057_vm9, %v4610_v39  ;;  %8211 = vmatprep.subr.bf16.mxu1 %v15983_v0 }
 0x1c2   : > { %v3483_v16 = vpop.f32.mrb[12].mxu1 }
 0x1c3   : > { %v3106_v1 = vpop.f32.mrb[8].mxu0  ;;  %v3485_v17 = vpop.f32.mrb[13].mxu1 }
 0x1c4   : > { %v3108_v44 = vpop.f32.mrb[9].mxu0  ;;  %v3486_v52 = vpop.f32.mrb[14].mxu1  ;;  %v13926_v9 = vadd.f32 %v3475_v23, %v3106_v1 }
 0x1c5   : > { %v3109_v27 = vpop.f32.mrb[10].mxu0  ;;  %v3488_v51 = vpop.f32.mrb[15].mxu1 }
 0x1c6   : > { %v3111_v34 = vpop.f32.mrb[11].mxu0  ;;  %v13928_v47 = vadd.f32 %v3478_v5, %v3109_v27 }
 0x1c7   : > { %v4620_v34 = vld [vmem:[#allocation4 + $0xa8] sm:$0xff] }
 0x1c8   : > { %4889 = vmatmul.mubr.bf16.gmra.mrb[116].mxu0 %v4609_v7  ;;  %v4617_v7 = vld [vmem:[#allocation4 + $0x90] sm:$0xff] }
 0x1c9   : > { %11025 = vmatprep.mubr.msk.bf16.mxu0 %vm1057_vm9, %v4612_v59 }
 0x1ca   : > { %v3491_v41 = vpop.f32.mrb[16].mxu1 }
 0x1cb   : > { %v3114_v6 = vpop.f32.mrb[12].mxu0  ;;  %v3493_v8 = vpop.f32.mrb[17].mxu1 }
 0x1cc   : > { %v3116_v10 = vpop.f32.mrb[13].mxu0  ;;  %v3494_v18 = vpop.f32.mrb[18].mxu1  ;;  %v13932_v26 = vadd.f32 %v3483_v16, %v3114_v6 }
 0x1cd   : > { %v3117_v3 = vpop.f32.mrb[14].mxu0  ;;  %v3496_v11 = vpop.f32.mrb[19].mxu1 }
 0x1ce   : > { %v3119_v42 = vpop.f32.mrb[15].mxu0  ;;  %v13934_v56 = vadd.f32 %v3486_v52, %v3117_v3  ;;  %v4257_v33 = vpop.permute.xlu1 %4256 }
 0x1cf   : > { %4317 = vst.msk [vmem:[#allocation4 + $0xb0] sm:$0xff] %vm1523_vm11, %v4257_v33  ;;  %v4619_v42 = vld [vmem:[#allocation4 + $0xa0] sm:$0xff] }
 0x1d0   : > { %4897 = vmatmul.mubr.bf16.gmra.mrb[120].mxu0 %v4611_v13 }
 0x1d1   : > { %11026 = vmatprep.mubr.msk.bf16.mxu0 %vm1057_vm9, %v4614_v54 }
 0x1d2   : > { %v3499_v48 = vpop.f32.mrb[20].mxu1 }
 0x1d3   : > { %v3122_v40 = vpop.f32.mrb[16].mxu0  ;;  %v3501_v38 = vpop.f32.mrb[21].mxu1 }
 0x1d4   : > { %v3124_v35 = vpop.f32.mrb[17].mxu0  ;;  %v3502_v29 = vpop.f32.mrb[22].mxu1  ;;  %v13940_v53 = vadd.f32 %v3491_v41, %v3122_v40 }
 0x1d5   : > { %v3125_v12 = vpop.f32.mrb[18].mxu0  ;;  %v3504_v19 = vpop.f32.mrb[23].mxu1 }
 0x1d6   : > { %v3127_v4 = vpop.f32.mrb[19].mxu0  ;;  %v13942_v49 = vadd.f32 %v3494_v18, %v3125_v12 }
 0x1d7   : > { %v4259_v14 = vpop.permute.xlu0 %4258 }
 0x1d8   : > { %4905 = vmatmul.mubr.bf16.gmra.mrb[124].mxu0 %v4613_v45  ;;  %4318 = vst.msk [vmem:[#allocation4 + $0xc0] sm:$0xff] %vm1523_vm11, %v4259_v14 }
 0x1d9   : > { %11027 = vmatprep.mubr.msk.bf16.mxu0 %vm1057_vm9, %v4616_v21  ;;  %v4261_v30 = vpop.permute.xlu1 %4260 }
 0x1da   : > { %v3507_v43 = vpop.f32.mrb[24].mxu1  ;;  %4319 = vst.msk [vmem:[#allocation4 + $0xd0] sm:$0xff] %vm1523_vm11, %v4261_v30 }
 0x1db   : > { %v3130_v46 = vpop.f32.mrb[20].mxu0  ;;  %v3509_v23 = vpop.f32.mrb[25].mxu1 }
 0x1dc   : > { %v3132_v36 = vpop.f32.mrb[21].mxu0  ;;  %v3510_v61 = vpop.f32.mrb[26].mxu1  ;;  %v13946_v20 = vadd.f32 %v3499_v48, %v3130_v46  ;;  %v11920_v48 = vld [vmem:[%s15980_s3 + $0x68] sm:$0xff]   ;;  %v4621_v46 = vld [vmem:[#allocation4 + $0xb0] sm:$0xff] }
 0x1dd   : > { %v3133_v5 = vpop.f32.mrb[22].mxu0  ;;  %v3512_v62 = vpop.f32.mrb[27].mxu1  ;;  %8212 = vmatpush1.bf16.msra.mxu1 %v11920_v48  ;;  %v4628_v48 = vld [vmem:[#allocation4 + $0xe8] sm:$0xff] }
 0x1de   : > { %v3135_v60 = vpop.f32.mrb[23].mxu0  ;;  %v13951_v39 = vadd.f32 %v3502_v29, %v3133_v5  ;;  %v4263_v41 = vpop.permute.xlu0 %4262  ;;  %8213 = vmatprep.subr.bf16.mxu1 %v15983_v0 }
 0x1df   : > { %4320 = vst.msk [vmem:[#allocation4 + $0xe0] sm:$0xff] %vm1523_vm11, %v4263_v41 }
 0x1e0   : > { %4913 = vmatmul.mubr.bf16.gmra.mrb[128].mxu0 %v4615_v22 }
 0x1e1   : > { %11028 = vmatprep.mubr.msk.bf16.mxu0 %vm1057_vm9, %v4618_v63 }
 0x1e2   : > { %v3515_v50 = vpop.f32.mrb[28].mxu1 }
 0x1e3   : > { %v3138_v16 = vpop.f32.mrb[24].mxu0  ;;  %v3517_v1 = vpop.f32.mrb[29].mxu1 }
 0x1e4   : > { %v3140_v17 = vpop.f32.mrb[25].mxu0  ;;  %v3518_v44 = vpop.f32.mrb[30].mxu1  ;;  %v13956_v52 = vadd.f32 %v3507_v43, %v3138_v16 }
 0x1e5   : > { %v3141_v27 = vpop.f32.mrb[26].mxu0  ;;  %v3520_v51 = vpop.f32.mrb[31].mxu1 }
 0x1e6   : > { %v3143_v32 = vpop.f32.mrb[27].mxu0  ;;  %v13958_v59 = vadd.f32 %v3510_v61, %v3141_v27  ;;  %v4265_v33 = vpop.permute.xlu1 %4264  ;;  %v4624_v61 = vld [vmem:[#allocation4 + $0xc8] sm:$0xff] }
 0x1e7   : > { %4321 = vst.msk [vmem:[#allocation4 + $0xf0] sm:$0xff] %vm1523_vm11, %v4265_v33  ;;  %v4267_v38 = vpop.permute.xlu0 %4266 }
 0x1e8   : > { %4921 = vmatmul.mubr.bf16.gmra.mrb[132].mxu0 %v4617_v7  ;;  %4322 = vst.msk [vmem:[#allocation4 + $0x100] sm:$0xff] %vm1523_vm11, %v4267_v38  ;;  %v4626_v7 = vld [vmem:[#allocation4 + $0xd8] sm:$0xff] }
 0x1e9   : > { %11029 = vmatprep.mubr.msk.bf16.mxu0 %vm1057_vm9, %v4620_v34 }
 0x1ea   : > { %v3523_v6 = vpop.f32.mrb[32].mxu1 }
 0x1eb   : > { %v3146_v8 = vpop.f32.mrb[28].mxu0  ;;  %v3525_v10 = vpop.f32.mrb[33].mxu1 }
 0x1ec   : > { %v3148_v18 = vpop.f32.mrb[29].mxu0  ;;  %v3526_v3 = vpop.f32.mrb[34].mxu1  ;;  %v13962_v11 = vadd.f32 %v3515_v50, %v3146_v8 }
 0x1ed   : > { %v3149_v13 = vpop.f32.mrb[30].mxu0  ;;  %v3528_v58 = vpop.f32.mrb[35].mxu1 }
 0x1ee   : > { %v3151_v54 = vpop.f32.mrb[31].mxu0  ;;  %v13967_v40 = vadd.f32 %v3518_v44, %v3149_v13  ;;  %v4269_v29 = vpop.permute.xlu1 %4268  ;;  %v4623_v44 = vld [vmem:[#allocation4 + $0xc0] sm:$0xff] }
 0x1ef   : > { %4323 = vst.msk [vmem:[#allocation4 + $0x110] sm:$0xff] %vm1523_vm11, %v4269_v29  ;;  %v4625_v54 = vld [vmem:[#allocation4 + $0xd0] sm:$0xff] }
 0x1f0   : > { %4929 = vmatmul.mubr.bf16.gmra.mrb[136].mxu0 %v4619_v42  ;;  %v4271_v5 = vpop.permute.xlu0 %4270 }
 0x1f1   : > { %11030 = vmatprep.mubr.msk.bf16.mxu0 %vm1057_vm9, %v4622_v25  ;;  %4324 = vst.msk [vmem:[#allocation4 + $0x120] sm:$0xff] %vm1523_vm11, %v4271_v5 }
 0x1f2   : > { %v3531_v35 = vpop.f32.mrb[36].mxu1 }
 0x1f3   : > { %v3154_v12 = vpop.f32.mrb[32].mxu0  ;;  %v3533_v19 = vpop.f32.mrb[37].mxu1 }
 0x1f4   : > { %v13974_v45 = vadd.f32 %v3523_v6, %v3154_v12  ;;  %v3156_v4 = vpop.f32.mrb[33].mxu0  ;;  %v3534_v21 = vpop.f32.mrb[38].mxu1 }
 0x1f5   : > { %v3157_v14 = vpop.f32.mrb[34].mxu0  ;;  %v3536_v43 = vpop.f32.mrb[39].mxu1 }
 0x1f6   : > { %v13976_v23 = vadd.f32 %v3526_v3, %v3157_v14  ;;  %v3159_v36 = vpop.f32.mrb[35].mxu0  ;;  %v4273_v62 = vpop.permute.xlu1 %4272  ;;  %v4627_v43 = vld [vmem:[#allocation4 + $0xe0] sm:$0xff] }
 0x1f7   : > { %4325 = vst.msk [vmem:[#allocation4 + $0x130] sm:$0xff] %vm1523_vm11, %v4273_v62  ;;  %v4275_v60 = vpop.permute.xlu0 %4274 }
 0x1f8   : > { %4937 = vmatmul.mubr.bf16.gmra.mrb[140].mxu0 %v4621_v46  ;;  %4326 = vst.msk [vmem:[#allocation4 + $0x140] sm:$0xff] %vm1523_vm11, %v4275_v60 }
 0x1f9   : > { %11031 = vmatprep.mubr.msk.bf16.mxu0 %vm1057_vm9, %v4624_v61  ;;  %v4630_v61 = vld [vmem:[#allocation4 + $0xf8] sm:$0xff] }
 0x1fa   : > { %v3539_v22 = vpop.f32.mrb[40].mxu1  ;;  %v4277_v32 = vpop.permute.xlu1 %4276 }
 0x1fb   : > { %v3162_v63 = vpop.f32.mrb[36].mxu0  ;;  %v3541_v15 = vpop.f32.mrb[41].mxu1  ;;  %4327 = vst.msk [vmem:[#allocation4 + $0x150] sm:$0xff] %vm1523_vm11, %v4277_v32 }
 0x1fc   : > { %v13982_v30 = vadd.f32 %v3531_v35, %v3162_v63  ;;  %v3164_v50 = vpop.f32.mrb[37].mxu0  ;;  %v3542_v16 = vpop.f32.mrb[42].mxu1 }
 0x1fd   : > { %v3165_v1 = vpop.f32.mrb[38].mxu0  ;;  %v3544_v17 = vpop.f32.mrb[43].mxu1 }
 0x1fe   : > { %v13984_v27 = vadd.f32 %v3534_v21, %v3165_v1  ;;  %v3167_v51 = vpop.f32.mrb[39].mxu0  ;;  %v4279_v34 = vpop.permute.xlu0 %4278  ;;  %v4629_v1 = vld [vmem:[#allocation4 + $0xf0] sm:$0xff] }
 0x1ff   : > { %4328 = vst.msk [vmem:[#allocation4 + $0x160] sm:$0xff] %vm1523_vm11, %v4279_v34  ;;  %v4281_v6 = vpop.permute.xlu1 %4280  ;;  %v4632_v51 = vld [vmem:[#allocation4 + $0x108] sm:$0xff] }
 0x200   : > { %4945 = vmatmul.mubr.bf16.gmra.mrb[144].mxu0 %v4623_v44  ;;  %4329 = vst.msk [vmem:[#allocation4 + $0x170] sm:$0xff] %vm1523_vm11, %v4281_v6 }
 0x201   : > { %11032 = vmatprep.mubr.msk.bf16.mxu0 %vm1057_vm9, %v4626_v7  ;;  %v11921_v7 = vld [vmem:[%s15980_s3 + $0x70] sm:$0xff]  }
 0x202   : > { %v3547_v41 = vpop.f32.mrb[44].mxu1  ;;  %8214 = vmatpush1.bf16.msra.mxu1 %v11921_v7  ;;  %v4635_v7 = vld [vmem:[#allocation4 + $0x120] sm:$0xff] }
 0x203   : > { %v3170_v8 = vpop.f32.mrb[40].mxu0  ;;  %v3549_v10 = vpop.f32.mrb[45].mxu1  ;;  %8215 = vmatprep.subr.bf16.mxu1 %v15983_v0 }
 0x204   : > { %v13990_v18 = vadd.f32 %v3539_v22, %v3170_v8  ;;  %v3172_v3 = vpop.f32.mrb[41].mxu0  ;;  %v3550_v13 = vpop.f32.mrb[46].mxu1 }
 0x205   : > { %v3173_v58 = vpop.f32.mrb[42].mxu0  ;;  %v3552_v42 = vpop.f32.mrb[47].mxu1 }
 0x206   : > { %v13992_v25 = vadd.f32 %v3542_v16, %v3173_v58  ;;  %v3175_v33 = vpop.f32.mrb[43].mxu0  ;;  %v4631_v58 = vld [vmem:[#allocation4 + $0x100] sm:$0xff] }
 0x207   : > { %v4634_v33 = vld [vmem:[#allocation4 + $0x118] sm:$0xff] }
 0x208   : > { %4953 = vmatmul.mubr.bf16.gmra.mrb[148].mxu0 %v4625_v54 }
 0x209   : > { %11033 = vmatprep.mubr.msk.bf16.mxu0 %vm1057_vm9, %v4628_v48 }
 0x20a   : > { %v3555_v38 = vpop.f32.mrb[48].mxu1 }
 0x20b   : > { %v3178_v35 = vpop.f32.mrb[44].mxu0  ;;  %v3557_v29 = vpop.f32.mrb[49].mxu1 }
 0x20c   : > { %v13995_v12 = vadd.f32 %v3547_v41, %v3178_v35  ;;  %v3180_v19 = vpop.f32.mrb[45].mxu0  ;;  %v3558_v4 = vpop.f32.mrb[50].mxu1 }
 0x20d   : > { %v3181_v21 = vpop.f32.mrb[46].mxu0  ;;  %v3560_v14 = vpop.f32.mrb[51].mxu1 }
 0x20e   : > { %v13997_v46 = vadd.f32 %v3550_v13, %v3181_v21  ;;  %v3183_v36 = vpop.f32.mrb[47].mxu0  ;;  %v11922_v21 = vld [vmem:[%s15980_s3 + $0x78] sm:$0xff]  }
 0x20f   : > { %v4633_v36 = vld [vmem:[#allocation4 + $0x110] sm:$0xff]  ;;  %8216 = vmatpush1.bf16.msra.mxu1 %v11922_v21  ;;  %v11929_v21 = vld [vmem:[%s15980_s3 + $0x80] sm:$0xff]  }
 0x210   : > { %4961 = vmatmul.mubr.bf16.gmra.mrb[152].mxu0 %v4627_v43  ;;  %8217 = vmatprep.subr.bf16.mxu1 %v15983_v0 }
 0x211   : > { %11034 = vmatprep.mubr.msk.bf16.mxu0 %vm1057_vm9, %v4630_v61 }
 0x212   : > { %v3563_v5 = vpop.f32.mrb[52].mxu1 }
 0x213   : > { %v3186_v62 = vpop.f32.mrb[48].mxu0  ;;  %v3565_v22 = vpop.f32.mrb[53].mxu1  ;;  %8218 = vmatpush1.bf16.msra.mxu1 %v11929_v21 }
 0x214   : > { %v14000_v60 = vadd.f32 %v3555_v38, %v3186_v62  ;;  %v3188_v63 = vpop.f32.mrb[49].mxu0  ;;  %v3566_v15 = vpop.f32.mrb[54].mxu1  ;;  %v4636_v62 = vld [vmem:[#allocation4 + $0x128] sm:$0xff]  ;;  %8219 = vmatprep.subr.bf16.mxu1 %v15983_v0 }
 0x215   : > { %v3189_v50 = vpop.f32.mrb[50].mxu0  ;;  %v3568_v16 = vpop.f32.mrb[55].mxu1 }
 0x216   : > { %v14002_v17 = vadd.f32 %v3558_v4, %v3189_v50  ;;  %v3191_v44 = vpop.f32.mrb[51].mxu0 }
 0x218   : > { %4969 = vmatmul.mubr.bf16.gmra.mrb[156].mxu0 %v4629_v1 }
 0x219   : > { %11035 = vmatprep.mubr.msk.bf16.mxu0 %vm1057_vm9, %v4632_v51 }
 0x21a   : > { %v3571_v32 = vpop.f32.mrb[56].mxu1 }
 0x21b   : > { %v3194_v34 = vpop.f32.mrb[52].mxu0  ;;  %v3573_v41 = vpop.f32.mrb[57].mxu1 }
 0x21c   : > { %v14009_v6 = vadd.f32 %v3563_v5, %v3194_v34  ;;  %v3196_v8 = vpop.f32.mrb[53].mxu0  ;;  %v3574_v10 = vpop.f32.mrb[58].mxu1  ;;  %v4638_v41 = vld [vmem:[#allocation4 + $0x138] sm:$0xff] }
 0x21d   : > { %v3197_v3 = vpop.f32.mrb[54].mxu0  ;;  %v3576_v13 = vpop.f32.mrb[59].mxu1 }
 0x21e   : > { %v14011_v42 = vadd.f32 %v3566_v15, %v3197_v3  ;;  %v3199_v54 = vpop.f32.mrb[55].mxu0 }
 0x220   : > { %4977 = vmatmul.mubr.bf16.gmra.mrb[160].mxu0 %v4631_v58 }
 0x221   : > { %11036 = vmatprep.mubr.msk.bf16.mxu0 %vm1057_vm9, %v4634_v33 }
 0x222   : > { %v3579_v48 = vpop.f32.mrb[60].mxu1 }
 0x223   : > { %v3202_v38 = vpop.f32.mrb[56].mxu0  ;;  %v3581_v35 = vpop.f32.mrb[61].mxu1 }
 0x224   : > { %v14014_v29 = vadd.f32 %v3571_v32, %v3202_v38  ;;  %v3204_v19 = vpop.f32.mrb[57].mxu0  ;;  %v3582_v4 = vpop.f32.mrb[62].mxu1  ;;  %v4637_v38 = vld [vmem:[#allocation4 + $0x130] sm:$0xff] }
 0x225   : > { %v3205_v14 = vpop.f32.mrb[58].mxu0  ;;  %v3584_v43 = vpop.f32.mrb[63].mxu1 }
 0x226   : > { %v14019_v61 = vadd.f32 %v3574_v10, %v3205_v14  ;;  %v3207_v5 = vpop.f32.mrb[59].mxu0 }
 0x228   : > { %4985 = vmatmul.mubr.bf16.gmra.mrb[164].mxu0 %v4633_v36 }
 0x229   : > { %11037 = vmatprep.mubr.msk.bf16.mxu0 %vm1057_vm9, %v4636_v62 }
 0x22a   : > { %v3587_v22 = vpop.f32.mrb[64].mxu1 }
 0x22b   : > { %v3210_v63 = vpop.f32.mrb[60].mxu0  ;;  %v3589_v15 = vpop.f32.mrb[65].mxu1 }
 0x22c   : > { %v14023_v50 = vadd.f32 %v3579_v48, %v3210_v63  ;;  %v3212_v16 = vpop.f32.mrb[61].mxu0  ;;  %v3590_v1 = vpop.f32.mrb[66].mxu1 }
 0x22d   : > { %v3213_v44 = vpop.f32.mrb[62].mxu0  ;;  %v3592_v51 = vpop.f32.mrb[67].mxu1  ;;  %v4639_v16 = vld [vmem:[#allocation4 + $0x140] sm:$0xff] }
 0x22e   : > { %v14025_v32 = vadd.f32 %v3582_v4, %v3213_v44  ;;  %v3215_v34 = vpop.f32.mrb[63].mxu0  ;;  %v4640_v4 = vld [vmem:[#allocation4 + $0x148] sm:$0xff]  ;;  %v4642_v51 = vld [vmem:[#allocation4 + $0x158] sm:$0xff] }
 0x230   : > { %4993 = vmatmul.mubr.bf16.gmra.mrb[168].mxu0 %v4635_v7 }
 0x231   : > { %11038 = vmatprep.mubr.msk.bf16.mxu0 %vm1057_vm9, %v4638_v41 }
 0x232   : > { %v3595_v8 = vpop.f32.mrb[68].mxu1 }
 0x233   : > { %v3218_v10 = vpop.f32.mrb[64].mxu0  ;;  %v3597_v3 = vpop.f32.mrb[69].mxu1 }
 0x234   : > { %v14028_v13 = vadd.f32 %v3587_v22, %v3218_v10  ;;  %v3220_v58 = vpop.f32.mrb[65].mxu0  ;;  %v3598_v54 = vpop.f32.mrb[70].mxu1 }
 0x235   : > { %v3221_v33 = vpop.f32.mrb[66].mxu0  ;;  %v3600_v48 = vpop.f32.mrb[71].mxu1  ;;  %v11937_v58 = vld [vmem:[%s15980_s3 + $0x88] sm:$0xff]  }
 0x236   : > { %v14030_v35 = vadd.f32 %v3590_v1, %v3221_v33  ;;  %v3223_v19 = vpop.f32.mrb[67].mxu0  ;;  %8220 = vmatpush1.bf16.msra.mxu1 %v11937_v58 }
 0x237   : > { %8221 = vmatprep.subr.bf16.mxu1 %v15983_v0 }
 0x238   : > { %5001 = vmatmul.mubr.bf16.gmra.mrb[172].mxu0 %v4637_v38 }
 0x239   : > { %11039 = vmatprep.mubr.msk.bf16.mxu0 %vm1057_vm9, %v4640_v4  ;;  %v4644_v4 = vld [vmem:[#allocation4 + $0x168] sm:$0xff] }
 0x23a   : > { %v3603_v14 = vpop.f32.mrb[72].mxu1 }
 0x23b   : > { %v3226_v43 = vpop.f32.mrb[68].mxu0  ;;  %v3605_v36 = vpop.f32.mrb[73].mxu1 }
 0x23c   : > { %v14037_v5 = vadd.f32 %v3595_v8, %v3226_v43  ;;  %v3228_v62 = vpop.f32.mrb[69].mxu0  ;;  %v3606_v22 = vpop.f32.mrb[74].mxu1 }
 0x23d   : > { %v3229_v63 = vpop.f32.mrb[70].mxu0  ;;  %v3608_v15 = vpop.f32.mrb[75].mxu1 }
 0x23e   : > { %v14039_v1 = vadd.f32 %v3598_v54, %v3229_v63  ;;  %v3231_v44 = vpop.f32.mrb[71].mxu0  ;;  %v4641_v54 = vld [vmem:[#allocation4 + $0x150] sm:$0xff] }
 0x23f   : > { %v4643_v44 = vld [vmem:[#allocation4 + $0x160] sm:$0xff] }
 0x240   : > { %5009 = vmatmul.mubr.bf16.gmra.mrb[176].mxu0 %v4639_v16 }
 0x241   : > { %11040 = vmatprep.mubr.msk.bf16.mxu0 %vm1057_vm9, %v4642_v51 }
 0x242   : > { %v3611_v7 = vpop.f32.mrb[76].mxu1 }
 0x243   : > { %v3234_v34 = vpop.f32.mrb[72].mxu0  ;;  %v3613_v41 = vpop.f32.mrb[77].mxu1 }
 0x244   : > { %v14042_v10 = vadd.f32 %v3603_v14, %v3234_v34  ;;  %v3236_v3 = vpop.f32.mrb[73].mxu0  ;;  %v3614_v8 = vpop.f32.mrb[78].mxu1  ;;  %v4646_v34 = vld [vmem:[#allocation4 + $0x178] sm:$0xff]  ;;  %v11943_v41 = vld [vmem:[%s15980_s3 + $0x90] sm:$0xff]  }
 0x245   : > { %v3237_v33 = vpop.f32.mrb[74].mxu0  ;;  %v3616_v48 = vpop.f32.mrb[79].mxu1  ;;  %8222 = vmatpush1.bf16.msra.mxu1 %v11943_v41 }
 0x246   : > { %v14047_v38 = vadd.f32 %v3606_v22, %v3237_v33  ;;  %v3239_v19 = vpop.f32.mrb[75].mxu0  ;;  %8223 = vmatprep.subr.bf16.mxu1 %v15983_v0 }
 0x248   : > { %5017 = vmatmul.mubr.bf16.gmra.mrb[180].mxu0 %v4641_v54 }
 0x249   : > { %11041 = vmatprep.mubr.msk.bf16.mxu0 %vm1057_vm9, %v4644_v4  ;;  %v4645_v4 = vld [vmem:[#allocation4 + $0x170] sm:$0xff] }
 0x24a   : > { %v3619_v21 = vpop.f32.mrb[80].mxu1 }
 0x24b   : > { %v3242_v14 = vpop.f32.mrb[76].mxu0  ;;  %v3621_v43 = vpop.f32.mrb[81].mxu1 }
 0x24c   : > { %v14051_v36 = vadd.f32 %v3611_v7, %v3242_v14  ;;  %v3244_v62 = vpop.f32.mrb[77].mxu0  ;;  %v3622_v63 = vpop.f32.mrb[82].mxu1 }
 0x24d   : > { %v3245_v15 = vpop.f32.mrb[78].mxu0  ;;  %v3624_v16 = vpop.f32.mrb[83].mxu1 }
 0x24e   : > { %v14053_v22 = vadd.f32 %v3614_v8, %v3245_v15  ;;  %v3247_v51 = vpop.f32.mrb[79].mxu0 }
 0x250   : > { %5025 = vmatmul.mubr.bf16.gmra.mrb[184].mxu0 %v4643_v44 }
 0x251   : > { %11042 = vmatprep.mubr.msk.bf16.mxu0 %vm1057_vm9, %v4646_v34 }
 0x252   : > { %v3627_v7 = vpop.f32.mrb[84].mxu1 }
 0x253   : > { %v3250_v3 = vpop.f32.mrb[80].mxu0  ;;  %v3629_v58 = vpop.f32.mrb[85].mxu1 }
 0x254   : > { %v14060_v33 = vadd.f32 %v3619_v21, %v3250_v3  ;;  %v3252_v48 = vpop.f32.mrb[81].mxu0  ;;  %v3630_v8 = vpop.f32.mrb[86].mxu1 }
 0x255   : > { %v3253_v54 = vpop.f32.mrb[82].mxu0  ;;  %v3632_v19 = vpop.f32.mrb[87].mxu1 }
 0x256   : > { %15994 = vst [vmem:[#allocation9_spill] sm:$0xff] %v14060_v33  ;;  %v14062_v14 = vadd.f32 %v3622_v63, %v3253_v54  ;;  %v3255_v43 = vpop.f32.mrb[83].mxu0 }
 0x258   : > { %15995 = vst [vmem:[#allocation10_spill] sm:$0xff] %v14062_v14  ;;  %5033 = vmatmul.mubr.bf16.gmra.mrb[188].mxu0 %v4645_v4 }
 0x25a   : > { %v3635_v62 = vpop.f32.mrb[88].mxu1 }
 0x25b   : > { %v3258_v15 = vpop.f32.mrb[84].mxu0  ;;  %v3637_v16 = vpop.f32.mrb[89].mxu1 }
 0x25c   : > { %v14064_v44 = vadd.f32 %v3627_v7, %v3258_v15  ;;  %v3260_v51 = vpop.f32.mrb[85].mxu0  ;;  %v3638_v34 = vpop.f32.mrb[90].mxu1  ;;  %v11947_v15 = vld [vmem:[%s15980_s3 + $0x98] sm:$0xff]  }
 0x25d   : > { %v3261_v41 = vpop.f32.mrb[86].mxu0  ;;  %v3640_v58 = vpop.f32.mrb[91].mxu1  ;;  %8224 = vmatpush1.bf16.msra.mxu1 %v11947_v15 }
 0x25e   : > { %v14066_v21 = vadd.f32 %v3630_v8, %v3261_v41  ;;  %v3263_v3 = vpop.f32.mrb[87].mxu0  ;;  %v15999_v8 = vmov 0  }
 0x25f   : > { %8225 = vmatprep.subr.bf16.mxu1 %v15999_v8  ;;  %v11954_v3 = vld [vmem:[%s15980_s3 + $0x8] sm:$0xff]  }
 0x260   : > { %15996 = vst [vmem:[#allocation11_spill] sm:$0xff] %v14066_v21 }
 0x262   : > { %v3643_v48 = vpop.f32.mrb[92].mxu1 }
 0x263   : > { %v3266_v0 = vpop.f32.mrb[88].mxu0  ;;  %v3645_v19 = vpop.f32.mrb[93].mxu1 }
 0x264   : > { %v14068_v33 = vadd.f32 %v3635_v62, %v3266_v0  ;;  %v3268_v63 = vpop.f32.mrb[89].mxu0  ;;  %v3646_v54 = vpop.f32.mrb[94].mxu1  ;;  %v11952_v0 = vld [vmem:[%s15980_s3] sm:$0xff]  }
 0x265   : > { %v3269_v4 = vpop.f32.mrb[90].mxu0  ;;  %v3648_v43 = vpop.f32.mrb[95].mxu1  ;;  %8579 = vmatpush1.bf16.msra.mxu0 %v11952_v0 }
 0x266   : > { %15997 = vst [vmem:[#allocation12_spill] sm:$0xff] %v14068_v33  ;;  %v14070_v14 = vadd.f32 %v3638_v34, %v3269_v4  ;;  %v3271_v7 = vpop.f32.mrb[91].mxu0  ;;  %8580 = vmatprep.subr.bf16.mxu0 %v15999_v8  ;;  %v11953_v4 = vld [vmem:[%s15980_s3 + $0xa0] sm:$0xff]   ;;  %v11957_v43 = vld [vmem:[%s15980_s3 + $0x10] sm:$0xff]  }
 0x267   : > { %8226 = vmatpush1.bf16.msra.mxu1 %v11953_v4 }
 0x268   : > { %15998 = vst [vmem:[#allocation13_spill] sm:$0xff] %v14070_v14  ;;  %8227 = vmatprep.subr.bf16.mxu1 %v15999_v8 }
 0x269   : > { %8581 = vmatpush1.bf16.msra.mxu0 %v11954_v3 }
 0x26a   : > { %8582 = vmatprep.subr.bf16.mxu0 %v15999_v8 }
 0x26b   : > { %v3274_v16 = vpop.f32.mrb[92].mxu0 }
 0x26c   : > { %v14079_v62 = vadd.f32 %v3643_v48, %v3274_v16  ;;  %v3276_v51 = vpop.f32.mrb[93].mxu0  ;;  %v14091_v48 = vld [vmem:[%s15979_s2] ss:$0 sm:$0xff] }
 0x26d   : > { %v3277_v41 = vpop.f32.mrb[94].mxu0  ;;  %8583 = vmatpush1.bf16.msra.mxu0 %v11957_v43  ;;  %v11961_v43 = vld [vmem:[%s15980_s3 + $0x20] sm:$0xff]  }
 0x26e   : > { %16000 = vst [vmem:[#allocation14_spill] sm:$0xff] %v14079_v62  ;;  %v14081_v34 = vadd.f32 %v3646_v54, %v3277_v41  ;;  %v3279_v58 = vpop.f32.mrb[95].mxu0  ;;  %8584 = vmatprep.subr.bf16.mxu0 %v15999_v8  ;;  %v11958_v41 = vld [vmem:[%s15980_s3 + $0x18] sm:$0xff]   ;;  %v14115_v62 = vld [vmem:[#allocation3] sm:$0xff]  }
 0x270   : > { %16001 = vst [vmem:[#allocation15_spill] sm:$0xff] %v14081_v34 }
 0x271   : > { %8585 = vmatpush1.bf16.msra.mxu0 %v11958_v41 }
 0x272   : > { %8586 = vmatprep.subr.bf16.mxu0 %v15999_v8 }
 0x273   : > { %v4850_v19 = vpop.f32.mrb[96].mxu0 }
 0x274   : > { %v5041_v63 = vadd.f32 %v4850_v19, %v13911_v57  ;;  %v4852_v54 = vpop.f32.mrb[97].mxu0 }
 0x275   : > { %v4853_v7 = vpop.f32.mrb[98].mxu0  ;;  %8587 = vmatpush1.bf16.msra.mxu0 %v11961_v43 }
 0x276   : > { %v5096_v15 = vadd.f32 %v14091_v48, %v5041_v63  ;;  %v5042_v16 = vadd.f32 %v4853_v7, %v13913_v2  ;;  %v4855_v0 = vpop.f32.mrb[99].mxu0  ;;  %8588 = vmatprep.subr.bf16.mxu0 %v15999_v8 }
 0x277   : > { %v5873_v0 = vld [vmem:[#allocation3 + $0xc] sm:$0xf] }
 0x278   : > { %v5144_v57 = vmax.f32 %v5096_v15, 0.0  ;;  %v5097_v51 = vadd.f32 %v14091_v48, %v5042_v16 }
 0x27a   : > { %v11569_v58 = vpack.c.bf16 %v5144_v57, %v5144_v57  ;;  %v5145_v3 = vmax.f32 %v5097_v51, 0.0 }
 0x27b   : > { %v4858_v19 = vpop.f32.mrb[100].mxu0 }
 0x27c   : > { %v5394_v2 = vshrl.u32 %v11569_v58, 16  ;;  %v11570_v63 = vpack.c.bf16 %v5145_v3, %v5145_v3  ;;  %v5043_v54 = vadd.f32 %v4858_v19, %v13918_v55  ;;  %v4860_v4 = vpop.f32.mrb[101].mxu0  ;;  %v5397_v16 = vshll.u32 %v11569_v58, 16  ;;  %v11963_v55 = vld [vmem:[%s15980_s3 + $0xa8] sm:$0xff]  }
 0x27d   : > { %v4861_v7 = vpop.f32.mrb[102].mxu0  ;;  %v11964_v58 = vld [vmem:[%s15980_s3 + $0x28] sm:$0xff]   ;;  %8228 = vmatpush1.bf16.msra.mxu1 %v11963_v55 }
 0x27e   : > { %v5396_v15 = vrot.slane %v5394_v2, 7  ;;  %v5402_v34 = vshrl.u32 %v11570_v63, 16  ;;  %v5098_v57 = vadd.f32 %v14091_v48, %v5043_v54  ;;  %v4863_v51 = vpop.f32.mrb[103].mxu0  ;;  %v5044_v41 = vadd.f32 %v4861_v7, %v13920_v31  ;;  %8589 = vmatpush1.bf16.msra.mxu0 %v11964_v58  ;;  %8229 = vmatprep.subr.bf16.mxu1 %v15999_v8  ;;  %v11925_v58 = vld [vmem:[#allocation3] sm:$0xfe]  }
 0x27f   : > { %v5405_v2 = vshll.u32 %v11570_v63, 16  ;;  %8590 = vmatprep.subr.bf16.mxu0 %v15999_v8 }
 0x280   : > { %v5399_v3 = vor.u32 %v5397_v16, %v5396_v15  ;;  %v5404_v19 = vrot.slane %v5402_v34, 7  ;;  %v5146_v54 = vmax.f32 %v5098_v57, 0.0  ;;  %v5099_v4 = vadd.f32 %v14091_v48, %v5044_v41 }
 0x281   : > { %v5400_v31 = vrot.slane %v5396_v15, 4  ;;  %v6413_v16 = vshll.u32 %v14115_v62, 16 }
 0x282   : > { %v5874_v43 = vsel %vm12581_vm5, %v5399_v3, %v5873_v0  ;;  %v5407_v7 = vor.u32 %v5405_v2, %v5404_v19  ;;  %v11571_v51 = vpack.c.bf16 %v5146_v54, %v5146_v54  ;;  %v5147_v14 = vmax.f32 %v5099_v4, 0.0  ;;  %v11966_v0 = vld [vmem:[%s15980_s3 + $0x30] sm:$0xff]  }
 0x283   : > { %5875 = vst [vmem:[#allocation3 + $0xc] sm:$0xf] %v5874_v43  ;;  %v4866_v33 = vpop.f32.mrb[104].mxu0  ;;  %8591 = vmatpush1.bf16.msra.mxu0 %v11966_v0 }
 0x284   : > { %v5408_v34 = vsel %vm12587_vm6, %v5400_v31, %v5407_v7  ;;  %v5411_v63 = vshrl.u32 %v11571_v51, 16  ;;  %v5045_v15 = vadd.f32 %v4866_v33, %v13926_v9  ;;  %v4868_v57 = vpop.f32.mrb[105].mxu0  ;;  %v11572_v41 = vpack.c.bf16 %v5147_v14, %v5147_v14  ;;  %8592 = vmatprep.subr.bf16.mxu0 %v15999_v8 }
 0x285   : > { %5876 = vst.msk [vmem:[#allocation3 + $0x10] sm:$0xf] %vm224_vm0, %v5408_v34  ;;  %v4869_v55 = vpop.f32.mrb[106].mxu0  ;;  %v5414_v2 = vshll.u32 %v11571_v51, 16  ;;  %v6411_v9 = vshrl.u32 %v14115_v62, 16  ;;  %v6415_v33 = vrot.slane %v6413_v16, 1 }
 0x286   : > { %v5413_v3 = vrot.slane %v5411_v63, 7  ;;  %v5100_v54 = vadd.f32 %v14091_v48, %v5045_v15  ;;  %v5046_v4 = vadd.f32 %v4869_v55, %v13928_v47  ;;  %v4871_v31 = vpop.f32.mrb[107].mxu0  ;;  %v5420_v43 = vshrl.u32 %v11572_v41, 16  ;;  %v11967_v51 = vld [vmem:[%s15980_s3 + $0x38] sm:$0xff]  }
 0x287   : > { %v5409_v7 = vrot.slane %v5404_v19, 4  ;;  %v5423_v15 = vshll.u32 %v11572_v41, 16  ;;  %v6874_v47 = vrot.slane %v11925_v58, 1  ;;  %8593 = vmatpush1.bf16.msra.mxu0 %v11967_v51 }
 0x288   : > { %v5416_v57 = vor.u32 %v5414_v2, %v5413_v3  ;;  %v5148_v34 = vmax.f32 %v5100_v54, 0.0  ;;  %v5101_v14 = vadd.f32 %v14091_v48, %v5046_v4  ;;  %v5422_v63 = vrot.slane %v5420_v43, 7  ;;  %8594 = vmatprep.subr.bf16.mxu0 %v15999_v8 }
 0x289   : > { %v5418_v19 = vrot.slane %v5413_v3, 4 }
 0x28a   : > { %v5417_v0 = vsel %vm12587_vm6, %v5409_v7, %v5416_v57  ;;  %v11573_v55 = vpack.c.bf16 %v5148_v34, %v5148_v34  ;;  %v5149_v62 = vmax.f32 %v5101_v14, 0.0  ;;  %v14147_v16 = vld [vmem:[#allocation3 + $0x8] sm:$0xff]   ;;  %v5425_v2 = vor.u32 %v5423_v15, %v5422_v63 }
 0x28b   : > { %5877 = vst.msk [vmem:[#allocation3 + $0x14] sm:$0xf] %vm224_vm0, %v5417_v0  ;;  %v4874_v54 = vpop.f32.mrb[108].mxu0  ;;  %v14150_v4 = vld [vmem:[#allocation3 + $0x8] sm:$0xff]   ;;  %v6416_v57 = vor.u32 %v6415_v33, %v6411_v9  ;;  %v5427_v14 = vrot.slane %v5422_v63, 4  ;;  %v6418_v51 = vshll.u32 %v14147_v16, 16 }
 0x28c   : > { %v11985_v31 = vld [vmem:[#allocation3 + $0x8] sm:$0xff]   ;;  %v5429_v41 = vshrl.u32 %v11573_v55, 16  ;;  %v11574_v58 = vpack.c.bf16 %v5149_v62, %v5149_v62  ;;  %v5047_v43 = vadd.f32 %v4874_v54, %v13932_v26  ;;  %v4876_v7 = vpop.f32.mrb[109].mxu0  ;;  %v5426_v34 = vsel %vm12587_vm6, %v5418_v19, %v5425_v2 }
 0x28d   : > { %v4877_v3 = vpop.f32.mrb[110].mxu0  ;;  %v6875_v15 = vrot.slane %v14150_v4, 1  ;;  %6215 = vst.msk [vmem:[#allocation4 + $0x10] sm:$0xff] %vm1057_vm9, %v11985_v31  ;;  %v5432_v21 = vshll.u32 %v11573_v55, 16  ;;  %v14162_v33 = vrot.slane %v6418_v51, 1  ;;  %v14167_v19 = vld [vmem:[#allocation3 + $0xc] sm:$0xff]  }
 0x28e   : > { %5878 = vst.msk [vmem:[#allocation3 + $0x18] sm:$0xf] %vm224_vm0, %v5426_v34  ;;  %v5431_v0 = vrot.slane %v5429_v41, 7  ;;  %v5438_v62 = vshrl.u32 %v11574_v58, 16  ;;  %v5102_v26 = vadd.f32 %v14091_v48, %v5047_v43  ;;  %v4879_v54 = vpop.f32.mrb[111].mxu0  ;;  %v5048_v9 = vadd.f32 %v4877_v3, %v13934_v56  ;;  %v11970_v55 = vld [vmem:[%s15980_s3 + $0x40] sm:$0xff]  }
 0x28f   : > { %v6876_v63 = vsel %vm1720_vm10, %v6874_v47, %v6875_v15  ;;  %v5441_v7 = vshll.u32 %v11574_v58, 16  ;;  %v6421_v41 = vsel %vm1254_vm8, %v6416_v57, %v14162_v33  ;;  %8595 = vmatpush1.bf16.msra.mxu0 %v11970_v55  ;;  %v11972_v58 = vld [vmem:[%s15980_s3 + $0x48] sm:$0xff]  }
 0x290   : > { %v5434_v2 = vor.u32 %v5432_v21, %v5431_v0  ;;  %v5440_v31 = vrot.slane %v5438_v62, 7  ;;  %v5150_v34 = vmax.f32 %v5102_v26, 0.0  ;;  %6947 = vst.msk [vmem:[#allocation4 + $0x8] sm:$0xff] %vm1057_vm9, %v6876_v63  ;;  %v5103_v56 = vadd.f32 %v14091_v48, %v5048_v9  ;;  %6606 = vrot.lane.b32.xlu0 %v6421_v41, %s12244_s26  ;;  %8596 = vmatprep.subr.bf16.mxu0 %v15999_v8  ;;  %v14189_v63 = vld [vmem:[#allocation3 + $0xc] sm:$0xfe]  }
 0x291   : > { %v5436_v3 = vrot.slane %v5431_v0, 4 }
 0x292   : > { %v5926_v43 = vld [vmem:[#allocation3 + $0x14] sm:$0xf]  ;;  %v5435_v47 = vsel %vm12587_vm6, %v5427_v14, %v5434_v2  ;;  %v5443_v21 = vor.u32 %v5441_v7, %v5440_v31  ;;  %v11575_v51 = vpack.c.bf16 %v5150_v34, %v5150_v34  ;;  %v5151_v57 = vmax.f32 %v5103_v56, 0.0  ;;  %v11974_v7 = vld [vmem:[#allocation3] sm:$0xff]  }
 0x293   : > { %v5927_v62 = vsel %vm12581_vm5, 0, %v5926_v43  ;;  %5879 = vst.msk [vmem:[#allocation3 + $0x1c] sm:$0xf] %vm224_vm0, %v5435_v47  ;;  %v4882_v26 = vpop.f32.mrb[112].mxu0  ;;  %v7434_v2 = vshll.u32 %v14167_v19, 16  ;;  %8597 = vmatpush1.bf16.msra.mxu0 %v11972_v58 }
 0x294   : > { %5928 = vst [vmem:[#allocation3 + $0x14] sm:$0xf] %v5927_v62  ;;  %v5444_v14 = vsel %vm12587_vm6, %v5436_v3, %v5443_v21  ;;  %v5447_v0 = vshrl.u32 %v11575_v51, 16  ;;  %v5049_v54 = vadd.f32 %v4882_v26, %v13940_v53  ;;  %v4884_v9 = vpop.f32.mrb[113].mxu0  ;;  %v5450_v55 = vshll.u32 %v11575_v51, 16  ;;  %v11971_v62 = vld [vmem:[%s15980_s3 + $0xb0] sm:$0xff]   ;;  %8598 = vmatprep.subr.bf16.mxu0 %v15999_v8 }
 0x295   : > { %v5929_v34 = vld [vmem:[#allocation3 + $0x18] sm:$0x1]  ;;  %5880 = vst.msk [vmem:[#allocation3 + $0x20] sm:$0xf] %vm224_vm0, %v5444_v14  ;;  %v11576_v56 = vpack.c.bf16 %v5151_v57, %v5151_v57  ;;  %v4885_v41 = vpop.f32.mrb[114].mxu0  ;;  %v11976_v51 = vld [vmem:[%s15980_s3 + $0x50] sm:$0xff]   ;;  %8230 = vmatpush1.bf16.msra.mxu1 %v11971_v62 }
 0x296   : > { %v5930_v43 = vsel %vm12595_vm7, 0, %v5929_v34  ;;  %v5449_v47 = vrot.slane %v5447_v0, 7  ;;  %v5104_v3 = vadd.f32 %v14091_v48, %v5049_v54  ;;  %v5050_v53 = vadd.f32 %v4885_v41, %v13942_v49  ;;  %v4887_v21 = vpop.f32.mrb[115].mxu0  ;;  %6214 = vst.msk [vmem:[#allocation4] sm:$0xff] %vm1057_vm9, %v11974_v7  ;;  %8231 = vmatprep.subr.bf16.mxu1 %v15999_v8 }
 0x297   : > { %5931 = vst [vmem:[#allocation3 + $0x18] sm:$0x1] %v5930_v43  ;;  %v5456_v57 = vshrl.u32 %v11576_v56, 16  ;;  %v6972_v26 = vld [vmem:[#allocation4 + $0x8] sm:$0xff]  ;;  %v6422_v14 = vshrl.u32 %v14147_v16, 16  ;;  %v5445_v49 = vrot.slane %v5440_v31, 4  ;;  %8599 = vmatpush1.bf16.msra.mxu0 %v11976_v51 }
 0x298   : > { %v5452_v0 = vor.u32 %v5450_v55, %v5449_v47  ;;  %v5152_v54 = vmax.f32 %v5104_v3, 0.0  ;;  %v5105_v9 = vadd.f32 %v14091_v48, %v5050_v53  ;;  %11312 = vmatprep.mubr.msk.bf16.mxu0 %vm1057_vm9, %v6972_v26  ;;  %v5459_v7 = vshll.u32 %v11576_v56, 16  ;;  %v11978_v31 = vld [vmem:[%s15980_s3 + $0x58] sm:$0xff]   ;;  %8600 = vmatprep.subr.bf16.mxu0 %v15999_v8 }
 0x299   : > { %v5458_v58 = vrot.slane %v5456_v57, 7  ;;  %v7895_v34 = vrot.slane %v14189_v63, 1  ;;  %v7436_v41 = vrot.slane %v7434_v2, 1  ;;  %v5454_v55 = vrot.slane %v5449_v47, 4 }
 0x29a   : > { %v5453_v16 = vsel %vm12587_vm6, %v5445_v49, %v5452_v0  ;;  %v11577_v43 = vpack.c.bf16 %v5152_v54, %v5152_v54  ;;  %v5153_v21 = vmax.f32 %v5105_v9, 0.0  ;;  %v6424_v51 = vor.u32 %v6422_v14, %v14162_v33 }
 0x29b   : > { %5881 = vst.msk [vmem:[#allocation3 + $0x24] sm:$0xf] %vm224_vm0, %v5453_v16  ;;  %v5461_v3 = vor.u32 %v5459_v7, %v5458_v58  ;;  %v4890_v56 = vpop.f32.mrb[116].mxu0  ;;  %v14218_v26 = vld [vmem:[#allocation3 + $0x10] sm:$0xff]   ;;  %v5463_v0 = vrot.slane %v5458_v58, 4  ;;  %v7432_v9 = vshrl.u32 %v14167_v19, 16  ;;  %8601 = vmatpush1.bf16.msra.mxu0 %v11978_v31 }
 0x29c   : > { %v5932_v63 = vld [vmem:[#allocation3 + $0x20] sm:$0xf]  ;;  %v5465_v2 = vshrl.u32 %v11577_v43, 16  ;;  %v11578_v53 = vpack.c.bf16 %v5153_v21, %v5153_v21  ;;  %v5051_v62 = vadd.f32 %v4890_v56, %v13946_v20  ;;  %v4892_v57 = vpop.f32.mrb[117].mxu0  ;;  %v5468_v20 = vshll.u32 %v11577_v43, 16 }
 0x29d   : > { %v5933_v49 = vsel %vm12581_vm5, 0, %v5932_v63  ;;  %v5462_v47 = vsel %vm12587_vm6, %v5454_v55, %v5461_v3  ;;  %v4893_v54 = vpop.f32.mrb[118].mxu0  ;;  %v6426_v58 = vshll.u32 %v14218_v26, 16  ;;  %v7437_v19 = vor.u32 %v7436_v41, %v7432_v9 }
 0x29e   : > { %5934 = vst [vmem:[#allocation3 + $0x20] sm:$0xf] %v5933_v49  ;;  %5882 = vst.msk [vmem:[#allocation3 + $0x28] sm:$0xf] %vm224_vm0, %v5462_v47  ;;  %v5467_v7 = vrot.slane %v5465_v2, 7  ;;  %v5474_v16 = vshrl.u32 %v11578_v53, 16  ;;  %v5106_v33 = vadd.f32 %v14091_v48, %v5051_v62  ;;  %v5052_v56 = vadd.f32 %v4893_v54, %v13951_v39 }
 0x29f   : > { %v14227_v21 = vld [vmem:[#allocation3 + $0x14] sm:$0xff]   ;;  %v5477_v14 = vshll.u32 %v11578_v53, 16  ;;  %v4895_v63 = vpop.f32.mrb[119].mxu0  ;;  %v6428_v53 = vrot.slane %v6426_v58, 1 }
 0x2a0   : > { %v14232_v55 = vld [vmem:[#allocation3 + $0x14] sm:$0xff]   ;;  %v5470_v3 = vor.u32 %v5468_v20, %v5467_v7  ;;  %v5472_v57 = vrot.slane %v5467_v7, 4  ;;  %v14234_v49 = vrot.slane %v5474_v16, 7  ;;  %v7896_v43 = vrot.slane %v14227_v21, 1 }
 0x2a1   : > { %v14237_v2 = vld [vmem:[#allocation3 + $0x18] sm:$0xff]   ;;  %v5154_v47 = vmax.f32 %v5106_v33, 0.0  ;;  %v5107_v31 = vadd.f32 %v14091_v48, %v5052_v56  ;;  %v7439_v39 = vshll.u32 %v14232_v55, 16  ;;  %v11987_v62 = vld [vmem:[#allocation3 + $0x10] sm:$0xff]  }
 0x2a2   : > { %v5935_v54 = vld [vmem:[#allocation3 + $0x24] sm:$0x1]  ;;  %v5471_v63 = vsel %vm12587_vm6, %v5463_v0, %v5470_v3  ;;  %v5479_v41 = vor.u32 %v5477_v14, %v14234_v49  ;;  %v5481_v9 = vrot.slane %v14234_v49, 4  ;;  %v7897_v7 = vsel %vm1720_vm10, %v7895_v34, %v7896_v43  ;;  %v14248_v20 = vld [vmem:[#allocation3 + $0x18] sm:$0xfe]   ;;  %6216 = vst.msk [vmem:[#allocation4 + $0x20] sm:$0xff] %vm1057_vm9, %v11987_v62 }
 0x2a3   : > { %v5936_v16 = vsel %vm12595_vm7, 0, %v5935_v54  ;;  %5883 = vst.msk [vmem:[#allocation3 + $0x2c] sm:$0xf] %vm224_vm0, %v5471_v63  ;;  %v11579_v33 = vpack.c.bf16 %v5154_v47, %v5154_v47  ;;  %v5155_v56 = vmax.f32 %v5107_v31, 0.0  ;;  %v6429_v0 = vsel %vm1254_vm8, %v6424_v51, %v6428_v53  ;;  %v4898_v14 = vpop.f32.mrb[120].mxu0  ;;  %v11996_v63 = vld [vmem:[#allocation3 + $0x18] sm:$0xff]  }
 0x2a4   : > { %7968 = vst.msk [vmem:[#allocation4 + $0x8] sm:$0xff] %vm1057_vm9, %v7897_v7  ;;  %5937 = vst [vmem:[#allocation3 + $0x24] sm:$0x1] %v5936_v16  ;;  %v5480_v34 = vsel %vm12587_vm6, %v5472_v57, %v5479_v41  ;;  %6608 = vrot.lane.b32.xlu1 %v6429_v0, %s12244_s26  ;;  %v5053_v58 = vadd.f32 %v4898_v14, %v13956_v52  ;;  %v4900_v3 = vpop.f32.mrb[121].mxu0  ;;  %v7441_v49 = vrot.slane %v7439_v39, 1  ;;  %v6430_v54 = vshrl.u32 %v14218_v26, 16 }
 0x2a5   : > { %5884 = vst.msk [vmem:[#allocation3 + $0x30] sm:$0xf] %vm224_vm0, %v5480_v34  ;;  %v5483_v47 = vshrl.u32 %v11579_v33, 16  ;;  %v5486_v51 = vshll.u32 %v11579_v33, 16  ;;  %v11580_v31 = vpack.c.bf16 %v5155_v56, %v5155_v56  ;;  %v4901_v7 = vpop.f32.mrb[122].mxu0  ;;  %v6434_v62 = vshll.u32 %v14237_v2, 16 }
 0x2a6   : > { %v5108_v16 = vadd.f32 %v14091_v48, %v5053_v58  ;;  %v7442_v57 = vsel %vm1254_vm8, %v7437_v19, %v7441_v49  ;;  %v5054_v41 = vadd.f32 %v4901_v7, %v13958_v59  ;;  %v4903_v52 = vpop.f32.mrb[123].mxu0  ;;  %v6432_v0 = vor.u32 %v6430_v54, %v6428_v53  ;;  %v14266_v39 = vld [vmem:[#allocation3 + $0x1c] sm:$0xff]   ;;  %6217 = vst.msk [vmem:[#allocation4 + $0x30] sm:$0xff] %vm1057_vm9, %v11996_v63  ;;  %v11982_v63 = vld [vmem:[%s15980_s3 + $0xb8] sm:$0xff]  }
 0x2a7   : > { %v5485_v26 = vrot.slane %v5483_v47, 7  ;;  %v5492_v14 = vshrl.u32 %v11580_v31, 16  ;;  %v5495_v34 = vshll.u32 %v11580_v31, 16  ;;  %7627 = vrot.lane.b32.xlu0 %v7442_v57, %s12244_s26  ;;  %v6436_v33 = vrot.slane %v6434_v62, 1  ;;  %8232 = vmatpush1.bf16.msra.mxu1 %v11982_v63 }
 0x2a8   : > { %v5156_v56 = vmax.f32 %v5108_v16, 0.0  ;;  %v5109_v3 = vadd.f32 %v14091_v48, %v5054_v41  ;;  %v9655_v58 = vrot.slane %v14248_v20, 1  ;;  %v7443_v19 = vshrl.u32 %v14232_v55, 16  ;;  %9969 = vmatprep.subr.bf16.mxu1 %v15999_v8 }
 0x2a9   : > { %v5488_v59 = vor.u32 %v5486_v51, %v5485_v26  ;;  %v5490_v7 = vrot.slane %v5485_v26, 4  ;;  %v5494_v53 = vrot.slane %v5492_v14, 7  ;;  %v6437_v54 = vsel %vm1254_vm8, %v6432_v0, %v6436_v33 }
 0x2aa   : > { %v5938_v47 = vld [vmem:[#allocation3 + $0x2c] sm:$0xf]  ;;  %v11581_v31 = vpack.c.bf16 %v5156_v56, %v5156_v56  ;;  %v5157_v57 = vmax.f32 %v5109_v3, 0.0  ;;  %6610 = vrot.lane.b32.xlu1 %v6437_v54, %s12244_s26  ;;  %v7445_v16 = vor.u32 %v7443_v19, %v7441_v49  ;;  %v7447_v20 = vshll.u32 %v14266_v39, 16 }
 0x2ab   : > { %v7993_v62 = vld [vmem:[#allocation4 + $0x8] sm:$0xff]  ;;  %v5939_v55 = vsel %vm12581_vm5, 0, %v5938_v47  ;;  %v5489_v51 = vsel %vm12587_vm6, %v5481_v9, %v5488_v59  ;;  %v5497_v41 = vor.u32 %v5495_v34, %v5494_v53  ;;  %v5499_v52 = vrot.slane %v5494_v53, 4  ;;  %v4906_v0 = vpop.f32.mrb[124].mxu0  ;;  %v14284_v26 = vld [vmem:[#allocation3 + $0x20] sm:$0xff]  }
 0x2ac   : > { %11276 = vmatprep.mubr.msk.bf16.mxu1 %vm1057_vm9, %v7993_v62  ;;  %5940 = vst [vmem:[#allocation3 + $0x2c] sm:$0xf] %v5939_v55  ;;  %5885 = vst.msk [vmem:[#allocation3 + $0x34] sm:$0xf] %vm224_vm0, %v5489_v51  ;;  %v5501_v49 = vshrl.u32 %v11581_v31, 16  ;;  %v5504_v14 = vshll.u32 %v11581_v31, 16  ;;  %v11582_v56 = vpack.c.bf16 %v5157_v57, %v5157_v57  ;;  %v5055_v3 = vadd.f32 %v4906_v0, %v13962_v11 }
 0x2ad   : > { %v4908_v19 = vpop.f32.mrb[125].mxu0  ;;  %v14288_v54 = vld [vmem:[#allocation3 + $0x20] sm:$0xff]   ;;  %v5498_v9 = vsel %vm12587_vm6, %v5490_v7, %v5497_v41  ;;  %v15985_v34 = vrot.slane %v14284_v26, 1  ;;  %v7449_v59 = vrot.slane %v7447_v20, 1  ;;  %v6438_v63 = vshrl.u32 %v14237_v2, 16 }
 0x2ae   : > { %v4909_v53 = vpop.f32.mrb[126].mxu0  ;;  %5886 = vst.msk [vmem:[#allocation3 + $0x38] sm:$0xf] %vm224_vm0, %v5498_v9  ;;  %v5503_v47 = vrot.slane %v5501_v49, 7  ;;  %v5510_v31 = vshrl.u32 %v11582_v56, 16  ;;  %v5513_v57 = vshll.u32 %v11582_v56, 16  ;;  %v5110_v11 = vadd.f32 %v14091_v48, %v5055_v3 }
 0x2af   : > { %v4911_v62 = vpop.f32.mrb[127].mxu0  ;;  %v14297_v55 = vld [vmem:[#allocation3 + $0x24] sm:$0xff]   ;;  %v9657_v7 = vsel %vm1720_vm10, %v9655_v58, %v15985_v34  ;;  %v7450_v51 = vsel %vm1254_vm8, %v7445_v16, %v7449_v59  ;;  %v5056_v20 = vadd.f32 %v4909_v53, %v13967_v40  ;;  %v6440_v41 = vor.u32 %v6438_v63, %v6436_v33 }
 0x2b0   : > { %v5506_v2 = vor.u32 %v5504_v14, %v5503_v47  ;;  %v5508_v0 = vrot.slane %v5503_v47, 4  ;;  %v5512_v19 = vrot.slane %v5510_v31, 7  ;;  %v5158_v49 = vmax.f32 %v5110_v11, 0.0  ;;  %9728 = vst.msk [vmem:[#allocation4 + $0x8] sm:$0xff] %vm1057_vm9, %v9657_v7  ;;  %7629 = vrot.lane.b32.xlu0 %v7450_v51, %s12244_s26  ;;  %v12004_v53 = vld [vmem:[#allocation3 + $0x20] sm:$0xff]  }
 0x2b1   : > { %v5111_v56 = vadd.f32 %v14091_v48, %v5056_v20  ;;  %v6442_v3 = vshll.u32 %v14288_v54, 16  ;;  %v7451_v9 = vshrl.u32 %v14266_v39, 16  ;;  %v7455_v58 = vshll.u32 %v14297_v55, 16  ;;  %6218 = vst.msk [vmem:[#allocation4 + $0x40] sm:$0xff] %vm1057_vm9, %v12004_v53  ;;  %v11980_v53 = vld [vmem:[#allocation3 + $0x10] sm:$0xff]  }
 0x2b2   : > { %v5507_v40 = vsel %vm12587_vm6, %v5499_v52, %v5506_v2  ;;  %v5515_v33 = vor.u32 %v5513_v57, %v5512_v19  ;;  %v5517_v16 = vrot.slane %v5512_v19, 4  ;;  %v11583_v14 = vpack.c.bf16 %v5158_v49, %v5158_v49  ;;  %v5941_v57 = vld [vmem:[#allocation3 + $0x30] sm:$0x1] }
 0x2b3   : > { %5887 = vst.msk [vmem:[#allocation3 + $0x3c] sm:$0xf] %vm224_vm0, %v5507_v40  ;;  %v5159_v63 = vmax.f32 %v5111_v56, 0.0  ;;  %v6444_v47 = vrot.slane %v6442_v3, 1  ;;  %v7453_v31 = vor.u32 %v7451_v9, %v7449_v59  ;;  %v7457_v11 = vrot.slane %v7455_v58, 1  ;;  %v4914_v62 = vpop.f32.mrb[128].mxu0 }
 0x2b4   : > { %v5516_v7 = vsel %vm12587_vm6, %v5508_v0, %v5515_v33  ;;  %v5519_v39 = vshrl.u32 %v11583_v14, 16  ;;  %v5522_v51 = vshll.u32 %v11583_v14, 16  ;;  %v5057_v20 = vadd.f32 %v4914_v62, %v13974_v45  ;;  %v4916_v34 = vpop.f32.mrb[129].mxu0  ;;  %v11940_v52 = vld [vmem:[#allocation3 + $0x28] sm:$0xff]  }
 0x2b5   : > { %v5944_v2 = vld [vmem:[#allocation3 + $0x38] sm:$0xf]  ;;  %5888 = vst.msk [vmem:[#allocation3 + $0x40] sm:$0xf] %vm224_vm0, %v5516_v7  ;;  %v11584_v19 = vpack.c.bf16 %v5159_v63, %v5159_v63  ;;  %v6445_v59 = vsel %vm1254_vm8, %v6440_v41, %v6444_v47  ;;  %v7458_v49 = vsel %vm1254_vm8, %v7453_v31, %v7457_v11  ;;  %v4917_v56 = vpop.f32.mrb[130].mxu0  ;;  %v6446_v0 = vshrl.u32 %v14288_v54, 16 }
 0x2b6   : > { %v5945_v3 = vsel %vm12581_vm5, 0, %v5944_v2  ;;  %v5521_v45 = vrot.slane %v5519_v39, 7  ;;  %6612 = vrot.lane.b32.xlu1 %v6445_v59, %s12244_s26  ;;  %7631 = vrot.lane.b32.xlu0 %v7458_v49, %s12244_s26  ;;  %v5112_v34 = vadd.f32 %v14091_v48, %v5057_v20  ;;  %v5058_v9 = vadd.f32 %v4917_v56, %v13976_v23  ;;  %v4919_v58 = vpop.f32.mrb[131].mxu0  ;;  %v14331_v23 = vld [vmem:[#allocation3 + $0x1c] sm:$0xff]  }
 0x2b7   : > { %5946 = vst [vmem:[#allocation3 + $0x38] sm:$0xf] %v5945_v3  ;;  %v5528_v41 = vshrl.u32 %v11584_v19, 16  ;;  %v5531_v40 = vshll.u32 %v11584_v19, 16  ;;  %v6448_v33 = vor.u32 %v6446_v0, %v6444_v47  ;;  %v6450_v14 = vshll.u32 %v11940_v52, 16  ;;  %v14333_v59 = vld [vmem:[#allocation3 + $0x18] sm:$0xff]  }
 0x2b8   : > { %v5524_v54 = vor.u32 %v5522_v51, %v5521_v45  ;;  %v5526_v63 = vrot.slane %v5521_v45, 4  ;;  %v5160_v31 = vmax.f32 %v5112_v34, 0.0  ;;  %v5113_v62 = vadd.f32 %v14091_v48, %v5058_v9 }
 0x2b9   : > { %v5530_v7 = vrot.slane %v5528_v41, 7  ;;  %v6452_v39 = vrot.slane %v6450_v14, 1  ;;  %v5942_v2 = vsel %vm12595_vm7, 0, %v5941_v57  ;;  %v7459_v20 = vshrl.u32 %v14297_v55, 16 }
 0x2ba   : > { %v5525_v47 = vsel %vm12587_vm6, %v5517_v16, %v5524_v54  ;;  %v11585_v19 = vpack.c.bf16 %v5160_v31, %v5160_v31  ;;  %v5161_v51 = vmax.f32 %v5113_v62, 0.0  ;;  %5943 = vst [vmem:[#allocation3 + $0x30] sm:$0x1] %v5942_v2  ;;  %v6454_v49 = vshrl.u32 %v11940_v52, 16  ;;  %v5947_v56 = vld [vmem:[#allocation3 + $0x3c] sm:$0x1] }
 0x2bb   : > { %5889 = vst.msk [vmem:[#allocation3 + $0x44] sm:$0xf] %vm224_vm0, %v5525_v47  ;;  %v5533_v0 = vor.u32 %v5531_v40, %v5530_v7  ;;  %v5535_v3 = vrot.slane %v5530_v7, 4  ;;  %v6453_v57 = vsel %vm1254_vm8, %v6448_v33, %v6452_v39  ;;  %v4922_v45 = vpop.f32.mrb[132].mxu0  ;;  %v14339_v55 = vor.u32 %v7459_v20, %v7457_v11  ;;  %v12010_v11 = vld [vmem:[#allocation3 + $0x28] sm:$0xff]  }
 0x2bc   : > { %v5537_v34 = vshrl.u32 %v11585_v19, 16  ;;  %v5540_v9 = vshll.u32 %v11585_v19, 16  ;;  %v11586_v58 = vpack.c.bf16 %v5161_v51, %v5161_v51  ;;  %6614 = vrot.lane.b32.xlu1 %v6453_v57, %s12244_s26  ;;  %v5059_v16 = vadd.f32 %v4922_v45, %v13982_v30  ;;  %v4924_v41 = vpop.f32.mrb[133].mxu0  ;;  %6219 = vst.msk [vmem:[#allocation4 + $0x50] sm:$0xff] %vm1057_vm9, %v12010_v11 }
 0x2bd   : > { %v5534_v52 = vsel %vm12587_vm6, %v5526_v63, %v5533_v0  ;;  %v4925_v14 = vpop.f32.mrb[134].mxu0  ;;  %v14345_v54 = vor.u32 %v6454_v49, %v6452_v39  ;;  %v5948_v40 = vsel %vm12595_vm7, 0, %v5947_v56  ;;  %v6877_v33 = vrot.slane %v11980_v53, 1 }
 0x2be   : > { %5890 = vst.msk [vmem:[#allocation3 + $0x48] sm:$0xf] %vm224_vm0, %v5534_v52  ;;  %v5539_v31 = vrot.slane %v5537_v34, 7  ;;  %v5546_v62 = vshrl.u32 %v11586_v58, 16  ;;  %v5549_v7 = vshll.u32 %v11586_v58, 16  ;;  %v5114_v2 = vadd.f32 %v14091_v48, %v5059_v16  ;;  %v4927_v30 = vpop.f32.mrb[135].mxu0 }
 0x2bf   : > { %5949 = vst [vmem:[#allocation3 + $0x3c] sm:$0x1] %v5948_v40  ;;  %v5060_v20 = vadd.f32 %v4925_v14, %v13984_v27  ;;  %v14352_v63 = vld [vmem:[#allocation3 + $0x34] sm:$0xff]   ;;  %v6878_v39 = vsel %vm1720_vm10, %v6875_v15, %v6877_v33  ;;  %v7898_v53 = vrot.slane %v14331_v23, 1  ;;  %v6879_v47 = vrot.slane %v14333_v59, 1 }
 0x2c0   : > { %v5542_v19 = vor.u32 %v5540_v9, %v5539_v31  ;;  %v5544_v51 = vrot.slane %v5539_v31, 4  ;;  %v5548_v49 = vrot.slane %v5546_v62, 7  ;;  %v5162_v56 = vmax.f32 %v5114_v2, 0.0  ;;  %6948 = vst.msk [vmem:[#allocation4 + $0x18] sm:$0xff] %vm1057_vm9, %v6878_v39 }
 0x2c1   : > { %v11941_v0 = vld [vmem:[#allocation3 + $0x2c] sm:$0xff]   ;;  %v5115_v27 = vadd.f32 %v14091_v48, %v5060_v20  ;;  %v7471_v57 = vshll.u32 %v14352_v63, 16  ;;  %v7899_v4 = vsel %vm1720_vm10, %v7896_v43, %v7898_v53  ;;  %v6880_v15 = vsel %vm1720_vm10, %v6877_v33, %v6879_v47 }
 0x2c2   : > { %v5950_v45 = vld [vmem:[#allocation3 + $0x44] sm:$0xf]  ;;  %v5543_v34 = vsel %vm12587_vm6, %v5535_v3, %v5542_v19  ;;  %v5551_v9 = vor.u32 %v5549_v7, %v5548_v49  ;;  %v5553_v58 = vrot.slane %v5548_v49, 4  ;;  %v11587_v16 = vpack.c.bf16 %v5162_v56, %v5162_v56  ;;  %v11942_v41 = vld [vmem:[#allocation3 + $0x30] sm:$0xff]   ;;  %6949 = vst.msk [vmem:[#allocation4 + $0x28] sm:$0xff] %vm1057_vm9, %v6880_v15 }
 0x2c3   : > { %v5951_v52 = vsel %vm12581_vm5, 0, %v5950_v45  ;;  %5891 = vst.msk [vmem:[#allocation3 + $0x4c] sm:$0xf] %vm224_vm0, %v5543_v34  ;;  %v7463_v21 = vshll.u32 %v11941_v0, 16  ;;  %v5163_v43 = vmax.f32 %v5115_v27, 0.0  ;;  %v4930_v14 = vpop.f32.mrb[136].mxu0 }
 0x2c4   : > { %v7467_v40 = vshrl.u32 %v11941_v0, 16  ;;  %5952 = vst [vmem:[#allocation3 + $0x44] sm:$0xf] %v5951_v52  ;;  %v5552_v33 = vsel %vm12587_vm6, %v5544_v51, %v5551_v9  ;;  %v5555_v3 = vshrl.u32 %v11587_v16, 16  ;;  %v5558_v11 = vshll.u32 %v11587_v16, 16  ;;  %v4932_v62 = vpop.f32.mrb[137].mxu0 }
 0x2c5   : > { %v6458_v31 = vshll.u32 %v11942_v41, 16  ;;  %5892 = vst.msk [vmem:[#allocation3 + $0x50] sm:$0xf] %vm224_vm0, %v5552_v33  ;;  %v7465_v7 = vrot.slane %v7463_v21, 1  ;;  %v11588_v2 = vpack.c.bf16 %v5163_v43, %v5163_v43  ;;  %v5061_v30 = vadd.f32 %v4930_v14, %v13990_v18  ;;  %v4933_v39 = vpop.f32.mrb[138].mxu0 }
 0x2c6   : > { %v7473_v20 = vrot.slane %v7471_v57, 1  ;;  %v5557_v19 = vrot.slane %v5555_v3, 7  ;;  %v5062_v56 = vadd.f32 %v4933_v39, %v13992_v25  ;;  %v4935_v0 = vpop.f32.mrb[139].mxu0  ;;  %v14382_v27 = vld [vmem:[#allocation3 + $0x38] sm:$0xff]   ;;  %v6462_v34 = vshrl.u32 %v11942_v41, 16 }
 0x2c7   : > { %v6460_v49 = vrot.slane %v6458_v31, 1  ;;  %v7466_v51 = vsel %vm1254_vm8, %v14339_v55, %v7465_v7  ;;  %v5564_v15 = vshrl.u32 %v11588_v2, 16  ;;  %v5116_v45 = vadd.f32 %v14091_v48, %v5061_v30  ;;  %v14387_v9 = vld [vmem:[#allocation4 + $0x18] sm:$0xff] }
 0x2c8   : > { %v5560_v16 = vor.u32 %v5558_v11, %v5557_v19  ;;  %7633 = vrot.lane.b32.xlu0 %v7466_v51, %s12244_s26  ;;  %v5567_v18 = vshll.u32 %v11588_v2, 16  ;;  %v7469_v25 = vor.u32 %v7467_v40, %v7465_v7  ;;  %v14392_v52 = vld [vmem:[#allocation3 + $0x3c] sm:$0xff]   ;;  %7969 = vst.msk [vmem:[#allocation4 + $0x18] sm:$0xff] %vm1057_vm9, %v7899_v4  ;;  %v5562_v21 = vrot.slane %v5557_v19, 4 }
 0x2c9   : > { %v6461_v57 = vsel %vm1254_vm8, %v14345_v54, %v6460_v49  ;;  %v5566_v55 = vrot.slane %v5564_v15, 7  ;;  %v5164_v48 = vmax.f32 %v5116_v45, 0.0  ;;  %v14399_v41 = vld [vmem:[%s15979_s2] ss:$0 sm:$0xff]  ;;  %v6464_v40 = vor.u32 %v6462_v34, %v6460_v49 }
 0x2ca   : > { %6616 = vrot.lane.b32.xlu1 %v6461_v57, %s12244_s26  ;;  %v5117_v43 = vadd.f32 %v14399_v41, %v5062_v56  ;;  %v5561_v54 = vsel %vm12587_vm6, %v5553_v58, %v5560_v16  ;;  %v7474_v14 = vsel %vm1254_vm8, %v7469_v25, %v7473_v20  ;;  %v6466_v4 = vshll.u32 %v14382_v27, 16  ;;  %v5953_v57 = vld [vmem:[#allocation3 + $0x48] sm:$0x1] }
 0x2cb   : > { %5893 = vst.msk [vmem:[#allocation3 + $0x54] sm:$0xf] %vm224_vm0, %v5561_v54  ;;  %v5569_v33 = vor.u32 %v5567_v18, %v5566_v55  ;;  %v11589_v3 = vpack.c.bf16 %v5164_v48, %v5164_v48  ;;  %v7475_v31 = vshrl.u32 %v14352_v63, 16  ;;  %v4938_v62 = vpop.f32.mrb[140].mxu0  ;;  %v14408_v7 = vld [vmem:[#allocation3 + $0x40] sm:$0xff]   ;;  %v5571_v30 = vrot.slane %v5566_v55, 4 }
 0x2cc   : > { %v5165_v11 = vmax.f32 %v5117_v43, 0.0  ;;  %v5956_v2 = vld [vmem:[#allocation3 + $0x50] sm:$0xf]  ;;  %7635 = vrot.lane.b32.xlu0 %v7474_v14, %s12244_s26  ;;  %v6468_v58 = vrot.slane %v6466_v4, 1  ;;  %v7479_v39 = vshll.u32 %v14392_v52, 16  ;;  %v5063_v19 = vadd.f32 %v4938_v62, %v13995_v12  ;;  %v4940_v49 = vpop.f32.mrb[141].mxu0 }
 0x2cd   : > { %v5957_v56 = vsel %vm12581_vm5, 0, %v5956_v2  ;;  %v5570_v0 = vsel %vm12587_vm6, %v5562_v21, %v5569_v33  ;;  %v5573_v63 = vshrl.u32 %v11589_v3, 16  ;;  %v7477_v51 = vor.u32 %v7475_v31, %v7473_v20  ;;  %v4941_v15 = vpop.f32.mrb[142].mxu0 }
 0x2ce   : > { %5958 = vst [vmem:[#allocation3 + $0x50] sm:$0xf] %v5957_v56  ;;  %5894 = vst.msk [vmem:[#allocation3 + $0x58] sm:$0xf] %vm224_vm0, %v5570_v0  ;;  %v11590_v45 = vpack.c.bf16 %v5165_v11, %v5165_v11  ;;  %v6469_v34 = vsel %vm1254_vm8, %v6464_v40, %v6468_v58  ;;  %v7481_v16 = vrot.slane %v7479_v39, 1  ;;  %v5118_v18 = vadd.f32 %v14399_v41, %v5063_v19  ;;  %v4943_v12 = vpop.f32.mrb[143].mxu0 }
 0x2cf   : > { %v5575_v25 = vrot.slane %v5573_v63, 7  ;;  %v5576_v55 = vshll.u32 %v11589_v3, 16  ;;  %6618 = vrot.lane.b32.xlu1 %v6469_v34, %s12244_s26  ;;  %v5064_v21 = vadd.f32 %v4941_v15, %v13997_v46  ;;  %v6474_v20 = vshll.u32 %v14408_v7, 16 }
 0x2d0   : > { %v5582_v48 = vshrl.u32 %v11590_v45, 16  ;;  %v7482_v43 = vsel %vm1254_vm8, %v7477_v51, %v7481_v16  ;;  %v5166_v54 = vmax.f32 %v5118_v18, 0.0  ;;  %v6470_v14 = vshrl.u32 %v14382_v27, 16 }
 0x2d1   : > { %v5578_v40 = vor.u32 %v5576_v55, %v5575_v25  ;;  %v5580_v4 = vrot.slane %v5575_v25, 4  ;;  %v5585_v33 = vshll.u32 %v11590_v45, 16  ;;  %7637 = vrot.lane.b32.xlu0 %v7482_v43, %s12244_s26  ;;  %v5119_v11 = vadd.f32 %v14399_v41, %v5064_v21 }
 0x2d2   : > { %v5584_v3 = vrot.slane %v5582_v48, 7  ;;  %v11591_v31 = vpack.c.bf16 %v5166_v54, %v5166_v54  ;;  %v6476_v62 = vrot.slane %v6474_v20, 1  ;;  %v5954_v46 = vsel %vm12595_vm7, 0, %v5953_v57  ;;  %v5959_v56 = vld [vmem:[#allocation3 + $0x54] sm:$0x1] }
 0x2d3   : > { %v5579_v2 = vsel %vm12587_vm6, %v5571_v30, %v5578_v40  ;;  %v5167_v39 = vmax.f32 %v5119_v11, 0.0  ;;  %v6472_v19 = vor.u32 %v6470_v14, %v6468_v58  ;;  %v4946_v49 = vpop.f32.mrb[144].mxu0  ;;  %5955 = vst [vmem:[#allocation3 + $0x48] sm:$0x1] %v5954_v46  ;;  %v7483_v27 = vshrl.u32 %v14392_v52, 16 }
 0x2d4   : > { %5895 = vst.msk [vmem:[#allocation3 + $0x5c] sm:$0xf] %vm224_vm0, %v5579_v2  ;;  %v5587_v0 = vor.u32 %v5585_v33, %v5584_v3  ;;  %v5591_v63 = vshrl.u32 %v11591_v31, 16  ;;  %v5594_v51 = vshll.u32 %v11591_v31, 16  ;;  %v4948_v15 = vpop.f32.mrb[145].mxu0  ;;  %v6478_v45 = vshrl.u32 %v14408_v7, 16 }
 0x2d5   : > { %v11592_v34 = vpack.c.bf16 %v5167_v39, %v5167_v39  ;;  %v6477_v18 = vsel %vm1254_vm8, %v6472_v19, %v6476_v62  ;;  %v5065_v30 = vadd.f32 %v4946_v49, %v14000_v60  ;;  %v4949_v12 = vpop.f32.mrb[146].mxu0  ;;  %v14436_v58 = vld [vmem:[#allocation3 + $0x4c] sm:$0xff]   ;;  %v5589_v21 = vrot.slane %v5584_v3, 4 }
 0x2d6   : > { %v5588_v52 = vsel %vm12587_vm6, %v5580_v4, %v5587_v0  ;;  %v5593_v57 = vrot.slane %v5591_v63, 7  ;;  %6620 = vrot.lane.b32.xlu1 %v6477_v18, %s12244_s26  ;;  %v5066_v25 = vadd.f32 %v4949_v12, %v14002_v17  ;;  %v4951_v55 = vpop.f32.mrb[147].mxu0  ;;  %v7495_v60 = vshll.u32 %v14436_v58, 16 }
 0x2d7   : > { %5896 = vst.msk [vmem:[#allocation3 + $0x60] sm:$0xf] %vm224_vm0, %v5588_v52  ;;  %v5600_v7 = vshrl.u32 %v11592_v34, 16  ;;  %v5120_v20 = vadd.f32 %v14399_v41, %v5065_v30  ;;  %v5603_v43 = vshll.u32 %v11592_v34, 16  ;;  %v5960_v14 = vsel %vm12595_vm7, 0, %v5959_v56 }
 0x2d8   : > { %v5596_v48 = vor.u32 %v5594_v51, %v5593_v57  ;;  %v5121_v54 = vadd.f32 %v14399_v41, %v5066_v25  ;;  %v5598_v40 = vrot.slane %v5593_v57, 4  ;;  %v7497_v17 = vrot.slane %v7495_v60, 1  ;;  %5961 = vst [vmem:[#allocation3 + $0x54] sm:$0x1] %v5960_v14  ;;  %v12018_v51 = vld [vmem:[#allocation3 + $0x30] sm:$0xff]  }
 0x2d9   : > { %v5602_v4 = vrot.slane %v5600_v7, 7  ;;  %v5168_v33 = vmax.f32 %v5120_v20, 0.0  ;;  %v7485_v31 = vor.u32 %v7483_v27, %v7481_v16  ;;  %v6480_v0 = vor.u32 %v6478_v45, %v6476_v62  ;;  %6220 = vst.msk [vmem:[#allocation4 + $0x60] sm:$0xff] %vm1057_vm9, %v12018_v51 }
 0x2da   : > { %v5597_v11 = vsel %vm12587_vm6, %v5589_v21, %v5596_v48  ;;  %v11949_v3 = vld [vmem:[#allocation3 + $0x44] sm:$0xff]   ;;  %v5169_v46 = vmax.f32 %v5121_v54, 0.0  ;;  %v7499_v56 = vshrl.u32 %v14436_v58, 16 }
 0x2db   : > { %v5962_v2 = vld [vmem:[#allocation3 + $0x5c] sm:$0xf]  ;;  %5897 = vst.msk [vmem:[#allocation3 + $0x64] sm:$0xf] %vm224_vm0, %v5597_v11  ;;  %v5605_v39 = vor.u32 %v5603_v43, %v5602_v4  ;;  %v11593_v19 = vpack.c.bf16 %v5168_v33, %v5168_v33  ;;  %v11950_v49 = vld [vmem:[#allocation3 + $0x48] sm:$0xff]   ;;  %v4954_v63 = vpop.f32.mrb[148].mxu0 }
 0x2dc   : > { %v5963_v15 = vsel %vm12581_vm5, 0, %v5962_v2  ;;  %v7487_v34 = vshll.u32 %v11949_v3, 16  ;;  %v11594_v18 = vpack.c.bf16 %v5169_v46, %v5169_v46  ;;  %v5067_v30 = vadd.f32 %v4954_v63, %v14009_v6  ;;  %v4956_v16 = vpop.f32.mrb[149].mxu0 }
 0x2dd   : > { %5964 = vst [vmem:[#allocation3 + $0x5c] sm:$0xf] %v5963_v15  ;;  %v5606_v27 = vsel %vm12587_vm6, %v5598_v40, %v5605_v39  ;;  %v5607_v12 = vrot.slane %v5602_v4, 4  ;;  %v5609_v52 = vshrl.u32 %v11593_v19, 16  ;;  %v6482_v57 = vshll.u32 %v11950_v49, 16  ;;  %v4957_v62 = vpop.f32.mrb[150].mxu0 }
 0x2de   : > { %5898 = vst.msk [vmem:[#allocation3 + $0x68] sm:$0xf] %vm224_vm0, %v5606_v27  ;;  %v5612_v45 = vshll.u32 %v11593_v19, 16  ;;  %v7489_v58 = vrot.slane %v7487_v34, 1  ;;  %v5618_v25 = vshrl.u32 %v11594_v18, 16  ;;  %v5122_v55 = vadd.f32 %v14399_v41, %v5067_v30  ;;  %v4959_v21 = vpop.f32.mrb[151].mxu0 }
 0x2df   : > { %v5611_v6 = vrot.slane %v5609_v52, 7  ;;  %v6484_v7 = vrot.slane %v6482_v57, 1  ;;  %v7491_v20 = vshrl.u32 %v11949_v3, 16  ;;  %v5068_v60 = vadd.f32 %v4957_v62, %v14011_v42  ;;  %v14462_v40 = vld [vmem:[#allocation3 + $0x50] sm:$0xff]   ;;  %v5965_v62 = vld [vmem:[#allocation3 + $0x60] sm:$0x1] }
 0x2e0   : > { %v7490_v48 = vsel %vm1254_vm8, %v7485_v31, %v7489_v58  ;;  %v5620_v43 = vrot.slane %v5618_v25, 7  ;;  %v5621_v54 = vshll.u32 %v11594_v18, 16  ;;  %v5170_v14 = vmax.f32 %v5122_v55, 0.0  ;;  %v14466_v2 = vld [vmem:[#allocation3 + $0x54] sm:$0xff]  }
 0x2e1   : > { %v5614_v4 = vor.u32 %v5612_v45, %v5611_v6  ;;  %7639 = vrot.lane.b32.xlu0 %v7490_v48, %s12244_s26  ;;  %v6485_v33 = vsel %vm1254_vm8, %v6480_v0, %v6484_v7  ;;  %v7493_v11 = vor.u32 %v7491_v20, %v7489_v58  ;;  %v6486_v46 = vshrl.u32 %v11950_v49, 16 }
 0x2e2   : > { %v5616_v39 = vrot.slane %v5611_v6, 4  ;;  %v5623_v3 = vor.u32 %v5621_v54, %v5620_v43  ;;  %6622 = vrot.lane.b32.xlu1 %v6485_v33, %s12244_s26  ;;  %v11595_v42 = vpack.c.bf16 %v5170_v14, %v5170_v14  ;;  %v5123_v31 = vadd.f32 %v14399_v41, %v5068_v60  ;;  %v12027_v33 = vld [vmem:[#allocation3 + $0x38] sm:$0xff]  }
 0x2e3   : > { %v5615_v19 = vsel %vm12587_vm6, %v5607_v12, %v5614_v4  ;;  %v7498_v63 = vsel %vm1254_vm8, %v7493_v11, %v7497_v17  ;;  %v6490_v51 = vshll.u32 %v14462_v40, 16  ;;  %v7501_v15 = vor.u32 %v7499_v56, %v7497_v17  ;;  %v4962_v0 = vpop.f32.mrb[152].mxu0  ;;  %6221 = vst.msk [vmem:[#allocation4 + $0x70] sm:$0xff] %vm1057_vm9, %v12027_v33 }
 0x2e4   : > { %5899 = vst.msk [vmem:[#allocation3 + $0x6c] sm:$0xf] %vm224_vm0, %v5615_v19  ;;  %v5624_v49 = vsel %vm12587_vm6, %v5616_v39, %v5623_v3  ;;  %v5627_v34 = vshrl.u32 %v11595_v42, 16  ;;  %v5171_v18 = vmax.f32 %v5123_v31, 0.0  ;;  %v6488_v30 = vor.u32 %v6486_v46, %v6484_v7  ;;  %v4964_v16 = vpop.f32.mrb[153].mxu0  ;;  %v14484_v6 = vld [vmem:[#allocation3 + $0x58] sm:$0xff]  }
 0x2e5   : > { %v5968_v27 = vld [vmem:[#allocation3 + $0x68] sm:$0xf]  ;;  %5900 = vst.msk [vmem:[#allocation3 + $0x70] sm:$0xf] %vm224_vm0, %v5624_v49  ;;  %v5630_v52 = vshll.u32 %v11595_v42, 16  ;;  %7641 = vrot.lane.b32.xlu0 %v7498_v63, %s12244_s26  ;;  %v6492_v12 = vrot.slane %v6490_v51, 1  ;;  %v5069_v17 = vadd.f32 %v4962_v0, %v14014_v29 }
 0x2e6   : > { %v7503_v57 = vshll.u32 %v14466_v2, 16  ;;  %v4965_v56 = vpop.f32.mrb[154].mxu0  ;;  %v5969_v45 = vsel %vm12581_vm5, 0, %v5968_v27  ;;  %v5629_v58 = vrot.slane %v5627_v34, 7  ;;  %v11596_v25 = vpack.c.bf16 %v5171_v18, %v5171_v18 }
 0x2e7   : > { %v5070_v55 = vadd.f32 %v4965_v56, %v14019_v61  ;;  %v4967_v21 = vpop.f32.mrb[155].mxu0  ;;  %5970 = vst [vmem:[#allocation3 + $0x68] sm:$0xf] %v5969_v45  ;;  %v5625_v7 = vrot.slane %v5620_v43, 4  ;;  %v6493_v20 = vsel %vm1254_vm8, %v6488_v30, %v6492_v12  ;;  %v5124_v48 = vadd.f32 %v14399_v41, %v5069_v17 }
 0x2e8   : > { %v7505_v60 = vrot.slane %v7503_v57, 1  ;;  %v5632_v29 = vor.u32 %v5630_v52, %v5629_v58  ;;  %v5634_v54 = vrot.slane %v5629_v58, 4  ;;  %v5636_v14 = vshrl.u32 %v11596_v25, 16  ;;  %6624 = vrot.lane.b32.xlu1 %v6493_v20, %s12244_s26 }
 0x2e9   : > { %v6494_v4 = vshrl.u32 %v14462_v40, 16  ;;  %v5639_v11 = vshll.u32 %v11596_v25, 16  ;;  %v5172_v46 = vmax.f32 %v5124_v48, 0.0  ;;  %v5125_v39 = vadd.f32 %v14399_v41, %v5070_v55 }
 0x2ea   : > { %v7506_v61 = vsel %vm1254_vm8, %v7501_v15, %v7505_v60  ;;  %v5633_v43 = vsel %vm12587_vm6, %v5625_v7, %v5632_v29  ;;  %v5638_v3 = vrot.slane %v5636_v14, 7  ;;  %v6498_v42 = vshll.u32 %v14484_v6, 16 }
 0x2eb   : > { %7643 = vrot.lane.b32.xlu0 %v7506_v61, %s12244_s26  ;;  %v5966_v31 = vsel %vm12595_vm7, 0, %v5965_v62  ;;  %5901 = vst.msk [vmem:[#allocation3 + $0x74] sm:$0xf] %vm224_vm0, %v5633_v43  ;;  %v11597_v40 = vpack.c.bf16 %v5172_v46, %v5172_v46  ;;  %v5173_v19 = vmax.f32 %v5125_v39, 0.0  ;;  %v4970_v63 = vpop.f32.mrb[156].mxu0  ;;  %v7507_v51 = vshrl.u32 %v14466_v2, 16 }
 0x2ec   : > { %5967 = vst [vmem:[#allocation3 + $0x60] sm:$0x1] %v5966_v31  ;;  %v6502_v15 = vshrl.u32 %v14484_v6, 16  ;;  %v5641_v0 = vor.u32 %v5639_v11, %v5638_v3  ;;  %v6496_v49 = vor.u32 %v6494_v4, %v6492_v12  ;;  %v6500_v34 = vrot.slane %v6498_v42, 1  ;;  %v4972_v30 = vpop.f32.mrb[157].mxu0  ;;  %v12032_v6 = vld [vmem:[#allocation3 + $0x40] sm:$0xff]  }
 0x2ed   : > { %v5071_v18 = vadd.f32 %v4970_v63, %v14023_v50  ;;  %v5971_v16 = vld [vmem:[#allocation3 + $0x6c] sm:$0x1]  ;;  %v5643_v27 = vrot.slane %v5638_v3, 4  ;;  %v5645_v52 = vshrl.u32 %v11597_v40, 16  ;;  %v5648_v57 = vshll.u32 %v11597_v40, 16  ;;  %v4973_v56 = vpop.f32.mrb[158].mxu0 }
 0x2ee   : > { %v11598_v17 = vpack.c.bf16 %v5173_v19, %v5173_v19  ;;  %v5642_v62 = vsel %vm12587_vm6, %v5634_v54, %v5641_v0  ;;  %v6501_v45 = vsel %vm1254_vm8, %v6496_v49, %v6500_v34  ;;  %v5072_v58 = vadd.f32 %v4973_v56, %v14025_v32  ;;  %v4975_v12 = vpop.f32.mrb[159].mxu0  ;;  %v14508_v25 = vld [vmem:[#allocation3 + $0x64] sm:$0xff]   ;;  %6222 = vst.msk [vmem:[#allocation4 + $0x80] sm:$0xff] %vm1057_vm9, %v12032_v6 }
 0x2ef   : > { %v5126_v2 = vadd.f32 %v14399_v41, %v5071_v18  ;;  %5902 = vst.msk [vmem:[#allocation3 + $0x78] sm:$0xf] %vm224_vm0, %v5642_v62  ;;  %v5647_v50 = vrot.slane %v5645_v52, 7  ;;  %6626 = vrot.lane.b32.xlu1 %v6501_v45, %s12244_s26  ;;  %v7519_v48 = vshll.u32 %v14508_v25, 16  ;;  %v5972_v29 = vsel %vm12595_vm7, 0, %v5971_v16 }
 0x2f0   : > { %v5654_v55 = vshrl.u32 %v11598_v17, 16  ;;  %v5657_v21 = vshll.u32 %v11598_v17, 16  ;;  %v5127_v20 = vadd.f32 %v14399_v41, %v5072_v58  ;;  %5973 = vst [vmem:[#allocation3 + $0x6c] sm:$0x1] %v5972_v29  ;;  %v7523_v4 = vshrl.u32 %v14508_v25, 16 }
 0x2f1   : > { %v5174_v7 = vmax.f32 %v5126_v2, 0.0  ;;  %v5650_v32 = vor.u32 %v5648_v57, %v5647_v50  ;;  %v5652_v54 = vrot.slane %v5647_v50, 4  ;;  %v7509_v46 = vor.u32 %v7507_v51, %v7505_v60 }
 0x2f2   : > { %v5656_v14 = vrot.slane %v5654_v55, 7  ;;  %v5974_v33 = vld [vmem:[#allocation3 + $0x74] sm:$0xf]  ;;  %v5175_v39 = vmax.f32 %v5127_v20, 0.0  ;;  %v6504_v43 = vor.u32 %v6502_v15, %v6500_v34  ;;  %v7521_v58 = vrot.slane %v7519_v48, 1 }
 0x2f3   : > { %v11599_v11 = vpack.c.bf16 %v5174_v7, %v5174_v7  ;;  %v11960_v61 = vld [vmem:[#allocation3 + $0x5c] sm:$0xff]   ;;  %v5975_v3 = vsel %vm12581_vm5, 0, %v5974_v33  ;;  %v5651_v42 = vsel %vm12587_vm6, %v5643_v27, %v5650_v32  ;;  %v4978_v63 = vpop.f32.mrb[160].mxu0 }
 0x2f4   : > { %v5659_v31 = vor.u32 %v5657_v21, %v5656_v14  ;;  %v5661_v40 = vrot.slane %v5656_v14, 4  ;;  %v11962_v19 = vld [vmem:[#allocation3 + $0x60] sm:$0xff]   ;;  %5976 = vst [vmem:[#allocation3 + $0x74] sm:$0xf] %v5975_v3  ;;  %5903 = vst.msk [vmem:[#allocation3 + $0x7c] sm:$0xf] %vm224_vm0, %v5651_v42  ;;  %v11600_v30 = vpack.c.bf16 %v5175_v39, %v5175_v39  ;;  %v5073_v34 = vadd.f32 %v4978_v63, %v14028_v13 }
 0x2f5   : > { %v5663_v0 = vshrl.u32 %v11599_v11, 16  ;;  %v5666_v49 = vshll.u32 %v11599_v11, 16  ;;  %v7511_v18 = vshll.u32 %v11960_v61, 16  ;;  %v4980_v60 = vpop.f32.mrb[161].mxu0  ;;  %v6506_v15 = vshll.u32 %v11962_v19, 16 }
 0x2f6   : > { %v5660_v51 = vsel %vm12587_vm6, %v5652_v54, %v5659_v31  ;;  %v7515_v16 = vshrl.u32 %v11960_v61, 16  ;;  %v4981_v27 = vpop.f32.mrb[162].mxu0  ;;  %v5672_v17 = vshrl.u32 %v11600_v30, 16  ;;  %v5675_v56 = vshll.u32 %v11600_v30, 16 }
 0x2f7   : > { %5904 = vst.msk [vmem:[#allocation3 + $0x80] sm:$0xf] %vm224_vm0, %v5660_v51  ;;  %v5665_v52 = vrot.slane %v5663_v0, 7  ;;  %v7513_v57 = vrot.slane %v7511_v18, 1  ;;  %v4983_v62 = vpop.f32.mrb[163].mxu0  ;;  %v6508_v45 = vrot.slane %v6506_v15, 1  ;;  %v5128_v2 = vadd.f32 %v14399_v41, %v5073_v34 }
 0x2f8   : > { %v5074_v12 = vadd.f32 %v4981_v27, %v14030_v35  ;;  %v14530_v13 = vrot.slane %v5672_v17, 7  ;;  %v11968_v21 = vld [vmem:[#allocation3 + $0x68] sm:$0xff]   ;;  %v6510_v14 = vshrl.u32 %v11962_v19, 16  ;;  %v7525_v31 = vor.u32 %v7523_v4, %v7521_v58  ;;  %v5977_v51 = vld [vmem:[#allocation3 + $0x78] sm:$0x1] }
 0x2f9   : > { %v5668_v25 = vor.u32 %v5666_v49, %v5665_v52  ;;  %v5670_v50 = vrot.slane %v5665_v52, 4  ;;  %v7514_v55 = vsel %vm1254_vm8, %v7509_v46, %v7513_v57  ;;  %v14532_v6 = vld [vmem:[#allocation3 + $0x6c] sm:$0xff]   ;;  %v6509_v7 = vsel %vm1254_vm8, %v6504_v43, %v6508_v45 }
 0x2fa   : > { %7645 = vrot.lane.b32.xlu0 %v7514_v55, %s12244_s26  ;;  %v5176_v20 = vmax.f32 %v5128_v2, 0.0  ;;  %v7517_v29 = vor.u32 %v7515_v16, %v7513_v57  ;;  %v5129_v32 = vadd.f32 %v14399_v41, %v5074_v12  ;;  %v5677_v48 = vor.u32 %v5675_v56, %v14530_v13  ;;  %6628 = vrot.lane.b32.xlu1 %v6509_v7, %s12244_s26  ;;  %v12041_v52 = vld [vmem:[#allocation3 + $0x48] sm:$0xff]  }
 0x2fb   : > { %v5669_v35 = vsel %vm12587_vm6, %v5661_v40, %v5668_v25  ;;  %v5679_v54 = vrot.slane %v14530_v13, 4  ;;  %v6514_v46 = vshll.u32 %v11968_v21, 16  ;;  %v4986_v39 = vpop.f32.mrb[164].mxu0  ;;  %v14544_v43 = vld [vmem:[#allocation3 + $0x70] sm:$0xff]   ;;  %v6512_v42 = vor.u32 %v6510_v14, %v6508_v45  ;;  %6223 = vst.msk [vmem:[#allocation4 + $0x90] sm:$0xff] %vm1057_vm9, %v12041_v52 }
 0x2fc   : > { %5905 = vst.msk [vmem:[#allocation3 + $0x84] sm:$0xf] %vm224_vm0, %v5669_v35  ;;  %v11601_v33 = vpack.c.bf16 %v5176_v20, %v5176_v20  ;;  %v7522_v11 = vsel %vm1254_vm8, %v7517_v29, %v7521_v58  ;;  %v5177_v61 = vmax.f32 %v5129_v32, 0.0  ;;  %v5678_v3 = vsel %vm12587_vm6, %v5670_v50, %v5677_v48  ;;  %v4988_v63 = vpop.f32.mrb[165].mxu0 }
 0x2fd   : > { %v7527_v40 = vshll.u32 %v14532_v6, 16  ;;  %5906 = vst.msk [vmem:[#allocation3 + $0x88] sm:$0xf] %vm224_vm0, %v5678_v3  ;;  %v6516_v30 = vrot.slane %v6514_v46, 1  ;;  %v4989_v60 = vpop.f32.mrb[166].mxu0  ;;  %v5075_v4 = vadd.f32 %v4986_v39, %v14037_v5  ;;  %v6518_v12 = vshrl.u32 %v11968_v21, 16 }
 0x2fe   : > { %v5980_v0 = vld [vmem:[#allocation3 + $0x80] sm:$0xf]  ;;  %v5681_v19 = vshrl.u32 %v11601_v33, 16  ;;  %v5684_v49 = vshll.u32 %v11601_v33, 16  ;;  %7647 = vrot.lane.b32.xlu0 %v7522_v11, %s12244_s26  ;;  %v11602_v18 = vpack.c.bf16 %v5177_v61, %v5177_v61  ;;  %v5076_v16 = vadd.f32 %v4989_v60, %v14039_v1  ;;  %v4991_v27 = vpop.f32.mrb[167].mxu0  ;;  %v14571_v33 = vld [vmem:[#allocation3 + $0x24] sm:$0xff]  }
 0x2ff   : > { %v5981_v15 = vsel %vm12581_vm5, 0, %v5980_v0  ;;  %v7529_v34 = vrot.slane %v7527_v40, 1  ;;  %v6517_v62 = vsel %vm1254_vm8, %v6512_v42, %v6516_v30  ;;  %v5130_v2 = vadd.f32 %v14399_v41, %v5075_v4 }
 0x300   : > { %5982 = vst [vmem:[#allocation3 + $0x80] sm:$0xf] %v5981_v15  ;;  %v5683_v57 = vrot.slane %v5681_v19, 7  ;;  %v5690_v17 = vshrl.u32 %v11602_v18, 16  ;;  %v5693_v56 = vshll.u32 %v11602_v18, 16  ;;  %6630 = vrot.lane.b32.xlu1 %v6517_v62, %s12244_s26  ;;  %v5131_v58 = vadd.f32 %v14399_v41, %v5076_v16  ;;  %v14583_v19 = vld [vmem:[#allocation3 + $0x28] sm:$0xff]  }
 0x301   : > { %v7530_v45 = vsel %vm1254_vm8, %v7525_v31, %v7529_v34  ;;  %v6522_v50 = vshll.u32 %v14544_v43, 16  ;;  %v5178_v55 = vmax.f32 %v5130_v2, 0.0  ;;  %v6520_v7 = vor.u32 %v6518_v12, %v6516_v30  ;;  %v11986_v62 = vld [vmem:[#allocation3 + $0xc] sm:$0xff]  }
 0x302   : > { %v5686_v5 = vor.u32 %v5684_v49, %v5683_v57  ;;  %v5688_v1 = vrot.slane %v5683_v57, 4  ;;  %v14561_v25 = vrot.slane %v5690_v17, 7  ;;  %7649 = vrot.lane.b32.xlu0 %v7530_v45, %s12244_s26  ;;  %v5179_v13 = vmax.f32 %v5131_v58, 0.0  ;;  %v6607_v39 = vpop.permute.xlu0 %6606  ;;  %v14598_v45 = vld [vmem:[#allocation4 + $0x28] sm:$0xff] }
 0x303   : > { %v5978_v20 = vsel %vm12595_vm7, 0, %v5977_v51  ;;  %v5983_v29 = vld [vmem:[#allocation3 + $0x84] sm:$0x1]  ;;  %v6524_v48 = vrot.slane %v6522_v50, 1  ;;  %v4994_v14 = vpop.f32.mrb[168].mxu0  ;;  %v11603_v11 = vpack.c.bf16 %v5178_v55, %v5178_v55  ;;  %v7531_v42 = vshrl.u32 %v14532_v6, 16 }
 0x304   : > { %v5687_v21 = vsel %vm12587_vm6, %v5679_v54, %v5686_v5  ;;  %v5695_v32 = vor.u32 %v5693_v56, %v14561_v25  ;;  %v5697_v35 = vrot.slane %v14561_v25, 4  ;;  %5979 = vst [vmem:[#allocation3 + $0x78] sm:$0x1] %v5978_v20  ;;  %v11604_v61 = vpack.c.bf16 %v5179_v13, %v5179_v13  ;;  %v4996_v3 = vpop.f32.mrb[169].mxu0  ;;  %6678 = vst.msk [vmem:[#allocation4] sm:$0xff] %vm1523_vm11, %v6607_v39 }
 0x305   : > { %5907 = vst.msk [vmem:[#allocation3 + $0x8c] sm:$0xf] %vm224_vm0, %v5687_v21  ;;  %v5077_v46 = vadd.f32 %v4994_v14, %v14042_v10  ;;  %v6525_v31 = vsel %vm1254_vm8, %v6520_v7, %v6524_v48  ;;  %v4997_v40 = vpop.f32.mrb[170].mxu0  ;;  %v6526_v63 = vshrl.u32 %v14544_v43, 16  ;;  %v5984_v0 = vsel %vm12595_vm7, 0, %v5983_v29 }
 0x306   : > { %v5696_v54 = vsel %vm12587_vm6, %v5688_v1, %v5695_v32  ;;  %v5699_v10 = vshrl.u32 %v11603_v11, 16  ;;  %v5702_v49 = vshll.u32 %v11603_v11, 16  ;;  %v5708_v6 = vshrl.u32 %v11604_v61, 16  ;;  %6632 = vrot.lane.b32.xlu1 %v6525_v31, %s12244_s26  ;;  %v4999_v30 = vpop.f32.mrb[171].mxu0  ;;  %5985 = vst [vmem:[#allocation3 + $0x84] sm:$0x1] %v5984_v0 }
 0x307   : > { %5908 = vst.msk [vmem:[#allocation3 + $0x90] sm:$0xf] %vm224_vm0, %v5696_v54  ;;  %v5711_v18 = vshll.u32 %v11604_v61, 16  ;;  %v14587_v60 = vld [vmem:[#allocation3 + $0x7c] sm:$0xff]   ;;  %v5132_v51 = vadd.f32 %v14399_v41, %v5077_v46  ;;  %v7533_v43 = vor.u32 %v7531_v42, %v7529_v34  ;;  %v5078_v15 = vadd.f32 %v4997_v40, %v14047_v38 }
 0x308   : > { %v14591_v4 = vor.u32 %v6526_v63, %v6524_v48  ;;  %v5701_v16 = vrot.slane %v5699_v10, 7  ;;  %v14593_v27 = vrot.slane %v5708_v6, 7  ;;  %v7543_v52 = vshll.u32 %v14587_v60, 16  ;;  %v14601_v34 = vld [vmem:[#allocation4 + $0x18] sm:$0xff] }
 0x309   : > { %v7547_v57 = vshrl.u32 %v14587_v60, 16  ;;  %v5180_v17 = vmax.f32 %v5132_v51, 0.0  ;;  %v5133_v56 = vadd.f32 %v14399_v41, %v5078_v15  ;;  %v7900_v2 = vrot.slane %v14571_v33, 1 }
 0x30a   : > { %v9658_v38 = vrot.slane %v14583_v19, 1  ;;  %v5704_v58 = vor.u32 %v5702_v49, %v5701_v16  ;;  %v5706_v12 = vrot.slane %v5701_v16, 4  ;;  %v5713_v5 = vor.u32 %v5711_v18, %v14593_v27  ;;  %v12023_v19 = vld [vmem:[%s15980_s3 + $0xd0] sm:$0xff]  }
 0x30b   : > { %v5715_v1 = vrot.slane %v14593_v27, 4  ;;  %v11975_v25 = vld [vmem:[#allocation3 + $0x74] sm:$0xff]   ;;  %v11605_v13 = vpack.c.bf16 %v5180_v17, %v5180_v17  ;;  %v5181_v7 = vmax.f32 %v5133_v56, 0.0  ;;  %v5002_v20 = vpop.f32.mrb[172].mxu0  ;;  %v7901_v29 = vsel %vm1720_vm10, %v7898_v53, %v7900_v2  ;;  %v6971_v23 = vld [vmem:[#allocation4] sm:$0xff] }
 0x30c   : > { %v11977_v50 = vld [vmem:[#allocation3 + $0x78] sm:$0xff]   ;;  %v5986_v55 = vld [vmem:[#allocation3 + $0x8c] sm:$0xf]  ;;  %v16002_v21 = vrot.slane %v14284_v26, 1  ;;  %v5705_v14 = vsel %vm12587_vm6, %v5697_v35, %v5704_v58  ;;  %v5714_v11 = vsel %vm12587_vm6, %v5706_v12, %v5713_v5  ;;  %v7535_v61 = vshll.u32 %v11975_v25, 16  ;;  %v5004_v46 = vpop.f32.mrb[173].mxu0  ;;  %8611 = vmatmul.mubr.bf16.vlgmr.msra.gmra.mrb[192].mxu0 %v6971_v23 }
 0x30d   : > { %v5987_v48 = vsel %vm12581_vm5, 0, %v5986_v55  ;;  %7970 = vst.msk [vmem:[#allocation4 + $0x28] sm:$0xff] %vm1057_vm9, %v7901_v29  ;;  %v5717_v26 = vshrl.u32 %v11605_v13, 16  ;;  %v5720_v53 = vshll.u32 %v11605_v13, 16  ;;  %v11606_v39 = vpack.c.bf16 %v5181_v7, %v5181_v7  ;;  %v5005_v35 = vpop.f32.mrb[174].mxu0  ;;  %7235 = vst.msk [vmem:[#allocation4] sm:$0xff] %vm1057_vm9, %v11986_v62  ;;  %11313 = vmatprep.mubr.msk.bf16.mxu0 %vm1057_vm9, %v14387_v9 }
 0x30e   : > { %v9659_v32 = vsel %vm1720_vm10, %v16002_v21, %v9658_v38  ;;  %5988 = vst [vmem:[#allocation3 + $0x8c] sm:$0xf] %v5987_v48  ;;  %5909 = vst.msk [vmem:[#allocation3 + $0x94] sm:$0xf] %vm224_vm0, %v5705_v14  ;;  %v6530_v3 = vshll.u32 %v11977_v50, 16  ;;  %v7537_v42 = vrot.slane %v7535_v61, 1  ;;  %v5079_v54 = vadd.f32 %v5002_v20, %v14051_v36 }
 0x30f   : > { %9729 = vst.msk [vmem:[#allocation4 + $0x18] sm:$0xff] %vm1057_vm9, %v9659_v32  ;;  %v7539_v31 = vshrl.u32 %v11975_v25, 16  ;;  %v7545_v40 = vrot.slane %v7543_v52, 1  ;;  %v5007_v63 = vpop.f32.mrb[175].mxu0  ;;  %v14630_v0 = vld [vmem:[#allocation3 + $0x80] sm:$0xff]   ;;  %v5719_v10 = vrot.slane %v5717_v26, 7  ;;  %v5080_v16 = vadd.f32 %v5005_v35, %v14053_v22 }
 0x310   : > { %5910 = vst.msk [vmem:[#allocation3 + $0x98] sm:$0xf] %vm224_vm0, %v5714_v11  ;;  %v5726_v49 = vshrl.u32 %v11606_v39, 16  ;;  %v5729_v6 = vshll.u32 %v11606_v39, 16  ;;  %v6532_v18 = vrot.slane %v6530_v3, 1  ;;  %v7538_v30 = vsel %vm1254_vm8, %v7533_v43, %v7537_v42  ;;  %v14635_v36 = vld [vmem:[#allocation3 + $0x84] sm:$0xff]  }
 0x311   : > { %v5134_v51 = vadd.f32 %v14399_v41, %v5079_v54  ;;  %v7541_v15 = vor.u32 %v7539_v31, %v7537_v42  ;;  %v5722_v27 = vor.u32 %v5720_v53, %v5719_v10  ;;  %v5724_v52 = vrot.slane %v5719_v10, 4  ;;  %7651 = vrot.lane.b32.xlu0 %v7538_v30, %s12244_s26  ;;  %v12051_v11 = vld [vmem:[#allocation3 + $0x50] sm:$0xff]   ;;  %v16003_v46 = vld [vmem:[#allocation9_spill] sm:$0xff] }
 0x312   : > { %v14638_v9 = vrot.slane %v5726_v49, 7  ;;  %v6533_v17 = vsel %vm1254_vm8, %v14591_v4, %v6532_v18  ;;  %v5135_v62 = vadd.f32 %v14399_v41, %v5080_v16  ;;  %v6534_v58 = vshrl.u32 %v11977_v50, 16  ;;  %v5989_v39 = vld [vmem:[#allocation3 + $0x90] sm:$0x1]  ;;  %6224 = vst.msk [vmem:[#allocation4 + $0xa0] sm:$0xff] %vm1057_vm9, %v12051_v11  ;;  %v16005_v11 = vld [vmem:[#allocation11_spill] sm:$0xff] }
 0x313   : > { %6634 = vrot.lane.b32.xlu1 %v6533_v17, %s12244_s26  ;;  %v5182_v56 = vmax.f32 %v5134_v51, 0.0  ;;  %v7546_v43 = vsel %vm1254_vm8, %v7541_v15, %v7545_v40  ;;  %v5723_v22 = vsel %vm12587_vm6, %v5715_v1, %v5722_v27  ;;  %v6538_v25 = vshll.u32 %v14630_v0, 16  ;;  %v5010_v55 = vpop.f32.mrb[176].mxu0  ;;  %v16004_v42 = vld [vmem:[#allocation10_spill] sm:$0xff]  ;;  %v14674_v49 = vld [vmem:[%s15979_s2] ss:$0 sm:$0xff] }
 0x314   : > { %v5731_v12 = vor.u32 %v5729_v6, %v14638_v9  ;;  %v5733_v5 = vrot.slane %v14638_v9, 4  ;;  %5911 = vst.msk [vmem:[#allocation3 + $0x9c] sm:$0xf] %vm224_vm0, %v5723_v22  ;;  %v5183_v7 = vmax.f32 %v5135_v62, 0.0  ;;  %v6536_v20 = vor.u32 %v6534_v58, %v6532_v18  ;;  %v5012_v50 = vpop.f32.mrb[177].mxu0  ;;  %v11992_v22 = vld [vmem:[#allocation3 + $0x14] sm:$0xff]  }
 0x315   : > { %v11607_v4 = vpack.c.bf16 %v5182_v56, %v5182_v56  ;;  %v7549_v41 = vor.u32 %v7547_v57, %v7545_v40  ;;  %7653 = vrot.lane.b32.xlu0 %v7546_v43, %s12244_s26  ;;  %v6540_v21 = vrot.slane %v6538_v25, 1  ;;  %v7551_v32 = vshll.u32 %v14635_v36, 16  ;;  %v5013_v48 = vpop.f32.mrb[178].mxu0  ;;  %v14659_v14 = vld [vmem:[#allocation3 + $0x88] sm:$0xff]  }
 0x316   : > { %v5732_v29 = vsel %vm12587_vm6, %v5724_v52, %v5731_v12  ;;  %v11608_v61 = vpack.c.bf16 %v5183_v7, %v5183_v7  ;;  %v5081_v23 = vadd.f32 %v5010_v55, %v16003_v46  ;;  %v6609_v26 = vpop.permute.xlu1 %6608  ;;  %v5015_v53 = vpop.f32.mrb[179].mxu0  ;;  %v5082_v54 = vadd.f32 %v5013_v48, %v16004_v42 }
 0x317   : > { %v5992_v13 = vld [vmem:[#allocation3 + $0x98] sm:$0xf]  ;;  %5912 = vst.msk [vmem:[#allocation3 + $0xa0] sm:$0xf] %vm224_vm0, %v5732_v29  ;;  %v5735_v60 = vshrl.u32 %v11607_v4, 16  ;;  %v5738_v57 = vshll.u32 %v11607_v4, 16  ;;  %v6541_v3 = vsel %vm1254_vm8, %v6536_v20, %v6540_v21 }
 0x318   : > { %v5993_v1 = vsel %vm12581_vm5, 0, %v5992_v13  ;;  %v14664_v35 = vrot.slane %v7551_v32, 1  ;;  %6679 = vst.msk [vmem:[#allocation4 + $0x10] sm:$0xff] %vm1523_vm11, %v6609_v26  ;;  %v6542_v31 = vshrl.u32 %v14630_v0, 16  ;;  %v5744_v63 = vshrl.u32 %v11608_v61, 16  ;;  %6636 = vrot.lane.b32.xlu1 %v6541_v3, %s12244_s26  ;;  %v14694_v20 = vld [vmem:[#allocation3 + $0x20] sm:$0xff]  }
 0x319   : > { %5994 = vst [vmem:[#allocation3 + $0x98] sm:$0xf] %v5993_v1  ;;  %v5737_v40 = vrot.slane %v5735_v60, 7  ;;  %v5747_v10 = vshll.u32 %v11608_v61, 16  ;;  %v5136_v6 = vadd.f32 %v14674_v49, %v5081_v23  ;;  %v5137_v30 = vadd.f32 %v14674_v49, %v5082_v54  ;;  %v7628_v0 = vpop.permute.xlu0 %7627  ;;  %v11994_v53 = vld [vmem:[%s15980_s3 + $0xc0] sm:$0xff]  }
 0x31a   : > { %v7554_v18 = vsel %vm1254_vm8, %v7549_v41, %v14664_v35  ;;  %v6544_v51 = vor.u32 %v6542_v31, %v6540_v21  ;;  %v6546_v15 = vshll.u32 %v14659_v14, 16  ;;  %v14681_v52 = vrot.slane %v5744_v63, 7  ;;  %7699 = vst.msk [vmem:[#allocation4] sm:$0xff] %vm1523_vm11, %v7628_v0  ;;  %v14696_v41 = vld [vmem:[#allocation3 + $0x2c] sm:$0xff]  }
 0x31b   : > { %v5740_v16 = vor.u32 %v5738_v57, %v5737_v40  ;;  %v5742_v27 = vrot.slane %v5737_v40, 4  ;;  %7655 = vrot.lane.b32.xlu0 %v7554_v18, %s12244_s26  ;;  %v5184_v9 = vmax.f32 %v5136_v6, 0.0  ;;  %v5185_v17 = vmax.f32 %v5137_v30, 0.0  ;;  %v5018_v43 = vpop.f32.mrb[180].mxu0  ;;  %v14721_v31 = vld [vmem:[#allocation3 + $0x30] sm:$0xff]   ;;  %v11997_v6 = vld [vmem:[#allocation3 + $0x1c] sm:$0xff]  }
 0x31c   : > { %v14685_v56 = vrot.slane %v6546_v15, 1  ;;  %v5990_v62 = vsel %vm12595_vm7, 0, %v5989_v39  ;;  %v7555_v58 = vshrl.u32 %v14635_v36, 16  ;;  %v5749_v25 = vor.u32 %v5747_v10, %v14681_v52  ;;  %v6611_v4 = vpop.permute.xlu1 %6610  ;;  %v5020_v7 = vpop.f32.mrb[181].mxu0  ;;  %v5995_v33 = vld [vmem:[#allocation3 + $0x9c] sm:$0x1] }
 0x31d   : > { %v5741_v12 = vsel %vm12587_vm6, %v5733_v5, %v5740_v16  ;;  %v5751_v55 = vrot.slane %v14681_v52, 4  ;;  %v11609_v13 = vpack.c.bf16 %v5184_v9, %v5184_v9  ;;  %5991 = vst [vmem:[#allocation3 + $0x90] sm:$0x1] %v5990_v62  ;;  %v11610_v50 = vpack.c.bf16 %v5185_v17, %v5185_v17  ;;  %6680 = vst.msk [vmem:[#allocation4 + $0x20] sm:$0xff] %vm1523_vm11, %v6611_v4  ;;  %v5021_v1 = vpop.f32.mrb[182].mxu0 }
 0x31e   : > { %5913 = vst.msk [vmem:[#allocation3 + $0xa4] sm:$0xf] %vm224_vm0, %v5741_v12  ;;  %v6549_v36 = vsel %vm1254_vm8, %v6544_v51, %v14685_v56  ;;  %v5083_v5 = vadd.f32 %v5018_v43, %v14064_v44  ;;  %v5750_v21 = vsel %vm12587_vm6, %v5742_v27, %v5749_v25  ;;  %v5084_v60 = vadd.f32 %v5021_v1, %v16005_v11  ;;  %v5023_v57 = vpop.f32.mrb[183].mxu0  ;;  %v12059_v27 = vld [vmem:[#allocation3 + $0x58] sm:$0xff]  }
 0x31f   : > { %v5753_v32 = vshrl.u32 %v11609_v13, 16  ;;  %v5756_v48 = vshll.u32 %v11609_v13, 16  ;;  %6638 = vrot.lane.b32.xlu1 %v6549_v36, %s12244_s26  ;;  %v6973_v61 = vld [vmem:[#allocation4 + $0x10] sm:$0xff]  ;;  %5914 = vst.msk [vmem:[#allocation3 + $0xa8] sm:$0xf] %vm224_vm0, %v5750_v21  ;;  %v5762_v46 = vshrl.u32 %v11610_v50, 16 }
 0x320   : > { %v14703_v29 = vld [vmem:[#allocation3 + $0x94] sm:$0xff]   ;;  %v5765_v23 = vshll.u32 %v11610_v50, 16  ;;  %v5138_v44 = vadd.f32 %v14674_v49, %v5083_v5  ;;  %8619 = vmatmul.mubr.bf16.gmra.mrb[196].mxu0 %v6973_v61  ;;  %7236 = vst.msk [vmem:[#allocation4 + $0x10] sm:$0xff] %vm1057_vm9, %v11992_v22  ;;  %v6550_v26 = vshrl.u32 %v14659_v14, 16  ;;  %v5139_v3 = vadd.f32 %v14674_v49, %v5084_v60  ;;  %6225 = vst.msk [vmem:[#allocation4 + $0xb0] sm:$0xff] %vm1057_vm9, %v12059_v27  ;;  %v16006_v11 = vld [vmem:[#allocation12_spill] sm:$0xff] }
 0x321   : > { %v5755_v39 = vrot.slane %v5753_v32, 7  ;;  %11314 = vmatprep.mubr.msk.bf16.mxu0 %vm1057_vm9, %v14598_v45  ;;  %v7567_v42 = vshll.u32 %v14703_v29, 16  ;;  %v6881_v54 = vrot.slane %v14694_v20, 1  ;;  %v14723_v40 = vrot.slane %v5762_v46, 7  ;;  %v7992_v10 = vld [vmem:[#allocation4] sm:$0xff] }
 0x322   : > { %v5186_v63 = vmax.f32 %v5138_v44, 0.0  ;;  %v14726_v14 = vor.u32 %v7555_v58, %v14664_v35  ;;  %v7902_v18 = vrot.slane %v14696_v41, 1  ;;  %v12008_v45 = vld [vmem:[%s15980_s3 + $0xc8] sm:$0xff]   ;;  %v5187_v51 = vmax.f32 %v5139_v3, 0.0  ;;  %v7630_v15 = vpop.permute.xlu0 %7629  ;;  %8242 = vmatmul.mubr.bf16.vlgmr.msra.gmra.mrb[96].mxu1 %v7992_v10 }
 0x323   : > { %v5758_v30 = vor.u32 %v5756_v48, %v5755_v39  ;;  %v5760_v0 = vrot.slane %v5755_v39, 4  ;;  %v14732_v16 = vrot.slane %v7567_v42, 1  ;;  %v5767_v52 = vor.u32 %v5765_v23, %v14723_v40  ;;  %7700 = vst.msk [vmem:[#allocation4 + $0x10] sm:$0xff] %vm1523_vm11, %v7630_v15  ;;  %9970 = vmatpush1.bf16.msra.mxu1 %v11994_v53  ;;  %11277 = vmatprep.mubr.msk.bf16.mxu1 %vm1057_vm9, %v14601_v34  ;;  %v5026_v13 = vpop.f32.mrb[184].mxu0  ;;  %v16007_v57 = vld [vmem:[#allocation13_spill] sm:$0xff]  ;;  %v7997_v39 = vld [vmem:[#allocation4 + $0x28] sm:$0xff] }
 0x324   : > { %v5769_v35 = vrot.slane %v14723_v40, 4  ;;  %v11611_v9 = vpack.c.bf16 %v5186_v63, %v5186_v63  ;;  %v14736_v17 = vld [vmem:[#allocation3 + $0x8c] sm:$0xff]   ;;  %v6882_v43 = vsel %vm1720_vm10, %v6879_v47, %v6881_v54  ;;  %v11612_v22 = vpack.c.bf16 %v5187_v51, %v5187_v51  ;;  %v6975_v4 = vld [vmem:[#allocation4 + $0x20] sm:$0xff]  ;;  %9971 = vmatprep.subr.bf16.mxu1 %v15999_v8 }
 0x325   : > { %v5998_v62 = vld [vmem:[#allocation3 + $0xa4] sm:$0xf]  ;;  %v5759_v58 = vsel %vm12587_vm6, %v5751_v55, %v5758_v30  ;;  %v14748_v12 = vld [vmem:[#allocation3 + $0x90] sm:$0xff]   ;;  %v6552_v25 = vor.u32 %v6550_v26, %v14685_v56  ;;  %6950 = vst.msk [vmem:[#allocation4 + $0x38] sm:$0xff] %vm1057_vm9, %v6882_v43  ;;  %v9660_v34 = vrot.slane %v14721_v31, 1  ;;  %v5768_v47 = vsel %vm12587_vm6, %v5760_v0, %v5767_v52  ;;  %v5028_v56 = vpop.f32.mrb[185].mxu0 }
 0x326   : > { %v5999_v59 = vsel %vm12581_vm5, 0, %v5998_v62  ;;  %5915 = vst.msk [vmem:[#allocation3 + $0xac] sm:$0xf] %vm224_vm0, %v5759_v58  ;;  %v5771_v55 = vshrl.u32 %v11611_v9, 16  ;;  %v7903_v7 = vsel %vm1720_vm10, %v7900_v2, %v7902_v18  ;;  %5916 = vst.msk [vmem:[#allocation3 + $0xb0] sm:$0xf] %vm224_vm0, %v5768_v47  ;;  %v5085_v60 = vadd.f32 %v5026_v13, %v16006_v11 }
 0x327   : > { %7237 = vst.msk [vmem:[#allocation4 + $0x20] sm:$0xff] %vm1057_vm9, %v11997_v6  ;;  %6000 = vst [vmem:[#allocation3 + $0xa4] sm:$0xf] %v5999_v59  ;;  %v5774_v50 = vshll.u32 %v11611_v9, 16  ;;  %v7559_v36 = vshll.u32 %v14736_v17, 16  ;;  %v5780_v5 = vshrl.u32 %v11612_v22, 16  ;;  %9972 = vmatpush1.bf16.msra.mxu1 %v12008_v45  ;;  %v9661_v3 = vsel %vm1720_vm10, %v9658_v38, %v9660_v34 }
 0x328   : > { %v6554_v1 = vshll.u32 %v14748_v12, 16  ;;  %v5029_v21 = vpop.f32.mrb[186].mxu0  ;;  %v5773_v32 = vrot.slane %v5771_v55, 7  ;;  %v5783_v48 = vshll.u32 %v11612_v22, 16  ;;  %8627 = vmatmul.mubr.bf16.gmra.mrb[200].mxu0 %v6975_v4  ;;  %v6613_v26 = vpop.permute.xlu1 %6612  ;;  %9973 = vmatprep.subr.bf16.mxu1 %v15999_v8  ;;  %v5140_v63 = vadd.f32 %v14674_v49, %v5085_v60  ;;  %9730 = vst.msk [vmem:[#allocation4 + $0x28] sm:$0xff] %vm1057_vm9, %v9661_v3  ;;  %v14795_v15 = vld [vmem:[#allocation3 + $0x28] sm:$0xff]  }
 0x329   : > { %v5086_v61 = vadd.f32 %v5029_v21, %v16007_v57  ;;  %v5031_v46 = vpop.f32.mrb[187].mxu0  ;;  %v7561_v2 = vrot.slane %v7559_v36, 1  ;;  %v14771_v23 = vrot.slane %v5780_v5, 7  ;;  %v7632_v53 = vpop.permute.xlu0 %7631  ;;  %6681 = vst.msk [vmem:[#allocation4 + $0x30] sm:$0xff] %vm1523_vm11, %v6613_v26  ;;  %v7563_v10 = vshrl.u32 %v14736_v17, 16  ;;  %v14803_v62 = vld [vmem:[#allocation3 + $0x34] sm:$0xff]  }
 0x32a   : > { %v14773_v44 = vrot.slane %v6554_v1, 1  ;;  %v5776_v42 = vor.u32 %v5774_v50, %v5773_v32  ;;  %7701 = vst.msk [vmem:[#allocation4 + $0x20] sm:$0xff] %vm1523_vm11, %v7632_v53  ;;  %v5778_v38 = vrot.slane %v5773_v32, 4  ;;  %v7994_v51 = vld [vmem:[#allocation4 + $0x10] sm:$0xff]  ;;  %v5188_v52 = vmax.f32 %v5140_v63, 0.0  ;;  %v16008_v56 = vld [vmem:[#allocation14_spill] sm:$0xff] }
 0x32b   : > { %v5141_v6 = vadd.f32 %v14674_v49, %v5086_v61  ;;  %v7562_v45 = vsel %vm1254_vm8, %v14726_v14, %v7561_v2  ;;  %v5785_v30 = vor.u32 %v5783_v48, %v14771_v23  ;;  %v7565_v9 = vor.u32 %v7563_v10, %v7561_v2  ;;  %v5034_v43 = vpop.f32.mrb[188].mxu0  ;;  %v14805_v58 = vld [vmem:[#allocation3 + $0x38] sm:$0xff]   ;;  %8250 = vmatmul.mubr.bf16.gmra.mrb[100].mxu1 %v7994_v51  ;;  %v12007_v36 = vld [vmem:[#allocation3 + $0x24] sm:$0xff]   ;;  %v14830_v46 = vld [vmem:[#allocation3 + $0x30] sm:$0xff]  }
 0x32c   : > { %v6557_v0 = vsel %vm1254_vm8, %v6552_v25, %v14773_v44  ;;  %v5777_v27 = vsel %vm12587_vm6, %v5769_v35, %v5776_v42  ;;  %7657 = vrot.lane.b32.xlu0 %v7562_v45, %s12244_s26  ;;  %v6978_v17 = vld [vmem:[#allocation4 + $0x38] sm:$0xff]  ;;  %v5787_v35 = vrot.slane %v14771_v23, 4  ;;  %v5996_v22 = vsel %vm12595_vm7, 0, %v5995_v33  ;;  %v5036_v13 = vpop.f32.mrb[189].mxu0  ;;  %11278 = vmatprep.mubr.msk.bf16.mxu1 %vm1057_vm9, %v7997_v39  ;;  %v16009_v21 = vld [vmem:[#allocation15_spill] sm:$0xff] }
 0x32d   : > { %6640 = vrot.lane.b32.xlu1 %v6557_v0, %s12244_s26  ;;  %v5189_v14 = vmax.f32 %v5141_v6, 0.0  ;;  %5917 = vst.msk [vmem:[#allocation3 + $0xb4] sm:$0xf] %vm224_vm0, %v5777_v27  ;;  %v5786_v40 = vsel %vm12587_vm6, %v5778_v38, %v5785_v30  ;;  %11315 = vmatprep.mubr.msk.bf16.mxu0 %vm1057_vm9, %v6978_v17  ;;  %v6558_v25 = vshrl.u32 %v14748_v12, 16  ;;  %v6004_v4 = vld [vmem:[#allocation3 + $0xb0] sm:$0xf]  ;;  %v11613_v59 = vpack.c.bf16 %v5188_v52, %v5188_v52 }
 0x32e   : > { %7971 = vst.msk [vmem:[#allocation4 + $0x38] sm:$0xff] %vm1057_vm9, %v7903_v7  ;;  %v7570_v47 = vsel %vm1254_vm8, %v7565_v9, %v14732_v16  ;;  %5997 = vst [vmem:[#allocation3 + $0x9c] sm:$0x1] %v5996_v22  ;;  %v5087_v7 = vadd.f32 %v5034_v43, %v16008_v56  ;;  %v5037_v50 = vpop.f32.mrb[190].mxu0  ;;  %v12039_v12 = vld [vmem:[%s15980_s3 + $0xd8] sm:$0xff]   ;;  %v6005_v5 = vsel %vm12581_vm5, 0, %v6004_v4  ;;  %v6615_v1 = vpop.permute.xlu1 %6614  ;;  %9974 = vmatpush1.bf16.msra.mxu1 %v12023_v19 }
 0x32f   : > { %5918 = vst.msk [vmem:[#allocation3 + $0xb8] sm:$0xf] %vm224_vm0, %v5786_v40  ;;  %v11614_v55 = vpack.c.bf16 %v5189_v14, %v5189_v14  ;;  %v5088_v32 = vadd.f32 %v5037_v50, %v16009_v21  ;;  %v5039_v48 = vpop.f32.mrb[191].mxu0  ;;  %6006 = vst [vmem:[#allocation3 + $0xb0] sm:$0xf] %v6005_v5  ;;  %v5789_v11 = vshrl.u32 %v11613_v59, 16  ;;  %9975 = vmatprep.subr.bf16.mxu1 %v15999_v8 }
 0x330   : > { %v5792_v60 = vshll.u32 %v11613_v59, 16  ;;  %7659 = vrot.lane.b32.xlu0 %v7570_v47, %s12244_s26  ;;  %v7571_v61 = vshrl.u32 %v14703_v29, 16  ;;  %6682 = vst.msk [vmem:[#allocation4 + $0x40] sm:$0xff] %vm1523_vm11, %v6615_v1  ;;  %v5142_v2 = vadd.f32 %v14674_v49, %v5087_v7  ;;  %v6977_v53 = vld [vmem:[#allocation4 + $0x30] sm:$0xff]  ;;  %v6883_v39 = vrot.slane %v14795_v15, 1  ;;  %v14836_v3 = vld [vmem:[#allocation3 + $0xa0] sm:$0xff]  }
 0x331   : > { %v5798_v57 = vshrl.u32 %v11614_v55, 16  ;;  %v5801_v33 = vshll.u32 %v11614_v55, 16  ;;  %v5143_v26 = vadd.f32 %v14674_v49, %v5088_v32  ;;  %v6001_v42 = vld [vmem:[#allocation3 + $0xa8] sm:$0x1]  ;;  %v12057_v29 = vld [vmem:[%s15980_s3 + $0xe0] sm:$0xff]   ;;  %v5791_v63 = vrot.slane %v5789_v11, 7  ;;  %8635 = vmatmul.mubr.bf16.gmra.mrb[204].mxu0 %v6977_v53 }
 0x332   : > { %v7904_v6 = vrot.slane %v14803_v62, 1  ;;  %7238 = vst.msk [vmem:[#allocation4 + $0x30] sm:$0xff] %vm1057_vm9, %v12007_v36  ;;  %v9662_v49 = vrot.slane %v14805_v58, 1  ;;  %v6560_v19 = vor.u32 %v6558_v25, %v14773_v44  ;;  %v5190_v38 = vmax.f32 %v5142_v2, 0.0  ;;  %9976 = vmatpush1.bf16.msra.mxu1 %v12039_v12  ;;  %v7996_v52 = vld [vmem:[#allocation4 + $0x20] sm:$0xff]  ;;  %v14853_v14 = vld [vmem:[#allocation3 + $0x3c] sm:$0xff]  }
 0x333   : > { %v14841_v10 = vrot.slane %v5798_v57, 7  ;;  %v5191_v45 = vmax.f32 %v5143_v26, 0.0  ;;  %v6884_v30 = vsel %vm1720_vm10, %v6881_v54, %v6883_v39  ;;  %v5794_v0 = vor.u32 %v5792_v60, %v5791_v63  ;;  %9977 = vmatprep.subr.bf16.mxu1 %v15999_v8  ;;  %8258 = vmatmul.mubr.bf16.gmra.mrb[104].mxu1 %v7996_v52  ;;  %v12015_v25 = vld [vmem:[#allocation3 + $0x2c] sm:$0xff]   ;;  %v14882_v47 = vld [vmem:[#allocation3 + $0x40] sm:$0xff]   ;;  %v14895_v60 = vld [vmem:[#allocation3 + $0x38] sm:$0xff]  }
 0x334   : > { %v5796_v51 = vrot.slane %v5791_v63, 4  ;;  %v7573_v27 = vor.u32 %v7571_v61, %v14732_v16  ;;  %6951 = vst.msk [vmem:[#allocation4 + $0x48] sm:$0xff] %vm1057_vm9, %v6884_v30  ;;  %v11615_v17 = vpack.c.bf16 %v5190_v38, %v5190_v38  ;;  %v9663_v54 = vsel %vm1720_vm10, %v9660_v34, %v9662_v49  ;;  %v5923_v5 = vld [vmem:[#allocation3 + $0xcc] sm:$0x1]  ;;  %v6007_v38 = vld [vmem:[#allocation3 + $0xb4] sm:$0x1] }
 0x335   : > { %v5803_v15 = vor.u32 %v5801_v33, %v14841_v10  ;;  %v7999_v9 = vld [vmem:[#allocation4 + $0x38] sm:$0xff]  ;;  %v11616_v20 = vpack.c.bf16 %v5191_v45, %v5191_v45  ;;  %v6570_v16 = vshll.u32 %v14836_v3, 16  ;;  %v5795_v43 = vsel %vm12587_vm6, %v5787_v35, %v5794_v0 }
 0x336   : > { %v12002_v44 = vld [vmem:[#allocation3 + $0x98] sm:$0xff]   ;;  %11279 = vmatprep.mubr.msk.bf16.mxu1 %vm1057_vm9, %v7999_v9  ;;  %9731 = vst.msk [vmem:[#allocation4 + $0x38] sm:$0xff] %vm1057_vm9, %v9663_v54  ;;  %v6002_v31 = vsel %vm12595_vm7, 0, %v6001_v42  ;;  %v6885_v34 = vrot.slane %v14830_v46, 1  ;;  %v5807_v35 = vshrl.u32 %v11615_v17, 16  ;;  %v7905_v4 = vsel %vm1720_vm10, %v7902_v18, %v7904_v6  ;;  %9978 = vmatpush1.bf16.msra.mxu1 %v12057_v29  ;;  %v14891_v1 = vld [vmem:[#allocation3 + $0xac] sm:$0xff]  }
 0x337   : > { %v5804_v40 = vsel %vm12587_vm6, %v5796_v51, %v5803_v15  ;;  %v14868_v22 = vld [vmem:[#allocation3 + $0x9c] sm:$0xff]   ;;  %5919 = vst.msk [vmem:[#allocation3 + $0xbc] sm:$0xf] %vm224_vm0, %v5795_v43  ;;  %v6562_v23 = vshll.u32 %v12002_v44, 16  ;;  %v5816_v13 = vshrl.u32 %v11616_v20, 16  ;;  %v6979_v59 = vld [vmem:[#allocation4 + $0x40] sm:$0xff]  ;;  %9979 = vmatprep.subr.bf16.mxu1 %v15999_v8 }
 0x338   : > { %5920 = vst.msk [vmem:[#allocation3 + $0xc0] sm:$0xf] %vm224_vm0, %v5804_v40  ;;  %6003 = vst [vmem:[#allocation3 + $0xa8] sm:$0x1] %v6002_v31  ;;  %v5805_v55 = vrot.slane %v14841_v10, 4  ;;  %v7575_v56 = vshll.u32 %v14868_v22, 16  ;;  %v6886_v18 = vsel %vm1720_vm10, %v6883_v39, %v6885_v34 }
 0x339   : > { %v5810_v7 = vshll.u32 %v11615_v17, 16  ;;  %v5819_v50 = vshll.u32 %v11616_v20, 16  ;;  %7239 = vst.msk [vmem:[#allocation4 + $0x40] sm:$0xff] %vm1057_vm9, %v12015_v25  ;;  %v6564_v36 = vrot.slane %v6562_v23, 1  ;;  %v5809_v12 = vrot.slane %v5807_v35, 7  ;;  %6952 = vst.msk [vmem:[#allocation4 + $0x58] sm:$0xff] %vm1057_vm9, %v6886_v18 }
 0x33a   : > { %v5818_v41 = vrot.slane %v5816_v13, 7  ;;  %v7577_v21 = vrot.slane %v7575_v56, 1  ;;  %v6566_v32 = vshrl.u32 %v12002_v44, 16  ;;  %v6572_v48 = vrot.slane %v6570_v16, 1  ;;  %v7634_v53 = vpop.permute.xlu0 %7633  ;;  %v14914_v15 = vld [vmem:[#allocation3 + $0x40] sm:$0xff]   ;;  %v14943_v25 = vld [vmem:[#allocation3 + $0x48] sm:$0xff]  }
 0x33b   : > { %v7906_v11 = vrot.slane %v14853_v14, 1  ;;  %v6565_v57 = vsel %vm1254_vm8, %v6560_v19, %v6564_v36  ;;  %v5812_v61 = vor.u32 %v5810_v7, %v5809_v12  ;;  %v5814_v33 = vrot.slane %v5809_v12, 4  ;;  %v6980_v26 = vld [vmem:[#allocation4 + $0x48] sm:$0xff]  ;;  %7702 = vst.msk [vmem:[#allocation4 + $0x30] sm:$0xff] %vm1523_vm11, %v7634_v53  ;;  %v14941_v31 = vld [vmem:[#allocation3 + $0x44] sm:$0xff]  }
 0x33c   : > { %v5821_v2 = vor.u32 %v5819_v50, %v5818_v41  ;;  %6642 = vrot.lane.b32.xlu1 %v6565_v57, %s12244_s26  ;;  %v7578_v39 = vsel %vm1254_vm8, %v7573_v27, %v7577_v21  ;;  %v5823_v42 = vrot.slane %v5818_v41, 4  ;;  %7972 = vst.msk [vmem:[#allocation4 + $0x48] sm:$0xff] %vm1057_vm9, %v7905_v4  ;;  %11316 = vmatprep.mubr.msk.bf16.mxu0 %vm1057_vm9, %v6980_v26  ;;  %v6617_v29 = vpop.permute.xlu1 %6616  ;;  %v9664_v10 = vrot.slane %v14882_v47, 1  ;;  %v14904_v19 = vld [vmem:[#allocation3 + $0x48] sm:$0xff]   ;;  %v12070_v50 = vld [vmem:[#allocation3 + $0x60] sm:$0xff]   ;;  %v14968_v57 = vld [vmem:[#allocation3 + $0x50] sm:$0xff]  }
 0x33d   : > { %v6568_v63 = vor.u32 %v6566_v32, %v6564_v36  ;;  %7661 = vrot.lane.b32.xlu0 %v7578_v39, %s12244_s26  ;;  %v5813_v45 = vsel %vm12587_vm6, %v5805_v55, %v5812_v61  ;;  %6683 = vst.msk [vmem:[#allocation4 + $0x50] sm:$0xff] %vm1523_vm11, %v6617_v29  ;;  %8643 = vmatmul.mubr.bf16.gmra.mrb[208].mxu0 %v6979_v59  ;;  %v6574_v0 = vshrl.u32 %v14836_v3, 16  ;;  %v7591_v51 = vshll.u32 %v14891_v1, 16  ;;  %v14950_v55 = vld [vmem:[#allocation3 + $0x4c] sm:$0xff]   ;;  %v14978_v39 = vld [vmem:[#allocation3 + $0x58] sm:$0xff]  }
 0x33e   : > { %v5822_v30 = vsel %vm12587_vm6, %v5814_v33, %v5821_v2  ;;  %v6010_v27 = vld [vmem:[#allocation3 + $0xbc] sm:$0xf]  ;;  %5921 = vst.msk [vmem:[#allocation3 + $0xc4] sm:$0xf] %vm224_vm0, %v5813_v45  ;;  %v5924_v9 = vsel %vm12595_vm7, %v5823_v42, %v5923_v5  ;;  %v7907_v20 = vsel %vm1720_vm10, %v7904_v6, %v7906_v11  ;;  %v7636_v54 = vpop.permute.xlu0 %7635  ;;  %v7579_v43 = vshrl.u32 %v14868_v22, 16  ;;  %v12019_v22 = vld [vmem:[#allocation3 + $0x34] sm:$0xff]  }
 0x33f   : > { %v6013_v52 = vld [vmem:[#allocation3 + $0xc0] sm:$0x1]  ;;  %5922 = vst.msk [vmem:[#allocation3 + $0xc8] sm:$0xf] %vm224_vm0, %v5822_v30  ;;  %v6573_v28 = vsel %vm1254_vm8, %v6568_v63, %v6572_v48  ;;  %v6011_v44 = vsel %vm12581_vm5, 0, %v6010_v27  ;;  %v12012_v17 = vld [vmem:[#allocation3 + $0xa4] sm:$0xff]   ;;  %v6576_v40 = vor.u32 %v6574_v0, %v6572_v48  ;;  %v9665_v62 = vsel %vm1720_vm10, %v9662_v49, %v9664_v10 }
 0x340   : > { %v6014_v3 = vsel %vm12595_vm7, 0, %v6013_v52  ;;  %5925 = vst [vmem:[#allocation3 + $0xcc] sm:$0x1] %v5924_v9  ;;  %v14930_v16 = vld [vmem:[#allocation3 + $0xa8] sm:$0xff]   ;;  %6012 = vst [vmem:[#allocation3 + $0xbc] sm:$0xf] %v6011_v44  ;;  %6644 = vrot.lane.b32.xlu1 %v6573_v28, %s12244_s26  ;;  %v7581_v58 = vor.u32 %v7579_v43, %v7577_v21 }
 0x341   : > { %6015 = vst [vmem:[#allocation3 + $0xc0] sm:$0x1] %v6014_v3  ;;  %7703 = vst.msk [vmem:[#allocation4 + $0x40] sm:$0xff] %vm1523_vm11, %v7636_v54  ;;  %v6887_v6 = vrot.slane %v14895_v60, 1  ;;  %v7583_v23 = vshll.u32 %v12012_v17, 16  ;;  %v6982_v35 = vld [vmem:[#allocation4 + $0x58] sm:$0xff]  ;;  %v6619_v49 = vpop.permute.xlu1 %6618 }
 0x342   : > { %v6578_v13 = vshll.u32 %v14930_v16, 16  ;;  %v14946_v4 = vrot.slane %v7591_v51, 1  ;;  %v6008_v59 = vsel %vm12595_vm7, 0, %v6007_v38  ;;  %7973 = vst.msk [vmem:[#allocation4 + $0x58] sm:$0xff] %vm1057_vm9, %v7907_v20  ;;  %11317 = vmatprep.mubr.msk.bf16.mxu0 %vm1057_vm9, %v6982_v35  ;;  %v9666_v7 = vrot.slane %v14904_v19, 1  ;;  %v7998_v41 = vld [vmem:[#allocation4 + $0x30] sm:$0xff] }
 0x343   : > { %v6888_v56 = vsel %vm1720_vm10, %v6885_v34, %v6887_v6  ;;  %6009 = vst [vmem:[#allocation3 + $0xb4] sm:$0x1] %v6008_v59  ;;  %v7585_v36 = vrot.slane %v7583_v23, 1  ;;  %v8001_v5 = vld [vmem:[#allocation4 + $0x48] sm:$0xff]  ;;  %6684 = vst.msk [vmem:[#allocation4 + $0x60] sm:$0xff] %vm1523_vm11, %v6619_v49  ;;  %v7587_v18 = vshrl.u32 %v12012_v17, 16  ;;  %8266 = vmatmul.mubr.bf16.gmra.mrb[108].mxu1 %v7998_v41  ;;  %v7638_v34 = vpop.permute.xlu0 %7637 }
 0x344   : > { %v14958_v12 = vrot.slane %v6578_v13, 1  ;;  %6953 = vst.msk [vmem:[#allocation4 + $0x68] sm:$0xff] %vm1057_vm9, %v6888_v56  ;;  %v6889_v21 = vrot.slane %v14914_v15, 1  ;;  %9732 = vst.msk [vmem:[#allocation4 + $0x48] sm:$0xff] %vm1057_vm9, %v9665_v62  ;;  %v6981_v46 = vld [vmem:[#allocation4 + $0x50] sm:$0xff]  ;;  %v7908_v32 = vrot.slane %v14941_v31, 1  ;;  %11280 = vmatprep.mubr.msk.bf16.mxu1 %vm1057_vm9, %v8001_v5  ;;  %v9667_v0 = vsel %vm1720_vm10, %v9664_v10, %v9666_v7 }
 0x345   : > { %v6891_v48 = vrot.slane %v14943_v25, 1  ;;  %v14966_v60 = vld [vmem:[#allocation3 + $0x54] sm:$0xff]   ;;  %6226 = vst.msk [vmem:[#allocation4 + $0xc0] sm:$0xff] %vm1057_vm9, %v12070_v50  ;;  %v7586_v33 = vsel %vm1254_vm8, %v7581_v58, %v7585_v36  ;;  %7240 = vst.msk [vmem:[#allocation4 + $0x50] sm:$0xff] %vm1057_vm9, %v12019_v22  ;;  %v7589_v26 = vor.u32 %v7587_v18, %v7585_v36  ;;  %8651 = vmatmul.mubr.bf16.gmra.mrb[212].mxu0 %v6981_v46  ;;  %v6582_v63 = vshrl.u32 %v14930_v16, 16  ;;  %v15000_v27 = vld [vmem:[#allocation3 + $0x5c] sm:$0xff]  }
 0x346   : > { %v6016_v61 = vld [vmem:[#allocation3 + $0xc8] sm:$0xf]  ;;  %v6581_v2 = vsel %vm1254_vm8, %v6576_v40, %v14958_v12  ;;  %v14976_v53 = vld [vmem:[#allocation3 + $0x50] sm:$0xff]   ;;  %7663 = vrot.lane.b32.xlu0 %v7586_v33, %s12244_s26  ;;  %7704 = vst.msk [vmem:[#allocation4 + $0x50] sm:$0xff] %vm1523_vm11, %v7638_v34  ;;  %v6890_v38 = vsel %vm1720_vm10, %v6887_v6, %v6889_v21  ;;  %v7910_v51 = vrot.slane %v14950_v55, 1  ;;  %v7909_v37 = vsel %vm1720_vm10, %v7906_v11, %v7908_v32  ;;  %v12030_v52 = vld [vmem:[#allocation3 + $0x3c] sm:$0xff]  }
 0x347   : > { %v6017_v42 = vsel %vm12581_vm5, 0, %v6016_v61  ;;  %v6019_v29 = vld [vmem:[#allocation3 + $0xcc] sm:$0x1]  ;;  %6646 = vrot.lane.b32.xlu1 %v6581_v2, %s12244_s26  ;;  %v7594_v30 = vsel %vm1254_vm8, %v7589_v26, %v14946_v4  ;;  %6954 = vst.msk [vmem:[#allocation4 + $0x78] sm:$0xff] %vm1057_vm9, %v6890_v38  ;;  %v14998_v15 = vld [vmem:[#allocation3 + $0xb8] sm:$0xff]   ;;  %v6892_v47 = vsel %vm1720_vm10, %v6889_v21, %v6891_v48  ;;  %v6893_v10 = vrot.slane %v14968_v57, 1 }
 0x348   : > { %6018 = vst [vmem:[#allocation3 + $0xc8] sm:$0xf] %v6017_v42  ;;  %v6020_v45 = vsel %vm12595_vm7, 0, %v6019_v29  ;;  %v8000_v24 = vld [vmem:[#allocation4 + $0x40] sm:$0xff]  ;;  %v15005_v9 = vld [vmem:[#allocation3 + $0xbc] sm:$0xff]   ;;  %v7595_v3 = vshrl.u32 %v14891_v1, 16  ;;  %v6621_v17 = vpop.permute.xlu1 %6620  ;;  %v6584_v43 = vor.u32 %v6582_v63, %v14958_v12  ;;  %v7911_v35 = vsel %vm1720_vm10, %v7908_v32, %v7910_v51 }
 0x349   : > { %6021 = vst [vmem:[#allocation3 + $0xcc] sm:$0x1] %v6020_v45  ;;  %v8003_v28 = vld [vmem:[#allocation4 + $0x58] sm:$0xff]  ;;  %v6594_v20 = vshll.u32 %v14998_v15, 16  ;;  %6955 = vst.msk [vmem:[#allocation4 + $0x88] sm:$0xff] %vm1057_vm9, %v6892_v47  ;;  %v7607_v54 = vshll.u32 %v15005_v9, 16  ;;  %v6894_v1 = vsel %vm1720_vm10, %v6891_v48, %v6893_v10 }
 0x34a   : > { %v12025_v44 = vld [vmem:[#allocation3 + $0xb0] sm:$0xff]   ;;  %7665 = vrot.lane.b32.xlu0 %v7594_v30, %s12244_s26  ;;  %9733 = vst.msk [vmem:[#allocation4 + $0x58] sm:$0xff] %vm1057_vm9, %v9667_v0  ;;  %v7912_v16 = vrot.slane %v14966_v60, 1  ;;  %v6983_v62 = vld [vmem:[#allocation4 + $0x60] sm:$0xff]  ;;  %v9668_v6 = vrot.slane %v14976_v53, 1  ;;  %v9670_v31 = vrot.slane %v14978_v39, 1  ;;  %v7597_v12 = vor.u32 %v7595_v3, %v14946_v4 }
 0x34b   : > { %v6984_v14 = vld [vmem:[#allocation4 + $0x68] sm:$0xff]  ;;  %v12026_v11 = vld [vmem:[#allocation3 + $0xb4] sm:$0xff]   ;;  %6685 = vst.msk [vmem:[#allocation4 + $0x70] sm:$0xff] %vm1523_vm11, %v6621_v17  ;;  %v6586_v40 = vshll.u32 %v12025_v44, 16  ;;  %v15026_v25 = vld [vmem:[#allocation3 + $0x60] sm:$0xff]   ;;  %8274 = vmatmul.mubr.bf16.gmra.mrb[112].mxu1 %v8000_v24  ;;  %v6590_v13 = vshrl.u32 %v12025_v44, 16 }
 0x34c   : > { %7974 = vst.msk [vmem:[#allocation4 + $0x68] sm:$0xff] %vm1057_vm9, %v7909_v37  ;;  %11318 = vmatprep.mubr.msk.bf16.mxu0 %vm1057_vm9, %v6984_v14  ;;  %6956 = vst.msk [vmem:[#allocation4 + $0x98] sm:$0xff] %vm1057_vm9, %v6894_v1  ;;  %v7599_v23 = vshll.u32 %v12026_v11, 16  ;;  %v12038_v22 = vld [vmem:[#allocation3 + $0xc0] ss:$0 sps:$4 sm:$0x11]   ;;  %11281 = vmatprep.mubr.msk.bf16.mxu1 %vm1057_vm9, %v8003_v28  ;;  %v7913_v21 = vsel %vm1720_vm10, %v7910_v51, %v7912_v16  ;;  %v9669_v4 = vsel %vm1720_vm10, %v9666_v7, %v9668_v6 }
 0x34d   : > { %7241 = vst.msk [vmem:[#allocation4 + $0x60] sm:$0xff] %vm1057_vm9, %v12030_v52  ;;  %v6598_v59 = vshrl.u32 %v14998_v15, 16  ;;  %v15031_v55 = vld [vmem:[#allocation3 + $0x18] sm:$0xff]   ;;  %v6588_v58 = vrot.slane %v6586_v40, 1  ;;  %8659 = vmatmul.mubr.bf16.gmra.mrb[216].mxu0 %v6983_v62  ;;  %v6596_v49 = vrot.slane %v6594_v20, 1  ;;  %v7603_v56 = vshrl.u32 %v12026_v11, 16 }
 0x34e   : > { %v7914_v50 = vrot.slane %v15000_v27, 1  ;;  %v15035_v36 = vld [vmem:[#allocation3 + $0x28] sm:$0xff]   ;;  %v7601_v41 = vrot.slane %v7599_v23, 1  ;;  %v6986_v5 = vld [vmem:[#allocation4 + $0x78] sm:$0xff]  ;;  %v7609_v18 = vrot.slane %v7607_v54, 1  ;;  %v6602_v61 = vshll.u32 %v12038_v22, 16 }
 0x34f   : > { %v12037_v46 = vld [vmem:[#allocation3 + $0x44] sm:$0xff]   ;;  %v6589_v48 = vsel %vm1254_vm8, %v6584_v43, %v6588_v58  ;;  %7975 = vst.msk [vmem:[#allocation4 + $0x78] sm:$0xff] %vm1057_vm9, %v7911_v35  ;;  %11319 = vmatprep.mubr.msk.bf16.mxu0 %vm1057_vm9, %v6986_v5  ;;  %v6592_v60 = vor.u32 %v6590_v13, %v6588_v58  ;;  %v15054_v38 = vld [vmem:[#allocation3 + $0x58] sm:$0xff]   ;;  %v7611_v45 = vshrl.u32 %v15005_v9, 16  ;;  %v9672_v24 = vrot.slane %v15026_v25, 1  ;;  %v15061_v0 = vld [vmem:[#allocation3 + $0x30] sm:$0xff]  }
 0x350   : > { %v12043_v34 = vld [vmem:[#allocation3 + $0xc4] sm:$0xff]   ;;  %v12046_v33 = vld [vmem:[#allocation3 + $0xcc] ss:$0 sps:$4 sm:$0x11]   ;;  %6648 = vrot.lane.b32.xlu1 %v6589_v48, %s12244_s26  ;;  %v7602_v2 = vsel %vm1254_vm8, %v7597_v12, %v7601_v41  ;;  %v7605_v26 = vor.u32 %v7603_v56, %v7601_v41  ;;  %v7915_v63 = vsel %vm1720_vm10, %v7912_v16, %v7914_v50  ;;  %v9194_v47 = vshll.u32 %v15031_v55, 16  ;;  %v8002_v28 = vld [vmem:[#allocation4 + $0x50] sm:$0xff] }
 0x351   : > { %v15039_v32 = vld [vmem:[#allocation3 + $0x20] sm:$0xff]   ;;  %v6988_v42 = vld [vmem:[#allocation4 + $0x88] sm:$0xff]  ;;  %v7615_v29 = vshll.u32 %v12043_v34, 16  ;;  %7667 = vrot.lane.b32.xlu0 %v7602_v2, %s12244_s26  ;;  %v6597_v19 = vsel %vm1254_vm8, %v6592_v60, %v6596_v49  ;;  %v7623_v30 = vshll.u32 %v12046_v33, 16  ;;  %v6600_v44 = vor.u32 %v6598_v59, %v6596_v49  ;;  %v15080_v1 = vld [vmem:[#allocation3 + $0x38] sm:$0xff]  }
 0x352   : > { %v6985_v7 = vld [vmem:[#allocation4 + $0x70] sm:$0xff]  ;;  %7976 = vst.msk [vmem:[#allocation4 + $0x88] sm:$0xff] %vm1057_vm9, %v7913_v21  ;;  %v7610_v15 = vsel %vm1254_vm8, %v7605_v26, %v7609_v18  ;;  %v6604_v9 = vrot.slane %v6602_v61, 1  ;;  %v7619_v3 = vshrl.u32 %v12043_v34, 16  ;;  %v9207_v17 = vshll.u32 %v15035_v36, 16  ;;  %v15071_v20 = vld [vmem:[#allocation3 + $0x64] sm:$0xff]  }
 0x353   : > { %v8005_v51 = vld [vmem:[#allocation4 + $0x68] sm:$0xff]  ;;  %7242 = vst.msk [vmem:[#allocation4 + $0x70] sm:$0xff] %vm1057_vm9, %v12037_v46  ;;  %v7617_v37 = vrot.slane %v7615_v29, 1  ;;  %v15065_v52 = vld [vmem:[#allocation4 + $0x98] sm:$0xff]  ;;  %v7640_v14 = vpop.permute.xlu0 %7639  ;;  %8282 = vmatmul.mubr.bf16.gmra.mrb[116].mxu1 %v8002_v28  ;;  %v9671_v11 = vsel %vm1720_vm10, %v9668_v6, %v9670_v31  ;;  %v7613_v54 = vor.u32 %v7611_v45, %v7609_v18  ;;  %v9199_v16 = vshll.u32 %v15039_v32, 16  ;;  %v12076_v12 = vld [vmem:[%s15980_s3 + $0xe8] sm:$0xff]  }
 0x354   : > { %9734 = vst.msk [vmem:[#allocation4 + $0x68] sm:$0xff] %vm1057_vm9, %v9669_v4  ;;  %7977 = vst.msk [vmem:[#allocation4 + $0x98] sm:$0xff] %vm1057_vm9, %v7915_v63  ;;  %6650 = vrot.lane.b32.xlu1 %v6597_v19, %s12244_s26  ;;  %v15082_v43 = vld [vmem:[#allocation3 + $0x68] sm:$0xff]   ;;  %11282 = vmatprep.mubr.msk.bf16.mxu1 %vm1057_vm9, %v8005_v51  ;;  %v6623_v40 = vpop.permute.xlu1 %6622  ;;  %v6895_v23 = vrot.slane %v15054_v38, 1  ;;  %v15088_v53 = vld [vmem:[#allocation3 + $0x40] sm:$0xff]   ;;  %v7625_v22 = vrot.slane %v7623_v30, 1  ;;  %v9673_v59 = vsel %vm1720_vm10, %v9670_v31, %v9672_v24 }
 0x355   : > { %7705 = vst.msk [vmem:[#allocation4 + $0x60] sm:$0xff] %vm1523_vm11, %v7640_v14  ;;  %7669 = vrot.lane.b32.xlu0 %v7610_v15, %s12244_s26  ;;  %v7621_v62 = vor.u32 %v7619_v3, %v7617_v37  ;;  %v15090_v6 = vld [vmem:[#allocation3 + $0x60] sm:$0xff]   ;;  %6686 = vst.msk [vmem:[#allocation4 + $0x80] sm:$0xff] %vm1523_vm11, %v6623_v40  ;;  %8667 = vmatmul.mubr.bf16.gmra.mrb[220].mxu0 %v6985_v7  ;;  %v7618_v13 = vsel %vm1254_vm8, %v7613_v54, %v7617_v37  ;;  %v9196_v58 = vrot.slane %v9194_v47, 1  ;;  %v15099_v49 = vld [vmem:[#allocation3 + $0x48] sm:$0xff]  }
 0x356   : > { %v8007_v35 = vld [vmem:[#allocation4 + $0x78] sm:$0xff]  ;;  %v15101_v56 = vld [vmem:[#allocation3 + $0x50] sm:$0xff]   ;;  %11320 = vmatprep.mubr.msk.bf16.mxu0 %vm1057_vm9, %v6988_v42  ;;  %v6605_v41 = vsel %vm1254_vm8, %v6600_v44, %v6604_v9  ;;  %v9209_v5 = vrot.slane %v9207_v17, 1  ;;  %v9215_v39 = vshll.u32 %v15061_v0, 16  ;;  %v6896_v31 = vsel %vm1720_vm10, %v6893_v10, %v6895_v23  ;;  %9980 = vmatpush1.bf16.msra.mxu1 %v12076_v12  ;;  %v12080_v37 = vld [vmem:[#allocation3 + $0x68] sm:$0xff]  }
 0x357   : > { %9735 = vst.msk [vmem:[#allocation4 + $0x78] sm:$0xff] %vm1057_vm9, %v9671_v11  ;;  %v7642_v18 = vpop.permute.xlu0 %7641  ;;  %v9192_v46 = vshrl.u32 %v15031_v55, 16  ;;  %v9201_v34 = vrot.slane %v9199_v16, 1  ;;  %6957 = vst.msk [vmem:[#allocation4 + $0xa8] sm:$0xff] %vm1057_vm9, %v6896_v31  ;;  %v9674_v48 = vrot.slane %v15082_v43, 1  ;;  %v7626_v57 = vsel %vm1254_vm8, %v7621_v62, %v7625_v22  ;;  %v15127_v60 = vld [vmem:[#allocation3 + $0x6c] sm:$0xff]   ;;  %9981 = vmatprep.subr.bf16.mxu1 %v15999_v8 }
 0x358   : > { %6652 = vrot.lane.b32.xlu1 %v6605_v41, %s12244_s26  ;;  %7706 = vst.msk [vmem:[#allocation4 + $0x70] sm:$0xff] %vm1523_vm11, %v7642_v18  ;;  %v9211_v10 = vshrl.u32 %v15035_v36, 16  ;;  %v7916_v4 = vrot.slane %v15071_v20, 1  ;;  %v12042_v55 = vld [vmem:[#allocation3 + $0x4c] sm:$0xff]   ;;  %v9203_v33 = vshrl.u32 %v15039_v32, 16  ;;  %v9223_v2 = vshll.u32 %v15080_v1, 16 }
 0x359   : > { %v15116_v21 = vld [vmem:[#allocation4 + $0x88] sm:$0xff]  ;;  %7671 = vrot.lane.b32.xlu0 %v7618_v13, %s12244_s26  ;;  %v9197_v61 = vor.u32 %v9196_v58, %v9192_v46  ;;  %v9675_v36 = vsel %vm1720_vm10, %v9672_v24, %v9674_v48  ;;  %v15139_v42 = vld [vmem:[#allocation3 + $0x58] sm:$0xff]   ;;  %v9217_v19 = vrot.slane %v9215_v39, 1  ;;  %v9231_v7 = vshll.u32 %v15088_v53, 16  ;;  %v15164_v14 = vld [vmem:[#allocation3 + $0x60] sm:$0xff]   ;;  %6227 = vst.msk [vmem:[#allocation4 + $0xd0] sm:$0xff] %vm1057_vm9, %v12080_v37 }
 0x35a   : > { %9736 = vst.msk [vmem:[#allocation4 + $0x88] sm:$0xff] %vm1057_vm9, %v9673_v59  ;;  %v6625_v29 = vpop.permute.xlu1 %6624  ;;  %v9213_v63 = vor.u32 %v9211_v10, %v9209_v5  ;;  %v6897_v32 = vrot.slane %v15090_v6, 1  ;;  %v15144_v45 = vld [vmem:[#allocation3 + $0x70] sm:$0xff]   ;;  %v9205_v24 = vor.u32 %v9203_v33, %v9201_v34  ;;  %v9239_v51 = vshll.u32 %v15099_v49, 16  ;;  %v15171_v11 = vld [vmem:[#allocation3 + $0x68] sm:$0xff]   ;;  %v15193_v46 = vld [vmem:[#allocation3 + $0x78] sm:$0xff]  }
 0x35b   : > { %v15132_v26 = vld [vmem:[#allocation4 + $0x98] sm:$0xff]  ;;  %6687 = vst.msk [vmem:[#allocation4 + $0x90] sm:$0xff] %vm1523_vm11, %v6625_v29  ;;  %v9202_v25 = vsel %vm1254_vm8, %v9197_v61, %v9201_v34  ;;  %v9247_v15 = vshll.u32 %v15101_v56, 16  ;;  %v7917_v44 = vsel %vm1720_vm10, %v7914_v50, %v7916_v4  ;;  %v9219_v9 = vshrl.u32 %v15061_v0, 16  ;;  %v15180_v62 = vld [vmem:[#allocation3 + $0x68] sm:$0xff]   ;;  %v15186_v59 = vld [vmem:[#allocation3 + $0x70] sm:$0xff]  }
 0x35c   : > { %9737 = vst.msk [vmem:[#allocation4 + $0x98] sm:$0xff] %vm1057_vm9, %v9675_v36  ;;  %v8004_v30 = vld [vmem:[#allocation4 + $0x60] sm:$0xff]  ;;  %7673 = vrot.lane.b32.xlu1 %v7626_v57, %s12244_s26  ;;  %v9227_v3 = vshrl.u32 %v15080_v1, 16  ;;  %v6898_v17 = vsel %vm1720_vm10, %v6895_v23, %v6897_v32  ;;  %v9210_v27 = vsel %vm1254_vm8, %v9205_v24, %v9209_v5  ;;  %v9225_v50 = vrot.slane %v9223_v2, 1  ;;  %v12055_v23 = vld [vmem:[#allocation3 + $0x54] sm:$0xff]  }
 0x35d   : > { %8290 = vmatmul.mubr.bf16.gmra.mrb[120].mxu1 %v8004_v30  ;;  %v6987_v47 = vld [vmem:[#allocation4 + $0x80] sm:$0xff]  ;;  %v7644_v28 = vpop.permute.xlu0 %7643  ;;  %9387 = vrot.lane.b32.xlu0 %v9202_v25, %s12244_s26  ;;  %6958 = vst.msk [vmem:[#allocation4 + $0xb8] sm:$0xff] %vm1057_vm9, %v6898_v17  ;;  %v9255_v0 = vshll.u32 %v15139_v42, 16  ;;  %v9218_v38 = vsel %vm1254_vm8, %v9213_v63, %v9217_v19  ;;  %v9233_v16 = vrot.slane %v9231_v7, 1  ;;  %v9235_v1 = vshrl.u32 %v15088_v53, 16  ;;  %v15191_v18 = vld [vmem:[#allocation3 + $0x74] sm:$0xff]  }
 0x35e   : > { %11283 = vmatprep.mubr.msk.bf16.mxu1 %vm1057_vm9, %v8007_v35  ;;  %7243 = vst.msk [vmem:[#allocation4 + $0x80] sm:$0xff] %vm1057_vm9, %v12042_v55  ;;  %8675 = vmatmul.mubr.bf16.gmra.mrb[224].mxu0 %v6987_v47  ;;  %v6992_v54 = vld [vmem:[#allocation4 + $0xa8] sm:$0xff]  ;;  %v7918_v40 = vrot.slane %v15127_v60, 1  ;;  %v9241_v35 = vrot.slane %v9239_v51, 1  ;;  %v9243_v13 = vshrl.u32 %v15099_v49, 16  ;;  %v9249_v22 = vrot.slane %v9247_v15, 1 }
 0x35f   : > { %7707 = vst.msk [vmem:[#allocation4 + $0x80] sm:$0xff] %vm1523_vm11, %v7644_v28  ;;  %11321 = vmatprep.mubr.msk.bf16.mxu0 %vm1057_vm9, %v15065_v52  ;;  %v9251_v52 = vshrl.u32 %v15101_v56, 16  ;;  %v9221_v53 = vor.u32 %v9219_v9, %v9217_v19  ;;  %v9676_v58 = vrot.slane %v15144_v45, 1  ;;  %v9259_v12 = vshrl.u32 %v15139_v42, 16  ;;  %v8006_v41 = vld [vmem:[#allocation4 + $0x70] sm:$0xff]  ;;  %v15210_v36 = vld [vmem:[#allocation3 + $0x80] sm:$0xff]  }
 0x360   : > { %9389 = vrot.lane.b32.xlu1 %v9210_v27, %s12244_s26  ;;  %7978 = vst.msk [vmem:[#allocation4 + $0xa8] sm:$0xff] %vm1057_vm9, %v7917_v44  ;;  %v9229_v39 = vor.u32 %v9227_v3, %v9225_v50  ;;  %v9257_v31 = vrot.slane %v9255_v0, 1  ;;  %v9237_v34 = vor.u32 %v9235_v1, %v9233_v16  ;;  %v7919_v57 = vsel %vm1720_vm10, %v7916_v4, %v7918_v40  ;;  %v15203_v55 = vld [vmem:[#allocation3 + $0x78] sm:$0xff]   ;;  %v15217_v29 = vld [vmem:[#allocation3 + $0x88] sm:$0xff]   ;;  %v15243_v28 = vld [vmem:[#allocation3 + $0x90] sm:$0xff]  }
 0x361   : > { %9391 = vrot.lane.b32.xlu0 %v9218_v38, %s12244_s26  ;;  %v6627_v5 = vpop.permute.xlu1 %6626  ;;  %v9226_v56 = vsel %vm1254_vm8, %v9221_v53, %v9225_v50  ;;  %v9263_v10 = vshll.u32 %v15164_v14, 16  ;;  %v9267_v33 = vshrl.u32 %v15164_v14, 16  ;;  %v6899_v2 = vrot.slane %v15171_v11, 1  ;;  %v12065_v45 = vld [vmem:[#allocation3 + $0x5c] sm:$0xff]  }
 0x362   : > { %6688 = vst.msk [vmem:[#allocation4 + $0xa0] sm:$0xff] %vm1523_vm11, %v6627_v5  ;;  %v6989_v49 = vld [vmem:[#allocation4 + $0x90] sm:$0xff]  ;;  %v9234_v61 = vsel %vm1254_vm8, %v9229_v39, %v9233_v16  ;;  %v9677_v4 = vsel %vm1720_vm10, %v9674_v48, %v9676_v58  ;;  %v9271_v42 = vshll.u32 %v15180_v62, 16  ;;  %v9245_v63 = vor.u32 %v9243_v13, %v9241_v35 }
 0x363   : > { %7244 = vst.msk [vmem:[#allocation4 + $0x90] sm:$0xff] %vm1057_vm9, %v12055_v23  ;;  %v9275_v19 = vshrl.u32 %v15180_v62, 16  ;;  %v9279_v7 = vshll.u32 %v15186_v59, 16  ;;  %v6900_v43 = vsel %vm1720_vm10, %v6897_v32, %v6899_v2  ;;  %v15229_v48 = vld [vmem:[#allocation3 + $0x70] sm:$0xff]   ;;  %v9265_v25 = vrot.slane %v9263_v10, 1 }
 0x364   : > { %9393 = vrot.lane.b32.xlu1 %v9226_v56, %s12244_s26  ;;  %v6994_v20 = vld [vmem:[#allocation4 + $0xb8] sm:$0xff]  ;;  %6959 = vst.msk [vmem:[#allocation4 + $0xc8] sm:$0xff] %vm1057_vm9, %v6900_v43  ;;  %v9250_v24 = vsel %vm1254_vm8, %v9245_v63, %v9249_v22  ;;  %v9261_v6 = vor.u32 %v9259_v12, %v9257_v31  ;;  %v7920_v32 = vrot.slane %v15191_v18, 1  ;;  %v9678_v51 = vrot.slane %v15193_v46, 1  ;;  %v12089_v43 = vld [vmem:[#allocation3 + $0xa8] sm:$0xff]  }
 0x365   : > { %8298 = vmatmul.mubr.bf16.gmra.mrb[124].mxu1 %v8006_v41  ;;  %9395 = vrot.lane.b32.xlu0 %v9234_v61, %s12244_s26  ;;  %7979 = vst.msk [vmem:[#allocation4 + $0xb8] sm:$0xff] %vm1057_vm9, %v7919_v57  ;;  %v9253_v15 = vor.u32 %v9251_v52, %v9249_v22  ;;  %v9273_v37 = vrot.slane %v9271_v42, 1  ;;  %v9287_v47 = vshll.u32 %v15203_v55, 16  ;;  %v9281_v3 = vrot.slane %v9279_v7, 1  ;;  %v12071_v57 = vld [vmem:[#allocation3 + $0x64] sm:$0xff]   ;;  %v12087_v61 = vld [vmem:[#allocation3 + $0x70] sm:$0xff]  }
 0x366   : > { %11284 = vmatprep.mubr.msk.bf16.mxu1 %vm1057_vm9, %v15116_v21  ;;  %8683 = vmatmul.mubr.bf16.gmra.mrb[228].mxu0 %v6989_v49  ;;  %v9242_v21 = vsel %vm1254_vm8, %v9237_v34, %v9241_v35  ;;  %v8008_v44 = vld [vmem:[#allocation4 + $0x80] sm:$0xff]  ;;  %v9295_v17 = vshll.u32 %v15210_v36, 16  ;;  %v9283_v27 = vshrl.u32 %v15186_v59, 16  ;;  %v9679_v50 = vsel %vm1720_vm10, %v9676_v58, %v9678_v51  ;;  %v15276_v58 = vld [vmem:[#allocation3 + $0x7c] sm:$0xff]   ;;  %6228 = vst.msk [vmem:[#allocation4 + $0xe0] sm:$0xff] %vm1057_vm9, %v12087_v61 }
 0x367   : > { %11322 = vmatprep.mubr.msk.bf16.mxu0 %vm1057_vm9, %v6992_v54  ;;  %v15233_v30 = vld [vmem:[#allocation4 + $0xa8] sm:$0xff]  ;;  %v9258_v14 = vsel %vm1254_vm8, %v9253_v15, %v9257_v31  ;;  %v9303_v0 = vshll.u32 %v15217_v29, 16  ;;  %v9266_v54 = vsel %vm1254_vm8, %v9261_v6, %v9265_v25  ;;  %v7921_v16 = vsel %vm1720_vm10, %v7918_v40, %v7920_v32  ;;  %v12085_v49 = vld [vmem:[#allocation3 + $0x98] sm:$0xff]   ;;  %v15289_v34 = vld [vmem:[#allocation3 + $0x80] sm:$0xff]  }
 0x368   : > { %9397 = vrot.lane.b32.xlu1 %v9242_v21, %s12244_s26  ;;  %9738 = vst.msk [vmem:[#allocation4 + $0xa8] sm:$0xff] %vm1057_vm9, %v9677_v4  ;;  %v9291_v1 = vshrl.u32 %v15203_v55, 16  ;;  %v6901_v62 = vrot.slane %v15229_v48, 1  ;;  %v9269_v35 = vor.u32 %v9267_v33, %v9265_v25  ;;  %v9289_v13 = vrot.slane %v9287_v47, 1  ;;  %v15308_v6 = vld [vmem:[#allocation3 + $0xb0] sm:$0xff]  }
 0x369   : > { %9399 = vrot.lane.b32.xlu0 %v9250_v24, %s12244_s26  ;;  %v6991_v9 = vld [vmem:[#allocation4 + $0xa0] sm:$0xff]  ;;  %v9277_v60 = vor.u32 %v9275_v19, %v9273_v37  ;;  %v9297_v52 = vrot.slane %v9295_v17, 1  ;;  %v9299_v59 = vshrl.u32 %v15210_v36, 16  ;;  %v9285_v12 = vor.u32 %v9283_v27, %v9281_v3 }
 0x36a   : > { %7245 = vst.msk [vmem:[#allocation4 + $0xa0] sm:$0xff] %vm1057_vm9, %v12065_v45  ;;  %v6902_v53 = vsel %vm1720_vm10, %v6899_v2, %v6901_v62  ;;  %v9305_v41 = vrot.slane %v9303_v0, 1  ;;  %v9311_v5 = vshll.u32 %v15243_v28, 16  ;;  %v7922_v31 = vrot.slane %v15276_v58, 1 }
 0x36b   : > { %v6996_v40 = vld [vmem:[#allocation4 + $0xc8] sm:$0xff]  ;;  %6960 = vst.msk [vmem:[#allocation4 + $0xd8] sm:$0xff] %vm1057_vm9, %v6902_v53  ;;  %v9282_v11 = vsel %vm1254_vm8, %v9277_v60, %v9281_v3  ;;  %v9307_v56 = vshrl.u32 %v15217_v29, 16  ;;  %v9293_v10 = vor.u32 %v9291_v1, %v9289_v13  ;;  %v9319_v55 = vshll.u32 %v12085_v49, 16 }
 0x36c   : > { %v7646_v38 = vpop.permute.xlu0 %7645  ;;  %9401 = vrot.lane.b32.xlu1 %v9258_v14, %s12244_s26  ;;  %v6629_v23 = vpop.permute.xlu1 %6628  ;;  %v15264_v22 = vld [vmem:[#allocation4 + $0xb8] sm:$0xff]  ;;  %7980 = vst.msk [vmem:[#allocation4 + $0xc8] sm:$0xff] %vm1057_vm9, %v7921_v16  ;;  %v9290_v2 = vsel %vm1254_vm8, %v9285_v12, %v9289_v13  ;;  %v9680_v36 = vrot.slane %v15289_v34, 1  ;;  %v9313_v19 = vrot.slane %v9311_v5, 1  ;;  %v7923_v7 = vsel %vm1720_vm10, %v7920_v32, %v7922_v31  ;;  %v12095_v53 = vld [vmem:[%s15980_s3 + $0xf0] sm:$0xff]  }
 0x36d   : > { %7708 = vst.msk [vmem:[#allocation4 + $0x90] sm:$0xff] %vm1523_vm11, %v7646_v38  ;;  %8306 = vmatmul.mubr.bf16.gmra.mrb[128].mxu1 %v8008_v44  ;;  %9403 = vrot.lane.b32.xlu0 %v9266_v54, %s12244_s26  ;;  %6689 = vst.msk [vmem:[#allocation4 + $0xb0] sm:$0xff] %vm1523_vm11, %v6629_v23  ;;  %v9298_v29 = vsel %vm1254_vm8, %v9293_v10, %v9297_v52  ;;  %v9309_v63 = vor.u32 %v9307_v56, %v9305_v41  ;;  %v9321_v32 = vrot.slane %v9319_v55, 1  ;;  %v15324_v14 = vld [vmem:[#allocation3 + $0x78] sm:$0xff]   ;;  %v15346_v12 = vld [vmem:[#allocation3 + $0x88] sm:$0xff]  }
 0x36e   : > { %11285 = vmatprep.mubr.msk.bf16.mxu1 %vm1057_vm9, %v15132_v26  ;;  %8691 = vmatmul.mubr.bf16.gmra.mrb[232].mxu0 %v6991_v9  ;;  %9739 = vst.msk [vmem:[#allocation4 + $0xb8] sm:$0xff] %vm1057_vm9, %v9679_v50  ;;  %v9274_v26 = vsel %vm1254_vm8, %v9269_v35, %v9273_v37  ;;  %v9301_v45 = vor.u32 %v9299_v59, %v9297_v52  ;;  %v9335_v37 = vshll.u32 %v12089_v43, 16  ;;  %v12084_v9 = vld [vmem:[#allocation3 + $0x6c] sm:$0xff]   ;;  %v9323_v3 = vshrl.u32 %v12085_v49, 16  ;;  %v12094_v59 = vld [vmem:[#allocation3 + $0xb8] sm:$0xff]   ;;  %v12102_v34 = vld [vmem:[#allocation3 + $0x80] sm:$0xff]  }
 0x36f   : > { %11323 = vmatprep.mubr.msk.bf16.mxu0 %vm1057_vm9, %v6994_v20  ;;  %v12088_v20 = vld [vmem:[#allocation3 + $0xa0] sm:$0xff]   ;;  %v9681_v25 = vsel %vm1720_vm10, %v9678_v51, %v9680_v36  ;;  %v9315_v51 = vshrl.u32 %v15243_v28, 16  ;;  %v9314_v44 = vsel %vm1254_vm8, %v9309_v63, %v9313_v19  ;;  %v9343_v17 = vshll.u32 %v15308_v6, 16  ;;  %9982 = vmatpush1.bf16.msra.mxu1 %v12095_v53  ;;  %v12098_v55 = vld [vmem:[#allocation3 + $0xc8] sm:$0xff]  }
 0x370   : > { %v7648_v39 = vpop.permute.xlu0 %7647  ;;  %9405 = vrot.lane.b32.xlu1 %v9274_v26, %s12244_s26  ;;  %v9327_v24 = vshll.u32 %v12088_v20, 16  ;;  %v9306_v46 = vsel %vm1254_vm8, %v9301_v45, %v9305_v41  ;;  %v9331_v0 = vshrl.u32 %v12088_v20, 16  ;;  %v15327_v28 = vld [vmem:[#allocation3 + $0x84] sm:$0xff]   ;;  %v9325_v38 = vor.u32 %v9323_v3, %v9321_v32  ;;  %9983 = vmatprep.subr.bf16.mxu1 %v15999_v8 }
 0x371   : > { %7709 = vst.msk [vmem:[#allocation4 + $0xa0] sm:$0xff] %vm1523_vm11, %v7648_v39  ;;  %9407 = vrot.lane.b32.xlu0 %v9282_v11, %s12244_s26  ;;  %v9317_v50 = vor.u32 %v9315_v51, %v9313_v19  ;;  %v9337_v54 = vrot.slane %v9335_v37, 1  ;;  %v6903_v16 = vrot.slane %v15324_v14, 1  ;;  %v9339_v60 = vshrl.u32 %v12089_v43, 16  ;;  %v15370_v43 = vld [vmem:[#allocation3 + $0xd0] sm:$0xff]   ;;  %v12105_v3 = vld [vmem:[#allocation3 + $0x80] sm:$0xff]  }
 0x372   : > { %v6631_v33 = vpop.permute.xlu1 %6630  ;;  %v6998_v18 = vld [vmem:[#allocation4 + $0xd8] sm:$0xff]  ;;  %v7924_v26 = vrot.slane %v15327_v28, 1  ;;  %v9347_v41 = vshrl.u32 %v15308_v6, 16  ;;  %v9351_v5 = vshll.u32 %v12094_v59, 16  ;;  %v9355_v39 = vshrl.u32 %v12094_v59, 16  ;;  %v15376_v6 = vld [vmem:[#allocation3 + $0x8c] sm:$0xff]  }
 0x373   : > { %6690 = vst.msk [vmem:[#allocation4 + $0xc0] sm:$0xff] %vm1523_vm11, %v6631_v33  ;;  %v15313_v15 = vld [vmem:[#allocation4 + $0xc8] sm:$0xff]  ;;  %v9322_v23 = vsel %vm1254_vm8, %v9317_v50, %v9321_v32  ;;  %v6904_v52 = vsel %vm1720_vm10, %v6901_v62, %v6903_v16  ;;  %v9341_v48 = vor.u32 %v9339_v60, %v9337_v54  ;;  %v12093_v62 = vld [vmem:[#allocation3 + $0x74] sm:$0xff]   ;;  %v9682_v56 = vrot.slane %v15346_v12, 1 }
 0x374   : > { %v8010_v4 = vld [vmem:[#allocation4 + $0x90] sm:$0xff]  ;;  %v7650_v42 = vpop.permute.xlu0 %7649  ;;  %9409 = vrot.lane.b32.xlu1 %v9290_v2, %s12244_s26  ;;  %7981 = vst.msk [vmem:[#allocation4 + $0xd8] sm:$0xff] %vm1057_vm9, %v7923_v7  ;;  %9740 = vst.msk [vmem:[#allocation4 + $0xc8] sm:$0xff] %vm1057_vm9, %v9681_v25  ;;  %v9353_v10 = vrot.slane %v9351_v5, 1  ;;  %v7925_v33 = vsel %vm1720_vm10, %v7922_v31, %v7924_v26  ;;  %v9367_v7 = vshll.u32 %v12098_v55, 16  ;;  %v9371_v58 = vshrl.u32 %v12098_v55, 16 }
 0x375   : > { %8314 = vmatmul.mubr.bf16.gmra.mrb[132].mxu1 %v8010_v4  ;;  %v6993_v21 = vld [vmem:[#allocation4 + $0xb0] sm:$0xff]  ;;  %9411 = vrot.lane.b32.xlu0 %v9298_v29, %s12244_s26  ;;  %6961 = vst.msk [vmem:[#allocation4 + $0xe8] sm:$0xff] %vm1057_vm9, %v6904_v52  ;;  %v9683_v20 = vsel %vm1720_vm10, %v9680_v36, %v9682_v56  ;;  %v6905_v37 = vrot.slane %v12102_v34, 1  ;;  %v7926_v50 = vrot.slane %v15376_v6, 1  ;;  %6230 = vst.msk [vmem:[#allocation4 + $0x100] sm:$0xff] %vm1057_vm9, %v12105_v3  ;;  %v12111_v12 = vld [vmem:[#allocation3 + $0x88] sm:$0xff]  }
 0x376   : > { %11286 = vmatprep.mubr.msk.bf16.mxu1 %vm1057_vm9, %v15233_v30  ;;  %7246 = vst.msk [vmem:[#allocation4 + $0xb0] sm:$0xff] %vm1057_vm9, %v12071_v57  ;;  %8699 = vmatmul.mubr.bf16.gmra.mrb[236].mxu0 %v6993_v21  ;;  %v9329_v30 = vrot.slane %v9327_v24, 1  ;;  %v12097_v57 = vld [vmem:[#allocation3 + $0xc0] sm:$0xff]   ;;  %v9357_v63 = vor.u32 %v9355_v39, %v9353_v10  ;;  %v9369_v25 = vrot.slane %v9367_v7, 1  ;;  %v9375_v24 = vshll.u32 %v15370_v43, 16  ;;  %6231 = vst.msk [vmem:[#allocation4 + $0x110] sm:$0xff] %vm1057_vm9, %v12111_v12 }
 0x377   : > { %7710 = vst.msk [vmem:[#allocation4 + $0xb0] sm:$0xff] %vm1523_vm11, %v7650_v42  ;;  %11324 = vmatprep.mubr.msk.bf16.mxu0 %vm1057_vm9, %v6996_v40  ;;  %v9345_v40 = vrot.slane %v9343_v17, 1  ;;  %v9359_v4 = vshll.u32 %v12097_v57, 16  ;;  %v12099_v42 = vld [vmem:[#allocation3 + $0x78] sm:$0xff]   ;;  %v9363_v19 = vshrl.u32 %v12097_v57, 16  ;;  %v7927_v53 = vsel %vm1720_vm10, %v7924_v26, %v7926_v50  ;;  %v12108_v26 = vld [vmem:[#allocation3 + $0x84] sm:$0xff]  }
 0x378   : > { %v8012_v47 = vld [vmem:[#allocation4 + $0xa0] sm:$0xff]  ;;  %9413 = vrot.lane.b32.xlu1 %v9306_v46, %s12244_s26  ;;  %v6633_v27 = vpop.permute.xlu1 %6632  ;;  %v9333_v35 = vor.u32 %v9331_v0, %v9329_v30  ;;  %v9330_v13 = vsel %vm1254_vm8, %v9325_v38, %v9329_v30  ;;  %6229 = vst.msk [vmem:[#allocation4 + $0xf0] sm:$0xff] %vm1057_vm9, %v12099_v42  ;;  %v15380_v46 = vld [vmem:[#allocation3 + $0x90] sm:$0xff]   ;;  %v9373_v30 = vor.u32 %v9371_v58, %v9369_v25  ;;  %v12100_v0 = vld [vmem:[#allocation3 + $0x7c] sm:$0xff]  }
 0x379   : > { %9415 = vrot.lane.b32.xlu0 %v9314_v44, %s12244_s26  ;;  %6691 = vst.msk [vmem:[#allocation4 + $0xd0] sm:$0xff] %vm1523_vm11, %v6633_v27  ;;  %v9349_v2 = vor.u32 %v9347_v41, %v9345_v40  ;;  %v9361_v21 = vrot.slane %v9359_v4, 1  ;;  %v12106_v27 = vld [vmem:[#allocation3 + $0x88] sm:$0xff]   ;;  %v12113_v5 = vld [vmem:[#allocation3 + $0x9c] sm:$0xff]   ;;  %v12116_v55 = vld [vmem:[#allocation3 + $0x90] sm:$0xff]  }
 0x37a   : > { %v6995_v1 = vld [vmem:[#allocation4 + $0xc0] sm:$0xff]  ;;  %v9338_v11 = vsel %vm1254_vm8, %v9333_v35, %v9337_v54  ;;  %v6907_v54 = vrot.slane %v12106_v27, 1  ;;  %v15407_v35 = vld [vmem:[#allocation3 + $0x98] sm:$0xff]   ;;  %6232 = vst.msk [vmem:[#allocation4 + $0x120] sm:$0xff] %vm1057_vm9, %v12116_v55 }
 0x37b   : > { %7247 = vst.msk [vmem:[#allocation4 + $0xc0] sm:$0xff] %vm1057_vm9, %v12084_v9  ;;  %v15353_v49 = vld [vmem:[#allocation4 + $0xd8] sm:$0xff]  ;;  %v9354_v31 = vsel %vm1254_vm8, %v9349_v2, %v9353_v10  ;;  %v9365_v32 = vor.u32 %v9363_v19, %v9361_v21  ;;  %v9362_v51 = vsel %vm1254_vm8, %v9357_v63, %v9361_v21  ;;  %v6906_v9 = vsel %vm1720_vm10, %v6903_v16, %v6905_v37  ;;  %v12107_v16 = vld [vmem:[#allocation3 + $0x94] sm:$0xff]   ;;  %v12119_v63 = vld [vmem:[#allocation3 + $0xa4] sm:$0xff]  }
 0x37c   : > { %9417 = vrot.lane.b32.xlu1 %v9322_v23, %s12244_s26  ;;  %9741 = vst.msk [vmem:[#allocation4 + $0xd8] sm:$0xff] %vm1057_vm9, %v9683_v20  ;;  %v7000_v45 = vld [vmem:[#allocation4 + $0xe8] sm:$0xff]  ;;  %6962 = vst.msk [vmem:[#allocation4 + $0xf8] sm:$0xff] %vm1057_vm9, %v6906_v9  ;;  %v12118_v42 = vld [vmem:[#allocation3 + $0x98] sm:$0xff]   ;;  %v7932_v6 = vrot.slane %v12119_v63, 1 }
 0x37d   : > { %8322 = vmatmul.mubr.bf16.gmra.mrb[136].mxu1 %v8012_v47  ;;  %9419 = vrot.lane.b32.xlu0 %v9330_v13, %s12244_s26  ;;  %7982 = vst.msk [vmem:[#allocation4 + $0xe8] sm:$0xff] %vm1057_vm9, %v7925_v33  ;;  %v15386_v47 = vrot.slane %v9375_v24, 1  ;;  %v9370_v44 = vsel %vm1254_vm8, %v9365_v32, %v9369_v25  ;;  %v7930_v33 = vrot.slane %v12113_v5, 1  ;;  %v12114_v20 = vld [vmem:[#allocation3 + $0x8c] sm:$0xff]   ;;  %v6911_v7 = vrot.slane %v12118_v42, 1  ;;  %v12120_v58 = vld [vmem:[%s15980_s3 + $0x100] sm:$0xff]  }
 0x37e   : > { %11287 = vmatprep.mubr.msk.bf16.mxu1 %vm1057_vm9, %v15264_v22  ;;  %8707 = vmatmul.mubr.bf16.gmra.mrb[240].mxu0 %v6995_v1  ;;  %v9346_v22 = vsel %vm1254_vm8, %v9341_v48, %v9345_v40  ;;  %v8014_v29 = vld [vmem:[#allocation4 + $0xb0] sm:$0xff]  ;;  %v6908_v40 = vsel %vm1720_vm10, %v6905_v37, %v6907_v54  ;;  %v7928_v48 = vrot.slane %v12107_v16, 1  ;;  %v15440_v21 = vld [vmem:[#allocation3 + $0xa8] sm:$0xff]   ;;  %v12127_v27 = vld [vmem:[#allocation3 + $0xa0] sm:$0xff]  }
 0x37f   : > { %11325 = vmatprep.mubr.msk.bf16.mxu0 %vm1057_vm9, %v6998_v18  ;;  %v9378_v14 = vsel %vm1254_vm8, %v9373_v30, %v15386_v47  ;;  %v12109_v1 = vld [vmem:[%s15980_s3 + $0xf8] sm:$0xff]   ;;  %6963 = vst.msk [vmem:[#allocation4 + $0x108] sm:$0xff] %vm1057_vm9, %v6908_v40  ;;  %v9690_v37 = vrot.slane %v15440_v21, 1  ;;  %v7933_v3 = vsel %vm1720_vm10, %v7930_v33, %v7932_v6  ;;  %6234 = vst.msk [vmem:[#allocation4 + $0x140] sm:$0xff] %vm1057_vm9, %v12127_v27  ;;  %v12133_v12 = vld [vmem:[#allocation3 + $0xa8] sm:$0xff]  }
 0x380   : > { %9421 = vrot.lane.b32.xlu1 %v9338_v11, %s12244_s26  ;;  %v6997_v61 = vld [vmem:[#allocation4 + $0xd0] sm:$0xff]  ;;  %9984 = vmatpush1.bf16.msra.mxu1 %v12109_v1  ;;  %v7931_v19 = vsel %vm1720_vm10, %v7928_v48, %v7930_v33  ;;  %6235 = vst.msk [vmem:[#allocation4 + $0x150] sm:$0xff] %vm1057_vm9, %v12133_v12 }
 0x381   : > { %9423 = vrot.lane.b32.xlu0 %v9346_v22, %s12244_s26  ;;  %7248 = vst.msk [vmem:[#allocation4 + $0xd0] sm:$0xff] %vm1057_vm9, %v12093_v62  ;;  %9985 = vmatprep.subr.bf16.mxu1 %v15999_v8  ;;  %v12112_v62 = vld [vmem:[#allocation3 + $0x90] sm:$0xff]   ;;  %v12115_v22 = vld [vmem:[#allocation3 + $0xa0] sm:$0xff]   ;;  %v12122_v24 = vld [vmem:[#allocation3 + $0x98] sm:$0xff]  }
 0x382   : > { %v6909_v41 = vrot.slane %v12112_v62, 1  ;;  %v9688_v4 = vrot.slane %v12115_v22, 1  ;;  %6233 = vst.msk [vmem:[#allocation4 + $0x130] sm:$0xff] %vm1057_vm9, %v12122_v24  ;;  %v12117_v16 = vld [vmem:[#allocation3 + $0x94] sm:$0xff]   ;;  %v15483_v22 = vld [vmem:[#allocation3 + $0xc0] sm:$0xff]  }
 0x383   : > { %v7652_v36 = vpop.permute.xlu0 %7651  ;;  %v7002_v28 = vld [vmem:[#allocation4 + $0xf8] sm:$0xff]  ;;  %v12148_v27 = vld [vmem:[#allocation3 + $0xd0] sm:$0xff]  }
 0x384   : > { %9425 = vrot.lane.b32.xlu1 %v9354_v31, %s12244_s26  ;;  %7711 = vst.msk [vmem:[#allocation4 + $0xc0] sm:$0xff] %vm1523_vm11, %v7652_v36  ;;  %v8021_v60 = vld [vmem:[#allocation4 + $0xe8] sm:$0xff]  ;;  %v6910_v57 = vsel %vm1720_vm10, %v6907_v54, %v6909_v41  ;;  %v6912_v25 = vsel %vm1720_vm10, %v6909_v41, %v6911_v7  ;;  %9986 = vmatpush1.bf16.msra.mxu1 %v12120_v58  ;;  %v12144_v21 = vld [vmem:[#allocation3 + $0xb8] sm:$0xff]   ;;  %v12145_v24 = vld [vmem:[#allocation3 + $0xc0] ss:$0 sps:$4 sm:$0x11]  }
 0x385   : > { %8330 = vmatmul.mubr.bf16.gmra.mrb[140].mxu1 %v8014_v29  ;;  %v6635_v18 = vpop.permute.xlu1 %6634  ;;  %9427 = vrot.lane.b32.xlu0 %v9362_v51, %s12244_s26  ;;  %7983 = vst.msk [vmem:[#allocation4 + $0xf8] sm:$0xff] %vm1057_vm9, %v7927_v53  ;;  %6964 = vst.msk [vmem:[#allocation4 + $0x118] sm:$0xff] %vm1057_vm9, %v6910_v57  ;;  %v12124_v51 = vld [vmem:[#allocation3 + $0xac] sm:$0xff]   ;;  %v12156_v12 = vld [vmem:[#allocation3 + $0x38] sm:$0xff]  }
 0x386   : > { %11288 = vmatprep.mubr.msk.bf16.mxu1 %vm1057_vm9, %v15313_v15  ;;  %6692 = vst.msk [vmem:[#allocation4 + $0xe0] sm:$0xff] %vm1523_vm11, %v6635_v18  ;;  %8715 = vmatmul.mubr.bf16.gmra.mrb[244].mxu0 %v6997_v61  ;;  %v9684_v15 = vrot.slane %v15380_v46, 1  ;;  %v7004_v61 = vld [vmem:[#allocation4 + $0x108] sm:$0xff]  ;;  %v12123_v18 = vld [vmem:[#allocation3 + $0xa0] sm:$0xff]  }
 0x387   : > { %11326 = vmatprep.mubr.msk.bf16.mxu0 %vm1057_vm9, %v7000_v45  ;;  %v7654_v17 = vpop.permute.xlu0 %7653  ;;  %6965 = vst.msk [vmem:[#allocation4 + $0x128] sm:$0xff] %vm1057_vm9, %v6912_v25  ;;  %9987 = vmatprep.subr.bf16.mxu1 %v15999_v8  ;;  %v6913_v46 = vrot.slane %v12123_v18, 1  ;;  %v12135_v41 = vld [vmem:[#allocation3 + $0xb0] sm:$0xff]   ;;  %v15510_v25 = vld [vmem:[#allocation3 + $0xc8] sm:$0xff]   ;;  %6237 = vst.msk [vmem:[#allocation4 + $0x170] sm:$0xff] %vm1057_vm9, %v12144_v21 }
 0x388   : > { %9429 = vrot.lane.b32.xlu1 %v9370_v44, %s12244_s26  ;;  %7712 = vst.msk [vmem:[#allocation4 + $0xd0] sm:$0xff] %vm1523_vm11, %v7654_v17  ;;  %v9685_v38 = vsel %vm1720_vm10, %v9682_v56, %v9684_v15  ;;  %v7929_v56 = vsel %vm1720_vm10, %v7926_v50, %v7928_v48  ;;  %v9691_v17 = vsel %vm1720_vm10, %v9688_v4, %v9690_v37  ;;  %v7934_v50 = vrot.slane %v12124_v51, 1  ;;  %v12146_v18 = vld [vmem:[#allocation3 + $0xcc] ss:$0 sps:$4 sm:$0x11]   ;;  %v12147_v21 = vld [vmem:[#allocation3 + $0xbc] sm:$0xff]  }
 0x389   : > { %9431 = vrot.lane.b32.xlu0 %v9378_v14, %s12244_s26  ;;  %9742 = vst.msk [vmem:[#allocation4 + $0xe8] sm:$0xff] %vm1057_vm9, %v9685_v38  ;;  %7984 = vst.msk [vmem:[#allocation4 + $0x108] sm:$0xff] %vm1057_vm9, %v7929_v56  ;;  %v6914_v9 = vsel %vm1720_vm10, %v6911_v7, %v6913_v46  ;;  %v6917_v57 = vrot.slane %v12135_v41, 1  ;;  %v12142_v7 = vld [vmem:[%s15980_s3 + $0x110] sm:$0xff]  }
 0x38a   : > { %v6637_v23 = vpop.permute.xlu1 %6636  ;;  %6966 = vst.msk [vmem:[#allocation4 + $0x138] sm:$0xff] %vm1057_vm9, %v6914_v9  ;;  %8999 = vst.msk [vmem:[#allocation4 + $0x40] sm:$0xff] %vm1057_vm9, %v12156_v12 }
 0x38b   : > { %v8016_v13 = vld [vmem:[#allocation4 + $0xc0] sm:$0xff]  ;;  %6693 = vst.msk [vmem:[#allocation4 + $0xf0] sm:$0xff] %vm1523_vm11, %v6637_v23  ;;  %v12129_v23 = vld [vmem:[#allocation3 + $0xb4] sm:$0xff]  }
 0x38c   : > { %v8023_v29 = vld [vmem:[#allocation4 + $0xf8] sm:$0xff]  ;;  %v7936_v62 = vrot.slane %v12129_v23, 1 }
 0x38d   : > { %8338 = vmatmul.mubr.bf16.gmra.mrb[144].mxu1 %v8016_v13  ;;  %v6999_v52 = vld [vmem:[#allocation4 + $0xe0] sm:$0xff]  ;;  %v7656_v59 = vpop.permute.xlu0 %7655  ;;  %v7006_v36 = vld [vmem:[#allocation4 + $0x118] sm:$0xff] }
 0x38e   : > { %11289 = vmatprep.mubr.msk.bf16.mxu1 %vm1057_vm9, %v15353_v49  ;;  %7249 = vst.msk [vmem:[#allocation4 + $0xe0] sm:$0xff] %vm1057_vm9, %v12100_v0  ;;  %8723 = vmatmul.mubr.bf16.gmra.mrb[248].mxu0 %v6999_v52  ;;  %v9686_v49 = vrot.slane %v15407_v35, 1  ;;  %7985 = vst.msk [vmem:[#allocation4 + $0x118] sm:$0xff] %vm1057_vm9, %v7931_v19  ;;  %v12128_v0 = vld [vmem:[#allocation3 + $0xa8] sm:$0xff]   ;;  %v12132_v52 = vld [vmem:[#allocation3 + $0xb8] sm:$0xff]   ;;  %v7937_v56 = vsel %vm1720_vm10, %v7934_v50, %v7936_v62 }
 0x38f   : > { %7713 = vst.msk [vmem:[#allocation4 + $0xe0] sm:$0xff] %vm1523_vm11, %v7656_v59  ;;  %11327 = vmatprep.mubr.msk.bf16.mxu0 %vm1057_vm9, %v7002_v28  ;;  %v8018_v39 = vld [vmem:[#allocation4 + $0xd0] sm:$0xff]  ;;  %v7008_v38 = vld [vmem:[#allocation4 + $0x128] sm:$0xff]  ;;  %v6915_v1 = vrot.slane %v12128_v0, 1  ;;  %v12131_v13 = vld [vmem:[%s15980_s3 + $0x108] sm:$0xff]  }
 0x390   : > { %v9687_v2 = vsel %vm1720_vm10, %v9684_v15, %v9686_v49  ;;  %v9689_v45 = vsel %vm1720_vm10, %v9686_v49, %v9688_v4  ;;  %v8025_v32 = vld [vmem:[#allocation4 + $0x108] sm:$0xff]  ;;  %7986 = vst.msk [vmem:[#allocation4 + $0x128] sm:$0xff] %vm1057_vm9, %v7933_v3  ;;  %9988 = vmatpush1.bf16.msra.mxu1 %v12131_v13  ;;  %v9379_v49 = vshrl.u32 %v15370_v43, 16  ;;  %v12139_v43 = vld [vmem:[#allocation3 + $0xb8] sm:$0xff]   ;;  %v12140_v19 = vld [vmem:[#allocation3 + $0xc4] sm:$0xff]  }
 0x391   : > { %v6639_v11 = vpop.permute.xlu1 %6638  ;;  %9743 = vst.msk [vmem:[#allocation4 + $0xf8] sm:$0xff] %vm1057_vm9, %v9687_v2  ;;  %9744 = vst.msk [vmem:[#allocation4 + $0x108] sm:$0xff] %vm1057_vm9, %v9689_v45  ;;  %v12126_v15 = vld [vmem:[#allocation3 + $0xb0] sm:$0xff]   ;;  %v6916_v40 = vsel %vm1720_vm10, %v6913_v46, %v6915_v1  ;;  %v15470_v48 = vld [vmem:[#allocation4 + $0x138] sm:$0xff]  ;;  %9989 = vmatprep.subr.bf16.mxu1 %v15999_v8  ;;  %v6918_v2 = vsel %vm1720_vm10, %v6915_v1, %v6917_v57  ;;  %v6919_v63 = vrot.slane %v12139_v43, 1  ;;  %v6921_v46 = vrot.slane %v12145_v24, 1 }
 0x392   : > { %6694 = vst.msk [vmem:[#allocation4 + $0x100] sm:$0xff] %vm1523_vm11, %v6639_v11  ;;  %v7001_v10 = vld [vmem:[#allocation4 + $0xf0] sm:$0xff]  ;;  %v9692_v35 = vrot.slane %v12126_v15, 1  ;;  %v12136_v11 = vld [vmem:[#allocation3 + $0xbc] sm:$0xff]   ;;  %v15486_v55 = vor.u32 %v9379_v49, %v15386_v47  ;;  %v12152_v1 = vld [vmem:[#allocation3 + $0x28] sm:$0xff]  }
 0x393   : > { %7250 = vst.msk [vmem:[#allocation4 + $0xf0] sm:$0xff] %vm1057_vm9, %v12108_v26  ;;  %6967 = vst.msk [vmem:[#allocation4 + $0x148] sm:$0xff] %vm1057_vm9, %v6916_v40  ;;  %v9694_v26 = vrot.slane %v12132_v52, 1  ;;  %v7938_v42 = vrot.slane %v12136_v11, 1  ;;  %v6922_v9 = vsel %vm1720_vm10, %v6919_v63, %v6921_v46  ;;  %v12150_v0 = vld [vmem:[#allocation3 + $0x18] sm:$0xff]   ;;  %v12134_v13 = vld [vmem:[#allocation3 + $0xac] sm:$0xff]  }
 0x394   : > { %v9693_v28 = vsel %vm1720_vm10, %v9690_v37, %v9692_v35  ;;  %6968 = vst.msk [vmem:[#allocation4 + $0x158] sm:$0xff] %vm1057_vm9, %v6918_v2  ;;  %9990 = vmatpush1.bf16.msra.mxu1 %v12142_v7  ;;  %6970 = vst.msk [vmem:[#allocation4 + $0x178] sm:$0xff] %vm1057_vm9, %v6922_v9  ;;  %v12154_v52 = vld [vmem:[#allocation3 + $0x30] sm:$0xff]   ;;  %v12165_v7 = vld [vmem:[#allocation3 + $0x80] sm:$0xff]  }
 0x395   : > { %8346 = vmatmul.mubr.bf16.gmra.mrb[148].mxu1 %v8018_v39  ;;  %v8027_v54 = vld [vmem:[#allocation4 + $0x118] sm:$0xff]  ;;  %v9695_v33 = vsel %vm1720_vm10, %v9692_v35, %v9694_v26  ;;  %9991 = vmatprep.subr.bf16.mxu1 %v15999_v8  ;;  %v9698_v8 = vrot.slane %v15510_v25, 1  ;;  %8995 = vst.msk [vmem:[#allocation4] sm:$0xff] %vm1057_vm9, %v12150_v0  ;;  %v12153_v35 = vld [vmem:[%s15980_s3 + $0x118] sm:$0xff]   ;;  %8997 = vst.msk [vmem:[#allocation4 + $0x20] sm:$0xff] %vm1057_vm9, %v12152_v1 }
 0x396   : > { %11290 = vmatprep.mubr.msk.bf16.mxu1 %vm1057_vm9, %v8021_v60  ;;  %8731 = vmatmul.mubr.bf16.gmra.mrb[252].mxu0 %v7001_v10  ;;  %v8020_v34 = vld [vmem:[#allocation4 + $0xe0] sm:$0xff]  ;;  %9745 = vst.msk [vmem:[#allocation4 + $0x118] sm:$0xff] %vm1057_vm9, %v9691_v17  ;;  %v7935_v60 = vsel %vm1720_vm10, %v7932_v6, %v7934_v50  ;;  %v12138_v10 = vld [vmem:[#allocation3 + $0xb0] sm:$0xff]   ;;  %v7940_v6 = vrot.slane %v12140_v19, 1  ;;  %v7942_v50 = vrot.slane %v12146_v18, 1  ;;  %8998 = vst.msk [vmem:[#allocation4 + $0x30] sm:$0xff] %vm1057_vm9, %v12154_v52 }
 0x397   : > { %11328 = vmatprep.mubr.msk.bf16.mxu0 %vm1057_vm9, %v7004_v61  ;;  %7987 = vst.msk [vmem:[#allocation4 + $0x138] sm:$0xff] %vm1057_vm9, %v7935_v60  ;;  %v15478_v39 = vld [vmem:[#allocation4 + $0x128] sm:$0xff]  ;;  %6236 = vst.msk [vmem:[#allocation4 + $0x160] sm:$0xff] %vm1057_vm9, %v12138_v10  ;;  %v12160_v10 = vld [vmem:[#allocation3 + $0x58] sm:$0xff]  }
 0x398   : > { %9746 = vst.msk [vmem:[#allocation4 + $0x128] sm:$0xff] %vm1057_vm9, %v9693_v28  ;;  %v7941_v17 = vsel %vm1720_vm10, %v7938_v42, %v7940_v6  ;;  %v7943_v40 = vsel %vm1720_vm10, %v7940_v6, %v7942_v50  ;;  %9992 = vmatpush1.bf16.msra.mxu1 %v12153_v35  ;;  %9003 = vst.msk [vmem:[#allocation4 + $0x80] sm:$0xff] %vm1057_vm9, %v12160_v10  ;;  %v12168_v24 = vld [vmem:[#allocation3 + $0x98] sm:$0xff]   ;;  %v12149_v6 = vld [vmem:[#allocation3 + $0xc4] sm:$0xff]  }
 0x399   : > { %v7003_v31 = vld [vmem:[#allocation4 + $0x100] sm:$0xff]  ;;  %9008 = vst.msk [vmem:[#allocation4 + $0xd0] sm:$0xff] %vm1057_vm9, %v12165_v7  ;;  %v12171_v46 = vld [vmem:[#allocation3 + $0xb0] sm:$0xff]   ;;  %v12172_v9 = vld [vmem:[#allocation3 + $0xb8] sm:$0xff]  }
 0x39a   : > { %7251 = vst.msk [vmem:[#allocation4 + $0x100] sm:$0xff] %vm1057_vm9, %v12114_v20  ;;  %v15488_v61 = vld [vmem:[#allocation4 + $0x148] sm:$0xff]  ;;  %v12175_v0 = vld [vmem:[#allocation3 + $0xd8] ss:$0 sps:$4 sm:$0x11]  }
 0x39b   : > { %7988 = vst.msk [vmem:[#allocation4 + $0x148] sm:$0xff] %vm1057_vm9, %v7937_v56 }
 0x39d   : > { %8354 = vmatmul.mubr.bf16.gmra.mrb[152].mxu1 %v8020_v34  ;;  %v12125_v34 = vld [vmem:[#allocation3 + $0x9c] sm:$0xff]  }
 0x39e   : > { %v7658_v30 = vpop.permute.xlu0 %7657  ;;  %11291 = vmatprep.mubr.msk.bf16.mxu1 %vm1057_vm9, %v8023_v29  ;;  %8739 = vmatmul.mubr.bf16.gmra.mrb[0].mxu0 %v7003_v31  ;;  %v15496_v47 = vld [vmem:[#allocation4 + $0x138] sm:$0xff]  ;;  %v9696_v29 = vrot.slane %v15483_v22, 1  ;;  %v6920_v31 = vsel %vm1720_vm10, %v6917_v57, %v6919_v63  ;;  %v12159_v57 = vld [vmem:[#allocation3 + $0x50] sm:$0xff]  }
 0x39f   : > { %v6641_v44 = vpop.permute.xlu1 %6640  ;;  %7714 = vst.msk [vmem:[#allocation4 + $0xf0] sm:$0xff] %vm1523_vm11, %v7658_v30  ;;  %11329 = vmatprep.mubr.msk.bf16.mxu0 %vm1057_vm9, %v7006_v36  ;;  %v7939_v36 = vsel %vm1720_vm10, %v7936_v62, %v7938_v42  ;;  %v12163_v42 = vld [vmem:[#allocation3 + $0x70] sm:$0xff]  }
 0x3a0   : > { %6695 = vst.msk [vmem:[#allocation4 + $0x110] sm:$0xff] %vm1523_vm11, %v6641_v44  ;;  %v9697_v45 = vsel %vm1720_vm10, %v9694_v26, %v9696_v29  ;;  %v12130_v44 = vld [vmem:[#allocation3 + $0xa4] sm:$0xff]  }
 0x3a1   : > { %9747 = vst.msk [vmem:[#allocation4 + $0x138] sm:$0xff] %vm1057_vm9, %v9695_v33  ;;  %6969 = vst.msk [vmem:[#allocation4 + $0x168] sm:$0xff] %vm1057_vm9, %v6920_v31  ;;  %v12157_v26 = vld [vmem:[#allocation3 + $0x40] sm:$0xff]   ;;  %v12166_v31 = vld [vmem:[#allocation3 + $0x88] sm:$0xff]  }
 0x3a2   : > { %v7660_v14 = vpop.permute.xlu0 %7659  ;;  %v15516_v37 = vld [vmem:[#allocation4 + $0x148] sm:$0xff]  ;;  %9000 = vst.msk [vmem:[#allocation4 + $0x50] sm:$0xff] %vm1057_vm9, %v12157_v26  ;;  %9002 = vst.msk [vmem:[#allocation4 + $0x70] sm:$0xff] %vm1057_vm9, %v12159_v57  ;;  %v12161_v33 = vld [vmem:[#allocation3 + $0x60] sm:$0xff]  }
 0x3a3   : > { %7715 = vst.msk [vmem:[#allocation4 + $0x100] sm:$0xff] %vm1523_vm11, %v7660_v14 }
 0x3a4   : > { %9748 = vst.msk [vmem:[#allocation4 + $0x148] sm:$0xff] %vm1057_vm9, %v9697_v45  ;;  %9004 = vst.msk [vmem:[#allocation4 + $0x90] sm:$0xff] %vm1057_vm9, %v12161_v33 }
 0x3a5   : > { %9006 = vst.msk [vmem:[#allocation4 + $0xb0] sm:$0xff] %vm1057_vm9, %v12163_v42  ;;  %9009 = vst.msk [vmem:[#allocation4 + $0xe0] sm:$0xff] %vm1057_vm9, %v12166_v31  ;;  %v9757_v42 = vld [vmem:[#allocation4 + $0x28] sm:$0xff] }
 0x3a6   : > { %v8022_v59 = vld [vmem:[#allocation4 + $0xf0] sm:$0xff] }
 0x3a7   : > { %v7005_v53 = vld [vmem:[#allocation4 + $0x110] sm:$0xff]  ;;  %8362 = vmatmul.mubr.bf16.gmra.mrb[156].mxu1 %v8022_v59 }
 0x3a8   : > { %7252 = vst.msk [vmem:[#allocation4 + $0x110] sm:$0xff] %vm1057_vm9, %v12117_v16  ;;  %8747 = vmatmul.mubr.bf16.gmra.mrb[4].mxu0 %v7005_v53  ;;  %11292 = vmatprep.mubr.msk.bf16.mxu1 %vm1057_vm9, %v8025_v32  ;;  %v15514_v32 = vld [vmem:[#allocation4 + $0x158] sm:$0xff]  ;;  %v9699_v16 = vsel %vm1720_vm10, %v9696_v29, %v9698_v8  ;;  %v12155_v59 = vld [vmem:[#allocation3 + $0xd8] ss:$0 sps:$4 sm:$0x11]   ;;  %v9700_v53 = vrot.slane %v12148_v27, 1 }
 0x3a9   : > { %11330 = vmatprep.mubr.msk.bf16.mxu0 %vm1057_vm9, %v7008_v38  ;;  %7989 = vst.msk [vmem:[#allocation4 + $0x158] sm:$0xff] %vm1057_vm9, %v7939_v36  ;;  %v15531_v38 = vld [vmem:[#allocation4 + $0x168] sm:$0xff]  ;;  %v9702_v41 = vrot.slane %v12155_v59, 1  ;;  %v12164_v29 = vld [vmem:[#allocation3 + $0x78] sm:$0xff]  }
 0x3aa   : > { %v8024_v5 = vld [vmem:[#allocation4 + $0x100] sm:$0xff]  ;;  %7990 = vst.msk [vmem:[#allocation4 + $0x168] sm:$0xff] %vm1057_vm9, %v7941_v17  ;;  %v9701_v49 = vsel %vm1720_vm10, %v9698_v8, %v9700_v53  ;;  %9007 = vst.msk [vmem:[#allocation4 + $0xc0] sm:$0xff] %vm1057_vm9, %v12164_v29 }
 0x3ab   : > { %9011 = vst.msk [vmem:[#allocation4 + $0x100] sm:$0xff] %vm1057_vm9, %v12168_v24  ;;  %v12174_v17 = vld [vmem:[#allocation3 + $0xc8] sm:$0xff]   ;;  %v9759_v24 = vld [vmem:[#allocation4 + $0x38] sm:$0xff] }
 0x3ae   : > { %v6643_v20 = vpop.permute.xlu1 %6642 }
 0x3af   : > { %6696 = vst.msk [vmem:[#allocation4 + $0x120] sm:$0xff] %vm1523_vm11, %v6643_v20  ;;  %v7662_v4 = vpop.permute.xlu0 %7661  ;;  %8370 = vmatmul.mubr.bf16.gmra.mrb[160].mxu1 %v8024_v5  ;;  %v12158_v5 = vld [vmem:[#allocation3 + $0x48] sm:$0xff]  }
 0x3b0   : > { %7716 = vst.msk [vmem:[#allocation4 + $0x110] sm:$0xff] %vm1523_vm11, %v7662_v4  ;;  %11293 = vmatprep.mubr.msk.bf16.mxu1 %vm1057_vm9, %v8027_v54  ;;  %v12151_v54 = vld [vmem:[#allocation3 + $0x20] sm:$0xff]   ;;  %v12162_v20 = vld [vmem:[#allocation3 + $0x68] sm:$0xff]  }
 0x3b1   : > { %8996 = vst.msk [vmem:[#allocation4 + $0x10] sm:$0xff] %vm1057_vm9, %v12151_v54  ;;  %v15542_v60 = vld [vmem:[#allocation4 + $0x158] sm:$0xff]  ;;  %v15557_v11 = vld [vmem:[#allocation4 + $0x168] sm:$0xff]  ;;  %9001 = vst.msk [vmem:[#allocation4 + $0x60] sm:$0xff] %vm1057_vm9, %v12158_v5 }
 0x3b2   : > { %v6645_v58 = vpop.permute.xlu1 %6644  ;;  %9749 = vst.msk [vmem:[#allocation4 + $0x158] sm:$0xff] %vm1057_vm9, %v9699_v16  ;;  %9750 = vst.msk [vmem:[#allocation4 + $0x168] sm:$0xff] %vm1057_vm9, %v9701_v49 }
 0x3b3   : > { %6697 = vst.msk [vmem:[#allocation4 + $0x130] sm:$0xff] %vm1523_vm11, %v6645_v58 }
 0x3b4   : > { %9005 = vst.msk [vmem:[#allocation4 + $0xa0] sm:$0xff] %vm1057_vm9, %v12162_v20 }
 0x3b6   : > { %v7007_v51 = vld [vmem:[#allocation4 + $0x120] sm:$0xff] }
 0x3b7   : > { %8755 = vmatmul.mubr.bf16.gmra.mrb[8].mxu0 %v7007_v51  ;;  %7253 = vst.msk [vmem:[#allocation4 + $0x120] sm:$0xff] %vm1057_vm9, %v12125_v34  ;;  %v8026_v30 = vld [vmem:[#allocation4 + $0x110] sm:$0xff] }
 0x3b8   : > { %11331 = vmatprep.mubr.msk.bf16.mxu0 %vm1057_vm9, %v15470_v48  ;;  %v7664_v15 = vpop.permute.xlu0 %7663  ;;  %8378 = vmatmul.mubr.bf16.gmra.mrb[164].mxu1 %v8026_v30  ;;  %v15547_v48 = vld [vmem:[#allocation4 + $0x178] sm:$0xff]  ;;  %v12167_v34 = vld [vmem:[#allocation3 + $0x90] sm:$0xff]  }
 0x3b9   : > { %v6647_v3 = vpop.permute.xlu1 %6646  ;;  %7717 = vst.msk [vmem:[#allocation4 + $0x120] sm:$0xff] %vm1523_vm11, %v7664_v15  ;;  %11294 = vmatprep.mubr.msk.bf16.mxu1 %vm1057_vm9, %v15478_v39  ;;  %v12173_v15 = vld [vmem:[#allocation3 + $0xc0] sm:$0xff]  }
 0x3ba   : > { %6698 = vst.msk [vmem:[#allocation4 + $0x140] sm:$0xff] %vm1523_vm11, %v6647_v3  ;;  %v7009_v14 = vld [vmem:[#allocation4 + $0x130] sm:$0xff] }
 0x3bb   : > { %7254 = vst.msk [vmem:[#allocation4 + $0x130] sm:$0xff] %vm1057_vm9, %v12130_v44  ;;  %7991 = vst.msk [vmem:[#allocation4 + $0x178] sm:$0xff] %vm1057_vm9, %v7943_v40 }
 0x3bc   : > { %v7666_v23 = vpop.permute.xlu0 %7665  ;;  %9010 = vst.msk [vmem:[#allocation4 + $0xf0] sm:$0xff] %vm1057_vm9, %v12167_v34 }
 0x3bd   : > { %7718 = vst.msk [vmem:[#allocation4 + $0x130] sm:$0xff] %vm1523_vm11, %v7666_v23 }
 0x3bf   : > { %8763 = vmatmul.mubr.bf16.gmra.mrb[12].mxu0 %v7009_v14 }
 0x3c0   : > { %11332 = vmatprep.mubr.msk.bf16.mxu0 %vm1057_vm9, %v15488_v61  ;;  %v8028_v62 = vld [vmem:[#allocation4 + $0x120] sm:$0xff]  ;;  %v9703_v61 = vsel %vm1720_vm10, %v9700_v53, %v9702_v41 }
 0x3c1   : > { %v7011_v28 = vld [vmem:[#allocation4 + $0x140] sm:$0xff]  ;;  %8386 = vmatmul.mubr.bf16.gmra.mrb[168].mxu1 %v8028_v62  ;;  %v9753_v62 = vld [vmem:[#allocation4 + $0x8] sm:$0xff] }
 0x3c2   : > { %7255 = vst.msk [vmem:[#allocation4 + $0x140] sm:$0xff] %vm1057_vm9, %v12134_v13  ;;  %11295 = vmatprep.mubr.msk.bf16.mxu1 %vm1057_vm9, %v15496_v47  ;;  %v6649_v39 = vpop.permute.xlu1 %6648  ;;  %v15569_v4 = vld [vmem:[#allocation4 + $0x178] sm:$0xff]  ;;  %v12141_v47 = vld [vmem:[#allocation3 + $0xb4] sm:$0xff]  }
 0x3c3   : > { %6699 = vst.msk [vmem:[#allocation4 + $0x150] sm:$0xff] %vm1523_vm11, %v6649_v39  ;;  %v7668_v56 = vpop.permute.xlu0 %7667 }
 0x3c4   : > { %7719 = vst.msk [vmem:[#allocation4 + $0x140] sm:$0xff] %vm1523_vm11, %v7668_v56  ;;  %v8030_v22 = vld [vmem:[#allocation4 + $0x130] sm:$0xff] }
 0x3c5   : > { %9751 = vst.msk [vmem:[#allocation4 + $0x178] sm:$0xff] %vm1057_vm9, %v9703_v61  ;;  %9014 = vst.msk [vmem:[#allocation4 + $0x130] sm:$0xff] %vm1057_vm9, %v12171_v46 }
 0x3c6   : > { %v6651_v2 = vpop.permute.xlu1 %6650 }
 0x3c7   : > { %8771 = vmatmul.mubr.bf16.gmra.mrb[16].mxu0 %v7011_v28  ;;  %6700 = vst.msk [vmem:[#allocation4 + $0x160] sm:$0xff] %vm1523_vm11, %v6651_v2  ;;  %v7670_v43 = vpop.permute.xlu0 %7669 }
 0x3c8   : > { %11333 = vmatprep.mubr.msk.bf16.mxu0 %vm1057_vm9, %v15514_v32  ;;  %v12169_v32 = vld [vmem:[#allocation3 + $0xa0] sm:$0xff]  }
 0x3c9   : > { %8394 = vmatmul.mubr.bf16.gmra.mrb[172].mxu1 %v8030_v22  ;;  %9012 = vst.msk [vmem:[#allocation4 + $0x110] sm:$0xff] %vm1057_vm9, %v12169_v32 }
 0x3ca   : > { %11296 = vmatprep.mubr.msk.bf16.mxu1 %vm1057_vm9, %v15516_v37  ;;  %v7013_v63 = vld [vmem:[#allocation4 + $0x150] sm:$0xff]  ;;  %v6653_v19 = vpop.permute.xlu1 %6652  ;;  %v12170_v37 = vld [vmem:[#allocation3 + $0xa8] sm:$0xff]  }
 0x3cb   : > { %7256 = vst.msk [vmem:[#allocation4 + $0x150] sm:$0xff] %vm1057_vm9, %v12141_v47  ;;  %v7672_v58 = vpop.permute.xlu0 %7671  ;;  %v8032_v36 = vld [vmem:[#allocation4 + $0x140] sm:$0xff]  ;;  %9013 = vst.msk [vmem:[#allocation4 + $0x120] sm:$0xff] %vm1057_vm9, %v12170_v37 }
 0x3cc   : > { %6701 = vst.msk [vmem:[#allocation4 + $0x170] sm:$0xff] %vm1523_vm11, %v6653_v19  ;;  %7720 = vst.msk [vmem:[#allocation4 + $0x150] sm:$0xff] %vm1523_vm11, %v7670_v43 }
 0x3cd   : > { %9015 = vst.msk [vmem:[#allocation4 + $0x140] sm:$0xff] %vm1057_vm9, %v12172_v9 }
 0x3ce   : > { %v7015_v45 = vld [vmem:[#allocation4 + $0x160] sm:$0xff]  ;;  %v7674_v25 = vpop.permute.xlu1 %7673 }
 0x3cf   : > { %8779 = vmatmul.mubr.bf16.gmra.mrb[20].mxu0 %v7013_v63  ;;  %7257 = vst.msk [vmem:[#allocation4 + $0x160] sm:$0xff] %vm1057_vm9, %v12147_v21  ;;  %v9388_v18 = vpop.permute.xlu0 %9387 }
 0x3d0   : > { %11334 = vmatprep.mubr.msk.bf16.mxu0 %vm1057_vm9, %v15531_v38  ;;  %7721 = vst.msk [vmem:[#allocation4 + $0x160] sm:$0xff] %vm1523_vm11, %v7672_v58  ;;  %9459 = vst.msk [vmem:[#allocation4] sm:$0xff] %vm1523_vm11, %v9388_v18  ;;  %v9383_v38 = vshll.u32 %v12175_v0, 16 }
 0x3d1   : > { %8402 = vmatmul.mubr.bf16.gmra.mrb[176].mxu1 %v8032_v36 }
 0x3d2   : > { %11297 = vmatprep.mubr.msk.bf16.mxu1 %vm1057_vm9, %v15542_v60  ;;  %v9390_v30 = vpop.permute.xlu1 %9389  ;;  %v9385_v16 = vrot.slane %v9383_v38, 1  ;;  %v9763_v38 = vld [vmem:[#allocation4 + $0x58] sm:$0xff] }
 0x3d3   : > { %v7017_v51 = vld [vmem:[#allocation4 + $0x170] sm:$0xff]  ;;  %9460 = vst.msk [vmem:[#allocation4 + $0x10] sm:$0xff] %vm1523_vm11, %v9390_v30  ;;  %v9392_v8 = vpop.permute.xlu0 %9391 }
 0x3d4   : > { %v8034_v44 = vld [vmem:[#allocation4 + $0x150] sm:$0xff]  ;;  %7258 = vst.msk [vmem:[#allocation4 + $0x170] sm:$0xff] %vm1057_vm9, %v12149_v6  ;;  %v9386_v23 = vsel %vm1254_vm8, %v15486_v55, %v9385_v16 }
 0x3d5   : > { %7722 = vst.msk [vmem:[#allocation4 + $0x170] sm:$0xff] %vm1523_vm11, %v7674_v25  ;;  %9461 = vst.msk [vmem:[#allocation4 + $0x20] sm:$0xff] %vm1523_vm11, %v9392_v8  ;;  %9433 = vrot.lane.b32.xlu1 %v9386_v23, %s12244_s26 }
 0x3d6   : > { %v9394_v3 = vpop.permute.xlu1 %9393  ;;  %9016 = vst.msk [vmem:[#allocation4 + $0x150] sm:$0xff] %vm1057_vm9, %v12173_v15  ;;  %v9761_v15 = vld [vmem:[#allocation4 + $0x48] sm:$0xff] }
 0x3d7   : > { %8787 = vmatmul.mubr.bf16.gmra.mrb[24].mxu0 %v7015_v45  ;;  %v8036_v27 = vld [vmem:[#allocation4 + $0x160] sm:$0xff]  ;;  %9462 = vst.msk [vmem:[#allocation4 + $0x30] sm:$0xff] %vm1523_vm11, %v9394_v3  ;;  %v9396_v50 = vpop.permute.xlu0 %9395 }
 0x3d8   : > { %11335 = vmatprep.mubr.msk.bf16.mxu0 %vm1057_vm9, %v15547_v48  ;;  %9463 = vst.msk [vmem:[#allocation4 + $0x40] sm:$0xff] %vm1523_vm11, %v9396_v50  ;;  %v9752_v39 = vld [vmem:[#allocation4] sm:$0xff] }
 0x3d9   : > { %9017 = vst.msk [vmem:[#allocation4 + $0x160] sm:$0xff] %vm1057_vm9, %v12174_v17  ;;  %8410 = vmatmul.mubr.bf16.gmra.mrb[180].mxu1 %v8034_v44 }
 0x3da   : > { %11298 = vmatprep.mubr.msk.bf16.mxu1 %vm1057_vm9, %v15557_v11  ;;  %v9398_v14 = vpop.permute.xlu1 %9397  ;;  %v9755_v11 = vld [vmem:[#allocation4 + $0x18] sm:$0xff] }
 0x3db   : > { %9464 = vst.msk [vmem:[#allocation4 + $0x50] sm:$0xff] %vm1523_vm11, %v9398_v14  ;;  %v9400_v54 = vpop.permute.xlu0 %9399 }
 0x3dc   : > { %9465 = vst.msk [vmem:[#allocation4 + $0x60] sm:$0xff] %vm1523_vm11, %v9400_v54  ;;  %v8038_v48 = vld [vmem:[#allocation4 + $0x170] sm:$0xff]  ;;  %v9756_v45 = vld [vmem:[#allocation4 + $0x20] sm:$0xff] }
 0x3de   : > { %v9402_v1 = vpop.permute.xlu1 %9401  ;;  %v9758_v44 = vld [vmem:[#allocation4 + $0x30] sm:$0xff] }
 0x3df   : > { %8795 = vmatmul.mubr.bf16.gmra.mrb[28].mxu0 %v7017_v51  ;;  %9466 = vst.msk [vmem:[#allocation4 + $0x70] sm:$0xff] %vm1523_vm11, %v9402_v1  ;;  %v9404_v35 = vpop.permute.xlu0 %9403  ;;  %v8612_v13 = vpop.f32.mrb[192].mxu0  ;;  %v9760_v0 = vld [vmem:[#allocation4 + $0x40] sm:$0xff] }
 0x3e0   : > { %9467 = vst.msk [vmem:[#allocation4 + $0x80] sm:$0xff] %vm1523_vm11, %v9404_v35  ;;  %v8614_v40 = vpop.f32.mrb[193].mxu0 }
 0x3e1   : > { %8418 = vmatmul.mubr.bf16.gmra.mrb[184].mxu1 %v8036_v27  ;;  %v8615_v59 = vpop.f32.mrb[194].mxu0 }
 0x3e2   : > { %11299 = vmatprep.mubr.msk.bf16.mxu1 %vm1057_vm9, %v15569_v4  ;;  %v9406_v60 = vpop.permute.xlu1 %9405  ;;  %v8617_v55 = vpop.f32.mrb[195].mxu0  ;;  %v9754_v4 = vld [vmem:[#allocation4 + $0x10] sm:$0xff] }
 0x3e3   : > { %9468 = vst.msk [vmem:[#allocation4 + $0x90] sm:$0xff] %vm1523_vm11, %v9406_v60  ;;  %v9408_v52 = vpop.permute.xlu0 %9407  ;;  %v9762_v35 = vld [vmem:[#allocation4 + $0x50] sm:$0xff] }
 0x3e4   : > { %9469 = vst.msk [vmem:[#allocation4 + $0xa0] sm:$0xff] %vm1523_vm11, %v9408_v52  ;;  %v9765_v52 = vld [vmem:[#allocation4 + $0x68] sm:$0xff] }
 0x3e6   : > { %v9410_v53 = vpop.permute.xlu1 %9409 }
 0x3e7   : > { %9470 = vst.msk [vmem:[#allocation4 + $0xb0] sm:$0xff] %vm1523_vm11, %v9410_v53  ;;  %v9412_v12 = vpop.permute.xlu0 %9411 }
 0x3e8   : > { %9471 = vst.msk [vmem:[#allocation4 + $0xc0] sm:$0xff] %vm1523_vm11, %v9412_v12 }
 0x3e9   : > { %8426 = vmatmul.mubr.bf16.gmra.mrb[188].mxu1 %v8038_v48 }
 0x3ea   : > { %11446 = vmatprep.mubr.msk.bf16.mxu1 %vm1057_vm9, %v9753_v62  ;;  %v9414_v28 = vpop.permute.xlu1 %9413 }
 0x3eb   : > { %9472 = vst.msk [vmem:[#allocation4 + $0xd0] sm:$0xff] %vm1523_vm11, %v9414_v28  ;;  %v9416_v26 = vpop.permute.xlu0 %9415 }
 0x3ec   : > { %9473 = vst.msk [vmem:[#allocation4 + $0xe0] sm:$0xff] %vm1523_vm11, %v9416_v26  ;;  %v12176_v26 = vld [vmem:[#allocation3 + $0xd0] sm:$0xff]  }
 0x3ed   : > { %9018 = vst.msk [vmem:[#allocation4 + $0x170] sm:$0xff] %vm1057_vm9, %v12176_v26  ;;  %v9777_v26 = vld [vmem:[#allocation4 + $0xc8] sm:$0xff] }
 0x3ee   : > { %v9418_v41 = vpop.permute.xlu1 %9417 }
 0x3ef   : > { %9474 = vst.msk [vmem:[#allocation4 + $0xf0] sm:$0xff] %vm1523_vm11, %v9418_v41  ;;  %v9420_v5 = vpop.permute.xlu0 %9419  ;;  %v9764_v41 = vld [vmem:[#allocation4 + $0x60] sm:$0xff] }
 0x3f0   : > { %9475 = vst.msk [vmem:[#allocation4 + $0x100] sm:$0xff] %vm1523_vm11, %v9420_v5 }
 0x3f1   : > { %10002 = vmatmul.mubr.bf16.vlgmr.msra.gmra.mrb[192].mxu1 %v9752_v39 }
 0x3f2   : > { %11447 = vmatprep.mubr.msk.bf16.mxu1 %vm1057_vm9, %v9755_v11  ;;  %v9422_v49 = vpop.permute.xlu1 %9421  ;;  %v9767_v11 = vld [vmem:[#allocation4 + $0x78] sm:$0xff] }
 0x3f3   : > { %9476 = vst.msk [vmem:[#allocation4 + $0x110] sm:$0xff] %vm1523_vm11, %v9422_v49  ;;  %v9424_v56 = vpop.permute.xlu0 %9423  ;;  %v8620_v57 = vpop.f32.mrb[196].mxu0 }
 0x3f4   : > { %9477 = vst.msk [vmem:[#allocation4 + $0x120] sm:$0xff] %vm1523_vm11, %v9424_v56  ;;  %v8622_v22 = vpop.f32.mrb[197].mxu0 }
 0x3f5   : > { %v8623_v10 = vpop.f32.mrb[198].mxu0  ;;  %v8243_v33 = vpop.f32.mrb[96].mxu1 }
 0x3f6   : > { %v9426_v61 = vpop.permute.xlu1 %9425  ;;  %v15632_v2 = vadd.f32 %v8612_v13, %v8243_v33  ;;  %v8245_v20 = vpop.f32.mrb[97].mxu1 }
 0x3f7   : > { %9478 = vst.msk [vmem:[#allocation4 + $0x130] sm:$0xff] %vm1523_vm11, %v9426_v61  ;;  %v8625_v43 = vpop.f32.mrb[199].mxu0  ;;  %v8246_v47 = vpop.f32.mrb[98].mxu1  ;;  %v9766_v20 = vld [vmem:[#allocation4 + $0x70] sm:$0xff] }
 0x3f8   : > { %v9428_v29 = vpop.permute.xlu0 %9427  ;;  %v15634_v63 = vadd.f32 %v8615_v59, %v8246_v47  ;;  %v8248_v19 = vpop.f32.mrb[99].mxu1  ;;  %v9769_v47 = vld [vmem:[#allocation4 + $0x88] sm:$0xff] }
 0x3f9   : > { %10010 = vmatmul.mubr.bf16.gmra.mrb[196].mxu1 %v9754_v4  ;;  %9479 = vst.msk [vmem:[#allocation4 + $0x140] sm:$0xff] %vm1523_vm11, %v9428_v29 }
 0x3fa   : > { %11448 = vmatprep.mubr.msk.bf16.mxu1 %vm1057_vm9, %v9757_v42  ;;  %v9430_v7 = vpop.permute.xlu1 %9429 }
 0x3fb   : > { %9480 = vst.msk [vmem:[#allocation4 + $0x150] sm:$0xff] %vm1523_vm11, %v9430_v7  ;;  %v8628_v58 = vpop.f32.mrb[200].mxu0 }
 0x3fc   : > { %v8630_v31 = vpop.f32.mrb[201].mxu0  ;;  %v9432_v21 = vpop.permute.xlu0 %9431 }
 0x3fd   : > { %v8631_v34 = vpop.f32.mrb[202].mxu0  ;;  %9481 = vst.msk [vmem:[#allocation4 + $0x160] sm:$0xff] %vm1523_vm11, %v9432_v21  ;;  %v9768_v21 = vld [vmem:[#allocation4 + $0x80] sm:$0xff] }
 0x3fe   : > { %v8633_v36 = vpop.f32.mrb[203].mxu0  ;;  %v8251_v25 = vpop.f32.mrb[100].mxu1 }
 0x3ff   : > { %v8253_v6 = vpop.f32.mrb[101].mxu1  ;;  %v9771_v36 = vld [vmem:[#allocation4 + $0x98] sm:$0xff] }
 0x400   : > { %v8254_v18 = vpop.f32.mrb[102].mxu1 }
 0x401   : > { %10018 = vmatmul.mubr.bf16.gmra.mrb[200].mxu1 %v9756_v45  ;;  %v15641_v32 = vadd.f32 %v8623_v10, %v8254_v18  ;;  %v8256_v37 = vpop.f32.mrb[103].mxu1 }
 0x402   : > { %11449 = vmatprep.mubr.msk.bf16.mxu1 %vm1057_vm9, %v9759_v24 }
 0x404   : > { %v8636_v46 = vpop.f32.mrb[204].mxu0 }
 0x405   : > { %v8638_v51 = vpop.f32.mrb[205].mxu0 }
 0x406   : > { %v8639_v30 = vpop.f32.mrb[206].mxu0  ;;  %v8259_v8 = vpop.f32.mrb[104].mxu1 }
 0x407   : > { %v8641_v9 = vpop.f32.mrb[207].mxu0  ;;  %v15643_v3 = vadd.f32 %v8628_v58, %v8259_v8  ;;  %v8261_v17 = vpop.f32.mrb[105].mxu1 }
 0x408   : > { %v8262_v27 = vpop.f32.mrb[106].mxu1  ;;  %v9773_v9 = vld [vmem:[#allocation4 + $0xa8] sm:$0xff] }
 0x409   : > { %10026 = vmatmul.mubr.bf16.gmra.mrb[204].mxu1 %v9758_v44  ;;  %v8264_v50 = vpop.f32.mrb[107].mxu1  ;;  %v9770_v44 = vld [vmem:[#allocation4 + $0x90] sm:$0xff] }
 0x40a   : > { %11450 = vmatprep.mubr.msk.bf16.mxu1 %vm1057_vm9, %v9761_v15 }
 0x410   : > { %v8644_v14 = vpop.f32.mrb[208].mxu0 }
 0x411   : > { %10034 = vmatmul.mubr.bf16.gmra.mrb[208].mxu1 %v9760_v0  ;;  %v8646_v54 = vpop.f32.mrb[209].mxu0 }
 0x412   : > { %11451 = vmatprep.mubr.msk.bf16.mxu1 %vm1057_vm9, %v9763_v38  ;;  %v8647_v16 = vpop.f32.mrb[210].mxu0 }
 0x413   : > { %v8649_v1 = vpop.f32.mrb[211].mxu0 }
 0x416   : > { %v8267_v23 = vpop.f32.mrb[108].mxu1 }
 0x417   : > { %v15647_v13 = vadd.f32 %v8636_v46, %v8267_v23  ;;  %v8269_v60 = vpop.f32.mrb[109].mxu1  ;;  %v9775_v23 = vld [vmem:[#allocation4 + $0xb8] sm:$0xff] }
 0x418   : > { %v8652_v40 = vpop.f32.mrb[212].mxu0  ;;  %v8270_v59 = vpop.f32.mrb[110].mxu1 }
 0x419   : > { %10042 = vmatmul.mubr.bf16.gmra.mrb[212].mxu1 %v9762_v35  ;;  %v8654_v55 = vpop.f32.mrb[213].mxu0  ;;  %v15650_v53 = vadd.f32 %v8639_v30, %v8270_v59  ;;  %v8272_v12 = vpop.f32.mrb[111].mxu1 }
 0x41a   : > { %11452 = vmatprep.mubr.msk.bf16.mxu1 %vm1057_vm9, %v9765_v52  ;;  %v8655_v48 = vpop.f32.mrb[214].mxu0 }
 0x41b   : > { %v8657_v62 = vpop.f32.mrb[215].mxu0 }
 0x41c   : > { %v9774_v62 = vld [vmem:[#allocation4 + $0xb0] sm:$0xff] }
 0x41e   : > { %v8275_v28 = vpop.f32.mrb[112].mxu1 }
 0x41f   : > { %v8277_v5 = vpop.f32.mrb[113].mxu1 }
 0x420   : > { %v8660_v39 = vpop.f32.mrb[216].mxu0  ;;  %v8278_v49 = vpop.f32.mrb[114].mxu1 }
 0x421   : > { %10050 = vmatmul.mubr.bf16.gmra.mrb[216].mxu1 %v9764_v41  ;;  %v8662_v56 = vpop.f32.mrb[217].mxu0  ;;  %v15654_v57 = vadd.f32 %v8647_v16, %v8278_v49  ;;  %v8280_v22 = vpop.f32.mrb[115].mxu1  ;;  %v9772_v16 = vld [vmem:[#allocation4 + $0xa0] sm:$0xff] }
 0x422   : > { %11453 = vmatprep.mubr.msk.bf16.mxu1 %vm1057_vm9, %v9767_v11  ;;  %v8663_v10 = vpop.f32.mrb[218].mxu0 }
 0x423   : > { %v8665_v61 = vpop.f32.mrb[219].mxu0 }
 0x426   : > { %v8283_v33 = vpop.f32.mrb[116].mxu1 }
 0x427   : > { %v15656_v43 = vadd.f32 %v8652_v40, %v8283_v33  ;;  %v8285_v4 = vpop.f32.mrb[117].mxu1  ;;  %v9776_v33 = vld [vmem:[#allocation4 + $0xc0] sm:$0xff] }
 0x428   : > { %v8286_v42 = vpop.f32.mrb[118].mxu1  ;;  %v8668_v29 = vpop.f32.mrb[220].mxu0  ;;  %v9779_v4 = vld [vmem:[#allocation4 + $0xd8] sm:$0xff] }
 0x429   : > { %10058 = vmatmul.mubr.bf16.gmra.mrb[220].mxu1 %v9766_v20  ;;  %v8288_v19 = vpop.f32.mrb[119].mxu1  ;;  %v8670_v7 = vpop.f32.mrb[221].mxu0 }
 0x42a   : > { %11454 = vmatprep.mubr.msk.bf16.mxu1 %vm1057_vm9, %v9769_v47  ;;  %v8671_v58 = vpop.f32.mrb[222].mxu0 }
 0x42b   : > { %v8673_v31 = vpop.f32.mrb[223].mxu0 }
 0x430   : > { %v8291_v34 = vpop.f32.mrb[120].mxu1 }
 0x431   : > { %10066 = vmatmul.mubr.bf16.gmra.mrb[224].mxu1 %v9768_v21  ;;  %v15659_v45 = vadd.f32 %v8660_v39, %v8291_v34  ;;  %v8293_v25 = vpop.f32.mrb[121].mxu1  ;;  %v8676_v24 = vpop.f32.mrb[224].mxu0 }
 0x432   : > { %11455 = vmatprep.mubr.msk.bf16.mxu1 %vm1057_vm9, %v9771_v36  ;;  %v8294_v6 = vpop.f32.mrb[122].mxu1  ;;  %v8678_v18 = vpop.f32.mrb[225].mxu0  ;;  %v9778_v36 = vld [vmem:[#allocation4 + $0xd0] sm:$0xff] }
 0x433   : > { %v15662_v37 = vadd.f32 %v8663_v10, %v8294_v6  ;;  %v8296_v46 = vpop.f32.mrb[123].mxu1  ;;  %v8679_v51 = vpop.f32.mrb[226].mxu0 }
 0x434   : > { %v8681_v30 = vpop.f32.mrb[227].mxu0 }
 0x438   : > { %v8299_v8 = vpop.f32.mrb[124].mxu1 }
 0x439   : > { %10074 = vmatmul.mubr.bf16.gmra.mrb[228].mxu1 %v9770_v44  ;;  %v8301_v15 = vpop.f32.mrb[125].mxu1  ;;  %v8684_v17 = vpop.f32.mrb[228].mxu0 }
 0x43a   : > { %11456 = vmatprep.mubr.msk.bf16.mxu1 %vm1057_vm9, %v9773_v9  ;;  %v8302_v27 = vpop.f32.mrb[126].mxu1  ;;  %v8686_v50 = vpop.f32.mrb[229].mxu0  ;;  %v9780_v15 = vld [vmem:[#allocation4 + $0xe0] sm:$0xff] }
 0x43b   : > { %v15665_v0 = vadd.f32 %v8671_v58, %v8302_v27  ;;  %v8304_v14 = vpop.f32.mrb[127].mxu1  ;;  %v8687_v38 = vpop.f32.mrb[230].mxu0  ;;  %v9783_v27 = vld [vmem:[#allocation4 + $0xf8] sm:$0xff] }
 0x43c   : > { %v8689_v54 = vpop.f32.mrb[231].mxu0 }
 0x440   : > { %v8307_v1 = vpop.f32.mrb[128].mxu1 }
 0x441   : > { %10082 = vmatmul.mubr.bf16.gmra.mrb[232].mxu1 %v9772_v16  ;;  %v15667_v35 = vadd.f32 %v8676_v24, %v8307_v1  ;;  %v8309_v60 = vpop.f32.mrb[129].mxu1  ;;  %v8692_v40 = vpop.f32.mrb[232].mxu0  ;;  %v9781_v24 = vld [vmem:[#allocation4 + $0xe8] sm:$0xff] }
 0x442   : > { %11457 = vmatprep.mubr.msk.bf16.mxu1 %vm1057_vm9, %v9775_v23  ;;  %v8310_v52 = vpop.f32.mrb[130].mxu1  ;;  %v8694_v59 = vpop.f32.mrb[233].mxu0 }
 0x443   : > { %v8312_v55 = vpop.f32.mrb[131].mxu1  ;;  %v8695_v12 = vpop.f32.mrb[234].mxu0  ;;  %v9782_v52 = vld [vmem:[#allocation4 + $0xf0] sm:$0xff] }
 0x444   : > { %v8697_v48 = vpop.f32.mrb[235].mxu0  ;;  %v9785_v55 = vld [vmem:[#allocation4 + $0x108] sm:$0xff] }
 0x447   : > { %v9434_v34 = vpop.permute.xlu1 %9433 }
 0x448   : > { %v8315_v28 = vpop.f32.mrb[132].mxu1  ;;  %9482 = vst.msk [vmem:[#allocation4 + $0x170] sm:$0xff] %vm1523_vm11, %v9434_v34 }
 0x449   : > { %10090 = vmatmul.mubr.bf16.gmra.mrb[236].mxu1 %v9774_v62  ;;  %v15670_v41 = vadd.f32 %v8684_v17, %v8315_v28  ;;  %v8317_v5 = vpop.f32.mrb[133].mxu1  ;;  %v8700_v39 = vpop.f32.mrb[236].mxu0 }
 0x44a   : > { %11458 = vmatprep.mubr.msk.bf16.mxu1 %vm1057_vm9, %v9777_v26  ;;  %v8318_v11 = vpop.f32.mrb[134].mxu1  ;;  %v8702_v49 = vpop.f32.mrb[237].mxu0 }
 0x44b   : > { %v15673_v56 = vadd.f32 %v8687_v38, %v8318_v11  ;;  %v8320_v22 = vpop.f32.mrb[135].mxu1  ;;  %v8703_v10 = vpop.f32.mrb[238].mxu0  ;;  %v9784_v49 = vld [vmem:[#allocation4 + $0x100] sm:$0xff] }
 0x44c   : > { %v8705_v61 = vpop.f32.mrb[239].mxu0  ;;  %v9787_v10 = vld [vmem:[#allocation4 + $0x118] sm:$0xff] }
 0x450   : > { %v8323_v20 = vpop.f32.mrb[136].mxu1 }
 0x451   : > { %10098 = vmatmul.mubr.bf16.gmra.mrb[240].mxu1 %v9776_v33  ;;  %v8325_v47 = vpop.f32.mrb[137].mxu1  ;;  %v8708_v42 = vpop.f32.mrb[240].mxu0 }
 0x452   : > { %11459 = vmatprep.mubr.msk.bf16.mxu1 %vm1057_vm9, %v9779_v4  ;;  %v8326_v29 = vpop.f32.mrb[138].mxu1  ;;  %v8710_v19 = vpop.f32.mrb[241].mxu0 }
 0x453   : > { %v15676_v7 = vadd.f32 %v8695_v12, %v8326_v29  ;;  %v8328_v58 = vpop.f32.mrb[139].mxu1  ;;  %v8711_v31 = vpop.f32.mrb[242].mxu0 }
 0x454   : > { %v8713_v21 = vpop.f32.mrb[243].mxu0  ;;  %v9786_v58 = vld [vmem:[#allocation4 + $0x110] sm:$0xff] }
 0x458   : > { %v8331_v25 = vpop.f32.mrb[140].mxu1 }
 0x459   : > { %10106 = vmatmul.mubr.bf16.gmra.mrb[244].mxu1 %v9778_v36  ;;  %v15679_v6 = vadd.f32 %v8700_v39, %v8331_v25  ;;  %v8333_v18 = vpop.f32.mrb[141].mxu1  ;;  %v8716_v46 = vpop.f32.mrb[244].mxu0 }
 0x45a   : > { %11460 = vmatprep.mubr.msk.bf16.mxu1 %vm1057_vm9, %v9781_v24  ;;  %v8334_v51 = vpop.f32.mrb[142].mxu1  ;;  %v8718_v30 = vpop.f32.mrb[245].mxu0 }
 0x45b   : > { %v8336_v44 = vpop.f32.mrb[143].mxu1  ;;  %v8719_v8 = vpop.f32.mrb[246].mxu0 }
 0x45c   : > { %v8721_v9 = vpop.f32.mrb[247].mxu0 }
 0x45d   : > { %v9791_v9 = vld [vmem:[#allocation4 + $0x138] sm:$0xff] }
 0x460   : > { %v8339_v17 = vpop.f32.mrb[144].mxu1 }
 0x461   : > { %10114 = vmatmul.mubr.bf16.gmra.mrb[248].mxu1 %v9780_v15  ;;  %v15682_v50 = vadd.f32 %v8708_v42, %v8339_v17  ;;  %v8341_v14 = vpop.f32.mrb[145].mxu1  ;;  %v8724_v38 = vpop.f32.mrb[248].mxu0 }
 0x462   : > { %11461 = vmatprep.mubr.msk.bf16.mxu1 %vm1057_vm9, %v9783_v27  ;;  %v8342_v54 = vpop.f32.mrb[146].mxu1  ;;  %v8726_v16 = vpop.f32.mrb[249].mxu0 }
 0x463   : > { %v15685_v1 = vadd.f32 %v8711_v31, %v8342_v54  ;;  %v8344_v23 = vpop.f32.mrb[147].mxu1  ;;  %v8727_v60 = vpop.f32.mrb[250].mxu0  ;;  %v9789_v31 = vld [vmem:[#allocation4 + $0x128] sm:$0xff]  ;;  %v9790_v54 = vld [vmem:[#allocation4 + $0x130] sm:$0xff] }
 0x464   : > { %v8729_v40 = vpop.f32.mrb[251].mxu0  ;;  %v9793_v16 = vld [vmem:[#allocation4 + $0x148] sm:$0xff] }
 0x468   : > { %v8347_v59 = vpop.f32.mrb[148].mxu1 }
 0x469   : > { %10122 = vmatmul.mubr.bf16.gmra.mrb[252].mxu1 %v9782_v52  ;;  %v8349_v12 = vpop.f32.mrb[149].mxu1  ;;  %v8732_v48 = vpop.f32.mrb[252].mxu0 }
 0x46a   : > { %11462 = vmatprep.mubr.msk.bf16.mxu1 %vm1057_vm9, %v9785_v55  ;;  %v8350_v62 = vpop.f32.mrb[150].mxu1  ;;  %v8734_v28 = vpop.f32.mrb[253].mxu0 }
 0x46b   : > { %v15688_v26 = vadd.f32 %v8719_v8, %v8350_v62  ;;  %v8352_v5 = vpop.f32.mrb[151].mxu1  ;;  %v8735_v39 = vpop.f32.mrb[254].mxu0  ;;  %v9788_v8 = vld [vmem:[#allocation4 + $0x120] sm:$0xff] }
 0x46c   : > { %v8737_v11 = vpop.f32.mrb[255].mxu0  ;;  %v9792_v28 = vld [vmem:[#allocation4 + $0x140] sm:$0xff]  ;;  %v9795_v5 = vld [vmem:[#allocation4 + $0x158] sm:$0xff] }
 0x470   : > { %v8355_v22 = vpop.f32.mrb[152].mxu1 }
 0x471   : > { %10130 = vmatmul.mubr.bf16.gmra.mrb[0].mxu1 %v9784_v49  ;;  %v15690_v61 = vadd.f32 %v8724_v38, %v8355_v22  ;;  %v8357_v33 = vpop.f32.mrb[153].mxu1  ;;  %v8740_v20 = vpop.f32.mrb[0].mxu0 }
 0x472   : > { %11463 = vmatprep.mubr.msk.bf16.mxu1 %vm1057_vm9, %v9787_v10  ;;  %v8358_v4 = vpop.f32.mrb[154].mxu1  ;;  %v8742_v47 = vpop.f32.mrb[1].mxu0 }
 0x473   : > { %v8360_v42 = vpop.f32.mrb[155].mxu1  ;;  %v8743_v29 = vpop.f32.mrb[2].mxu0 }
 0x474   : > { %v8745_v19 = vpop.f32.mrb[3].mxu0 }
 0x475   : > { %v9797_v19 = vld [vmem:[#allocation4 + $0x168] sm:$0xff] }
 0x479   : > { %10138 = vmatmul.mubr.bf16.gmra.mrb[4].mxu1 %v9786_v58 }
 0x47a   : > { %11464 = vmatprep.mubr.msk.bf16.mxu1 %vm1057_vm9, %v9789_v31  ;;  %v8363_v21 = vpop.f32.mrb[156].mxu1 }
 0x47b   : > { %v8748_v34 = vpop.f32.mrb[4].mxu0  ;;  %v15694_v36 = vadd.f32 %v8732_v48, %v8363_v21  ;;  %v8365_v25 = vpop.f32.mrb[157].mxu1 }
 0x47c   : > { %v8750_v24 = vpop.f32.mrb[5].mxu0  ;;  %v8366_v18 = vpop.f32.mrb[158].mxu1 }
 0x47d   : > { %v8751_v46 = vpop.f32.mrb[6].mxu0  ;;  %v15696_v51 = vadd.f32 %v8735_v39, %v8366_v18  ;;  %v8368_v30 = vpop.f32.mrb[159].mxu1 }
 0x47e   : > { %v8753_v44 = vpop.f32.mrb[7].mxu0 }
 0x47f   : > { %v9799_v44 = vld [vmem:[#allocation4 + $0x178] sm:$0xff] }
 0x481   : > { %10146 = vmatmul.mubr.bf16.gmra.mrb[8].mxu1 %v9788_v8  ;;  %v9796_v8 = vld [vmem:[#allocation4 + $0x160] sm:$0xff] }
 0x482   : > { %11465 = vmatprep.mubr.msk.bf16.mxu1 %vm1057_vm9, %v9791_v9  ;;  %v8371_v15 = vpop.f32.mrb[160].mxu1 }
 0x483   : > { %v8373_v17 = vpop.f32.mrb[161].mxu1 }
 0x484   : > { %v8374_v27 = vpop.f32.mrb[162].mxu1 }
 0x485   : > { %v15699_v14 = vadd.f32 %v8743_v29, %v8374_v27  ;;  %v8376_v38 = vpop.f32.mrb[163].mxu1  ;;  %v9794_v29 = vld [vmem:[#allocation4 + $0x150] sm:$0xff] }
 0x489   : > { %10154 = vmatmul.mubr.bf16.gmra.mrb[12].mxu1 %v9790_v54 }
 0x48a   : > { %v8756_v23 = vpop.f32.mrb[8].mxu0  ;;  %11466 = vmatprep.mubr.msk.bf16.mxu1 %vm1057_vm9, %v9793_v16 }
 0x48b   : > { %v8758_v60 = vpop.f32.mrb[9].mxu0  ;;  %v8379_v40 = vpop.f32.mrb[164].mxu1 }
 0x48c   : > { %v15702_v52 = vadd.f32 %v8748_v34, %v8379_v40  ;;  %v8759_v59 = vpop.f32.mrb[10].mxu0  ;;  %v8381_v55 = vpop.f32.mrb[165].mxu1  ;;  %v9798_v60 = vld [vmem:[#allocation4 + $0x170] sm:$0xff] }
 0x48d   : > { %v8761_v12 = vpop.f32.mrb[11].mxu0  ;;  %v8382_v48 = vpop.f32.mrb[166].mxu1 }
 0x48e   : > { %v8384_v62 = vpop.f32.mrb[167].mxu1 }
 0x491   : > { %10162 = vmatmul.mubr.bf16.gmra.mrb[16].mxu1 %v9792_v28 }
 0x492   : > { %v8764_v39 = vpop.f32.mrb[12].mxu0  ;;  %11467 = vmatprep.mubr.msk.bf16.mxu1 %vm1057_vm9, %v9795_v5 }
 0x493   : > { %v8766_v11 = vpop.f32.mrb[13].mxu0 }
 0x494   : > { %v8387_v49 = vpop.f32.mrb[168].mxu1  ;;  %v8767_v22 = vpop.f32.mrb[14].mxu0 }
 0x495   : > { %v15705_v10 = vadd.f32 %v8756_v23, %v8387_v49  ;;  %v8389_v33 = vpop.f32.mrb[169].mxu1  ;;  %v8769_v20 = vpop.f32.mrb[15].mxu0 }
 0x496   : > { %v8390_v4 = vpop.f32.mrb[170].mxu1 }
 0x497   : > { %v15707_v47 = vadd.f32 %v8759_v59, %v8390_v4  ;;  %v8392_v42 = vpop.f32.mrb[171].mxu1 }
 0x499   : > { %10170 = vmatmul.mubr.bf16.gmra.mrb[20].mxu1 %v9794_v29 }
 0x49a   : > { %v8772_v58 = vpop.f32.mrb[16].mxu0  ;;  %11468 = vmatprep.mubr.msk.bf16.mxu1 %vm1057_vm9, %v9797_v19 }
 0x49b   : > { %v8774_v31 = vpop.f32.mrb[17].mxu0 }
 0x49c   : > { %v8395_v21 = vpop.f32.mrb[172].mxu1  ;;  %v8775_v34 = vpop.f32.mrb[18].mxu0 }
 0x49d   : > { %v8397_v25 = vpop.f32.mrb[173].mxu1  ;;  %v8777_v24 = vpop.f32.mrb[19].mxu0 }
 0x49e   : > { %v8398_v18 = vpop.f32.mrb[174].mxu1 }
 0x49f   : > { %v15710_v46 = vadd.f32 %v8767_v22, %v8398_v18  ;;  %v8400_v30 = vpop.f32.mrb[175].mxu1 }
 0x4a1   : > { %10178 = vmatmul.mubr.bf16.gmra.mrb[24].mxu1 %v9796_v8 }
 0x4a2   : > { %v8780_v9 = vpop.f32.mrb[20].mxu0  ;;  %11469 = vmatprep.mubr.msk.bf16.mxu1 %vm1057_vm9, %v9799_v44  ;;  %v15726_v44 = vld [vmem:[%s15981_s4] ss:$0 sm:$0xff] }
 0x4a3   : > { %v8782_v15 = vpop.f32.mrb[21].mxu0 }
 0x4a4   : > { %v8403_v17 = vpop.f32.mrb[176].mxu1  ;;  %v8783_v27 = vpop.f32.mrb[22].mxu0 }
 0x4a5   : > { %v15713_v38 = vadd.f32 %v8772_v58, %v8403_v17  ;;  %v8405_v54 = vpop.f32.mrb[177].mxu1  ;;  %v8785_v16 = vpop.f32.mrb[23].mxu0 }
 0x4a6   : > { %v8406_v23 = vpop.f32.mrb[178].mxu1 }
 0x4a7   : > { %v8408_v40 = vpop.f32.mrb[179].mxu1 }
 0x4a8   : > { %v10347_v40 = vld [vmem:[%s12561_s13] sm:$0xff] }
 0x4a9   : > { %10186 = vmatmul.mubr.bf16.gmra.mrb[28].mxu1 %v9798_v60 }
 0x4aa   : > { %v8788_v59 = vpop.f32.mrb[24].mxu0 }
 0x4ab   : > { %v8790_v55 = vpop.f32.mrb[25].mxu0 }
 0x4ac   : > { %v8411_v12 = vpop.f32.mrb[180].mxu1  ;;  %v8791_v48 = vpop.f32.mrb[26].mxu0 }
 0x4ad   : > { %v15715_v62 = vadd.f32 %v8780_v9, %v8411_v12  ;;  %v8413_v28 = vpop.f32.mrb[181].mxu1  ;;  %v8793_v5 = vpop.f32.mrb[27].mxu0 }
 0x4ae   : > { %v8414_v39 = vpop.f32.mrb[182].mxu1 }
 0x4af   : > { %v15717_v11 = vadd.f32 %v8783_v27, %v8414_v39  ;;  %v8416_v49 = vpop.f32.mrb[183].mxu1 }
 0x4b2   : > { %v8796_v22 = vpop.f32.mrb[28].mxu0 }
 0x4b3   : > { %v8798_v33 = vpop.f32.mrb[29].mxu0 }
 0x4b4   : > { %v8419_v20 = vpop.f32.mrb[184].mxu1  ;;  %v8799_v4 = vpop.f32.mrb[30].mxu0 }
 0x4b5   : > { %v8421_v42 = vpop.f32.mrb[185].mxu1  ;;  %v8801_v29 = vpop.f32.mrb[31].mxu0 }
 0x4b6   : > { %v8422_v19 = vpop.f32.mrb[186].mxu1 }
 0x4b7   : > { %v15719_v58 = vadd.f32 %v8791_v48, %v8422_v19  ;;  %v8424_v31 = vpop.f32.mrb[187].mxu1  ;;  %v10348_v48 = vld [vmem:[%s12561_s13 + $0x8] sm:$0xff]  ;;  %v11471_v19 = vld [vmem:[%s12561_s13 + $0x10] sm:$0xff] }
 0x4bc   : > { %v8427_v21 = vpop.f32.mrb[188].mxu1 }
 0x4bd   : > { %v15721_v34 = vadd.f32 %v8796_v22, %v8427_v21  ;;  %v8429_v25 = vpop.f32.mrb[189].mxu1 }
 0x4be   : > { %v8430_v24 = vpop.f32.mrb[190].mxu1 }
 0x4bf   : > { %v8432_v18 = vpop.f32.mrb[191].mxu1 }
 0x4c4   : > { %v10003_v30 = vpop.f32.mrb[192].mxu1 }
 0x4c5   : > { %v10194_v8 = vadd.f32 %v10003_v30, %v15632_v2  ;;  %v10005_v9 = vpop.f32.mrb[193].mxu1 }
 0x4c6   : > { %v10006_v15 = vpop.f32.mrb[194].mxu1 }
 0x4c7   : > { %v10249_v17 = vadd.f32 %v15726_v44, %v10194_v8  ;;  %v10195_v27 = vadd.f32 %v10006_v15, %v15634_v63  ;;  %v10008_v54 = vpop.f32.mrb[195].mxu1 }
 0x4c9   : > { %10297 = vst.msk [vmem:[#allocation5] sm:$0xff] %vm1057_vm9, %v10249_v17  ;;  %v10250_v16 = vadd.f32 %v15726_v44, %v10195_v27 }
 0x4cb   : > { %10298 = vst.msk [vmem:[#allocation5 + $0x8] sm:$0xff] %vm1057_vm9, %v10250_v16 }
 0x4cc   : > { %v10011_v23 = vpop.f32.mrb[196].mxu1 }
 0x4cd   : > { %v10013_v60 = vpop.f32.mrb[197].mxu1 }
 0x4ce   : > { %v10014_v59 = vpop.f32.mrb[198].mxu1 }
 0x4cf   : > { %v10197_v2 = vadd.f32 %v10014_v59, %v15641_v32  ;;  %v10016_v55 = vpop.f32.mrb[199].mxu1 }
 0x4d0   : > { %v10345_v12 = vld [vmem:[#allocation5] sm:$0xff] }
 0x4d1   : > { %v10349_v63 = vadd.f32 %v10347_v40, %v10345_v12  ;;  %v10252_v28 = vadd.f32 %v15726_v44, %v10197_v2  ;;  %v11475_v40 = vld [vmem:[%s12561_s13 + $0x20] sm:$0xff]  ;;  %v11476_v12 = vld [vmem:[%s12561_s13 + $0x28] sm:$0xff] }
 0x4d2   : > { %v10346_v5 = vld [vmem:[#allocation5 + $0x8] sm:$0xff] }
 0x4d3   : > { %v10351_v39 = vmax.f32 %v10349_v63, 0.0  ;;  %v10350_v49 = vadd.f32 %v10348_v48, %v10346_v5  ;;  %10300 = vst.msk [vmem:[#allocation5 + $0x18] sm:$0xff] %vm1057_vm9, %v10252_v28 }
 0x4d4   : > { %v10019_v22 = vpop.f32.mrb[200].mxu1 }
 0x4d5   : > { %10353 = vst.msk [vmem:[%s15742_s8] sm:$0xff] %vm1057_vm9, %v10351_v39  ;;  %v10352_v32 = vmax.f32 %v10350_v49, 0.0  ;;  %v10198_v33 = vadd.f32 %v10019_v22, %v15643_v3  ;;  %v10021_v20 = vpop.f32.mrb[201].mxu1  ;;  %v11472_v3 = vld [vmem:[%s12561_s13 + $0x18] sm:$0xff] }
 0x4d6   : > { %v10022_v4 = vpop.f32.mrb[202].mxu1 }
 0x4d7   : > { %10354 = vst.msk [vmem:[%s15742_s8 + $0x8] sm:$0xff] %vm1057_vm9, %v10352_v32  ;;  %v10253_v42 = vadd.f32 %v15726_v44, %v10198_v33  ;;  %v10024_v29 = vpop.f32.mrb[203].mxu1 }
 0x4d9   : > { %10301 = vst.msk [vmem:[#allocation5 + $0x20] sm:$0xff] %vm1057_vm9, %v10253_v42  ;;  %v11479_v42 = vld [vmem:[%s12561_s13 + $0x30] sm:$0xff] }
 0x4da   : > { %v10355_v31 = vld [vmem:[#allocation5 + $0x18] sm:$0xff] }
 0x4db   : > { %v10359_v21 = vadd.f32 %v11471_v19, %v10355_v31 }
 0x4dc   : > { %v10027_v25 = vpop.f32.mrb[204].mxu1 }
 0x4dd   : > { %v10361_v24 = vmax.f32 %v10359_v21, 0.0  ;;  %v10200_v18 = vadd.f32 %v10027_v25, %v15647_v13  ;;  %v10029_v30 = vpop.f32.mrb[205].mxu1 }
 0x4de   : > { %v10030_v8 = vpop.f32.mrb[206].mxu1 }
 0x4df   : > { %11473 = vst.msk [vmem:[%s15742_s8 + $0x10] sm:$0xff] %vm1057_vm9, %v10361_v24  ;;  %v10255_v9 = vadd.f32 %v15726_v44, %v10200_v18  ;;  %v10201_v15 = vadd.f32 %v10030_v8, %v15650_v53  ;;  %v10032_v17 = vpop.f32.mrb[207].mxu1 }
 0x4e0   : > { %v10356_v27 = vld [vmem:[#allocation5 + $0x20] sm:$0xff] }
 0x4e1   : > { %v10360_v54 = vadd.f32 %v11472_v3, %v10356_v27  ;;  %10303 = vst.msk [vmem:[#allocation5 + $0x30] sm:$0xff] %vm1057_vm9, %v10255_v9  ;;  %v10256_v16 = vadd.f32 %v15726_v44, %v10201_v15 }
 0x4e3   : > { %v10362_v23 = vmax.f32 %v10360_v54, 0.0  ;;  %10304 = vst.msk [vmem:[#allocation5 + $0x38] sm:$0xff] %vm1057_vm9, %v10256_v16  ;;  %v11483_v16 = vld [vmem:[%s12561_s13 + $0x40] sm:$0xff] }
 0x4e4   : > { %v10035_v13 = vpop.f32.mrb[208].mxu1 }
 0x4e5   : > { %11474 = vst.msk [vmem:[%s15742_s8 + $0x18] sm:$0xff] %vm1057_vm9, %v10362_v23  ;;  %v10037_v60 = vpop.f32.mrb[209].mxu1 }
 0x4e6   : > { %v10038_v59 = vpop.f32.mrb[210].mxu1 }
 0x4e7   : > { %v10203_v53 = vadd.f32 %v10038_v59, %v15654_v57  ;;  %v10040_v2 = vpop.f32.mrb[211].mxu1 }
 0x4e8   : > { %v10366_v55 = vld [vmem:[#allocation5 + $0x30] sm:$0xff] }
 0x4e9   : > { %v10370_v48 = vadd.f32 %v11475_v40, %v10366_v55  ;;  %v10258_v63 = vadd.f32 %v15726_v44, %v10203_v53  ;;  %v11484_v40 = vld [vmem:[%s12561_s13 + $0x48] sm:$0xff] }
 0x4ea   : > { %v10367_v28 = vld [vmem:[#allocation5 + $0x38] sm:$0xff] }
 0x4eb   : > { %v10372_v5 = vmax.f32 %v10370_v48, 0.0  ;;  %v10371_v39 = vadd.f32 %v11476_v12, %v10367_v28  ;;  %10306 = vst.msk [vmem:[#allocation5 + $0x48] sm:$0xff] %vm1057_vm9, %v10258_v63 }
 0x4ec   : > { %v10043_v49 = vpop.f32.mrb[212].mxu1 }
 0x4ed   : > { %11477 = vst.msk [vmem:[%s15742_s8 + $0x20] sm:$0xff] %vm1057_vm9, %v10372_v5  ;;  %v10373_v22 = vmax.f32 %v10371_v39, 0.0  ;;  %v10204_v57 = vadd.f32 %v10043_v49, %v15656_v43  ;;  %v10045_v32 = vpop.f32.mrb[213].mxu1  ;;  %v11480_v43 = vld [vmem:[%s12561_s13 + $0x38] sm:$0xff] }
 0x4ee   : > { %v10046_v33 = vpop.f32.mrb[214].mxu1 }
 0x4ef   : > { %11478 = vst.msk [vmem:[%s15742_s8 + $0x28] sm:$0xff] %vm1057_vm9, %v10373_v22  ;;  %v10259_v20 = vadd.f32 %v15726_v44, %v10204_v57  ;;  %v10048_v4 = vpop.f32.mrb[215].mxu1  ;;  %v11487_v22 = vld [vmem:[%s12561_s13 + $0x50] sm:$0xff] }
 0x4f1   : > { %10307 = vst.msk [vmem:[#allocation5 + $0x50] sm:$0xff] %vm1057_vm9, %v10259_v20 }
 0x4f2   : > { %v10377_v29 = vld [vmem:[#allocation5 + $0x48] sm:$0xff] }
 0x4f3   : > { %v10381_v19 = vadd.f32 %v11479_v42, %v10377_v29 }
 0x4f4   : > { %v10051_v31 = vpop.f32.mrb[216].mxu1 }
 0x4f5   : > { %v10383_v21 = vmax.f32 %v10381_v19, 0.0  ;;  %v10206_v25 = vadd.f32 %v10051_v31, %v15659_v45  ;;  %v10053_v24 = vpop.f32.mrb[217].mxu1 }
 0x4f6   : > { %v10054_v18 = vpop.f32.mrb[218].mxu1 }
 0x4f7   : > { %11481 = vst.msk [vmem:[%s15742_s8 + $0x30] sm:$0xff] %vm1057_vm9, %v10383_v21  ;;  %v10261_v30 = vadd.f32 %v15726_v44, %v10206_v25  ;;  %v10207_v3 = vadd.f32 %v10054_v18, %v15662_v37  ;;  %v10056_v8 = vpop.f32.mrb[219].mxu1 }
 0x4f8   : > { %v10378_v9 = vld [vmem:[#allocation5 + $0x50] sm:$0xff] }
 0x4f9   : > { %v10382_v15 = vadd.f32 %v11480_v43, %v10378_v9  ;;  %10309 = vst.msk [vmem:[#allocation5 + $0x60] sm:$0xff] %vm1057_vm9, %v10261_v30  ;;  %v10262_v17 = vadd.f32 %v15726_v44, %v10207_v3  ;;  %v11491_v3 = vld [vmem:[%s12561_s13 + $0x60] sm:$0xff] }
 0x4fb   : > { %v10384_v27 = vmax.f32 %v10382_v15, 0.0  ;;  %10310 = vst.msk [vmem:[#allocation5 + $0x68] sm:$0xff] %vm1057_vm9, %v10262_v17  ;;  %v11492_v17 = vld [vmem:[%s12561_s13 + $0x68] sm:$0xff] }
 0x4fc   : > { %v10059_v45 = vpop.f32.mrb[220].mxu1 }
 0x4fd   : > { %11482 = vst.msk [vmem:[%s15742_s8 + $0x38] sm:$0xff] %vm1057_vm9, %v10384_v27  ;;  %v10061_v54 = vpop.f32.mrb[221].mxu1 }
 0x4fe   : > { %v10062_v23 = vpop.f32.mrb[222].mxu1 }
 0x4ff   : > { %v10209_v37 = vadd.f32 %v10062_v23, %v15665_v0  ;;  %v10064_v13 = vpop.f32.mrb[223].mxu1 }
 0x500   : > { %v10388_v60 = vld [vmem:[#allocation5 + $0x60] sm:$0xff] }
 0x501   : > { %v10392_v59 = vadd.f32 %v11483_v16, %v10388_v60  ;;  %v10264_v53 = vadd.f32 %v15726_v44, %v10209_v37 }
 0x502   : > { %v10389_v2 = vld [vmem:[#allocation5 + $0x68] sm:$0xff] }
 0x503   : > { %v10394_v55 = vmax.f32 %v10392_v59, 0.0  ;;  %v10393_v12 = vadd.f32 %v11484_v40, %v10389_v2  ;;  %10312 = vst.msk [vmem:[#allocation5 + $0x78] sm:$0xff] %vm1057_vm9, %v10264_v53  ;;  %v11495_v2 = vld [vmem:[%s12561_s13 + $0x70] sm:$0xff] }
 0x504   : > { %v10067_v48 = vpop.f32.mrb[224].mxu1 }
 0x505   : > { %11485 = vst.msk [vmem:[%s15742_s8 + $0x40] sm:$0xff] %vm1057_vm9, %v10394_v55  ;;  %v10395_v63 = vmax.f32 %v10393_v12, 0.0  ;;  %v10210_v0 = vadd.f32 %v10067_v48, %v15667_v35  ;;  %v10069_v28 = vpop.f32.mrb[225].mxu1  ;;  %v11488_v35 = vld [vmem:[%s12561_s13 + $0x58] sm:$0xff] }
 0x506   : > { %v10070_v5 = vpop.f32.mrb[226].mxu1 }
 0x507   : > { %11486 = vst.msk [vmem:[%s15742_s8 + $0x48] sm:$0xff] %vm1057_vm9, %v10395_v63  ;;  %v10265_v39 = vadd.f32 %v15726_v44, %v10210_v0  ;;  %v10072_v49 = vpop.f32.mrb[227].mxu1 }
 0x509   : > { %10313 = vst.msk [vmem:[#allocation5 + $0x80] sm:$0xff] %vm1057_vm9, %v10265_v39 }
 0x50a   : > { %v10399_v57 = vld [vmem:[#allocation5 + $0x78] sm:$0xff] }
 0x50b   : > { %v10403_v32 = vadd.f32 %v11487_v22, %v10399_v57 }
 0x50c   : > { %v10075_v33 = vpop.f32.mrb[228].mxu1 }
 0x50d   : > { %v10405_v20 = vmax.f32 %v10403_v32, 0.0  ;;  %v10212_v4 = vadd.f32 %v10075_v33, %v15670_v41  ;;  %v10077_v42 = vpop.f32.mrb[229].mxu1 }
 0x50e   : > { %v10078_v29 = vpop.f32.mrb[230].mxu1  ;;  %v11499_v42 = vld [vmem:[%s12561_s13 + $0x80] sm:$0xff] }
 0x50f   : > { %11489 = vst.msk [vmem:[%s15742_s8 + $0x50] sm:$0xff] %vm1057_vm9, %v10405_v20  ;;  %v10267_v19 = vadd.f32 %v15726_v44, %v10212_v4  ;;  %v10213_v31 = vadd.f32 %v10078_v29, %v15673_v56  ;;  %v10080_v21 = vpop.f32.mrb[231].mxu1 }
 0x510   : > { %v10400_v25 = vld [vmem:[#allocation5 + $0x80] sm:$0xff] }
 0x511   : > { %v10404_v24 = vadd.f32 %v11488_v35, %v10400_v25  ;;  %10315 = vst.msk [vmem:[#allocation5 + $0x90] sm:$0xff] %vm1057_vm9, %v10267_v19  ;;  %v10268_v43 = vadd.f32 %v15726_v44, %v10213_v31  ;;  %v11500_v31 = vld [vmem:[%s12561_s13 + $0x88] sm:$0xff] }
 0x513   : > { %v10406_v18 = vmax.f32 %v10404_v24, 0.0  ;;  %10316 = vst.msk [vmem:[#allocation5 + $0x98] sm:$0xff] %vm1057_vm9, %v10268_v43 }
 0x514   : > { %v10083_v41 = vpop.f32.mrb[232].mxu1 }
 0x515   : > { %11490 = vst.msk [vmem:[%s15742_s8 + $0x58] sm:$0xff] %vm1057_vm9, %v10406_v18  ;;  %v10085_v30 = vpop.f32.mrb[233].mxu1 }
 0x516   : > { %v10086_v8 = vpop.f32.mrb[234].mxu1 }
 0x517   : > { %v10215_v56 = vadd.f32 %v10086_v8, %v15676_v7  ;;  %v10088_v9 = vpop.f32.mrb[235].mxu1 }
 0x518   : > { %v10410_v15 = vld [vmem:[#allocation5 + $0x90] sm:$0xff] }
 0x519   : > { %v10414_v27 = vadd.f32 %v11491_v3, %v10410_v15  ;;  %v10270_v45 = vadd.f32 %v15726_v44, %v10215_v56  ;;  %v11503_v15 = vld [vmem:[%s12561_s13 + $0x90] sm:$0xff] }
 0x51a   : > { %v10411_v54 = vld [vmem:[#allocation5 + $0x98] sm:$0xff] }
 0x51b   : > { %v10416_v16 = vmax.f32 %v10414_v27, 0.0  ;;  %v10415_v23 = vadd.f32 %v11492_v17, %v10411_v54  ;;  %10318 = vst.msk [vmem:[#allocation5 + $0xa8] sm:$0xff] %vm1057_vm9, %v10270_v45 }
 0x51c   : > { %v10091_v37 = vpop.f32.mrb[236].mxu1 }
 0x51d   : > { %11493 = vst.msk [vmem:[%s15742_s8 + $0x60] sm:$0xff] %vm1057_vm9, %v10416_v16  ;;  %v10417_v13 = vmax.f32 %v10415_v23, 0.0  ;;  %v10216_v7 = vadd.f32 %v10091_v37, %v15679_v6  ;;  %v10093_v60 = vpop.f32.mrb[237].mxu1  ;;  %v11496_v6 = vld [vmem:[%s12561_s13 + $0x78] sm:$0xff] }
 0x51e   : > { %v10094_v40 = vpop.f32.mrb[238].mxu1 }
 0x51f   : > { %11494 = vst.msk [vmem:[%s15742_s8 + $0x68] sm:$0xff] %vm1057_vm9, %v10417_v13  ;;  %v10271_v59 = vadd.f32 %v15726_v44, %v10216_v7  ;;  %v10096_v53 = vpop.f32.mrb[239].mxu1 }
 0x521   : > { %10319 = vst.msk [vmem:[#allocation5 + $0xb0] sm:$0xff] %vm1057_vm9, %v10271_v59 }
 0x522   : > { %v10421_v55 = vld [vmem:[#allocation5 + $0xa8] sm:$0xff] }
 0x523   : > { %v10425_v12 = vadd.f32 %v11495_v2, %v10421_v55 }
 0x524   : > { %v10099_v48 = vpop.f32.mrb[240].mxu1 }
 0x525   : > { %v10427_v63 = vmax.f32 %v10425_v12, 0.0  ;;  %v10218_v0 = vadd.f32 %v10099_v48, %v15682_v50  ;;  %v10101_v28 = vpop.f32.mrb[241].mxu1  ;;  %v11507_v12 = vld [vmem:[%s12561_s13 + $0xa0] sm:$0xff] }
 0x526   : > { %v10102_v5 = vpop.f32.mrb[242].mxu1  ;;  %v11508_v28 = vld [vmem:[%s12561_s13 + $0xa8] sm:$0xff] }
 0x527   : > { %11497 = vst.msk [vmem:[%s15742_s8 + $0x70] sm:$0xff] %vm1057_vm9, %v10427_v63  ;;  %v10273_v39 = vadd.f32 %v15726_v44, %v10218_v0  ;;  %v10219_v49 = vadd.f32 %v10102_v5, %v15685_v1  ;;  %v10104_v22 = vpop.f32.mrb[243].mxu1 }
 0x528   : > { %v10422_v57 = vld [vmem:[#allocation5 + $0xb0] sm:$0xff] }
 0x529   : > { %v10426_v32 = vadd.f32 %v11496_v6, %v10422_v57  ;;  %10321 = vst.msk [vmem:[#allocation5 + $0xc0] sm:$0xff] %vm1057_vm9, %v10273_v39  ;;  %v10274_v33 = vadd.f32 %v15726_v44, %v10219_v49 }
 0x52b   : > { %v10428_v20 = vmax.f32 %v10426_v32, 0.0  ;;  %10322 = vst.msk [vmem:[#allocation5 + $0xc8] sm:$0xff] %vm1057_vm9, %v10274_v33 }
 0x52c   : > { %v10107_v50 = vpop.f32.mrb[244].mxu1 }
 0x52d   : > { %11498 = vst.msk [vmem:[%s15742_s8 + $0x78] sm:$0xff] %vm1057_vm9, %v10428_v20  ;;  %v10109_v4 = vpop.f32.mrb[245].mxu1 }
 0x52e   : > { %v10110_v35 = vpop.f32.mrb[246].mxu1 }
 0x52f   : > { %v10221_v1 = vadd.f32 %v10110_v35, %v15688_v26  ;;  %v10112_v29 = vpop.f32.mrb[247].mxu1 }
 0x530   : > { %v10432_v19 = vld [vmem:[#allocation5 + $0xc0] sm:$0xff] }
 0x531   : > { %v10436_v21 = vadd.f32 %v11499_v42, %v10432_v19  ;;  %v10276_v25 = vadd.f32 %v15726_v44, %v10221_v1  ;;  %v11511_v42 = vld [vmem:[%s12561_s13 + $0xb0] sm:$0xff] }
 0x532   : > { %v10433_v24 = vld [vmem:[#allocation5 + $0xc8] sm:$0xff] }
 0x533   : > { %v10438_v43 = vmax.f32 %v10436_v21, 0.0  ;;  %v10437_v18 = vadd.f32 %v11500_v31, %v10433_v24  ;;  %10324 = vst.msk [vmem:[#allocation5 + $0xd8] sm:$0xff] %vm1057_vm9, %v10276_v25 }
 0x534   : > { %v10115_v41 = vpop.f32.mrb[248].mxu1 }
 0x535   : > { %11501 = vst.msk [vmem:[%s15742_s8 + $0x80] sm:$0xff] %vm1057_vm9, %v10438_v43  ;;  %v10439_v30 = vmax.f32 %v10437_v18, 0.0  ;;  %v10222_v26 = vadd.f32 %v10115_v41, %v15690_v61  ;;  %v10117_v3 = vpop.f32.mrb[249].mxu1  ;;  %v11504_v61 = vld [vmem:[%s12561_s13 + $0x98] sm:$0xff] }
 0x536   : > { %v10118_v8 = vpop.f32.mrb[250].mxu1 }
 0x537   : > { %11502 = vst.msk [vmem:[%s15742_s8 + $0x88] sm:$0xff] %vm1057_vm9, %v10439_v30  ;;  %v10277_v56 = vadd.f32 %v15726_v44, %v10222_v26  ;;  %v10120_v9 = vpop.f32.mrb[251].mxu1 }
 0x539   : > { %10325 = vst.msk [vmem:[#allocation5 + $0xe0] sm:$0xff] %vm1057_vm9, %v10277_v56  ;;  %v11515_v56 = vld [vmem:[%s12561_s13 + $0xc0] sm:$0xff] }
 0x53a   : > { %v10443_v17 = vld [vmem:[#allocation5 + $0xd8] sm:$0xff] }
 0x53b   : > { %v10447_v27 = vadd.f32 %v11503_v15, %v10443_v17 }
 0x53c   : > { %v10123_v45 = vpop.f32.mrb[252].mxu1 }
 0x53d   : > { %v10449_v54 = vmax.f32 %v10447_v27, 0.0  ;;  %v10224_v16 = vadd.f32 %v10123_v45, %v15694_v36  ;;  %v10125_v23 = vpop.f32.mrb[253].mxu1  ;;  %v11516_v27 = vld [vmem:[%s12561_s13 + $0xc8] sm:$0xff] }
 0x53e   : > { %v10126_v37 = vpop.f32.mrb[254].mxu1 }
 0x53f   : > { %11505 = vst.msk [vmem:[%s15742_s8 + $0x90] sm:$0xff] %vm1057_vm9, %v10449_v54  ;;  %v10279_v13 = vadd.f32 %v15726_v44, %v10224_v16  ;;  %v10225_v7 = vadd.f32 %v10126_v37, %v15696_v51  ;;  %v10128_v60 = vpop.f32.mrb[255].mxu1 }
 0x540   : > { %v10444_v40 = vld [vmem:[#allocation5 + $0xe0] sm:$0xff] }
 0x541   : > { %v10448_v59 = vadd.f32 %v11504_v61, %v10444_v40  ;;  %10327 = vst.msk [vmem:[#allocation5 + $0xf0] sm:$0xff] %vm1057_vm9, %v10279_v13  ;;  %v10280_v53 = vadd.f32 %v15726_v44, %v10225_v7 }
 0x543   : > { %v10450_v2 = vmax.f32 %v10448_v59, 0.0  ;;  %10328 = vst.msk [vmem:[#allocation5 + $0xf8] sm:$0xff] %vm1057_vm9, %v10280_v53  ;;  %v11519_v53 = vld [vmem:[%s12561_s13 + $0xd0] sm:$0xff] }
 0x544   : > { %v10131_v36 = vpop.f32.mrb[0].mxu1 }
 0x545   : > { %11506 = vst.msk [vmem:[%s15742_s8 + $0x98] sm:$0xff] %vm1057_vm9, %v10450_v2  ;;  %v10133_v55 = vpop.f32.mrb[1].mxu1 }
 0x546   : > { %v10134_v48 = vpop.f32.mrb[2].mxu1 }
 0x547   : > { %v10227_v51 = vadd.f32 %v10134_v48, %v15699_v14  ;;  %v10136_v63 = vpop.f32.mrb[3].mxu1 }
 0x548   : > { %v10454_v0 = vld [vmem:[#allocation5 + $0xf0] sm:$0xff] }
 0x549   : > { %v10458_v6 = vadd.f32 %v11507_v12, %v10454_v0  ;;  %v10282_v5 = vadd.f32 %v15726_v44, %v10227_v51 }
 0x54a   : > { %v10455_v39 = vld [vmem:[#allocation5 + $0xf8] sm:$0xff] }
 0x54b   : > { %v10460_v49 = vmax.f32 %v10458_v6, 0.0  ;;  %v10459_v22 = vadd.f32 %v11508_v28, %v10455_v39  ;;  %10330 = vst.msk [vmem:[#allocation5 + $0x108] sm:$0xff] %vm1057_vm9, %v10282_v5 }
 0x54c   : > { %v10139_v57 = vpop.f32.mrb[4].mxu1 }
 0x54d   : > { %11509 = vst.msk [vmem:[%s15742_s8 + $0xa0] sm:$0xff] %vm1057_vm9, %v10460_v49  ;;  %v10461_v32 = vmax.f32 %v10459_v22, 0.0  ;;  %v10228_v14 = vadd.f32 %v10139_v57, %v15702_v52  ;;  %v10141_v33 = vpop.f32.mrb[5].mxu1  ;;  %v11512_v52 = vld [vmem:[%s12561_s13 + $0xb8] sm:$0xff] }
 0x54e   : > { %v10142_v20 = vpop.f32.mrb[6].mxu1 }
 0x54f   : > { %11510 = vst.msk [vmem:[%s15742_s8 + $0xa8] sm:$0xff] %vm1057_vm9, %v10461_v32  ;;  %v10283_v50 = vadd.f32 %v15726_v44, %v10228_v14  ;;  %v10144_v4 = vpop.f32.mrb[7].mxu1  ;;  %v11523_v32 = vld [vmem:[%s12561_s13 + $0xe0] sm:$0xff] }
 0x551   : > { %10331 = vst.msk [vmem:[#allocation5 + $0x110] sm:$0xff] %vm1057_vm9, %v10283_v50  ;;  %v11524_v50 = vld [vmem:[%s12561_s13 + $0xe8] sm:$0xff] }
 0x552   : > { %v10465_v35 = vld [vmem:[#allocation5 + $0x108] sm:$0xff] }
 0x553   : > { %v10469_v1 = vadd.f32 %v11511_v42, %v10465_v35 }
 0x554   : > { %v10147_v29 = vpop.f32.mrb[8].mxu1 }
 0x555   : > { %v10471_v19 = vmax.f32 %v10469_v1, 0.0  ;;  %v10230_v31 = vadd.f32 %v10147_v29, %v15705_v10  ;;  %v10149_v21 = vpop.f32.mrb[9].mxu1 }
 0x556   : > { %v10150_v25 = vpop.f32.mrb[10].mxu1 }
 0x557   : > { %11513 = vst.msk [vmem:[%s15742_s8 + $0xb0] sm:$0xff] %vm1057_vm9, %v10471_v19  ;;  %v10285_v24 = vadd.f32 %v15726_v44, %v10230_v31  ;;  %v10231_v43 = vadd.f32 %v10150_v25, %v15707_v47  ;;  %v10152_v18 = vpop.f32.mrb[11].mxu1 }
 0x558   : > { %v10466_v41 = vld [vmem:[#allocation5 + $0x110] sm:$0xff] }
 0x559   : > { %v10470_v30 = vadd.f32 %v11512_v52, %v10466_v41  ;;  %10333 = vst.msk [vmem:[#allocation5 + $0x120] sm:$0xff] %vm1057_vm9, %v10285_v24  ;;  %v10286_v26 = vadd.f32 %v15726_v44, %v10231_v43  ;;  %v11527_v43 = vld [vmem:[%s12561_s13 + $0xf0] sm:$0xff] }
 0x55b   : > { %v10472_v3 = vmax.f32 %v10470_v30, 0.0  ;;  %10334 = vst.msk [vmem:[#allocation5 + $0x128] sm:$0xff] %vm1057_vm9, %v10286_v26  ;;  %v11528_v26 = vld [vmem:[%s12561_s13 + $0xf8] sm:$0xff] }
 0x55c   : > { %v10155_v10 = vpop.f32.mrb[12].mxu1 }
 0x55d   : > { %11514 = vst.msk [vmem:[%s15742_s8 + $0xb8] sm:$0xff] %vm1057_vm9, %v10472_v3  ;;  %v10157_v8 = vpop.f32.mrb[13].mxu1 }
 0x55e   : > { %v10158_v9 = vpop.f32.mrb[14].mxu1 }
 0x55f   : > { %v10233_v47 = vadd.f32 %v10158_v9, %v15710_v46  ;;  %v10160_v15 = vpop.f32.mrb[15].mxu1 }
 0x560   : > { %v10476_v17 = vld [vmem:[#allocation5 + $0x120] sm:$0xff] }
 0x561   : > { %v10480_v45 = vadd.f32 %v11515_v56, %v10476_v17  ;;  %v10288_v54 = vadd.f32 %v15726_v44, %v10233_v47 }
 0x562   : > { %v10477_v16 = vld [vmem:[#allocation5 + $0x128] sm:$0xff] }
 0x563   : > { %v10482_v23 = vmax.f32 %v10480_v45, 0.0  ;;  %v10481_v61 = vadd.f32 %v11516_v27, %v10477_v16  ;;  %10336 = vst.msk [vmem:[#allocation5 + $0x138] sm:$0xff] %vm1057_vm9, %v10288_v54 }
 0x564   : > { %v10163_v37 = vpop.f32.mrb[16].mxu1 }
 0x565   : > { %11517 = vst.msk [vmem:[%s15742_s8 + $0xc0] sm:$0xff] %vm1057_vm9, %v10482_v23  ;;  %v10483_v13 = vmax.f32 %v10481_v61, 0.0  ;;  %v10234_v46 = vadd.f32 %v10163_v37, %v15713_v38  ;;  %v10165_v7 = vpop.f32.mrb[17].mxu1  ;;  %v11520_v38 = vld [vmem:[%s12561_s13 + $0xd8] sm:$0xff]  ;;  %s15936_s13 = scalar_lea.sflag [#allocation7], %s215_s6 }
 0x566   : > { %v10166_v60 = vpop.f32.mrb[18].mxu1 }
 0x567   : > { %11518 = vst.msk [vmem:[%s15742_s8 + $0xc8] sm:$0xff] %vm1057_vm9, %v10483_v13  ;;  %v10289_v40 = vadd.f32 %v15726_v44, %v10234_v46  ;;  %v10168_v59 = vpop.f32.mrb[19].mxu1 }
 0x569   : > { %10337 = vst.msk [vmem:[#allocation5 + $0x140] sm:$0xff] %vm1057_vm9, %v10289_v40 }
 0x56a   : > { %v10487_v2 = vld [vmem:[#allocation5 + $0x138] sm:$0xff] }
 0x56b   : > { %v10491_v36 = vadd.f32 %v11519_v53, %v10487_v2 }
 0x56c   : > { %v10171_v55 = vpop.f32.mrb[20].mxu1 }
 0x56d   : > { %v10493_v12 = vmax.f32 %v10491_v36, 0.0  ;;  %v10236_v48 = vadd.f32 %v10171_v55, %v15715_v62  ;;  %v10173_v51 = vpop.f32.mrb[21].mxu1 }
 0x56e   : > { %v10174_v63 = vpop.f32.mrb[22].mxu1 }
 0x56f   : > { %11521 = vst.msk [vmem:[%s15742_s8 + $0xd0] sm:$0xff] %vm1057_vm9, %v10493_v12  ;;  %v10291_v0 = vadd.f32 %v15726_v44, %v10236_v48  ;;  %v10237_v28 = vadd.f32 %v10174_v63, %v15717_v11  ;;  %v10176_v6 = vpop.f32.mrb[23].mxu1 }
 0x570   : > { %v10488_v5 = vld [vmem:[#allocation5 + $0x140] sm:$0xff] }
 0x571   : > { %v10492_v39 = vadd.f32 %v11520_v38, %v10488_v5  ;;  %10339 = vst.msk [vmem:[#allocation5 + $0x150] sm:$0xff] %vm1057_vm9, %v10291_v0  ;;  %v10292_v49 = vadd.f32 %v15726_v44, %v10237_v28 }
 0x573   : > { %v10494_v22 = vmax.f32 %v10492_v39, 0.0  ;;  %10340 = vst.msk [vmem:[#allocation5 + $0x158] sm:$0xff] %vm1057_vm9, %v10292_v49 }
 0x574   : > { %v10179_v62 = vpop.f32.mrb[24].mxu1 }
 0x575   : > { %11522 = vst.msk [vmem:[%s15742_s8 + $0xd8] sm:$0xff] %vm1057_vm9, %v10494_v22  ;;  %v10181_v57 = vpop.f32.mrb[25].mxu1 }
 0x576   : > { %v10182_v14 = vpop.f32.mrb[26].mxu1 }
 0x577   : > { %v10239_v11 = vadd.f32 %v10182_v14, %v15719_v58  ;;  %v10184_v33 = vpop.f32.mrb[27].mxu1 }
 0x578   : > { %v10498_v20 = vld [vmem:[#allocation5 + $0x150] sm:$0xff] }
 0x579   : > { %v10502_v4 = vadd.f32 %v11523_v32, %v10498_v20  ;;  %v10294_v42 = vadd.f32 %v15726_v44, %v10239_v11 }
 0x57a   : > { %v10499_v35 = vld [vmem:[#allocation5 + $0x158] sm:$0xff] }
 0x57b   : > { %v10504_v1 = vmax.f32 %v10502_v4, 0.0  ;;  %v10503_v29 = vadd.f32 %v11524_v50, %v10499_v35  ;;  %10342 = vst.msk [vmem:[#allocation5 + $0x168] sm:$0xff] %vm1057_vm9, %v10294_v42 }
 0x57c   : > { %v10187_v19 = vpop.f32.mrb[28].mxu1 }
 0x57d   : > { %11525 = vst.msk [vmem:[%s15742_s8 + $0xe0] sm:$0xff] %vm1057_vm9, %v10504_v1  ;;  %v10505_v58 = vmax.f32 %v10503_v29, 0.0  ;;  %v10240_v31 = vadd.f32 %v10187_v19, %v15721_v34  ;;  %v10189_v21 = vpop.f32.mrb[29].mxu1 }
 0x57e   : > { %v10190_v52 = vpop.f32.mrb[30].mxu1 }
 0x57f   : > { %11526 = vst.msk [vmem:[%s15742_s8 + $0xe8] sm:$0xff] %vm1057_vm9, %v10505_v58  ;;  %v10295_v25 = vadd.f32 %v15726_v44, %v10240_v31  ;;  %v10192_v24 = vpop.f32.mrb[31].mxu1 }
 0x581   : > { %10343 = vst.msk [vmem:[#allocation5 + $0x170] sm:$0xff] %vm1057_vm9, %v10295_v25 }
 0x582   : > { %v10509_v18 = vld [vmem:[#allocation5 + $0x168] sm:$0xff] }
 0x583   : > { %v10513_v41 = vadd.f32 %v11527_v43, %v10509_v18 }
 0x585   : > { %v10515_v30 = vmax.f32 %v10513_v41, 0.0 }
 0x587   : > { %11529 = vst.msk [vmem:[%s15742_s8 + $0xf0] sm:$0xff] %vm1057_vm9, %v10515_v30 }
 0x588   : > { %v10510_v34 = vld [vmem:[#allocation5 + $0x170] sm:$0xff] }
 0x589   : > { %v10514_v3 = vadd.f32 %v11528_v26, %v10510_v34 }
 0x58b   : > { %v10516_v44 = vmax.f32 %v10514_v3, 0.0 }
 0x58d   : > { %11530 = vst.msk [vmem:[%s15742_s8 + $0xf8] sm:$0xff] %vm1057_vm9, %v10516_v44 }
 0x58e   : > { %12192 = shalt.err (!%p12189_p3)
}
 0x58f   : > { %s12193_s23 = scalar_lea.hbm %s15928_s14, 4096  ;;  %s12197_s30 = scalar_lea.hbm %s15982_s5, 8192 }
 0x590   : > { %p12194_p4 = scmp.ne.s32.totalorder %s15928_s14, %s12193_s23  ;;  %p12198_p9 = scmp.lt.u32.totalorder %s15928_s14, %s15982_s5 }
 0x591   : > { %p12199_p10 = scmp.lt.u32.totalorder %s12197_s30, %s12193_s23  ;;  %p12201_p12 = scmp.lt.u32.totalorder %s12193_s23, %s15928_s14 }
 0x592   : > { %p12195_p7 = pnand %p12194_p4, %p12316_p5 }
 0x593   : > { %p12200_p11 = por %p12199_p10, %p12198_p9 }
 0x594   : > { %p12196_p8 = pneg %p12195_p7 }
 0x595   : > { %p12202_p13 = por %p12201_p12, %p12200_p11 }
 0x597   : > { %p12203_p0 = pnand %p12202_p13, %p12196_p8 }
 0x599   : > { %12206 = shalt.err (!%p12203_p0)
}
 0x59a   : > { %s12246_s8 = smov 128   ;;  %s12247_s9 = smov 8  }
 0x59b   : > { %11618 = dma.vmem_to_hbm [thread:$0]  (%p12316_p5), %s15930_s10, 4096, %s15928_s14, %s15936_s13, %s12246_s8, %s12246_s8, %s12247_s9  }
 0x59c PF: > { %p11624_p1 = scmp.ge.s32.totalorder %s12241_s21, 2  ;;  %s10549_s11 = sand.u32 1, %s12229_s18  }
 0x59d   : > { %s10550_s12 = scalar_lea.sflag [#allocation7], %s10549_s11 }
 0x59e   : > { %p11621_p2 = pnand %p11624_p1, %p12320_p6 }
 0x5a0   : > { %12224 = dma.done.wait (!%p11621_p2), %s10550_s12, 4096  }
 0x5a1   : > { %12226 = vsyncadd (!%p11621_p2), %s10550_s12, 4294963200  ;;  %p15_p3 = scmp.ge.s32.totalorder %s12303_s24, 4   ;;  %s16010_s18 = smov %s12233_s19 }
 0x5a2   : > { %s16011_s19 = smov %s12237_s20  ;;  %s16012_s20 = smov %s12314_s27 }
 0x5a3   : > { %s16013_s21 = smov %s12303_s24  ;;  %17 = sbr.rel (!%p15_p3) target bundleno = 3 (0x3), region = 109 }
 0x5aa   :  { %10555 = vsyncpa [#allocation7], 1 }
 0x5ab   :  { %10557 = vsyncpa [#allocation7 + $0x1], 1 }

</bundles_post_ra>
